<compile_context>
chip_gen: v7x
topology: tpu7x:2x2x1
jax: 0.10.0
libtpu: 0.0.40
codegen_flags: <defaults>
</compile_context>

<pallas_src>
import jax
import jax.numpy as jnp
from jax.experimental import pallas as pl
from jax.experimental.pallas import tpu as pltpu


_TAPS = [(ky, kx) for ky in range(3) for kx in range(3)]  # row-major 3x3 taps
_BN_EPS = 1e-5


def _full_spec(shape):
    # whole-array block (single grid step), resident in VMEM
    return pl.BlockSpec(shape, lambda *_: (0,) * len(shape))


def _bn_relu_maxpool(acc, gamma_ref, beta_ref, N, H, W, C):
    """Train-mode BatchNorm (centered batch stats, eps=1e-5) + ReLU + MaxPool2x2.

    acc: (N*H*W, C) f32 conv output, channels on lanes.
    Returns (N, H//2, W//2, C) f32.
    """
    mean = jnp.mean(acc, axis=0, keepdims=True)          # (1, C)
    cen = acc - mean
    var = jnp.mean(cen * cen, axis=0, keepdims=True)     # centered: no cancellation
    scale = gamma_ref[...] * jax.lax.rsqrt(var + _BN_EPS)
    y = jnp.maximum(cen * scale + beta_ref[...], 0.0)    # BN + ReLU

    # MaxPool2d(2,2): two pairwise maxes (W pairs then H pairs); C stays on lanes.
    y4 = y.reshape(N, H, W // 2, 2, C)
    yw = jnp.maximum(y4[:, :, :, 0, :], y4[:, :, :, 1, :])
    y5 = yw.reshape(N, H // 2, 2, W // 2, C)
    return jnp.maximum(y5[:, :, 0, :, :], y5[:, :, 1, :, :])


def _conv_bn_relu_pool(act, w_ref, gamma_ref, beta_ref, xp_ref):
    """One ConvNet block (Cin >= 32), entirely in VMEM.

    act    : (N, H, W, Cin) f32 activation value
    w_ref  : (9, Cin, Cout) bf16 per-tap conv weight (VMEM input or DMA'd buffer)
    xp_ref : (N, H+2, W+2, Cin) f32 VMEM scratch (zero-padded activation)
    returns: (N, H//2, W//2, Cout) f32
    """
    N, H, W, Cin = act.shape
    Cout = w_ref.shape[-1]
    M = N * H * W

    # Zero only the 1-px halo (interior is overwritten right after).
    xp_ref[:, 0:1, :, :] = jnp.zeros((N, 1, W + 2, Cin), jnp.float32)
    xp_ref[:, H + 1:H + 2, :, :] = jnp.zeros((N, 1, W + 2, Cin), jnp.float32)
    xp_ref[:, :, 0:1, :] = jnp.zeros((N, H + 2, 1, Cin), jnp.float32)
    xp_ref[:, :, W + 1:W + 2, :] = jnp.zeros((N, H + 2, 1, Cin), jnp.float32)
    xp_ref[:, 1:H + 1, 1:W + 1, :] = act

    # Conv3x3 (padding=1) as 9 accumulated MXU matmuls, bf16 operands / f32 acc.
    # Tap windows are consumed directly — no im2col scratch, hence no
    # lane-misaligned patch stores.  Conv bias omitted: train-mode BN
    # mean-centering cancels it exactly.
    acc = None
    for t, (ky, kx) in enumerate(_TAPS):
        win = xp_ref[:, ky:ky + H, kx:kx + W, :].reshape(M, Cin)
        part = jnp.dot(win.astype(jnp.bfloat16), w_ref[t],
                       preferred_element_type=jnp.float32)
        acc = part if acc is None else acc + part

    return _bn_relu_maxpool(acc, gamma_ref, beta_ref, N, H, W, Cout)


def make_convnet_kernel(nb, block0_dims, defer, defer_head):
    N, H0, W0 = block0_dims
    n_defer = sum(defer) + (1 if defer_head else 0)

    def kernel(*args):
        idx = 0
        patch1_ref = args[idx]; idx += 1
        w_refs, g_refs, b_refs = [], [], []
        for _ in range(nb):
            w_refs.append(args[idx])
            g_refs.append(args[idx + 1])
            b_refs.append(args[idx + 2])
            idx += 3
        head_w_ref = args[idx]; head_b_ref = args[idx + 1]; idx += 2
        out_ref = args[idx]; idx += 1
        scratch = args[idx:]

        s = 0
        xp_refs = scratch[s:s + nb - 1]; s += nb - 1
        wbuf_refs = [None] * nb
        for i in range(nb):
            if defer[i]:
                wbuf_refs[i] = scratch[s]; s += 1
        head_wbuf = None
        if defer_head:
            head_wbuf = scratch[s]; s += 1
        sem = scratch[s] if n_defer else None

        # Kick off HBM->VMEM DMAs for the late-block / head weights now so they
        # overlap with the early blocks; wait only right before each use.
        copies, d = {}, 0
        for i in range(nb):
            if defer[i]:
                copies[i] = pltpu.make_async_copy(w_refs[i], wbuf_refs[i], sem.at[d])
                copies[i].start()
                d += 1
        head_copy = None
        if defer_head:
            head_copy = pltpu.make_async_copy(head_w_ref, head_wbuf, sem.at[d])
            head_copy.start()
            d += 1

        # --- block 0 (Cin=1): im2col done in the wrapper -> one MXU matmul ---
        c1 = w_refs[0].shape[-1]
        acc0 = jnp.dot(patch1_ref[...], w_refs[0][...],
                       preferred_element_type=jnp.float32)     # (N*H0*W0, c1)
        act = _bn_relu_maxpool(acc0, g_refs[0], b_refs[0], N, H0, W0, c1)

        # --- blocks 1..nb-1 ---
        for i in range(1, nb):
            if defer[i]:
                copies[i].wait()
                w_i = wbuf_refs[i]
            else:
                w_i = w_refs[i]
            act = _conv_bn_relu_pool(act, w_i, g_refs[i], b_refs[i], xp_refs[i - 1])

        # --- head: AdaptiveAvgPool2d(1) + flatten + Linear ---
        Nf, Hf, Wf, Cf = act.shape
        pooled = jnp.mean(act.reshape(Nf, Hf * Wf, Cf), axis=1)   # (N, Cf) f32
        if defer_head:
            head_copy.wait()
            hw_ref = head_wbuf
        else:
            hw_ref = head_w_ref
        out_ref[...] = (jnp.dot(pooled.astype(jnp.bfloat16), hw_ref[...],
                                preferred_element_type=jnp.float32)
                        + head_b_ref[...])

    return kernel


def convnet_forward(x_nchw, params):
    blocks = params["blocks"]
    nb = len(blocks)
    N, Cin0, H, W = x_nchw.shape
    assert Cin0 == 1, "ConvNet expects single-channel input (Cin=1)."
    assert H % (2 ** nb) == 0 and W % (2 ** nb) == 0, (
        f"H, W must be divisible by 2**num_blocks (got H={H}, W={W}, blocks={nb}).")
    num_classes = params["head_w"].shape[-1]

    # Block-0 (Cin=1) im2col in the wrapper: tiny gather, overlaps launch + DMA.
    x = x_nchw.reshape(N, H, W, Cin0).astype(jnp.float32)
    xpad = jnp.pad(x, ((0, 0), (1, 1), (1, 1), (0, 0)))
    taps = [xpad[:, ky:ky + H, kx:kx + W, :] for (ky, kx) in _TAPS]
    patch1 = jnp.concatenate(taps, axis=-1).reshape(N * H * W, 9 * Cin0)
    patch1 = patch1.astype(jnp.bfloat16)

    defer = [i >= 2 for i in range(nb)]           # late-block weights via manual DMA
    defer_head = nb >= 3
    n_defer = sum(defer) + (1 if defer_head else 0)

    inputs, in_specs = [patch1], [_full_spec(patch1.shape)]
    scratch_xp, scratch_wbuf = [], []
    h, w, cin = H, W, Cin0
    for i, p in enumerate(blocks):
        cout = p["w"].shape[-1]
        if i == 0:
            w_i = p["w"].reshape(9 * cin, cout).astype(jnp.bfloat16)
        else:
            w_i = p["w"].reshape(9, cin, cout).astype(jnp.bfloat16)
        gamma = p["gamma"].reshape(1, cout).astype(jnp.float32)
        beta = p["beta"].reshape(1, cout).astype(jnp.float32)
        inputs += [w_i, gamma, beta]
        if defer[i]:
            in_specs.append(pl.BlockSpec(memory_space=pl.ANY))
            scratch_wbuf.append(pltpu.VMEM(w_i.shape, jnp.bfloat16))
        else:
            in_specs.append(_full_spec(w_i.shape))
        in_specs += [_full_spec(gamma.shape), _full_spec(beta.shape)]
        if i >= 1:
            scratch_xp.append(pltpu.VMEM((N, h + 2, w + 2, cin), jnp.float32))
        h, w, cin = h // 2, w // 2, cout

    head_w = params["head_w"].astype(jnp.bfloat16)             # (C_final, classes)
    head_b = params["head_b"].reshape(1, num_classes).astype(jnp.float32)
    inputs += [head_w, head_b]
    if defer_head:
        in_specs.append(pl.BlockSpec(memory_space=pl.ANY))
        scratch_wbuf.append(pltpu.VMEM(head_w.shape, jnp.bfloat16))
    else:
        in_specs.append(_full_spec(head_w.shape))
    in_specs.append(_full_spec(head_b.shape))

    scratch_shapes = scratch_xp + scratch_wbuf
    if n_defer:
        scratch_shapes.append(pltpu.SemaphoreType.DMA((n_defer,)))

    out_shape = (N, num_classes)
    return pl.pallas_call(
        make_convnet_kernel(nb, (N, H, W), tuple(defer), defer_head),
        grid=(1,),
        in_specs=in_specs,
        out_specs=_full_spec(out_shape),
        out_shape=jax.ShapeDtypeStruct(out_shape, jnp.float32),
        scratch_shapes=scratch_shapes,
        compiler_params=pltpu.CompilerParams(
            dimension_semantics=("arbitrary",)),
    )(*inputs)


def init_params(key, num_blocks=4, num_classes=8):
    """Deterministic synthetic f32 parameters matching ConvNet.__init__ shapes."""
    params = {"blocks": []}
    cin, cout = 1, 32
    for _ in range(num_blocks):
        key, k1, k2 = jax.random.split(key, 3)
        # torch Conv2d weight is (Cout, Cin, 3, 3); stored here as (3, 3, Cin, Cout)
        wk = jax.random.normal(k1, (3, 3, cin, cout), jnp.float32)
        wk = wk * (1.0 / (3.0 * 3.0 * cin) ** 0.5)
        b = jax.random.normal(k2, (cout,), jnp.float32) * 0.01
        params["blocks"].append({
            "w": wk,
            # conv bias kept for module parity; mathematically cancelled by
            # train-mode BatchNorm mean-centering, so it is not fed to the kernel.
            "b": b,
            "gamma": jnp.ones((cout,), jnp.float32),   # BN weight init
            "beta": jnp.zeros((cout,), jnp.float32),   # BN bias init
        })
        cin, cout = cout, cout * 2
    key, k1, k2 = jax.random.split(key, 3)
    # torch Linear weight is (num_classes, cin); stored transposed (cin, classes)
    params["head_w"] = (jax.random.normal(k1, (cin, num_classes), jnp.float32)
                        * (1.0 / cin ** 0.5))
    params["head_b"] = jax.random.normal(k2, (num_classes,), jnp.float32) * 0.01
    return params


if __name__ == "__main__":
    key = jax.random.PRNGKey(0)
    pkey, xkey = jax.random.split(key)
    params = init_params(pkey, num_blocks=4, num_classes=8)

    # input: (batch=2, channels=1, H=16, W=16) — divisible by 2**num_blocks
    x = jax.random.normal(xkey, (2, 1, 16, 16), jnp.float32)

    logits = jax.jit(convnet_forward)(x, params)
    logits = jax.block_until_ready(logits)
    assert logits.shape == (2, 8), logits.shape
    print("KERNEL_OK")
</pallas_src>

<mosaic_0001>
module attributes {stable_mosaic.version = 11 : i64} {
  func.func @kernel(%arg0: i32, %arg1: memref<512x9xbf16, #tpu.memory_space<vmem>>, %arg2: memref<9x32xbf16, #tpu.memory_space<vmem>>, %arg3: memref<1x32xf32, #tpu.memory_space<vmem>>, %arg4: memref<1x32xf32, #tpu.memory_space<vmem>>, %arg5: memref<9x32x64xbf16, #tpu.memory_space<vmem>>, %arg6: memref<1x64xf32, #tpu.memory_space<vmem>>, %arg7: memref<1x64xf32, #tpu.memory_space<vmem>>, %arg8: memref<9x64x128xbf16, #tpu.memory_space<any>>, %arg9: memref<1x128xf32, #tpu.memory_space<vmem>>, %arg10: memref<1x128xf32, #tpu.memory_space<vmem>>, %arg11: memref<9x128x256xbf16, #tpu.memory_space<any>>, %arg12: memref<1x256xf32, #tpu.memory_space<vmem>>, %arg13: memref<1x256xf32, #tpu.memory_space<vmem>>, %arg14: memref<256x8xbf16, #tpu.memory_space<any>>, %arg15: memref<1x8xf32, #tpu.memory_space<vmem>>, %arg16: memref<2x8xf32, #tpu.memory_space<vmem>>, %arg17: memref<2x10x10x32xf32, #tpu.memory_space<vmem>>, %arg18: memref<2x6x6x64xf32, #tpu.memory_space<vmem>>, %arg19: memref<2x4x4x128xf32, #tpu.memory_space<vmem>>, %arg20: memref<9x64x128xbf16, #tpu.memory_space<vmem>>, %arg21: memref<9x128x256xbf16, #tpu.memory_space<vmem>>, %arg22: memref<256x8xbf16, #tpu.memory_space<vmem>>, %arg23: memref<3x!tpu.dma_semaphore, #tpu.memory_space<semaphore_mem>>) attributes {dimension_semantics = [#tpu.dimension_semantics<arbitrary>], iteration_bounds = array<i64: 1>, scalar_prefetch = 0 : i64, scratch_operands = 7 : i64, tpu.core_type = #tpu.core_type<tc>, window_params = [{pipeline_mode = #tpu.pipeline_mode<synchronous>, transform_indices = @transform_0, window_bounds = array<i64: 512, 9>}, {pipeline_mode = #tpu.pipeline_mode<synchronous>, transform_indices = @transform_1, window_bounds = array<i64: 9, 32>}, {pipeline_mode = #tpu.pipeline_mode<synchronous>, transform_indices = @transform_2, window_bounds = array<i64: 1, 32>}, {pipeline_mode = #tpu.pipeline_mode<synchronous>, transform_indices = @transform_3, window_bounds = array<i64: 1, 32>}, {pipeline_mode = #tpu.pipeline_mode<synchronous>, transform_indices = @transform_4, window_bounds = array<i64: 9, 32, 64>}, {pipeline_mode = #tpu.pipeline_mode<synchronous>, transform_indices = @transform_5, window_bounds = array<i64: 1, 64>}, {pipeline_mode = #tpu.pipeline_mode<synchronous>, transform_indices = @transform_6, window_bounds = array<i64: 1, 64>}, {}, {pipeline_mode = #tpu.pipeline_mode<synchronous>, transform_indices = @transform_8, window_bounds = array<i64: 1, 128>}, {pipeline_mode = #tpu.pipeline_mode<synchronous>, transform_indices = @transform_9, window_bounds = array<i64: 1, 128>}, {}, {pipeline_mode = #tpu.pipeline_mode<synchronous>, transform_indices = @transform_11, window_bounds = array<i64: 1, 256>}, {pipeline_mode = #tpu.pipeline_mode<synchronous>, transform_indices = @transform_12, window_bounds = array<i64: 1, 256>}, {}, {pipeline_mode = #tpu.pipeline_mode<synchronous>, transform_indices = @transform_14, window_bounds = array<i64: 1, 8>}, {pipeline_mode = #tpu.pipeline_mode<synchronous>, transform_indices = @transform_15, window_bounds = array<i64: 2, 8>}]} {
    %c0_i32 = arith.constant 0 : i32
    %0 = tpu.memref_slice %arg23[%c0_i32] : memref<3x!tpu.dma_semaphore, #tpu.memory_space<semaphore_mem>> -> memref<1x!tpu.dma_semaphore, #tpu.memory_space<semaphore_mem>>
    %1 = tpu.memref_squeeze %0 : memref<1x!tpu.dma_semaphore, #tpu.memory_space<semaphore_mem>> -> memref<!tpu.dma_semaphore, #tpu.memory_space<semaphore_mem>>
    tpu.enqueue_dma source(%arg8 : memref<9x64x128xbf16, #tpu.memory_space<any>>) target(%arg20 : memref<9x64x128xbf16, #tpu.memory_space<vmem>>) target_semaphore(%1 : memref<!tpu.dma_semaphore, #tpu.memory_space<semaphore_mem>>)
    %c1_i32 = arith.constant 1 : i32
    %2 = tpu.memref_slice %arg23[%c1_i32] : memref<3x!tpu.dma_semaphore, #tpu.memory_space<semaphore_mem>> -> memref<1x!tpu.dma_semaphore, #tpu.memory_space<semaphore_mem>>
    %3 = tpu.memref_squeeze %2 : memref<1x!tpu.dma_semaphore, #tpu.memory_space<semaphore_mem>> -> memref<!tpu.dma_semaphore, #tpu.memory_space<semaphore_mem>>
    tpu.enqueue_dma source(%arg11 : memref<9x128x256xbf16, #tpu.memory_space<any>>) target(%arg21 : memref<9x128x256xbf16, #tpu.memory_space<vmem>>) target_semaphore(%3 : memref<!tpu.dma_semaphore, #tpu.memory_space<semaphore_mem>>)
    %c2_i32 = arith.constant 2 : i32
    %4 = tpu.memref_slice %arg23[%c2_i32] : memref<3x!tpu.dma_semaphore, #tpu.memory_space<semaphore_mem>> -> memref<1x!tpu.dma_semaphore, #tpu.memory_space<semaphore_mem>>
    %5 = tpu.memref_squeeze %4 : memref<1x!tpu.dma_semaphore, #tpu.memory_space<semaphore_mem>> -> memref<!tpu.dma_semaphore, #tpu.memory_space<semaphore_mem>>
    tpu.enqueue_dma source(%arg14 : memref<256x8xbf16, #tpu.memory_space<any>>) target(%arg22 : memref<256x8xbf16, #tpu.memory_space<vmem>>) target_semaphore(%5 : memref<!tpu.dma_semaphore, #tpu.memory_space<semaphore_mem>>)
    %c0 = arith.constant 0 : index
    %c0_0 = arith.constant 0 : index
    %6 = vector.load %arg1[%c0, %c0_0] : memref<512x9xbf16, #tpu.memory_space<vmem>>, vector<512x9xbf16>
    %c0_1 = arith.constant 0 : index
    %c0_2 = arith.constant 0 : index
    %7 = vector.load %arg2[%c0_1, %c0_2] : memref<9x32xbf16, #tpu.memory_space<vmem>>, vector<9x32xbf16>
    %cst = arith.constant dense<0.000000e+00> : vector<512x32xf32>
    %8 = tpu.matmul %6, %7, %cst {dimension_numbers = #tpu.dot_dimension_numbers<[1], [0], [0], [1], [0, 0, 1, 1], [], []>} : vector<512x9xbf16>, vector<9x32xbf16>, vector<512x32xf32> -> vector<512x32xf32>
    %cst_3 = arith.constant dense<0.000000e+00> : vector<32xf32>
    %9 = vector.multi_reduction <add>, %8, %cst_3 [0] : vector<512x32xf32> to vector<32xf32>
    %10 = vector.shape_cast %9 : vector<32xf32> to vector<1x32xf32>
    %cst_4 = arith.constant 5.120000e+02 : f32
    %11 = vector.broadcast %cst_4 : f32 to vector<1x32xf32>
    %12 = arith.divf %10, %11 : vector<1x32xf32>
    %13 = vector.broadcast %12 : vector<1x32xf32> to vector<512x32xf32>
    %14 = arith.subf %8, %13 : vector<512x32xf32>
    %15 = arith.mulf %14, %14 : vector<512x32xf32>
    %cst_5 = arith.constant dense<0.000000e+00> : vector<32xf32>
    %16 = vector.multi_reduction <add>, %15, %cst_5 [0] : vector<512x32xf32> to vector<32xf32>
    %17 = vector.shape_cast %16 : vector<32xf32> to vector<1x32xf32>
    %cst_6 = arith.constant 5.120000e+02 : f32
    %18 = vector.broadcast %cst_6 : f32 to vector<1x32xf32>
    %19 = arith.divf %17, %18 : vector<1x32xf32>
    %c0_7 = arith.constant 0 : index
    %c0_8 = arith.constant 0 : index
    %20 = vector.load %arg3[%c0_7, %c0_8] : memref<1x32xf32, #tpu.memory_space<vmem>>, vector<1x32xf32>
    %cst_9 = arith.constant 9.99999974E-6 : f32
    %21 = vector.broadcast %cst_9 : f32 to vector<1x32xf32>
    %22 = arith.addf %19, %21 : vector<1x32xf32>
    %23 = math.rsqrt %22 : vector<1x32xf32>
    %24 = arith.mulf %20, %23 : vector<1x32xf32>
    %25 = vector.broadcast %24 : vector<1x32xf32> to vector<512x32xf32>
    %26 = arith.mulf %14, %25 : vector<512x32xf32>
    %c0_10 = arith.constant 0 : index
    %c0_11 = arith.constant 0 : index
    %27 = vector.load %arg4[%c0_10, %c0_11] : memref<1x32xf32, #tpu.memory_space<vmem>>, vector<1x32xf32>
    %28 = vector.broadcast %27 : vector<1x32xf32> to vector<512x32xf32>
    %29 = arith.addf %26, %28 : vector<512x32xf32>
    %cst_12 = arith.constant 0.000000e+00 : f32
    %30 = vector.broadcast %cst_12 : f32 to vector<512x32xf32>
    %31 = arith.maximumf %29, %30 : vector<512x32xf32>
    %32 = vector.shape_cast %31 : vector<512x32xf32> to vector<2x16x8x2x32xf32>
    %33 = vector.extract_strided_slice %32 {offsets = [0, 0, 0, 0, 0], sizes = [2, 16, 8, 1, 32], strides = [1, 1, 1, 1, 1]} : vector<2x16x8x2x32xf32> to vector<2x16x8x1x32xf32>
    %34 = vector.shape_cast %33 : vector<2x16x8x1x32xf32> to vector<2x16x8x32xf32>
    %35 = vector.extract_strided_slice %32 {offsets = [0, 0, 0, 1, 0], sizes = [2, 16, 8, 1, 32], strides = [1, 1, 1, 1, 1]} : vector<2x16x8x2x32xf32> to vector<2x16x8x1x32xf32>
    %36 = vector.shape_cast %35 : vector<2x16x8x1x32xf32> to vector<2x16x8x32xf32>
    %37 = arith.maximumf %34, %36 : vector<2x16x8x32xf32>
    %38 = vector.shape_cast %37 : vector<2x16x8x32xf32> to vector<2x8x2x8x32xf32>
    %39 = vector.extract_strided_slice %38 {offsets = [0, 0, 0, 0, 0], sizes = [2, 8, 1, 8, 32], strides = [1, 1, 1, 1, 1]} : vector<2x8x2x8x32xf32> to vector<2x8x1x8x32xf32>
    %40 = vector.shape_cast %39 : vector<2x8x1x8x32xf32> to vector<2x8x8x32xf32>
    %41 = vector.extract_strided_slice %38 {offsets = [0, 0, 1, 0, 0], sizes = [2, 8, 1, 8, 32], strides = [1, 1, 1, 1, 1]} : vector<2x8x2x8x32xf32> to vector<2x8x1x8x32xf32>
    %42 = vector.shape_cast %41 : vector<2x8x1x8x32xf32> to vector<2x8x8x32xf32>
    %43 = arith.maximumf %40, %42 : vector<2x8x8x32xf32>
    %cst_13 = arith.constant 0.000000e+00 : f32
    %44 = vector.broadcast %cst_13 : f32 to vector<2x1x10x32xf32>
    %c0_14 = arith.constant 0 : index
    %c0_15 = arith.constant 0 : index
    %c0_16 = arith.constant 0 : index
    %c0_17 = arith.constant 0 : index
    %45 = vector.load %arg17[%c0_14, %c0_15, %c0_16, %c0_17] : memref<2x10x10x32xf32, #tpu.memory_space<vmem>>, vector<2x1x10x32xf32>
    tpu.vector_store %arg17[%c0_14, %c0_15, %c0_16, %c0_17], %44 {strides = array<i32>} : memref<2x10x10x32xf32, #tpu.memory_space<vmem>>, vector<2x1x10x32xf32>,
    %cst_18 = arith.constant 0.000000e+00 : f32
    %46 = vector.broadcast %cst_18 : f32 to vector<2x1x10x32xf32>
    %c0_19 = arith.constant 0 : index
    %c9 = arith.constant 9 : index
    %c0_20 = arith.constant 0 : index
    %c0_21 = arith.constant 0 : index
    %47 = vector.load %arg17[%c0_19, %c9, %c0_20, %c0_21] : memref<2x10x10x32xf32, #tpu.memory_space<vmem>>, vector<2x1x10x32xf32>
    tpu.vector_store %arg17[%c0_19, %c9, %c0_20, %c0_21], %46 {strides = array<i32>} : memref<2x10x10x32xf32, #tpu.memory_space<vmem>>, vector<2x1x10x32xf32>,
    %cst_22 = arith.constant 0.000000e+00 : f32
    %48 = vector.broadcast %cst_22 : f32 to vector<2x10x1x32xf32>
    %c0_23 = arith.constant 0 : index
    %c0_24 = arith.constant 0 : index
    %c0_25 = arith.constant 0 : index
    %c0_26 = arith.constant 0 : index
    %49 = vector.load %arg17[%c0_23, %c0_24, %c0_25, %c0_26] : memref<2x10x10x32xf32, #tpu.memory_space<vmem>>, vector<2x10x1x32xf32>
    tpu.vector_store %arg17[%c0_23, %c0_24, %c0_25, %c0_26], %48 {strides = array<i32>} : memref<2x10x10x32xf32, #tpu.memory_space<vmem>>, vector<2x10x1x32xf32>,
    %cst_27 = arith.constant 0.000000e+00 : f32
    %50 = vector.broadcast %cst_27 : f32 to vector<2x10x1x32xf32>
    %c0_28 = arith.constant 0 : index
    %c0_29 = arith.constant 0 : index
    %c9_30 = arith.constant 9 : index
    %c0_31 = arith.constant 0 : index
    %51 = vector.load %arg17[%c0_28, %c0_29, %c9_30, %c0_31] : memref<2x10x10x32xf32, #tpu.memory_space<vmem>>, vector<2x10x1x32xf32>
    tpu.vector_store %arg17[%c0_28, %c0_29, %c9_30, %c0_31], %50 {strides = array<i32>} : memref<2x10x10x32xf32, #tpu.memory_space<vmem>>, vector<2x10x1x32xf32>,
    %c0_32 = arith.constant 0 : index
    %c1 = arith.constant 1 : index
    %c1_33 = arith.constant 1 : index
    %c0_34 = arith.constant 0 : index
    %52 = vector.load %arg17[%c0_32, %c1, %c1_33, %c0_34] : memref<2x10x10x32xf32, #tpu.memory_space<vmem>>, vector<2x8x8x32xf32>
    tpu.vector_store %arg17[%c0_32, %c1, %c1_33, %c0_34], %43 {strides = array<i32>} : memref<2x10x10x32xf32, #tpu.memory_space<vmem>>, vector<2x8x8x32xf32>,
    %c0_35 = arith.constant 0 : index
    %c0_36 = arith.constant 0 : index
    %c0_37 = arith.constant 0 : index
    %c0_38 = arith.constant 0 : index
    %53 = vector.load %arg17[%c0_35, %c0_36, %c0_37, %c0_38] : memref<2x10x10x32xf32, #tpu.memory_space<vmem>>, vector<2x8x8x32xf32>
    %54 = vector.shape_cast %53 : vector<2x8x8x32xf32> to vector<128x32xf32>
    %55 = arith.truncf %54 : vector<128x32xf32> to vector<128x32xbf16>
    %c0_39 = arith.constant 0 : index
    %c0_40 = arith.constant 0 : index
    %c0_41 = arith.constant 0 : index
    %56 = vector.load %arg5[%c0_39, %c0_40, %c0_41] : memref<9x32x64xbf16, #tpu.memory_space<vmem>>, vector<1x32x64xbf16>
    %57 = vector.shape_cast %56 : vector<1x32x64xbf16> to vector<32x64xbf16>
    %cst_42 = arith.constant dense<0.000000e+00> : vector<128x64xf32>
    %58 = tpu.matmul %55, %57, %cst_42 {dimension_numbers = #tpu.dot_dimension_numbers<[1], [0], [0], [1], [0, 0, 1, 1], [], []>} : vector<128x32xbf16>, vector<32x64xbf16>, vector<128x64xf32> -> vector<128x64xf32>
    %c0_43 = arith.constant 0 : index
    %c0_44 = arith.constant 0 : index
    %c1_45 = arith.constant 1 : index
    %c0_46 = arith.constant 0 : index
    %59 = vector.load %arg17[%c0_43, %c0_44, %c1_45, %c0_46] : memref<2x10x10x32xf32, #tpu.memory_space<vmem>>, vector<2x8x8x32xf32>
    %60 = vector.shape_cast %59 : vector<2x8x8x32xf32> to vector<128x32xf32>
    %61 = arith.truncf %60 : vector<128x32xf32> to vector<128x32xbf16>
    %c1_47 = arith.constant 1 : index
    %c0_48 = arith.constant 0 : index
    %c0_49 = arith.constant 0 : index
    %62 = vector.load %arg5[%c1_47, %c0_48, %c0_49] : memref<9x32x64xbf16, #tpu.memory_space<vmem>>, vector<1x32x64xbf16>
    %63 = vector.shape_cast %62 : vector<1x32x64xbf16> to vector<32x64xbf16>
    %cst_50 = arith.constant dense<0.000000e+00> : vector<128x64xf32>
    %64 = tpu.matmul %61, %63, %cst_50 {dimension_numbers = #tpu.dot_dimension_numbers<[1], [0], [0], [1], [0, 0, 1, 1], [], []>} : vector<128x32xbf16>, vector<32x64xbf16>, vector<128x64xf32> -> vector<128x64xf32>
    %65 = arith.addf %58, %64 : vector<128x64xf32>
    %c0_51 = arith.constant 0 : index
    %c0_52 = arith.constant 0 : index
    %c2 = arith.constant 2 : index
    %c0_53 = arith.constant 0 : index
    %66 = vector.load %arg17[%c0_51, %c0_52, %c2, %c0_53] : memref<2x10x10x32xf32, #tpu.memory_space<vmem>>, vector<2x8x8x32xf32>
    %67 = vector.shape_cast %66 : vector<2x8x8x32xf32> to vector<128x32xf32>
    %68 = arith.truncf %67 : vector<128x32xf32> to vector<128x32xbf16>
    %c2_54 = arith.constant 2 : index
    %c0_55 = arith.constant 0 : index
    %c0_56 = arith.constant 0 : index
    %69 = vector.load %arg5[%c2_54, %c0_55, %c0_56] : memref<9x32x64xbf16, #tpu.memory_space<vmem>>, vector<1x32x64xbf16>
    %70 = vector.shape_cast %69 : vector<1x32x64xbf16> to vector<32x64xbf16>
    %cst_57 = arith.constant dense<0.000000e+00> : vector<128x64xf32>
    %71 = tpu.matmul %68, %70, %cst_57 {dimension_numbers = #tpu.dot_dimension_numbers<[1], [0], [0], [1], [0, 0, 1, 1], [], []>} : vector<128x32xbf16>, vector<32x64xbf16>, vector<128x64xf32> -> vector<128x64xf32>
    %72 = arith.addf %65, %71 : vector<128x64xf32>
    %c0_58 = arith.constant 0 : index
    %c1_59 = arith.constant 1 : index
    %c0_60 = arith.constant 0 : index
    %c0_61 = arith.constant 0 : index
    %73 = vector.load %arg17[%c0_58, %c1_59, %c0_60, %c0_61] : memref<2x10x10x32xf32, #tpu.memory_space<vmem>>, vector<2x8x8x32xf32>
    %74 = vector.shape_cast %73 : vector<2x8x8x32xf32> to vector<128x32xf32>
    %75 = arith.truncf %74 : vector<128x32xf32> to vector<128x32xbf16>
    %c3 = arith.constant 3 : index
    %c0_62 = arith.constant 0 : index
    %c0_63 = arith.constant 0 : index
    %76 = vector.load %arg5[%c3, %c0_62, %c0_63] : memref<9x32x64xbf16, #tpu.memory_space<vmem>>, vector<1x32x64xbf16>
    %77 = vector.shape_cast %76 : vector<1x32x64xbf16> to vector<32x64xbf16>
    %cst_64 = arith.constant dense<0.000000e+00> : vector<128x64xf32>
    %78 = tpu.matmul %75, %77, %cst_64 {dimension_numbers = #tpu.dot_dimension_numbers<[1], [0], [0], [1], [0, 0, 1, 1], [], []>} : vector<128x32xbf16>, vector<32x64xbf16>, vector<128x64xf32> -> vector<128x64xf32>
    %79 = arith.addf %72, %78 : vector<128x64xf32>
    %c0_65 = arith.constant 0 : index
    %c1_66 = arith.constant 1 : index
    %c1_67 = arith.constant 1 : index
    %c0_68 = arith.constant 0 : index
    %80 = vector.load %arg17[%c0_65, %c1_66, %c1_67, %c0_68] : memref<2x10x10x32xf32, #tpu.memory_space<vmem>>, vector<2x8x8x32xf32>
    %81 = vector.shape_cast %80 : vector<2x8x8x32xf32> to vector<128x32xf32>
    %82 = arith.truncf %81 : vector<128x32xf32> to vector<128x32xbf16>
    %c4 = arith.constant 4 : index
    %c0_69 = arith.constant 0 : index
    %c0_70 = arith.constant 0 : index
    %83 = vector.load %arg5[%c4, %c0_69, %c0_70] : memref<9x32x64xbf16, #tpu.memory_space<vmem>>, vector<1x32x64xbf16>
    %84 = vector.shape_cast %83 : vector<1x32x64xbf16> to vector<32x64xbf16>
    %cst_71 = arith.constant dense<0.000000e+00> : vector<128x64xf32>
    %85 = tpu.matmul %82, %84, %cst_71 {dimension_numbers = #tpu.dot_dimension_numbers<[1], [0], [0], [1], [0, 0, 1, 1], [], []>} : vector<128x32xbf16>, vector<32x64xbf16>, vector<128x64xf32> -> vector<128x64xf32>
    %86 = arith.addf %79, %85 : vector<128x64xf32>
    %c0_72 = arith.constant 0 : index
    %c1_73 = arith.constant 1 : index
    %c2_74 = arith.constant 2 : index
    %c0_75 = arith.constant 0 : index
    %87 = vector.load %arg17[%c0_72, %c1_73, %c2_74, %c0_75] : memref<2x10x10x32xf32, #tpu.memory_space<vmem>>, vector<2x8x8x32xf32>
    %88 = vector.shape_cast %87 : vector<2x8x8x32xf32> to vector<128x32xf32>
    %89 = arith.truncf %88 : vector<128x32xf32> to vector<128x32xbf16>
    %c5 = arith.constant 5 : index
    %c0_76 = arith.constant 0 : index
    %c0_77 = arith.constant 0 : index
    %90 = vector.load %arg5[%c5, %c0_76, %c0_77] : memref<9x32x64xbf16, #tpu.memory_space<vmem>>, vector<1x32x64xbf16>
    %91 = vector.shape_cast %90 : vector<1x32x64xbf16> to vector<32x64xbf16>
    %cst_78 = arith.constant dense<0.000000e+00> : vector<128x64xf32>
    %92 = tpu.matmul %89, %91, %cst_78 {dimension_numbers = #tpu.dot_dimension_numbers<[1], [0], [0], [1], [0, 0, 1, 1], [], []>} : vector<128x32xbf16>, vector<32x64xbf16>, vector<128x64xf32> -> vector<128x64xf32>
    %93 = arith.addf %86, %92 : vector<128x64xf32>
    %c0_79 = arith.constant 0 : index
    %c2_80 = arith.constant 2 : index
    %c0_81 = arith.constant 0 : index
    %c0_82 = arith.constant 0 : index
    %94 = vector.load %arg17[%c0_79, %c2_80, %c0_81, %c0_82] : memref<2x10x10x32xf32, #tpu.memory_space<vmem>>, vector<2x8x8x32xf32>
    %95 = vector.shape_cast %94 : vector<2x8x8x32xf32> to vector<128x32xf32>
    %96 = arith.truncf %95 : vector<128x32xf32> to vector<128x32xbf16>
    %c6 = arith.constant 6 : index
    %c0_83 = arith.constant 0 : index
    %c0_84 = arith.constant 0 : index
    %97 = vector.load %arg5[%c6, %c0_83, %c0_84] : memref<9x32x64xbf16, #tpu.memory_space<vmem>>, vector<1x32x64xbf16>
    %98 = vector.shape_cast %97 : vector<1x32x64xbf16> to vector<32x64xbf16>
    %cst_85 = arith.constant dense<0.000000e+00> : vector<128x64xf32>
    %99 = tpu.matmul %96, %98, %cst_85 {dimension_numbers = #tpu.dot_dimension_numbers<[1], [0], [0], [1], [0, 0, 1, 1], [], []>} : vector<128x32xbf16>, vector<32x64xbf16>, vector<128x64xf32> -> vector<128x64xf32>
    %100 = arith.addf %93, %99 : vector<128x64xf32>
    %c0_86 = arith.constant 0 : index
    %c2_87 = arith.constant 2 : index
    %c1_88 = arith.constant 1 : index
    %c0_89 = arith.constant 0 : index
    %101 = vector.load %arg17[%c0_86, %c2_87, %c1_88, %c0_89] : memref<2x10x10x32xf32, #tpu.memory_space<vmem>>, vector<2x8x8x32xf32>
    %102 = vector.shape_cast %101 : vector<2x8x8x32xf32> to vector<128x32xf32>
    %103 = arith.truncf %102 : vector<128x32xf32> to vector<128x32xbf16>
    %c7 = arith.constant 7 : index
    %c0_90 = arith.constant 0 : index
    %c0_91 = arith.constant 0 : index
    %104 = vector.load %arg5[%c7, %c0_90, %c0_91] : memref<9x32x64xbf16, #tpu.memory_space<vmem>>, vector<1x32x64xbf16>
    %105 = vector.shape_cast %104 : vector<1x32x64xbf16> to vector<32x64xbf16>
    %cst_92 = arith.constant dense<0.000000e+00> : vector<128x64xf32>
    %106 = tpu.matmul %103, %105, %cst_92 {dimension_numbers = #tpu.dot_dimension_numbers<[1], [0], [0], [1], [0, 0, 1, 1], [], []>} : vector<128x32xbf16>, vector<32x64xbf16>, vector<128x64xf32> -> vector<128x64xf32>
    %107 = arith.addf %100, %106 : vector<128x64xf32>
    %c0_93 = arith.constant 0 : index
    %c2_94 = arith.constant 2 : index
    %c2_95 = arith.constant 2 : index
    %c0_96 = arith.constant 0 : index
    %108 = vector.load %arg17[%c0_93, %c2_94, %c2_95, %c0_96] : memref<2x10x10x32xf32, #tpu.memory_space<vmem>>, vector<2x8x8x32xf32>
    %109 = vector.shape_cast %108 : vector<2x8x8x32xf32> to vector<128x32xf32>
    %110 = arith.truncf %109 : vector<128x32xf32> to vector<128x32xbf16>
    %c8 = arith.constant 8 : index
    %c0_97 = arith.constant 0 : index
    %c0_98 = arith.constant 0 : index
    %111 = vector.load %arg5[%c8, %c0_97, %c0_98] : memref<9x32x64xbf16, #tpu.memory_space<vmem>>, vector<1x32x64xbf16>
    %112 = vector.shape_cast %111 : vector<1x32x64xbf16> to vector<32x64xbf16>
    %cst_99 = arith.constant dense<0.000000e+00> : vector<128x64xf32>
    %113 = tpu.matmul %110, %112, %cst_99 {dimension_numbers = #tpu.dot_dimension_numbers<[1], [0], [0], [1], [0, 0, 1, 1], [], []>} : vector<128x32xbf16>, vector<32x64xbf16>, vector<128x64xf32> -> vector<128x64xf32>
    %114 = arith.addf %107, %113 : vector<128x64xf32>
    %cst_100 = arith.constant dense<0.000000e+00> : vector<64xf32>
    %115 = vector.multi_reduction <add>, %114, %cst_100 [0] : vector<128x64xf32> to vector<64xf32>
    %116 = vector.shape_cast %115 : vector<64xf32> to vector<1x64xf32>
    %cst_101 = arith.constant 1.280000e+02 : f32
    %117 = vector.broadcast %cst_101 : f32 to vector<1x64xf32>
    %118 = arith.divf %116, %117 : vector<1x64xf32>
    %119 = vector.broadcast %118 : vector<1x64xf32> to vector<128x64xf32>
    %120 = arith.subf %114, %119 : vector<128x64xf32>
    %121 = arith.mulf %120, %120 : vector<128x64xf32>
    %cst_102 = arith.constant dense<0.000000e+00> : vector<64xf32>
    %122 = vector.multi_reduction <add>, %121, %cst_102 [0] : vector<128x64xf32> to vector<64xf32>
    %123 = vector.shape_cast %122 : vector<64xf32> to vector<1x64xf32>
    %cst_103 = arith.constant 1.280000e+02 : f32
    %124 = vector.broadcast %cst_103 : f32 to vector<1x64xf32>
    %125 = arith.divf %123, %124 : vector<1x64xf32>
    %c0_104 = arith.constant 0 : index
    %c0_105 = arith.constant 0 : index
    %126 = vector.load %arg6[%c0_104, %c0_105] : memref<1x64xf32, #tpu.memory_space<vmem>>, vector<1x64xf32>
    %cst_106 = arith.constant 9.99999974E-6 : f32
    %127 = vector.broadcast %cst_106 : f32 to vector<1x64xf32>
    %128 = arith.addf %125, %127 : vector<1x64xf32>
    %129 = math.rsqrt %128 : vector<1x64xf32>
    %130 = arith.mulf %126, %129 : vector<1x64xf32>
    %131 = vector.broadcast %130 : vector<1x64xf32> to vector<128x64xf32>
    %132 = arith.mulf %120, %131 : vector<128x64xf32>
    %c0_107 = arith.constant 0 : index
    %c0_108 = arith.constant 0 : index
    %133 = vector.load %arg7[%c0_107, %c0_108] : memref<1x64xf32, #tpu.memory_space<vmem>>, vector<1x64xf32>
    %134 = vector.broadcast %133 : vector<1x64xf32> to vector<128x64xf32>
    %135 = arith.addf %132, %134 : vector<128x64xf32>
    %cst_109 = arith.constant 0.000000e+00 : f32
    %136 = vector.broadcast %cst_109 : f32 to vector<128x64xf32>
    %137 = arith.maximumf %135, %136 : vector<128x64xf32>
    %138 = vector.shape_cast %137 : vector<128x64xf32> to vector<2x8x4x2x64xf32>
    %139 = vector.extract_strided_slice %138 {offsets = [0, 0, 0, 0, 0], sizes = [2, 8, 4, 1, 64], strides = [1, 1, 1, 1, 1]} : vector<2x8x4x2x64xf32> to vector<2x8x4x1x64xf32>
    %140 = vector.shape_cast %139 : vector<2x8x4x1x64xf32> to vector<2x8x4x64xf32>
    %141 = vector.extract_strided_slice %138 {offsets = [0, 0, 0, 1, 0], sizes = [2, 8, 4, 1, 64], strides = [1, 1, 1, 1, 1]} : vector<2x8x4x2x64xf32> to vector<2x8x4x1x64xf32>
    %142 = vector.shape_cast %141 : vector<2x8x4x1x64xf32> to vector<2x8x4x64xf32>
    %143 = arith.maximumf %140, %142 : vector<2x8x4x64xf32>
    %144 = vector.shape_cast %143 : vector<2x8x4x64xf32> to vector<2x4x2x4x64xf32>
    %145 = vector.extract_strided_slice %144 {offsets = [0, 0, 0, 0, 0], sizes = [2, 4, 1, 4, 64], strides = [1, 1, 1, 1, 1]} : vector<2x4x2x4x64xf32> to vector<2x4x1x4x64xf32>
    %146 = vector.shape_cast %145 : vector<2x4x1x4x64xf32> to vector<2x4x4x64xf32>
    %147 = vector.extract_strided_slice %144 {offsets = [0, 0, 1, 0, 0], sizes = [2, 4, 1, 4, 64], strides = [1, 1, 1, 1, 1]} : vector<2x4x2x4x64xf32> to vector<2x4x1x4x64xf32>
    %148 = vector.shape_cast %147 : vector<2x4x1x4x64xf32> to vector<2x4x4x64xf32>
    %149 = arith.maximumf %146, %148 : vector<2x4x4x64xf32>
    %c0_i32_110 = arith.constant 0 : i32
    %150 = tpu.memref_slice %arg23[%c0_i32_110] : memref<3x!tpu.dma_semaphore, #tpu.memory_space<semaphore_mem>> -> memref<1x!tpu.dma_semaphore, #tpu.memory_space<semaphore_mem>>
    %151 = tpu.memref_squeeze %150 : memref<1x!tpu.dma_semaphore, #tpu.memory_space<semaphore_mem>> -> memref<!tpu.dma_semaphore, #tpu.memory_space<semaphore_mem>>
    tpu.wait_dma2 semaphore(%151 : memref<!tpu.dma_semaphore, #tpu.memory_space<semaphore_mem>>) src(%arg8 : memref<9x64x128xbf16, #tpu.memory_space<any>>) dst(%arg20 : memref<9x64x128xbf16, #tpu.memory_space<vmem>>)
    %cst_111 = arith.constant 0.000000e+00 : f32
    %152 = vector.broadcast %cst_111 : f32 to vector<2x1x6x64xf32>
    %c0_112 = arith.constant 0 : index
    %c0_113 = arith.constant 0 : index
    %c0_114 = arith.constant 0 : index
    %c0_115 = arith.constant 0 : index
    %153 = vector.load %arg18[%c0_112, %c0_113, %c0_114, %c0_115] : memref<2x6x6x64xf32, #tpu.memory_space<vmem>>, vector<2x1x6x64xf32>
    tpu.vector_store %arg18[%c0_112, %c0_113, %c0_114, %c0_115], %152 {strides = array<i32>} : memref<2x6x6x64xf32, #tpu.memory_space<vmem>>, vector<2x1x6x64xf32>,
    %cst_116 = arith.constant 0.000000e+00 : f32
    %154 = vector.broadcast %cst_116 : f32 to vector<2x1x6x64xf32>
    %c0_117 = arith.constant 0 : index
    %c5_118 = arith.constant 5 : index
    %c0_119 = arith.constant 0 : index
    %c0_120 = arith.constant 0 : index
    %155 = vector.load %arg18[%c0_117, %c5_118, %c0_119, %c0_120] : memref<2x6x6x64xf32, #tpu.memory_space<vmem>>, vector<2x1x6x64xf32>
    tpu.vector_store %arg18[%c0_117, %c5_118, %c0_119, %c0_120], %154 {strides = array<i32>} : memref<2x6x6x64xf32, #tpu.memory_space<vmem>>, vector<2x1x6x64xf32>,
    %cst_121 = arith.constant 0.000000e+00 : f32
    %156 = vector.broadcast %cst_121 : f32 to vector<2x6x1x64xf32>
    %c0_122 = arith.constant 0 : index
    %c0_123 = arith.constant 0 : index
    %c0_124 = arith.constant 0 : index
    %c0_125 = arith.constant 0 : index
    %157 = vector.load %arg18[%c0_122, %c0_123, %c0_124, %c0_125] : memref<2x6x6x64xf32, #tpu.memory_space<vmem>>, vector<2x6x1x64xf32>
    tpu.vector_store %arg18[%c0_122, %c0_123, %c0_124, %c0_125], %156 {strides = array<i32>} : memref<2x6x6x64xf32, #tpu.memory_space<vmem>>, vector<2x6x1x64xf32>,
    %cst_126 = arith.constant 0.000000e+00 : f32
    %158 = vector.broadcast %cst_126 : f32 to vector<2x6x1x64xf32>
    %c0_127 = arith.constant 0 : index
    %c0_128 = arith.constant 0 : index
    %c5_129 = arith.constant 5 : index
    %c0_130 = arith.constant 0 : index
    %159 = vector.load %arg18[%c0_127, %c0_128, %c5_129, %c0_130] : memref<2x6x6x64xf32, #tpu.memory_space<vmem>>, vector<2x6x1x64xf32>
    tpu.vector_store %arg18[%c0_127, %c0_128, %c5_129, %c0_130], %158 {strides = array<i32>} : memref<2x6x6x64xf32, #tpu.memory_space<vmem>>, vector<2x6x1x64xf32>,
    %c0_131 = arith.constant 0 : index
    %c1_132 = arith.constant 1 : index
    %c1_133 = arith.constant 1 : index
    %c0_134 = arith.constant 0 : index
    %160 = vector.load %arg18[%c0_131, %c1_132, %c1_133, %c0_134] : memref<2x6x6x64xf32, #tpu.memory_space<vmem>>, vector<2x4x4x64xf32>
    tpu.vector_store %arg18[%c0_131, %c1_132, %c1_133, %c0_134], %149 {strides = array<i32>} : memref<2x6x6x64xf32, #tpu.memory_space<vmem>>, vector<2x4x4x64xf32>,
    %c0_135 = arith.constant 0 : index
    %c0_136 = arith.constant 0 : index
    %c0_137 = arith.constant 0 : index
    %c0_138 = arith.constant 0 : index
    %161 = vector.load %arg18[%c0_135, %c0_136, %c0_137, %c0_138] : memref<2x6x6x64xf32, #tpu.memory_space<vmem>>, vector<2x4x4x64xf32>
    %162 = vector.shape_cast %161 : vector<2x4x4x64xf32> to vector<32x64xf32>
    %163 = arith.truncf %162 : vector<32x64xf32> to vector<32x64xbf16>
    %c0_139 = arith.constant 0 : index
    %c0_140 = arith.constant 0 : index
    %c0_141 = arith.constant 0 : index
    %164 = vector.load %arg20[%c0_139, %c0_140, %c0_141] : memref<9x64x128xbf16, #tpu.memory_space<vmem>>, vector<1x64x128xbf16>
    %165 = vector.shape_cast %164 : vector<1x64x128xbf16> to vector<64x128xbf16>
    %cst_142 = arith.constant dense<0.000000e+00> : vector<32x128xf32>
    %166 = tpu.matmul %163, %165, %cst_142 {dimension_numbers = #tpu.dot_dimension_numbers<[1], [0], [0], [1], [0, 0, 1, 1], [], []>} : vector<32x64xbf16>, vector<64x128xbf16>, vector<32x128xf32> -> vector<32x128xf32>
    %c0_143 = arith.constant 0 : index
    %c0_144 = arith.constant 0 : index
    %c1_145 = arith.constant 1 : index
    %c0_146 = arith.constant 0 : index
    %167 = vector.load %arg18[%c0_143, %c0_144, %c1_145, %c0_146] : memref<2x6x6x64xf32, #tpu.memory_space<vmem>>, vector<2x4x4x64xf32>
    %168 = vector.shape_cast %167 : vector<2x4x4x64xf32> to vector<32x64xf32>
    %169 = arith.truncf %168 : vector<32x64xf32> to vector<32x64xbf16>
    %c1_147 = arith.constant 1 : index
    %c0_148 = arith.constant 0 : index
    %c0_149 = arith.constant 0 : index
    %170 = vector.load %arg20[%c1_147, %c0_148, %c0_149] : memref<9x64x128xbf16, #tpu.memory_space<vmem>>, vector<1x64x128xbf16>
    %171 = vector.shape_cast %170 : vector<1x64x128xbf16> to vector<64x128xbf16>
    %cst_150 = arith.constant dense<0.000000e+00> : vector<32x128xf32>
    %172 = tpu.matmul %169, %171, %cst_150 {dimension_numbers = #tpu.dot_dimension_numbers<[1], [0], [0], [1], [0, 0, 1, 1], [], []>} : vector<32x64xbf16>, vector<64x128xbf16>, vector<32x128xf32> -> vector<32x128xf32>
    %173 = arith.addf %166, %172 : vector<32x128xf32>
    %c0_151 = arith.constant 0 : index
    %c0_152 = arith.constant 0 : index
    %c2_153 = arith.constant 2 : index
    %c0_154 = arith.constant 0 : index
    %174 = vector.load %arg18[%c0_151, %c0_152, %c2_153, %c0_154] : memref<2x6x6x64xf32, #tpu.memory_space<vmem>>, vector<2x4x4x64xf32>
    %175 = vector.shape_cast %174 : vector<2x4x4x64xf32> to vector<32x64xf32>
    %176 = arith.truncf %175 : vector<32x64xf32> to vector<32x64xbf16>
    %c2_155 = arith.constant 2 : index
    %c0_156 = arith.constant 0 : index
    %c0_157 = arith.constant 0 : index
    %177 = vector.load %arg20[%c2_155, %c0_156, %c0_157] : memref<9x64x128xbf16, #tpu.memory_space<vmem>>, vector<1x64x128xbf16>
    %178 = vector.shape_cast %177 : vector<1x64x128xbf16> to vector<64x128xbf16>
    %cst_158 = arith.constant dense<0.000000e+00> : vector<32x128xf32>
    %179 = tpu.matmul %176, %178, %cst_158 {dimension_numbers = #tpu.dot_dimension_numbers<[1], [0], [0], [1], [0, 0, 1, 1], [], []>} : vector<32x64xbf16>, vector<64x128xbf16>, vector<32x128xf32> -> vector<32x128xf32>
    %180 = arith.addf %173, %179 : vector<32x128xf32>
    %c0_159 = arith.constant 0 : index
    %c1_160 = arith.constant 1 : index
    %c0_161 = arith.constant 0 : index
    %c0_162 = arith.constant 0 : index
    %181 = vector.load %arg18[%c0_159, %c1_160, %c0_161, %c0_162] : memref<2x6x6x64xf32, #tpu.memory_space<vmem>>, vector<2x4x4x64xf32>
    %182 = vector.shape_cast %181 : vector<2x4x4x64xf32> to vector<32x64xf32>
    %183 = arith.truncf %182 : vector<32x64xf32> to vector<32x64xbf16>
    %c3_163 = arith.constant 3 : index
    %c0_164 = arith.constant 0 : index
    %c0_165 = arith.constant 0 : index
    %184 = vector.load %arg20[%c3_163, %c0_164, %c0_165] : memref<9x64x128xbf16, #tpu.memory_space<vmem>>, vector<1x64x128xbf16>
    %185 = vector.shape_cast %184 : vector<1x64x128xbf16> to vector<64x128xbf16>
    %cst_166 = arith.constant dense<0.000000e+00> : vector<32x128xf32>
    %186 = tpu.matmul %183, %185, %cst_166 {dimension_numbers = #tpu.dot_dimension_numbers<[1], [0], [0], [1], [0, 0, 1, 1], [], []>} : vector<32x64xbf16>, vector<64x128xbf16>, vector<32x128xf32> -> vector<32x128xf32>
    %187 = arith.addf %180, %186 : vector<32x128xf32>
    %c0_167 = arith.constant 0 : index
    %c1_168 = arith.constant 1 : index
    %c1_169 = arith.constant 1 : index
    %c0_170 = arith.constant 0 : index
    %188 = vector.load %arg18[%c0_167, %c1_168, %c1_169, %c0_170] : memref<2x6x6x64xf32, #tpu.memory_space<vmem>>, vector<2x4x4x64xf32>
    %189 = vector.shape_cast %188 : vector<2x4x4x64xf32> to vector<32x64xf32>
    %190 = arith.truncf %189 : vector<32x64xf32> to vector<32x64xbf16>
    %c4_171 = arith.constant 4 : index
    %c0_172 = arith.constant 0 : index
    %c0_173 = arith.constant 0 : index
    %191 = vector.load %arg20[%c4_171, %c0_172, %c0_173] : memref<9x64x128xbf16, #tpu.memory_space<vmem>>, vector<1x64x128xbf16>
    %192 = vector.shape_cast %191 : vector<1x64x128xbf16> to vector<64x128xbf16>
    %cst_174 = arith.constant dense<0.000000e+00> : vector<32x128xf32>
    %193 = tpu.matmul %190, %192, %cst_174 {dimension_numbers = #tpu.dot_dimension_numbers<[1], [0], [0], [1], [0, 0, 1, 1], [], []>} : vector<32x64xbf16>, vector<64x128xbf16>, vector<32x128xf32> -> vector<32x128xf32>
    %194 = arith.addf %187, %193 : vector<32x128xf32>
    %c0_175 = arith.constant 0 : index
    %c1_176 = arith.constant 1 : index
    %c2_177 = arith.constant 2 : index
    %c0_178 = arith.constant 0 : index
    %195 = vector.load %arg18[%c0_175, %c1_176, %c2_177, %c0_178] : memref<2x6x6x64xf32, #tpu.memory_space<vmem>>, vector<2x4x4x64xf32>
    %196 = vector.shape_cast %195 : vector<2x4x4x64xf32> to vector<32x64xf32>
    %197 = arith.truncf %196 : vector<32x64xf32> to vector<32x64xbf16>
    %c5_179 = arith.constant 5 : index
    %c0_180 = arith.constant 0 : index
    %c0_181 = arith.constant 0 : index
    %198 = vector.load %arg20[%c5_179, %c0_180, %c0_181] : memref<9x64x128xbf16, #tpu.memory_space<vmem>>, vector<1x64x128xbf16>
    %199 = vector.shape_cast %198 : vector<1x64x128xbf16> to vector<64x128xbf16>
    %cst_182 = arith.constant dense<0.000000e+00> : vector<32x128xf32>
    %200 = tpu.matmul %197, %199, %cst_182 {dimension_numbers = #tpu.dot_dimension_numbers<[1], [0], [0], [1], [0, 0, 1, 1], [], []>} : vector<32x64xbf16>, vector<64x128xbf16>, vector<32x128xf32> -> vector<32x128xf32>
    %201 = arith.addf %194, %200 : vector<32x128xf32>
    %c0_183 = arith.constant 0 : index
    %c2_184 = arith.constant 2 : index
    %c0_185 = arith.constant 0 : index
    %c0_186 = arith.constant 0 : index
    %202 = vector.load %arg18[%c0_183, %c2_184, %c0_185, %c0_186] : memref<2x6x6x64xf32, #tpu.memory_space<vmem>>, vector<2x4x4x64xf32>
    %203 = vector.shape_cast %202 : vector<2x4x4x64xf32> to vector<32x64xf32>
    %204 = arith.truncf %203 : vector<32x64xf32> to vector<32x64xbf16>
    %c6_187 = arith.constant 6 : index
    %c0_188 = arith.constant 0 : index
    %c0_189 = arith.constant 0 : index
    %205 = vector.load %arg20[%c6_187, %c0_188, %c0_189] : memref<9x64x128xbf16, #tpu.memory_space<vmem>>, vector<1x64x128xbf16>
    %206 = vector.shape_cast %205 : vector<1x64x128xbf16> to vector<64x128xbf16>
    %cst_190 = arith.constant dense<0.000000e+00> : vector<32x128xf32>
    %207 = tpu.matmul %204, %206, %cst_190 {dimension_numbers = #tpu.dot_dimension_numbers<[1], [0], [0], [1], [0, 0, 1, 1], [], []>} : vector<32x64xbf16>, vector<64x128xbf16>, vector<32x128xf32> -> vector<32x128xf32>
    %208 = arith.addf %201, %207 : vector<32x128xf32>
    %c0_191 = arith.constant 0 : index
    %c2_192 = arith.constant 2 : index
    %c1_193 = arith.constant 1 : index
    %c0_194 = arith.constant 0 : index
    %209 = vector.load %arg18[%c0_191, %c2_192, %c1_193, %c0_194] : memref<2x6x6x64xf32, #tpu.memory_space<vmem>>, vector<2x4x4x64xf32>
    %210 = vector.shape_cast %209 : vector<2x4x4x64xf32> to vector<32x64xf32>
    %211 = arith.truncf %210 : vector<32x64xf32> to vector<32x64xbf16>
    %c7_195 = arith.constant 7 : index
    %c0_196 = arith.constant 0 : index
    %c0_197 = arith.constant 0 : index
    %212 = vector.load %arg20[%c7_195, %c0_196, %c0_197] : memref<9x64x128xbf16, #tpu.memory_space<vmem>>, vector<1x64x128xbf16>
    %213 = vector.shape_cast %212 : vector<1x64x128xbf16> to vector<64x128xbf16>
    %cst_198 = arith.constant dense<0.000000e+00> : vector<32x128xf32>
    %214 = tpu.matmul %211, %213, %cst_198 {dimension_numbers = #tpu.dot_dimension_numbers<[1], [0], [0], [1], [0, 0, 1, 1], [], []>} : vector<32x64xbf16>, vector<64x128xbf16>, vector<32x128xf32> -> vector<32x128xf32>
    %215 = arith.addf %208, %214 : vector<32x128xf32>
    %c0_199 = arith.constant 0 : index
    %c2_200 = arith.constant 2 : index
    %c2_201 = arith.constant 2 : index
    %c0_202 = arith.constant 0 : index
    %216 = vector.load %arg18[%c0_199, %c2_200, %c2_201, %c0_202] : memref<2x6x6x64xf32, #tpu.memory_space<vmem>>, vector<2x4x4x64xf32>
    %217 = vector.shape_cast %216 : vector<2x4x4x64xf32> to vector<32x64xf32>
    %218 = arith.truncf %217 : vector<32x64xf32> to vector<32x64xbf16>
    %c8_203 = arith.constant 8 : index
    %c0_204 = arith.constant 0 : index
    %c0_205 = arith.constant 0 : index
    %219 = vector.load %arg20[%c8_203, %c0_204, %c0_205] : memref<9x64x128xbf16, #tpu.memory_space<vmem>>, vector<1x64x128xbf16>
    %220 = vector.shape_cast %219 : vector<1x64x128xbf16> to vector<64x128xbf16>
    %cst_206 = arith.constant dense<0.000000e+00> : vector<32x128xf32>
    %221 = tpu.matmul %218, %220, %cst_206 {dimension_numbers = #tpu.dot_dimension_numbers<[1], [0], [0], [1], [0, 0, 1, 1], [], []>} : vector<32x64xbf16>, vector<64x128xbf16>, vector<32x128xf32> -> vector<32x128xf32>
    %222 = arith.addf %215, %221 : vector<32x128xf32>
    %cst_207 = arith.constant dense<0.000000e+00> : vector<128xf32>
    %223 = vector.multi_reduction <add>, %222, %cst_207 [0] : vector<32x128xf32> to vector<128xf32>
    %224 = vector.shape_cast %223 : vector<128xf32> to vector<1x128xf32>
    %cst_208 = arith.constant 3.200000e+01 : f32
    %225 = vector.broadcast %cst_208 : f32 to vector<1x128xf32>
    %226 = arith.divf %224, %225 : vector<1x128xf32>
    %227 = vector.broadcast %226 : vector<1x128xf32> to vector<32x128xf32>
    %228 = arith.subf %222, %227 : vector<32x128xf32>
    %229 = arith.mulf %228, %228 : vector<32x128xf32>
    %cst_209 = arith.constant dense<0.000000e+00> : vector<128xf32>
    %230 = vector.multi_reduction <add>, %229, %cst_209 [0] : vector<32x128xf32> to vector<128xf32>
    %231 = vector.shape_cast %230 : vector<128xf32> to vector<1x128xf32>
    %cst_210 = arith.constant 3.200000e+01 : f32
    %232 = vector.broadcast %cst_210 : f32 to vector<1x128xf32>
    %233 = arith.divf %231, %232 : vector<1x128xf32>
    %c0_211 = arith.constant 0 : index
    %c0_212 = arith.constant 0 : index
    %234 = vector.load %arg9[%c0_211, %c0_212] : memref<1x128xf32, #tpu.memory_space<vmem>>, vector<1x128xf32>
    %cst_213 = arith.constant 9.99999974E-6 : f32
    %235 = vector.broadcast %cst_213 : f32 to vector<1x128xf32>
    %236 = arith.addf %233, %235 : vector<1x128xf32>
    %237 = math.rsqrt %236 : vector<1x128xf32>
    %238 = arith.mulf %234, %237 : vector<1x128xf32>
    %239 = vector.broadcast %238 : vector<1x128xf32> to vector<32x128xf32>
    %240 = arith.mulf %228, %239 : vector<32x128xf32>
    %c0_214 = arith.constant 0 : index
    %c0_215 = arith.constant 0 : index
    %241 = vector.load %arg10[%c0_214, %c0_215] : memref<1x128xf32, #tpu.memory_space<vmem>>, vector<1x128xf32>
    %242 = vector.broadcast %241 : vector<1x128xf32> to vector<32x128xf32>
    %243 = arith.addf %240, %242 : vector<32x128xf32>
    %cst_216 = arith.constant 0.000000e+00 : f32
    %244 = vector.broadcast %cst_216 : f32 to vector<32x128xf32>
    %245 = arith.maximumf %243, %244 : vector<32x128xf32>
    %246 = vector.shape_cast %245 : vector<32x128xf32> to vector<2x4x2x2x128xf32>
    %247 = vector.extract_strided_slice %246 {offsets = [0, 0, 0, 0, 0], sizes = [2, 4, 2, 1, 128], strides = [1, 1, 1, 1, 1]} : vector<2x4x2x2x128xf32> to vector<2x4x2x1x128xf32>
    %248 = vector.shape_cast %247 : vector<2x4x2x1x128xf32> to vector<2x4x2x128xf32>
    %249 = vector.extract_strided_slice %246 {offsets = [0, 0, 0, 1, 0], sizes = [2, 4, 2, 1, 128], strides = [1, 1, 1, 1, 1]} : vector<2x4x2x2x128xf32> to vector<2x4x2x1x128xf32>
    %250 = vector.shape_cast %249 : vector<2x4x2x1x128xf32> to vector<2x4x2x128xf32>
    %251 = arith.maximumf %248, %250 : vector<2x4x2x128xf32>
    %252 = vector.shape_cast %251 : vector<2x4x2x128xf32> to vector<2x2x2x2x128xf32>
    %253 = vector.extract_strided_slice %252 {offsets = [0, 0, 0, 0, 0], sizes = [2, 2, 1, 2, 128], strides = [1, 1, 1, 1, 1]} : vector<2x2x2x2x128xf32> to vector<2x2x1x2x128xf32>
    %254 = vector.shape_cast %253 : vector<2x2x1x2x128xf32> to vector<2x2x2x128xf32>
    %255 = vector.extract_strided_slice %252 {offsets = [0, 0, 1, 0, 0], sizes = [2, 2, 1, 2, 128], strides = [1, 1, 1, 1, 1]} : vector<2x2x2x2x128xf32> to vector<2x2x1x2x128xf32>
    %256 = vector.shape_cast %255 : vector<2x2x1x2x128xf32> to vector<2x2x2x128xf32>
    %257 = arith.maximumf %254, %256 : vector<2x2x2x128xf32>
    %c1_i32_217 = arith.constant 1 : i32
    %258 = tpu.memref_slice %arg23[%c1_i32_217] : memref<3x!tpu.dma_semaphore, #tpu.memory_space<semaphore_mem>> -> memref<1x!tpu.dma_semaphore, #tpu.memory_space<semaphore_mem>>
    %259 = tpu.memref_squeeze %258 : memref<1x!tpu.dma_semaphore, #tpu.memory_space<semaphore_mem>> -> memref<!tpu.dma_semaphore, #tpu.memory_space<semaphore_mem>>
    tpu.wait_dma2 semaphore(%259 : memref<!tpu.dma_semaphore, #tpu.memory_space<semaphore_mem>>) src(%arg11 : memref<9x128x256xbf16, #tpu.memory_space<any>>) dst(%arg21 : memref<9x128x256xbf16, #tpu.memory_space<vmem>>)
    %cst_218 = arith.constant 0.000000e+00 : f32
    %260 = vector.broadcast %cst_218 : f32 to vector<2x1x4x128xf32>
    %c0_219 = arith.constant 0 : index
    %c0_220 = arith.constant 0 : index
    %c0_221 = arith.constant 0 : index
    %c0_222 = arith.constant 0 : index
    %261 = vector.load %arg19[%c0_219, %c0_220, %c0_221, %c0_222] : memref<2x4x4x128xf32, #tpu.memory_space<vmem>>, vector<2x1x4x128xf32>
    tpu.vector_store %arg19[%c0_219, %c0_220, %c0_221, %c0_222], %260 {strides = array<i32>} : memref<2x4x4x128xf32, #tpu.memory_space<vmem>>, vector<2x1x4x128xf32>,
    %cst_223 = arith.constant 0.000000e+00 : f32
    %262 = vector.broadcast %cst_223 : f32 to vector<2x1x4x128xf32>
    %c0_224 = arith.constant 0 : index
    %c3_225 = arith.constant 3 : index
    %c0_226 = arith.constant 0 : index
    %c0_227 = arith.constant 0 : index
    %263 = vector.load %arg19[%c0_224, %c3_225, %c0_226, %c0_227] : memref<2x4x4x128xf32, #tpu.memory_space<vmem>>, vector<2x1x4x128xf32>
    tpu.vector_store %arg19[%c0_224, %c3_225, %c0_226, %c0_227], %262 {strides = array<i32>} : memref<2x4x4x128xf32, #tpu.memory_space<vmem>>, vector<2x1x4x128xf32>,
    %cst_228 = arith.constant 0.000000e+00 : f32
    %264 = vector.broadcast %cst_228 : f32 to vector<2x4x1x128xf32>
    %c0_229 = arith.constant 0 : index
    %c0_230 = arith.constant 0 : index
    %c0_231 = arith.constant 0 : index
    %c0_232 = arith.constant 0 : index
    %265 = vector.load %arg19[%c0_229, %c0_230, %c0_231, %c0_232] : memref<2x4x4x128xf32, #tpu.memory_space<vmem>>, vector<2x4x1x128xf32>
    tpu.vector_store %arg19[%c0_229, %c0_230, %c0_231, %c0_232], %264 {strides = array<i32>} : memref<2x4x4x128xf32, #tpu.memory_space<vmem>>, vector<2x4x1x128xf32>,
    %cst_233 = arith.constant 0.000000e+00 : f32
    %266 = vector.broadcast %cst_233 : f32 to vector<2x4x1x128xf32>
    %c0_234 = arith.constant 0 : index
    %c0_235 = arith.constant 0 : index
    %c3_236 = arith.constant 3 : index
    %c0_237 = arith.constant 0 : index
    %267 = vector.load %arg19[%c0_234, %c0_235, %c3_236, %c0_237] : memref<2x4x4x128xf32, #tpu.memory_space<vmem>>, vector<2x4x1x128xf32>
    tpu.vector_store %arg19[%c0_234, %c0_235, %c3_236, %c0_237], %266 {strides = array<i32>} : memref<2x4x4x128xf32, #tpu.memory_space<vmem>>, vector<2x4x1x128xf32>,
    %c0_238 = arith.constant 0 : index
    %c1_239 = arith.constant 1 : index
    %c1_240 = arith.constant 1 : index
    %c0_241 = arith.constant 0 : index
    %268 = vector.load %arg19[%c0_238, %c1_239, %c1_240, %c0_241] : memref<2x4x4x128xf32, #tpu.memory_space<vmem>>, vector<2x2x2x128xf32>
    tpu.vector_store %arg19[%c0_238, %c1_239, %c1_240, %c0_241], %257 {strides = array<i32>} : memref<2x4x4x128xf32, #tpu.memory_space<vmem>>, vector<2x2x2x128xf32>,
    %c0_242 = arith.constant 0 : index
    %c0_243 = arith.constant 0 : index
    %c0_244 = arith.constant 0 : index
    %c0_245 = arith.constant 0 : index
    %269 = vector.load %arg19[%c0_242, %c0_243, %c0_244, %c0_245] : memref<2x4x4x128xf32, #tpu.memory_space<vmem>>, vector<2x2x2x128xf32>
    %270 = vector.shape_cast %269 : vector<2x2x2x128xf32> to vector<8x128xf32>
    %271 = arith.truncf %270 : vector<8x128xf32> to vector<8x128xbf16>
    %c0_246 = arith.constant 0 : index
    %c0_247 = arith.constant 0 : index
    %c0_248 = arith.constant 0 : index
    %272 = vector.load %arg21[%c0_246, %c0_247, %c0_248] : memref<9x128x256xbf16, #tpu.memory_space<vmem>>, vector<1x128x256xbf16>
    %273 = vector.shape_cast %272 : vector<1x128x256xbf16> to vector<128x256xbf16>
    %cst_249 = arith.constant dense<0.000000e+00> : vector<8x256xf32>
    %274 = tpu.matmul %271, %273, %cst_249 {dimension_numbers = #tpu.dot_dimension_numbers<[1], [0], [0], [1], [0, 0, 1, 1], [], []>} : vector<8x128xbf16>, vector<128x256xbf16>, vector<8x256xf32> -> vector<8x256xf32>
    %c0_250 = arith.constant 0 : index
    %c0_251 = arith.constant 0 : index
    %c1_252 = arith.constant 1 : index
    %c0_253 = arith.constant 0 : index
    %275 = vector.load %arg19[%c0_250, %c0_251, %c1_252, %c0_253] : memref<2x4x4x128xf32, #tpu.memory_space<vmem>>, vector<2x2x2x128xf32>
    %276 = vector.shape_cast %275 : vector<2x2x2x128xf32> to vector<8x128xf32>
    %277 = arith.truncf %276 : vector<8x128xf32> to vector<8x128xbf16>
    %c1_254 = arith.constant 1 : index
    %c0_255 = arith.constant 0 : index
    %c0_256 = arith.constant 0 : index
    %278 = vector.load %arg21[%c1_254, %c0_255, %c0_256] : memref<9x128x256xbf16, #tpu.memory_space<vmem>>, vector<1x128x256xbf16>
    %279 = vector.shape_cast %278 : vector<1x128x256xbf16> to vector<128x256xbf16>
    %cst_257 = arith.constant dense<0.000000e+00> : vector<8x256xf32>
    %280 = tpu.matmul %277, %279, %cst_257 {dimension_numbers = #tpu.dot_dimension_numbers<[1], [0], [0], [1], [0, 0, 1, 1], [], []>} : vector<8x128xbf16>, vector<128x256xbf16>, vector<8x256xf32> -> vector<8x256xf32>
    %281 = arith.addf %274, %280 : vector<8x256xf32>
    %c0_258 = arith.constant 0 : index
    %c0_259 = arith.constant 0 : index
    %c2_260 = arith.constant 2 : index
    %c0_261 = arith.constant 0 : index
    %282 = vector.load %arg19[%c0_258, %c0_259, %c2_260, %c0_261] : memref<2x4x4x128xf32, #tpu.memory_space<vmem>>, vector<2x2x2x128xf32>
    %283 = vector.shape_cast %282 : vector<2x2x2x128xf32> to vector<8x128xf32>
    %284 = arith.truncf %283 : vector<8x128xf32> to vector<8x128xbf16>
    %c2_262 = arith.constant 2 : index
    %c0_263 = arith.constant 0 : index
    %c0_264 = arith.constant 0 : index
    %285 = vector.load %arg21[%c2_262, %c0_263, %c0_264] : memref<9x128x256xbf16, #tpu.memory_space<vmem>>, vector<1x128x256xbf16>
    %286 = vector.shape_cast %285 : vector<1x128x256xbf16> to vector<128x256xbf16>
    %cst_265 = arith.constant dense<0.000000e+00> : vector<8x256xf32>
    %287 = tpu.matmul %284, %286, %cst_265 {dimension_numbers = #tpu.dot_dimension_numbers<[1], [0], [0], [1], [0, 0, 1, 1], [], []>} : vector<8x128xbf16>, vector<128x256xbf16>, vector<8x256xf32> -> vector<8x256xf32>
    %288 = arith.addf %281, %287 : vector<8x256xf32>
    %c0_266 = arith.constant 0 : index
    %c1_267 = arith.constant 1 : index
    %c0_268 = arith.constant 0 : index
    %c0_269 = arith.constant 0 : index
    %289 = vector.load %arg19[%c0_266, %c1_267, %c0_268, %c0_269] : memref<2x4x4x128xf32, #tpu.memory_space<vmem>>, vector<2x2x2x128xf32>
    %290 = vector.shape_cast %289 : vector<2x2x2x128xf32> to vector<8x128xf32>
    %291 = arith.truncf %290 : vector<8x128xf32> to vector<8x128xbf16>
    %c3_270 = arith.constant 3 : index
    %c0_271 = arith.constant 0 : index
    %c0_272 = arith.constant 0 : index
    %292 = vector.load %arg21[%c3_270, %c0_271, %c0_272] : memref<9x128x256xbf16, #tpu.memory_space<vmem>>, vector<1x128x256xbf16>
    %293 = vector.shape_cast %292 : vector<1x128x256xbf16> to vector<128x256xbf16>
    %cst_273 = arith.constant dense<0.000000e+00> : vector<8x256xf32>
    %294 = tpu.matmul %291, %293, %cst_273 {dimension_numbers = #tpu.dot_dimension_numbers<[1], [0], [0], [1], [0, 0, 1, 1], [], []>} : vector<8x128xbf16>, vector<128x256xbf16>, vector<8x256xf32> -> vector<8x256xf32>
    %295 = arith.addf %288, %294 : vector<8x256xf32>
    %c0_274 = arith.constant 0 : index
    %c1_275 = arith.constant 1 : index
    %c1_276 = arith.constant 1 : index
    %c0_277 = arith.constant 0 : index
    %296 = vector.load %arg19[%c0_274, %c1_275, %c1_276, %c0_277] : memref<2x4x4x128xf32, #tpu.memory_space<vmem>>, vector<2x2x2x128xf32>
    %297 = vector.shape_cast %296 : vector<2x2x2x128xf32> to vector<8x128xf32>
    %298 = arith.truncf %297 : vector<8x128xf32> to vector<8x128xbf16>
    %c4_278 = arith.constant 4 : index
    %c0_279 = arith.constant 0 : index
    %c0_280 = arith.constant 0 : index
    %299 = vector.load %arg21[%c4_278, %c0_279, %c0_280] : memref<9x128x256xbf16, #tpu.memory_space<vmem>>, vector<1x128x256xbf16>
    %300 = vector.shape_cast %299 : vector<1x128x256xbf16> to vector<128x256xbf16>
    %cst_281 = arith.constant dense<0.000000e+00> : vector<8x256xf32>
    %301 = tpu.matmul %298, %300, %cst_281 {dimension_numbers = #tpu.dot_dimension_numbers<[1], [0], [0], [1], [0, 0, 1, 1], [], []>} : vector<8x128xbf16>, vector<128x256xbf16>, vector<8x256xf32> -> vector<8x256xf32>
    %302 = arith.addf %295, %301 : vector<8x256xf32>
    %c0_282 = arith.constant 0 : index
    %c1_283 = arith.constant 1 : index
    %c2_284 = arith.constant 2 : index
    %c0_285 = arith.constant 0 : index
    %303 = vector.load %arg19[%c0_282, %c1_283, %c2_284, %c0_285] : memref<2x4x4x128xf32, #tpu.memory_space<vmem>>, vector<2x2x2x128xf32>
    %304 = vector.shape_cast %303 : vector<2x2x2x128xf32> to vector<8x128xf32>
    %305 = arith.truncf %304 : vector<8x128xf32> to vector<8x128xbf16>
    %c5_286 = arith.constant 5 : index
    %c0_287 = arith.constant 0 : index
    %c0_288 = arith.constant 0 : index
    %306 = vector.load %arg21[%c5_286, %c0_287, %c0_288] : memref<9x128x256xbf16, #tpu.memory_space<vmem>>, vector<1x128x256xbf16>
    %307 = vector.shape_cast %306 : vector<1x128x256xbf16> to vector<128x256xbf16>
    %cst_289 = arith.constant dense<0.000000e+00> : vector<8x256xf32>
    %308 = tpu.matmul %305, %307, %cst_289 {dimension_numbers = #tpu.dot_dimension_numbers<[1], [0], [0], [1], [0, 0, 1, 1], [], []>} : vector<8x128xbf16>, vector<128x256xbf16>, vector<8x256xf32> -> vector<8x256xf32>
    %309 = arith.addf %302, %308 : vector<8x256xf32>
    %c0_290 = arith.constant 0 : index
    %c2_291 = arith.constant 2 : index
    %c0_292 = arith.constant 0 : index
    %c0_293 = arith.constant 0 : index
    %310 = vector.load %arg19[%c0_290, %c2_291, %c0_292, %c0_293] : memref<2x4x4x128xf32, #tpu.memory_space<vmem>>, vector<2x2x2x128xf32>
    %311 = vector.shape_cast %310 : vector<2x2x2x128xf32> to vector<8x128xf32>
    %312 = arith.truncf %311 : vector<8x128xf32> to vector<8x128xbf16>
    %c6_294 = arith.constant 6 : index
    %c0_295 = arith.constant 0 : index
    %c0_296 = arith.constant 0 : index
    %313 = vector.load %arg21[%c6_294, %c0_295, %c0_296] : memref<9x128x256xbf16, #tpu.memory_space<vmem>>, vector<1x128x256xbf16>
    %314 = vector.shape_cast %313 : vector<1x128x256xbf16> to vector<128x256xbf16>
    %cst_297 = arith.constant dense<0.000000e+00> : vector<8x256xf32>
    %315 = tpu.matmul %312, %314, %cst_297 {dimension_numbers = #tpu.dot_dimension_numbers<[1], [0], [0], [1], [0, 0, 1, 1], [], []>} : vector<8x128xbf16>, vector<128x256xbf16>, vector<8x256xf32> -> vector<8x256xf32>
    %316 = arith.addf %309, %315 : vector<8x256xf32>
    %c0_298 = arith.constant 0 : index
    %c2_299 = arith.constant 2 : index
    %c1_300 = arith.constant 1 : index
    %c0_301 = arith.constant 0 : index
    %317 = vector.load %arg19[%c0_298, %c2_299, %c1_300, %c0_301] : memref<2x4x4x128xf32, #tpu.memory_space<vmem>>, vector<2x2x2x128xf32>
    %318 = vector.shape_cast %317 : vector<2x2x2x128xf32> to vector<8x128xf32>
    %319 = arith.truncf %318 : vector<8x128xf32> to vector<8x128xbf16>
    %c7_302 = arith.constant 7 : index
    %c0_303 = arith.constant 0 : index
    %c0_304 = arith.constant 0 : index
    %320 = vector.load %arg21[%c7_302, %c0_303, %c0_304] : memref<9x128x256xbf16, #tpu.memory_space<vmem>>, vector<1x128x256xbf16>
    %321 = vector.shape_cast %320 : vector<1x128x256xbf16> to vector<128x256xbf16>
    %cst_305 = arith.constant dense<0.000000e+00> : vector<8x256xf32>
    %322 = tpu.matmul %319, %321, %cst_305 {dimension_numbers = #tpu.dot_dimension_numbers<[1], [0], [0], [1], [0, 0, 1, 1], [], []>} : vector<8x128xbf16>, vector<128x256xbf16>, vector<8x256xf32> -> vector<8x256xf32>
    %323 = arith.addf %316, %322 : vector<8x256xf32>
    %c0_306 = arith.constant 0 : index
    %c2_307 = arith.constant 2 : index
    %c2_308 = arith.constant 2 : index
    %c0_309 = arith.constant 0 : index
    %324 = vector.load %arg19[%c0_306, %c2_307, %c2_308, %c0_309] : memref<2x4x4x128xf32, #tpu.memory_space<vmem>>, vector<2x2x2x128xf32>
    %325 = vector.shape_cast %324 : vector<2x2x2x128xf32> to vector<8x128xf32>
    %326 = arith.truncf %325 : vector<8x128xf32> to vector<8x128xbf16>
    %c8_310 = arith.constant 8 : index
    %c0_311 = arith.constant 0 : index
    %c0_312 = arith.constant 0 : index
    %327 = vector.load %arg21[%c8_310, %c0_311, %c0_312] : memref<9x128x256xbf16, #tpu.memory_space<vmem>>, vector<1x128x256xbf16>
    %328 = vector.shape_cast %327 : vector<1x128x256xbf16> to vector<128x256xbf16>
    %cst_313 = arith.constant dense<0.000000e+00> : vector<8x256xf32>
    %329 = tpu.matmul %326, %328, %cst_313 {dimension_numbers = #tpu.dot_dimension_numbers<[1], [0], [0], [1], [0, 0, 1, 1], [], []>} : vector<8x128xbf16>, vector<128x256xbf16>, vector<8x256xf32> -> vector<8x256xf32>
    %330 = arith.addf %323, %329 : vector<8x256xf32>
    %cst_314 = arith.constant dense<0.000000e+00> : vector<256xf32>
    %331 = vector.multi_reduction <add>, %330, %cst_314 [0] : vector<8x256xf32> to vector<256xf32>
    %332 = vector.shape_cast %331 : vector<256xf32> to vector<1x256xf32>
    %cst_315 = arith.constant 8.000000e+00 : f32
    %333 = vector.broadcast %cst_315 : f32 to vector<1x256xf32>
    %334 = arith.divf %332, %333 : vector<1x256xf32>
    %335 = vector.broadcast %334 : vector<1x256xf32> to vector<8x256xf32>
    %336 = arith.subf %330, %335 : vector<8x256xf32>
    %337 = arith.mulf %336, %336 : vector<8x256xf32>
    %cst_316 = arith.constant dense<0.000000e+00> : vector<256xf32>
    %338 = vector.multi_reduction <add>, %337, %cst_316 [0] : vector<8x256xf32> to vector<256xf32>
    %339 = vector.shape_cast %338 : vector<256xf32> to vector<1x256xf32>
    %cst_317 = arith.constant 8.000000e+00 : f32
    %340 = vector.broadcast %cst_317 : f32 to vector<1x256xf32>
    %341 = arith.divf %339, %340 : vector<1x256xf32>
    %c0_318 = arith.constant 0 : index
    %c0_319 = arith.constant 0 : index
    %342 = vector.load %arg12[%c0_318, %c0_319] : memref<1x256xf32, #tpu.memory_space<vmem>>, vector<1x256xf32>
    %cst_320 = arith.constant 9.99999974E-6 : f32
    %343 = vector.broadcast %cst_320 : f32 to vector<1x256xf32>
    %344 = arith.addf %341, %343 : vector<1x256xf32>
    %345 = math.rsqrt %344 : vector<1x256xf32>
    %346 = arith.mulf %342, %345 : vector<1x256xf32>
    %347 = vector.broadcast %346 : vector<1x256xf32> to vector<8x256xf32>
    %348 = arith.mulf %336, %347 : vector<8x256xf32>
    %c0_321 = arith.constant 0 : index
    %c0_322 = arith.constant 0 : index
    %349 = vector.load %arg13[%c0_321, %c0_322] : memref<1x256xf32, #tpu.memory_space<vmem>>, vector<1x256xf32>
    %350 = vector.broadcast %349 : vector<1x256xf32> to vector<8x256xf32>
    %351 = arith.addf %348, %350 : vector<8x256xf32>
    %cst_323 = arith.constant 0.000000e+00 : f32
    %352 = vector.broadcast %cst_323 : f32 to vector<8x256xf32>
    %353 = arith.maximumf %351, %352 : vector<8x256xf32>
    %354 = vector.shape_cast %353 : vector<8x256xf32> to vector<2x2x1x2x256xf32>
    %355 = vector.extract_strided_slice %354 {offsets = [0, 0, 0, 0, 0], sizes = [2, 2, 1, 1, 256], strides = [1, 1, 1, 1, 1]} : vector<2x2x1x2x256xf32> to vector<2x2x1x1x256xf32>
    %356 = vector.shape_cast %355 : vector<2x2x1x1x256xf32> to vector<2x2x1x256xf32>
    %357 = vector.extract_strided_slice %354 {offsets = [0, 0, 0, 1, 0], sizes = [2, 2, 1, 1, 256], strides = [1, 1, 1, 1, 1]} : vector<2x2x1x2x256xf32> to vector<2x2x1x1x256xf32>
    %358 = vector.shape_cast %357 : vector<2x2x1x1x256xf32> to vector<2x2x1x256xf32>
    %359 = arith.maximumf %356, %358 : vector<2x2x1x256xf32>
    %360 = vector.shape_cast %359 : vector<2x2x1x256xf32> to vector<2x1x2x1x256xf32>
    %361 = vector.extract_strided_slice %360 {offsets = [0, 0, 0, 0, 0], sizes = [2, 1, 1, 1, 256], strides = [1, 1, 1, 1, 1]} : vector<2x1x2x1x256xf32> to vector<2x1x1x1x256xf32>
    %362 = vector.shape_cast %361 : vector<2x1x1x1x256xf32> to vector<2x1x1x256xf32>
    %363 = vector.extract_strided_slice %360 {offsets = [0, 0, 1, 0, 0], sizes = [2, 1, 1, 1, 256], strides = [1, 1, 1, 1, 1]} : vector<2x1x2x1x256xf32> to vector<2x1x1x1x256xf32>
    %364 = vector.shape_cast %363 : vector<2x1x1x1x256xf32> to vector<2x1x1x256xf32>
    %365 = arith.maximumf %362, %364 : vector<2x1x1x256xf32>
    %366 = vector.shape_cast %365 : vector<2x1x1x256xf32> to vector<2x1x256xf32>
    %cst_324 = arith.constant dense<0.000000e+00> : vector<2x256xf32>
    %367 = vector.multi_reduction <add>, %366, %cst_324 [1] : vector<2x1x256xf32> to vector<2x256xf32>
    %cst_325 = arith.constant 1.000000e+00 : f32
    %368 = vector.broadcast %cst_325 : f32 to vector<2x256xf32>
    %369 = arith.divf %367, %368 : vector<2x256xf32>
    %c2_i32_326 = arith.constant 2 : i32
    %370 = tpu.memref_slice %arg23[%c2_i32_326] : memref<3x!tpu.dma_semaphore, #tpu.memory_space<semaphore_mem>> -> memref<1x!tpu.dma_semaphore, #tpu.memory_space<semaphore_mem>>
    %371 = tpu.memref_squeeze %370 : memref<1x!tpu.dma_semaphore, #tpu.memory_space<semaphore_mem>> -> memref<!tpu.dma_semaphore, #tpu.memory_space<semaphore_mem>>
    tpu.wait_dma2 semaphore(%371 : memref<!tpu.dma_semaphore, #tpu.memory_space<semaphore_mem>>) src(%arg14 : memref<256x8xbf16, #tpu.memory_space<any>>) dst(%arg22 : memref<256x8xbf16, #tpu.memory_space<vmem>>)
    %372 = arith.truncf %369 : vector<2x256xf32> to vector<2x256xbf16>
    %c0_327 = arith.constant 0 : index
    %c0_328 = arith.constant 0 : index
    %373 = vector.load %arg22[%c0_327, %c0_328] : memref<256x8xbf16, #tpu.memory_space<vmem>>, vector<256x8xbf16>
    %cst_329 = arith.constant dense<0.000000e+00> : vector<2x8xf32>
    %374 = tpu.matmul %372, %373, %cst_329 {dimension_numbers = #tpu.dot_dimension_numbers<[1], [0], [0], [1], [0, 0, 1, 1], [], []>} : vector<2x256xbf16>, vector<256x8xbf16>, vector<2x8xf32> -> vector<2x8xf32>
    %c0_330 = arith.constant 0 : index
    %c0_331 = arith.constant 0 : index
    %375 = vector.load %arg15[%c0_330, %c0_331] : memref<1x8xf32, #tpu.memory_space<vmem>>, vector<1x8xf32>
    %376 = vector.broadcast %375 : vector<1x8xf32> to vector<2x8xf32>
    %377 = arith.addf %374, %376 : vector<2x8xf32>
    %c0_332 = arith.constant 0 : index
    %c0_333 = arith.constant 0 : index
    %378 = vector.load %arg16[%c0_332, %c0_333] : memref<2x8xf32, #tpu.memory_space<vmem>>, vector<2x8xf32>
    tpu.vector_store %arg16[%c0_332, %c0_333], %377 {strides = array<i32>} : memref<2x8xf32, #tpu.memory_space<vmem>>, vector<2x8xf32>,
    return
  }
  func.func @transform_0(%arg0: i32) -> (i32, i32) {
    %c0_i32 = arith.constant 0 : i32
    %c0_i32_0 = arith.constant 0 : i32
    %c0_i32_1 = arith.constant 0 : i32
    return %c0_i32, %c0_i32_0 : i32, i32
  }
  func.func @transform_1(%arg0: i32) -> (i32, i32) {
    %c0_i32 = arith.constant 0 : i32
    %c0_i32_0 = arith.constant 0 : i32
    %c0_i32_1 = arith.constant 0 : i32
    return %c0_i32, %c0_i32_0 : i32, i32
  }
  func.func @transform_2(%arg0: i32) -> (i32, i32) {
    %c0_i32 = arith.constant 0 : i32
    %c0_i32_0 = arith.constant 0 : i32
    %c0_i32_1 = arith.constant 0 : i32
    return %c0_i32, %c0_i32_0 : i32, i32
  }
  func.func @transform_3(%arg0: i32) -> (i32, i32) {
    %c0_i32 = arith.constant 0 : i32
    %c0_i32_0 = arith.constant 0 : i32
    %c0_i32_1 = arith.constant 0 : i32
    return %c0_i32, %c0_i32_0 : i32, i32
  }
  func.func @transform_4(%arg0: i32) -> (i32, i32, i32) {
    %c0_i32 = arith.constant 0 : i32
    %c0_i32_0 = arith.constant 0 : i32
    %c0_i32_1 = arith.constant 0 : i32
    %c0_i32_2 = arith.constant 0 : i32
    return %c0_i32, %c0_i32_0, %c0_i32_1 : i32, i32, i32
  }
  func.func @transform_5(%arg0: i32) -> (i32, i32) {
    %c0_i32 = arith.constant 0 : i32
    %c0_i32_0 = arith.constant 0 : i32
    %c0_i32_1 = arith.constant 0 : i32
    return %c0_i32, %c0_i32_0 : i32, i32
  }
  func.func @transform_6(%arg0: i32) -> (i32, i32) {
    %c0_i32 = arith.constant 0 : i32
    %c0_i32_0 = arith.constant 0 : i32
    %c0_i32_1 = arith.constant 0 : i32
    return %c0_i32, %c0_i32_0 : i32, i32
  }
  func.func @transform_8(%arg0: i32) -> (i32, i32) {
    %c0_i32 = arith.constant 0 : i32
    %c0_i32_0 = arith.constant 0 : i32
    %c0_i32_1 = arith.constant 0 : i32
    return %c0_i32, %c0_i32_0 : i32, i32
  }
  func.func @transform_9(%arg0: i32) -> (i32, i32) {
    %c0_i32 = arith.constant 0 : i32
    %c0_i32_0 = arith.constant 0 : i32
    %c0_i32_1 = arith.constant 0 : i32
    return %c0_i32, %c0_i32_0 : i32, i32
  }
  func.func @transform_11(%arg0: i32) -> (i32, i32) {
    %c0_i32 = arith.constant 0 : i32
    %c0_i32_0 = arith.constant 0 : i32
    %c0_i32_1 = arith.constant 0 : i32
    return %c0_i32, %c0_i32_0 : i32, i32
  }
  func.func @transform_12(%arg0: i32) -> (i32, i32) {
    %c0_i32 = arith.constant 0 : i32
    %c0_i32_0 = arith.constant 0 : i32
    %c0_i32_1 = arith.constant 0 : i32
    return %c0_i32, %c0_i32_0 : i32, i32
  }
  func.func @transform_14(%arg0: i32) -> (i32, i32) {
    %c0_i32 = arith.constant 0 : i32
    %c0_i32_0 = arith.constant 0 : i32
    %c0_i32_1 = arith.constant 0 : i32
    return %c0_i32, %c0_i32_0 : i32, i32
  }
  func.func @transform_15(%arg0: i32) -> (i32, i32) {
    %c0_i32 = arith.constant 0 : i32
    %c0_i32_0 = arith.constant 0 : i32
    %c0_i32_1 = arith.constant 0 : i32
    return %c0_i32, %c0_i32_0 : i32, i32
  }
}

</mosaic_0001>

<bundles_post_ra>
// kernel: convnet_forward.1
= control target key start
LH: loop header
LB: loop body
LE: loop exit
PB: predicated region body
PF: predicated region fallthrough
CT: control target
= control target key end

     0   :  { %20 = vsyncpa [#allocation10], 0  ;;  %s19870_s0 = inlined_call_operand.vmem [shape: bf16[512,9], index: 0, kind: input, shape index: {}]   ;;  %s19871_s1 = inlined_call_operand.vmem [shape: bf16[9,32], index: 1, kind: input, shape index: {}]   ;;  %s19872_s2 = inlined_call_operand.vmem [shape: f32[1,32], index: 2, kind: input, shape index: {}]   ;;  %s19873_s3 = inlined_call_operand.vmem [shape: f32[1,32], index: 3, kind: input, shape index: {}]   ;;  %s19874_s4 = inlined_call_operand.vmem [shape: bf16[9,32,64], index: 4, kind: input, shape index: {}]   ;;  %s19875_s5 = inlined_call_operand.vmem [shape: f32[1,64], index: 5, kind: input, shape index: {}]   ;;  %s19876_s6 = inlined_call_operand.vmem [shape: f32[1,64], index: 6, kind: input, shape index: {}]   ;;  %s19877_s7 = inlined_call_operand.vmem [shape: bf16[9,64,128], index: 7, kind: input, shape index: {}]   ;;  %s19878_s8 = inlined_call_operand.vmem [shape: f32[1,128], index: 8, kind: input, shape index: {}]   ;;  %s19879_s9 = inlined_call_operand.vmem [shape: f32[1,128], index: 9, kind: input, shape index: {}]   ;;  %s19880_s10 = inlined_call_operand.vmem [shape: bf16[9,128,256], index: 10, kind: input, shape index: {}]   ;;  %s19881_s11 = inlined_call_operand.vmem [shape: f32[1,256], index: 11, kind: input, shape index: {}]   ;;  %s19882_s12 = inlined_call_operand.vmem [shape: f32[1,256], index: 12, kind: input, shape index: {}]   ;;  %s19883_s13 = inlined_call_operand.vmem [shape: bf16[256,8], index: 13, kind: input, shape index: {}]   ;;  %s19884_s14 = inlined_call_operand.vmem [shape: f32[1,8], index: 14, kind: input, shape index: {}]   ;;  %s19885_s15 = inlined_call_operand.hbm [shape: f32[2,8], index: 15, kind: output, shape index: {}]  }
   0x1   :  { %v12427_v0 = vld [vmem:[%s19877_s7] sm:$0xff]  ;;  %v12432_v1 = vld [vmem:[%s19877_s7 + $0x8] sm:$0xff]  ;;  %v12437_v2 = vld [vmem:[%s19877_s7 + $0x10] sm:$0xff] }
   0x2   :  { %20623 = vst [vmem:[#allocation18_spill] sm:$0xff] %v12427_v0  ;;  %20624 = vst [vmem:[#allocation19_spill] sm:$0xff] %v12432_v1  ;;  %v12442_v3 = vld [vmem:[%s19877_s7 + $0x18] sm:$0xff]  ;;  %v12447_v4 = vld [vmem:[%s19877_s7 + $0x20] sm:$0xff] }
   0x3   :  { %20625 = vst [vmem:[#allocation20_spill] sm:$0xff] %v12437_v2  ;;  %20626 = vst [vmem:[#allocation21_spill] sm:$0xff] %v12442_v3  ;;  %v12452_v5 = vld [vmem:[%s19877_s7 + $0x28] sm:$0xff]  ;;  %v12457_v6 = vld [vmem:[%s19877_s7 + $0x30] sm:$0xff] }
   0x4   :  { %20627 = vst [vmem:[#allocation22_spill] sm:$0xff] %v12447_v4  ;;  %20628 = vst [vmem:[#allocation23_spill] sm:$0xff] %v12452_v5  ;;  %v12462_v7 = vld [vmem:[%s19877_s7 + $0x38] sm:$0xff]  ;;  %v12467_v8 = vld [vmem:[%s19877_s7 + $0x40] sm:$0xff] }
   0x5   :  { %20629 = vst [vmem:[#allocation24_spill] sm:$0xff] %v12457_v6  ;;  %20630 = vst [vmem:[#allocation25_spill] sm:$0xff] %v12462_v7  ;;  %v12472_v9 = vld [vmem:[%s19877_s7 + $0x48] sm:$0xff]  ;;  %v12477_v10 = vld [vmem:[%s19877_s7 + $0x50] sm:$0xff] }
   0x6   :  { %20631 = vst [vmem:[#allocation26_spill] sm:$0xff] %v12467_v8  ;;  %20632 = vst [vmem:[#allocation27_spill] sm:$0xff] %v12472_v9  ;;  %v12482_v11 = vld [vmem:[%s19877_s7 + $0x58] sm:$0xff]  ;;  %v12487_v12 = vld [vmem:[%s19877_s7 + $0x60] sm:$0xff] }
   0x7   :  { %20633 = vst [vmem:[#allocation28_spill] sm:$0xff] %v12477_v10  ;;  %20634 = vst [vmem:[#allocation29_spill] sm:$0xff] %v12482_v11  ;;  %v12492_v13 = vld [vmem:[%s19877_s7 + $0x68] sm:$0xff]  ;;  %v12497_v14 = vld [vmem:[%s19877_s7 + $0x70] sm:$0xff] }
   0x8   :  { %20635 = vst [vmem:[#allocation30_spill] sm:$0xff] %v12487_v12  ;;  %20636 = vst [vmem:[#allocation31_spill] sm:$0xff] %v12492_v13  ;;  %v12502_v15 = vld [vmem:[%s19877_s7 + $0x78] sm:$0xff]  ;;  %v12507_v16 = vld [vmem:[%s19877_s7 + $0x80] sm:$0xff] }
   0x9   :  { %20637 = vst [vmem:[#allocation32_spill] sm:$0xff] %v12497_v14  ;;  %20638 = vst [vmem:[#allocation33_spill] sm:$0xff] %v12502_v15  ;;  %v12512_v17 = vld [vmem:[%s19877_s7 + $0x88] sm:$0xff]  ;;  %v12517_v18 = vld [vmem:[%s19877_s7 + $0x90] sm:$0xff] }
   0xa   :  { %20639 = vst [vmem:[#allocation34_spill] sm:$0xff] %v12507_v16  ;;  %20640 = vst [vmem:[#allocation35_spill] sm:$0xff] %v12512_v17  ;;  %v12522_v19 = vld [vmem:[%s19877_s7 + $0x98] sm:$0xff]  ;;  %v12527_v20 = vld [vmem:[%s19877_s7 + $0xa0] sm:$0xff] }
   0xb   :  { %20641 = vst [vmem:[#allocation36_spill] sm:$0xff] %v12517_v18  ;;  %20642 = vst [vmem:[#allocation37_spill] sm:$0xff] %v12522_v19  ;;  %v12532_v21 = vld [vmem:[%s19877_s7 + $0xa8] sm:$0xff]  ;;  %v12537_v22 = vld [vmem:[%s19877_s7 + $0xb0] sm:$0xff] }
   0xc   :  { %20643 = vst [vmem:[#allocation38_spill] sm:$0xff] %v12527_v20  ;;  %20644 = vst [vmem:[#allocation39_spill] sm:$0xff] %v12532_v21  ;;  %v12542_v23 = vld [vmem:[%s19877_s7 + $0xb8] sm:$0xff]  ;;  %v12547_v24 = vld [vmem:[%s19877_s7 + $0xc0] sm:$0xff] }
   0xd   :  { %20645 = vst [vmem:[#allocation40_spill] sm:$0xff] %v12537_v22  ;;  %20646 = vst [vmem:[#allocation41_spill] sm:$0xff] %v12542_v23  ;;  %v12552_v25 = vld [vmem:[%s19877_s7 + $0xc8] sm:$0xff]  ;;  %v12557_v26 = vld [vmem:[%s19877_s7 + $0xd0] sm:$0xff] }
   0xe   :  { %20647 = vst [vmem:[#allocation42_spill] sm:$0xff] %v12547_v24  ;;  %20648 = vst [vmem:[#allocation43_spill] sm:$0xff] %v12552_v25  ;;  %v12562_v27 = vld [vmem:[%s19877_s7 + $0xd8] sm:$0xff]  ;;  %v12567_v28 = vld [vmem:[%s19877_s7 + $0xe0] sm:$0xff] }
   0xf   :  { %20649 = vst [vmem:[#allocation44_spill] sm:$0xff] %v12557_v26  ;;  %20650 = vst [vmem:[#allocation45_spill] sm:$0xff] %v12562_v27  ;;  %v12572_v29 = vld [vmem:[%s19877_s7 + $0xe8] sm:$0xff]  ;;  %v12577_v30 = vld [vmem:[%s19877_s7 + $0xf0] sm:$0xff] }
  0x10   :  { %20651 = vst [vmem:[#allocation46_spill] sm:$0xff] %v12567_v28  ;;  %20652 = vst [vmem:[#allocation47_spill] sm:$0xff] %v12572_v29  ;;  %v12582_v31 = vld [vmem:[%s19877_s7 + $0xf8] sm:$0xff]  ;;  %v12587_v32 = vld [vmem:[%s19877_s7 + $0x100] sm:$0xff] }
  0x11   :  { %20653 = vst [vmem:[#allocation48_spill] sm:$0xff] %v12577_v30  ;;  %20654 = vst [vmem:[#allocation49_spill] sm:$0xff] %v12582_v31  ;;  %v12592_v33 = vld [vmem:[%s19877_s7 + $0x108] sm:$0xff]  ;;  %v12597_v34 = vld [vmem:[%s19877_s7 + $0x110] sm:$0xff] }
  0x12   :  { %20655 = vst [vmem:[#allocation50_spill] sm:$0xff] %v12587_v32  ;;  %20656 = vst [vmem:[#allocation51_spill] sm:$0xff] %v12592_v33  ;;  %v12602_v35 = vld [vmem:[%s19877_s7 + $0x118] sm:$0xff] }
  0x13   :  { %20657 = vst [vmem:[#allocation52_spill] sm:$0xff] %v12597_v34  ;;  %20658 = vst [vmem:[#allocation53_spill] sm:$0xff] %v12602_v35 }
  0x14   :  { %157 = vsyncadd [#allocation8], 4608  ;;  %v176_v36 = vld [vmem:[%s19880_s10] sm:$0xf]  ;;  %v178_v37 = vld [vmem:[%s19880_s10 + $0x8] sm:$0xf] }
  0x15   :  { %177 = vst [vmem:[#allocation6] sm:$0xf] %v176_v36  ;;  %179 = vst [vmem:[#allocation6 + $0x4] sm:$0xf] %v178_v37  ;;  %v180_v38 = vld [vmem:[%s19880_s10 + $0x4] sm:$0xf] }
  0x16   :  { %v182_v39 = vld [vmem:[%s19880_s10 + $0xc] sm:$0xff]   ;;  %v186_v40 = vld [vmem:[%s19880_s10 + $0x18] sm:$0xf]  ;;  %181 = vst [vmem:[#allocation6 + $0x8] sm:$0xf] %v180_v38  ;;  %v190_v42 = vld [vmem:[%s19880_s10 + $0x1c] sm:$0xff]  }
  0x17   :  { %183 = vst [vmem:[#allocation6 + $0xc] sm:$0xff] %v182_v39   ;;  %187 = vst [vmem:[#allocation6 + $0x14] sm:$0xf] %v186_v40  ;;  %v188_v41 = vld [vmem:[%s19880_s10 + $0x14] sm:$0xf]  ;;  %v198_v45 = vld [vmem:[%s19880_s10 + $0x2c] sm:$0xff]  }
  0x18   :  { %v194_v43 = vld [vmem:[%s19880_s10 + $0x28] sm:$0xf]  ;;  %189 = vst [vmem:[#allocation6 + $0x18] sm:$0xf] %v188_v41  ;;  %191 = vst [vmem:[#allocation6 + $0x1c] sm:$0xff] %v190_v42   ;;  %v206_v48 = vld [vmem:[%s19880_s10 + $0x3c] sm:$0xff]  }
  0x19   :  { %195 = vst [vmem:[#allocation6 + $0x24] sm:$0xf] %v194_v43  ;;  %v196_v44 = vld [vmem:[%s19880_s10 + $0x24] sm:$0xf]  ;;  %v202_v46 = vld [vmem:[%s19880_s10 + $0x38] sm:$0xf] }
  0x1a   :  { %197 = vst [vmem:[#allocation6 + $0x28] sm:$0xf] %v196_v44  ;;  %199 = vst [vmem:[#allocation6 + $0x2c] sm:$0xff] %v198_v45   ;;  %v204_v47 = vld [vmem:[%s19880_s10 + $0x34] sm:$0xf]  ;;  %v214_v51 = vld [vmem:[%s19880_s10 + $0x4c] sm:$0xff]  }
  0x1b   :  { %203 = vst [vmem:[#allocation6 + $0x34] sm:$0xf] %v202_v46  ;;  %v210_v49 = vld [vmem:[%s19880_s10 + $0x48] sm:$0xf]  ;;  %205 = vst [vmem:[#allocation6 + $0x38] sm:$0xf] %v204_v47 }
  0x1c   :  { %207 = vst [vmem:[#allocation6 + $0x3c] sm:$0xff] %v206_v48   ;;  %211 = vst [vmem:[#allocation6 + $0x44] sm:$0xf] %v210_v49  ;;  %v212_v50 = vld [vmem:[%s19880_s10 + $0x44] sm:$0xf]  ;;  %v222_v54 = vld [vmem:[%s19880_s10 + $0x5c] sm:$0xff]  }
  0x1d   :  { %v218_v52 = vld [vmem:[%s19880_s10 + $0x58] sm:$0xf]  ;;  %213 = vst [vmem:[#allocation6 + $0x48] sm:$0xf] %v212_v50  ;;  %215 = vst [vmem:[#allocation6 + $0x4c] sm:$0xff] %v214_v51   ;;  %v230_v57 = vld [vmem:[%s19880_s10 + $0x6c] sm:$0xff]  }
  0x1e   :  { %219 = vst [vmem:[#allocation6 + $0x54] sm:$0xf] %v218_v52  ;;  %v220_v53 = vld [vmem:[%s19880_s10 + $0x54] sm:$0xf]  ;;  %v226_v55 = vld [vmem:[%s19880_s10 + $0x68] sm:$0xf] }
  0x1f   :  { %221 = vst [vmem:[#allocation6 + $0x58] sm:$0xf] %v220_v53  ;;  %223 = vst [vmem:[#allocation6 + $0x5c] sm:$0xff] %v222_v54   ;;  %v228_v56 = vld [vmem:[%s19880_s10 + $0x64] sm:$0xf]  ;;  %v238_v60 = vld [vmem:[%s19880_s10 + $0x7c] sm:$0xff]  }
  0x20   :  { %227 = vst [vmem:[#allocation6 + $0x64] sm:$0xf] %v226_v55  ;;  %v234_v58 = vld [vmem:[%s19880_s10 + $0x78] sm:$0xf]  ;;  %229 = vst [vmem:[#allocation6 + $0x68] sm:$0xf] %v228_v56 }
  0x21   :  { %231 = vst [vmem:[#allocation6 + $0x6c] sm:$0xff] %v230_v57   ;;  %235 = vst [vmem:[#allocation6 + $0x74] sm:$0xf] %v234_v58  ;;  %v236_v59 = vld [vmem:[%s19880_s10 + $0x74] sm:$0xf]  ;;  %v246_v63 = vld [vmem:[%s19880_s10 + $0x8c] sm:$0xff]  }
  0x22   :  { %v242_v61 = vld [vmem:[%s19880_s10 + $0x88] sm:$0xf]  ;;  %237 = vst [vmem:[#allocation6 + $0x78] sm:$0xf] %v236_v59  ;;  %239 = vst [vmem:[#allocation6 + $0x7c] sm:$0xff] %v238_v60   ;;  %v254_v38 = vld [vmem:[%s19880_s10 + $0x9c] sm:$0xff]  }
  0x23   :  { %243 = vst [vmem:[#allocation6 + $0x84] sm:$0xf] %v242_v61  ;;  %v244_v62 = vld [vmem:[%s19880_s10 + $0x84] sm:$0xf]  ;;  %v250_v36 = vld [vmem:[%s19880_s10 + $0x98] sm:$0xf] }
  0x24   :  { %245 = vst [vmem:[#allocation6 + $0x88] sm:$0xf] %v244_v62  ;;  %247 = vst [vmem:[#allocation6 + $0x8c] sm:$0xff] %v246_v63   ;;  %v252_v37 = vld [vmem:[%s19880_s10 + $0x94] sm:$0xf]  ;;  %v262_v41 = vld [vmem:[%s19880_s10 + $0xac] sm:$0xff]  }
  0x25   :  { %251 = vst [vmem:[#allocation6 + $0x94] sm:$0xf] %v250_v36  ;;  %v258_v39 = vld [vmem:[%s19880_s10 + $0xa8] sm:$0xf]  ;;  %253 = vst [vmem:[#allocation6 + $0x98] sm:$0xf] %v252_v37 }
  0x26   :  { %255 = vst [vmem:[#allocation6 + $0x9c] sm:$0xff] %v254_v38   ;;  %259 = vst [vmem:[#allocation6 + $0xa4] sm:$0xf] %v258_v39  ;;  %v260_v40 = vld [vmem:[%s19880_s10 + $0xa4] sm:$0xf]  ;;  %v270_v44 = vld [vmem:[%s19880_s10 + $0xbc] sm:$0xff]  }
  0x27   :  { %v266_v42 = vld [vmem:[%s19880_s10 + $0xb8] sm:$0xf]  ;;  %261 = vst [vmem:[#allocation6 + $0xa8] sm:$0xf] %v260_v40  ;;  %263 = vst [vmem:[#allocation6 + $0xac] sm:$0xff] %v262_v41   ;;  %v278_v47 = vld [vmem:[%s19880_s10 + $0xcc] sm:$0xff]  }
  0x28   :  { %267 = vst [vmem:[#allocation6 + $0xb4] sm:$0xf] %v266_v42  ;;  %v268_v43 = vld [vmem:[%s19880_s10 + $0xb4] sm:$0xf]  ;;  %v274_v45 = vld [vmem:[%s19880_s10 + $0xc8] sm:$0xf] }
  0x29   :  { %269 = vst [vmem:[#allocation6 + $0xb8] sm:$0xf] %v268_v43  ;;  %271 = vst [vmem:[#allocation6 + $0xbc] sm:$0xff] %v270_v44   ;;  %v276_v46 = vld [vmem:[%s19880_s10 + $0xc4] sm:$0xf]  ;;  %v286_v50 = vld [vmem:[%s19880_s10 + $0xdc] sm:$0xff]  }
  0x2a   :  { %275 = vst [vmem:[#allocation6 + $0xc4] sm:$0xf] %v274_v45  ;;  %v282_v48 = vld [vmem:[%s19880_s10 + $0xd8] sm:$0xf]  ;;  %277 = vst [vmem:[#allocation6 + $0xc8] sm:$0xf] %v276_v46 }
  0x2b   :  { %279 = vst [vmem:[#allocation6 + $0xcc] sm:$0xff] %v278_v47   ;;  %283 = vst [vmem:[#allocation6 + $0xd4] sm:$0xf] %v282_v48  ;;  %v284_v49 = vld [vmem:[%s19880_s10 + $0xd4] sm:$0xf]  ;;  %v294_v53 = vld [vmem:[%s19880_s10 + $0xec] sm:$0xff]  }
  0x2c   :  { %v290_v51 = vld [vmem:[%s19880_s10 + $0xe8] sm:$0xf]  ;;  %285 = vst [vmem:[#allocation6 + $0xd8] sm:$0xf] %v284_v49  ;;  %287 = vst [vmem:[#allocation6 + $0xdc] sm:$0xff] %v286_v50   ;;  %v302_v56 = vld [vmem:[%s19880_s10 + $0xfc] sm:$0xff]  }
  0x2d   :  { %291 = vst [vmem:[#allocation6 + $0xe4] sm:$0xf] %v290_v51  ;;  %v292_v52 = vld [vmem:[%s19880_s10 + $0xe4] sm:$0xf]  ;;  %v298_v54 = vld [vmem:[%s19880_s10 + $0xf8] sm:$0xf] }
  0x2e   :  { %293 = vst [vmem:[#allocation6 + $0xe8] sm:$0xf] %v292_v52  ;;  %295 = vst [vmem:[#allocation6 + $0xec] sm:$0xff] %v294_v53   ;;  %v300_v55 = vld [vmem:[%s19880_s10 + $0xf4] sm:$0xf]  ;;  %v310_v59 = vld [vmem:[%s19880_s10 + $0x10c] sm:$0xff]  }
  0x2f   :  { %299 = vst [vmem:[#allocation6 + $0xf4] sm:$0xf] %v298_v54  ;;  %v306_v57 = vld [vmem:[%s19880_s10 + $0x108] sm:$0xf]  ;;  %301 = vst [vmem:[#allocation6 + $0xf8] sm:$0xf] %v300_v55 }
  0x30   :  { %303 = vst [vmem:[#allocation6 + $0xfc] sm:$0xff] %v302_v56   ;;  %307 = vst [vmem:[#allocation6 + $0x104] sm:$0xf] %v306_v57  ;;  %v308_v58 = vld [vmem:[%s19880_s10 + $0x104] sm:$0xf]  ;;  %v318_v62 = vld [vmem:[%s19880_s10 + $0x11c] sm:$0xff]  }
  0x31   :  { %v314_v60 = vld [vmem:[%s19880_s10 + $0x118] sm:$0xf]  ;;  %309 = vst [vmem:[#allocation6 + $0x108] sm:$0xf] %v308_v58  ;;  %311 = vst [vmem:[#allocation6 + $0x10c] sm:$0xff] %v310_v59   ;;  %v326_v37 = vld [vmem:[%s19880_s10 + $0x12c] sm:$0xff]  }
  0x32   :  { %315 = vst [vmem:[#allocation6 + $0x114] sm:$0xf] %v314_v60  ;;  %v316_v61 = vld [vmem:[%s19880_s10 + $0x114] sm:$0xf]  ;;  %v322_v63 = vld [vmem:[%s19880_s10 + $0x128] sm:$0xf] }
  0x33   :  { %317 = vst [vmem:[#allocation6 + $0x118] sm:$0xf] %v316_v61  ;;  %319 = vst [vmem:[#allocation6 + $0x11c] sm:$0xff] %v318_v62   ;;  %v324_v36 = vld [vmem:[%s19880_s10 + $0x124] sm:$0xf]  ;;  %v334_v40 = vld [vmem:[%s19880_s10 + $0x13c] sm:$0xff]  }
  0x34   :  { %323 = vst [vmem:[#allocation6 + $0x124] sm:$0xf] %v322_v63  ;;  %v330_v38 = vld [vmem:[%s19880_s10 + $0x138] sm:$0xf]  ;;  %325 = vst [vmem:[#allocation6 + $0x128] sm:$0xf] %v324_v36 }
  0x35   :  { %327 = vst [vmem:[#allocation6 + $0x12c] sm:$0xff] %v326_v37   ;;  %331 = vst [vmem:[#allocation6 + $0x134] sm:$0xf] %v330_v38  ;;  %v332_v39 = vld [vmem:[%s19880_s10 + $0x134] sm:$0xf]  ;;  %v342_v43 = vld [vmem:[%s19880_s10 + $0x14c] sm:$0xff]  }
  0x36   :  { %v338_v41 = vld [vmem:[%s19880_s10 + $0x148] sm:$0xf]  ;;  %333 = vst [vmem:[#allocation6 + $0x138] sm:$0xf] %v332_v39  ;;  %335 = vst [vmem:[#allocation6 + $0x13c] sm:$0xff] %v334_v40   ;;  %v350_v46 = vld [vmem:[%s19880_s10 + $0x15c] sm:$0xff]  }
  0x37   :  { %339 = vst [vmem:[#allocation6 + $0x144] sm:$0xf] %v338_v41  ;;  %v340_v42 = vld [vmem:[%s19880_s10 + $0x144] sm:$0xf]  ;;  %v346_v44 = vld [vmem:[%s19880_s10 + $0x158] sm:$0xf] }
  0x38   :  { %341 = vst [vmem:[#allocation6 + $0x148] sm:$0xf] %v340_v42  ;;  %343 = vst [vmem:[#allocation6 + $0x14c] sm:$0xff] %v342_v43   ;;  %v348_v45 = vld [vmem:[%s19880_s10 + $0x154] sm:$0xf]  ;;  %v358_v49 = vld [vmem:[%s19880_s10 + $0x16c] sm:$0xff]  }
  0x39   :  { %347 = vst [vmem:[#allocation6 + $0x154] sm:$0xf] %v346_v44  ;;  %v354_v47 = vld [vmem:[%s19880_s10 + $0x168] sm:$0xf]  ;;  %349 = vst [vmem:[#allocation6 + $0x158] sm:$0xf] %v348_v45 }
  0x3a   :  { %351 = vst [vmem:[#allocation6 + $0x15c] sm:$0xff] %v350_v46   ;;  %355 = vst [vmem:[#allocation6 + $0x164] sm:$0xf] %v354_v47  ;;  %v356_v48 = vld [vmem:[%s19880_s10 + $0x164] sm:$0xf]  ;;  %v366_v52 = vld [vmem:[%s19880_s10 + $0x17c] sm:$0xff]  }
  0x3b   :  { %v362_v50 = vld [vmem:[%s19880_s10 + $0x178] sm:$0xf]  ;;  %357 = vst [vmem:[#allocation6 + $0x168] sm:$0xf] %v356_v48  ;;  %359 = vst [vmem:[#allocation6 + $0x16c] sm:$0xff] %v358_v49   ;;  %v374_v55 = vld [vmem:[%s19880_s10 + $0x18c] sm:$0xff]  }
  0x3c   :  { %363 = vst [vmem:[#allocation6 + $0x174] sm:$0xf] %v362_v50  ;;  %v364_v51 = vld [vmem:[%s19880_s10 + $0x174] sm:$0xf]  ;;  %v370_v53 = vld [vmem:[%s19880_s10 + $0x188] sm:$0xf] }
  0x3d   :  { %365 = vst [vmem:[#allocation6 + $0x178] sm:$0xf] %v364_v51  ;;  %367 = vst [vmem:[#allocation6 + $0x17c] sm:$0xff] %v366_v52   ;;  %v372_v54 = vld [vmem:[%s19880_s10 + $0x184] sm:$0xf]  ;;  %v382_v58 = vld [vmem:[%s19880_s10 + $0x19c] sm:$0xff]  }
  0x3e   :  { %371 = vst [vmem:[#allocation6 + $0x184] sm:$0xf] %v370_v53  ;;  %v378_v56 = vld [vmem:[%s19880_s10 + $0x198] sm:$0xf]  ;;  %373 = vst [vmem:[#allocation6 + $0x188] sm:$0xf] %v372_v54 }
  0x3f   :  { %375 = vst [vmem:[#allocation6 + $0x18c] sm:$0xff] %v374_v55   ;;  %379 = vst [vmem:[#allocation6 + $0x194] sm:$0xf] %v378_v56  ;;  %v380_v57 = vld [vmem:[%s19880_s10 + $0x194] sm:$0xf]  ;;  %v390_v61 = vld [vmem:[%s19880_s10 + $0x1ac] sm:$0xff]  }
  0x40   :  { %v386_v59 = vld [vmem:[%s19880_s10 + $0x1a8] sm:$0xf]  ;;  %381 = vst [vmem:[#allocation6 + $0x198] sm:$0xf] %v380_v57  ;;  %383 = vst [vmem:[#allocation6 + $0x19c] sm:$0xff] %v382_v58   ;;  %v398_v36 = vld [vmem:[%s19880_s10 + $0x1bc] sm:$0xff]  }
  0x41   :  { %387 = vst [vmem:[#allocation6 + $0x1a4] sm:$0xf] %v386_v59  ;;  %v388_v60 = vld [vmem:[%s19880_s10 + $0x1a4] sm:$0xf]  ;;  %v394_v62 = vld [vmem:[%s19880_s10 + $0x1b8] sm:$0xf] }
  0x42   :  { %389 = vst [vmem:[#allocation6 + $0x1a8] sm:$0xf] %v388_v60  ;;  %391 = vst [vmem:[#allocation6 + $0x1ac] sm:$0xff] %v390_v61   ;;  %v396_v63 = vld [vmem:[%s19880_s10 + $0x1b4] sm:$0xf]  ;;  %v406_v39 = vld [vmem:[%s19880_s10 + $0x1cc] sm:$0xff]  }
  0x43   :  { %395 = vst [vmem:[#allocation6 + $0x1b4] sm:$0xf] %v394_v62  ;;  %v402_v37 = vld [vmem:[%s19880_s10 + $0x1c8] sm:$0xf]  ;;  %397 = vst [vmem:[#allocation6 + $0x1b8] sm:$0xf] %v396_v63 }
  0x44   :  { %399 = vst [vmem:[#allocation6 + $0x1bc] sm:$0xff] %v398_v36   ;;  %403 = vst [vmem:[#allocation6 + $0x1c4] sm:$0xf] %v402_v37  ;;  %v404_v38 = vld [vmem:[%s19880_s10 + $0x1c4] sm:$0xf]  ;;  %v414_v42 = vld [vmem:[%s19880_s10 + $0x1dc] sm:$0xff]  }
  0x45   :  { %v410_v40 = vld [vmem:[%s19880_s10 + $0x1d8] sm:$0xf]  ;;  %405 = vst [vmem:[#allocation6 + $0x1c8] sm:$0xf] %v404_v38  ;;  %407 = vst [vmem:[#allocation6 + $0x1cc] sm:$0xff] %v406_v39   ;;  %v422_v45 = vld [vmem:[%s19880_s10 + $0x1ec] sm:$0xff]  }
  0x46   :  { %411 = vst [vmem:[#allocation6 + $0x1d4] sm:$0xf] %v410_v40  ;;  %v412_v41 = vld [vmem:[%s19880_s10 + $0x1d4] sm:$0xf]  ;;  %v418_v43 = vld [vmem:[%s19880_s10 + $0x1e8] sm:$0xf] }
  0x47   :  { %413 = vst [vmem:[#allocation6 + $0x1d8] sm:$0xf] %v412_v41  ;;  %415 = vst [vmem:[#allocation6 + $0x1dc] sm:$0xff] %v414_v42   ;;  %v420_v44 = vld [vmem:[%s19880_s10 + $0x1e4] sm:$0xf]  ;;  %v430_v48 = vld [vmem:[%s19880_s10 + $0x1fc] sm:$0xff]  }
  0x48   :  { %419 = vst [vmem:[#allocation6 + $0x1e4] sm:$0xf] %v418_v43  ;;  %v426_v46 = vld [vmem:[%s19880_s10 + $0x1f8] sm:$0xf]  ;;  %421 = vst [vmem:[#allocation6 + $0x1e8] sm:$0xf] %v420_v44 }
  0x49   :  { %423 = vst [vmem:[#allocation6 + $0x1ec] sm:$0xff] %v422_v45   ;;  %427 = vst [vmem:[#allocation6 + $0x1f4] sm:$0xf] %v426_v46  ;;  %v428_v47 = vld [vmem:[%s19880_s10 + $0x1f4] sm:$0xf]  ;;  %v438_v51 = vld [vmem:[%s19880_s10 + $0x20c] sm:$0xff]  }
  0x4a   :  { %v434_v49 = vld [vmem:[%s19880_s10 + $0x208] sm:$0xf]  ;;  %429 = vst [vmem:[#allocation6 + $0x1f8] sm:$0xf] %v428_v47  ;;  %431 = vst [vmem:[#allocation6 + $0x1fc] sm:$0xff] %v430_v48   ;;  %v446_v54 = vld [vmem:[%s19880_s10 + $0x21c] sm:$0xff]  }
  0x4b   :  { %435 = vst [vmem:[#allocation6 + $0x204] sm:$0xf] %v434_v49  ;;  %v436_v50 = vld [vmem:[%s19880_s10 + $0x204] sm:$0xf]  ;;  %v442_v52 = vld [vmem:[%s19880_s10 + $0x218] sm:$0xf] }
  0x4c   :  { %437 = vst [vmem:[#allocation6 + $0x208] sm:$0xf] %v436_v50  ;;  %439 = vst [vmem:[#allocation6 + $0x20c] sm:$0xff] %v438_v51   ;;  %v444_v53 = vld [vmem:[%s19880_s10 + $0x214] sm:$0xf]  ;;  %v454_v57 = vld [vmem:[%s19880_s10 + $0x22c] sm:$0xff]  }
  0x4d   :  { %443 = vst [vmem:[#allocation6 + $0x214] sm:$0xf] %v442_v52  ;;  %v450_v55 = vld [vmem:[%s19880_s10 + $0x228] sm:$0xf]  ;;  %445 = vst [vmem:[#allocation6 + $0x218] sm:$0xf] %v444_v53 }
  0x4e   :  { %447 = vst [vmem:[#allocation6 + $0x21c] sm:$0xff] %v446_v54   ;;  %451 = vst [vmem:[#allocation6 + $0x224] sm:$0xf] %v450_v55  ;;  %v452_v56 = vld [vmem:[%s19880_s10 + $0x224] sm:$0xf]  ;;  %v462_v60 = vld [vmem:[%s19880_s10 + $0x23c] sm:$0xff]  }
  0x4f   :  { %v458_v58 = vld [vmem:[%s19880_s10 + $0x238] sm:$0xf]  ;;  %453 = vst [vmem:[#allocation6 + $0x228] sm:$0xf] %v452_v56  ;;  %455 = vst [vmem:[#allocation6 + $0x22c] sm:$0xff] %v454_v57   ;;  %v470_v63 = vld [vmem:[%s19880_s10 + $0x24c] sm:$0xff]  }
  0x50   :  { %459 = vst [vmem:[#allocation6 + $0x234] sm:$0xf] %v458_v58  ;;  %v460_v59 = vld [vmem:[%s19880_s10 + $0x234] sm:$0xf]  ;;  %v466_v61 = vld [vmem:[%s19880_s10 + $0x248] sm:$0xf] }
  0x51   :  { %461 = vst [vmem:[#allocation6 + $0x238] sm:$0xf] %v460_v59  ;;  %463 = vst [vmem:[#allocation6 + $0x23c] sm:$0xff] %v462_v60   ;;  %v468_v62 = vld [vmem:[%s19880_s10 + $0x244] sm:$0xf]  ;;  %v478_v38 = vld [vmem:[%s19880_s10 + $0x25c] sm:$0xff]  }
  0x52   :  { %467 = vst [vmem:[#allocation6 + $0x244] sm:$0xf] %v466_v61  ;;  %v474_v36 = vld [vmem:[%s19880_s10 + $0x258] sm:$0xf]  ;;  %469 = vst [vmem:[#allocation6 + $0x248] sm:$0xf] %v468_v62 }
  0x53   :  { %471 = vst [vmem:[#allocation6 + $0x24c] sm:$0xff] %v470_v63   ;;  %475 = vst [vmem:[#allocation6 + $0x254] sm:$0xf] %v474_v36  ;;  %v476_v37 = vld [vmem:[%s19880_s10 + $0x254] sm:$0xf]  ;;  %v486_v41 = vld [vmem:[%s19880_s10 + $0x26c] sm:$0xff]  }
  0x54   :  { %v482_v39 = vld [vmem:[%s19880_s10 + $0x268] sm:$0xf]  ;;  %477 = vst [vmem:[#allocation6 + $0x258] sm:$0xf] %v476_v37  ;;  %479 = vst [vmem:[#allocation6 + $0x25c] sm:$0xff] %v478_v38   ;;  %v494_v44 = vld [vmem:[%s19880_s10 + $0x27c] sm:$0xff]  }
  0x55   :  { %483 = vst [vmem:[#allocation6 + $0x264] sm:$0xf] %v482_v39  ;;  %v484_v40 = vld [vmem:[%s19880_s10 + $0x264] sm:$0xf]  ;;  %v490_v42 = vld [vmem:[%s19880_s10 + $0x278] sm:$0xf] }
  0x56   :  { %485 = vst [vmem:[#allocation6 + $0x268] sm:$0xf] %v484_v40  ;;  %487 = vst [vmem:[#allocation6 + $0x26c] sm:$0xff] %v486_v41   ;;  %v492_v43 = vld [vmem:[%s19880_s10 + $0x274] sm:$0xf]  ;;  %v502_v47 = vld [vmem:[%s19880_s10 + $0x28c] sm:$0xff]  }
  0x57   :  { %491 = vst [vmem:[#allocation6 + $0x274] sm:$0xf] %v490_v42  ;;  %v498_v45 = vld [vmem:[%s19880_s10 + $0x288] sm:$0xf]  ;;  %493 = vst [vmem:[#allocation6 + $0x278] sm:$0xf] %v492_v43 }
  0x58   :  { %495 = vst [vmem:[#allocation6 + $0x27c] sm:$0xff] %v494_v44   ;;  %499 = vst [vmem:[#allocation6 + $0x284] sm:$0xf] %v498_v45  ;;  %v500_v46 = vld [vmem:[%s19880_s10 + $0x284] sm:$0xf]  ;;  %v510_v50 = vld [vmem:[%s19880_s10 + $0x29c] sm:$0xff]  }
  0x59   :  { %v506_v48 = vld [vmem:[%s19880_s10 + $0x298] sm:$0xf]  ;;  %501 = vst [vmem:[#allocation6 + $0x288] sm:$0xf] %v500_v46  ;;  %503 = vst [vmem:[#allocation6 + $0x28c] sm:$0xff] %v502_v47   ;;  %v518_v53 = vld [vmem:[%s19880_s10 + $0x2ac] sm:$0xff]  }
  0x5a   :  { %507 = vst [vmem:[#allocation6 + $0x294] sm:$0xf] %v506_v48  ;;  %v508_v49 = vld [vmem:[%s19880_s10 + $0x294] sm:$0xf]  ;;  %v514_v51 = vld [vmem:[%s19880_s10 + $0x2a8] sm:$0xf] }
  0x5b   :  { %509 = vst [vmem:[#allocation6 + $0x298] sm:$0xf] %v508_v49  ;;  %511 = vst [vmem:[#allocation6 + $0x29c] sm:$0xff] %v510_v50   ;;  %v516_v52 = vld [vmem:[%s19880_s10 + $0x2a4] sm:$0xf]  ;;  %v526_v56 = vld [vmem:[%s19880_s10 + $0x2bc] sm:$0xff]  }
  0x5c   :  { %515 = vst [vmem:[#allocation6 + $0x2a4] sm:$0xf] %v514_v51  ;;  %v522_v54 = vld [vmem:[%s19880_s10 + $0x2b8] sm:$0xf]  ;;  %517 = vst [vmem:[#allocation6 + $0x2a8] sm:$0xf] %v516_v52 }
  0x5d   :  { %519 = vst [vmem:[#allocation6 + $0x2ac] sm:$0xff] %v518_v53   ;;  %523 = vst [vmem:[#allocation6 + $0x2b4] sm:$0xf] %v522_v54  ;;  %v524_v55 = vld [vmem:[%s19880_s10 + $0x2b4] sm:$0xf]  ;;  %v534_v59 = vld [vmem:[%s19880_s10 + $0x2cc] sm:$0xff]  }
  0x5e   :  { %v530_v57 = vld [vmem:[%s19880_s10 + $0x2c8] sm:$0xf]  ;;  %525 = vst [vmem:[#allocation6 + $0x2b8] sm:$0xf] %v524_v55  ;;  %527 = vst [vmem:[#allocation6 + $0x2bc] sm:$0xff] %v526_v56   ;;  %v542_v62 = vld [vmem:[%s19880_s10 + $0x2dc] sm:$0xff]  }
  0x5f   :  { %531 = vst [vmem:[#allocation6 + $0x2c4] sm:$0xf] %v530_v57  ;;  %v532_v58 = vld [vmem:[%s19880_s10 + $0x2c4] sm:$0xf]  ;;  %v538_v60 = vld [vmem:[%s19880_s10 + $0x2d8] sm:$0xf] }
  0x60   :  { %533 = vst [vmem:[#allocation6 + $0x2c8] sm:$0xf] %v532_v58  ;;  %535 = vst [vmem:[#allocation6 + $0x2cc] sm:$0xff] %v534_v59   ;;  %v540_v61 = vld [vmem:[%s19880_s10 + $0x2d4] sm:$0xf]  ;;  %v550_v37 = vld [vmem:[%s19880_s10 + $0x2ec] sm:$0xff]  }
  0x61   :  { %539 = vst [vmem:[#allocation6 + $0x2d4] sm:$0xf] %v538_v60  ;;  %v546_v63 = vld [vmem:[%s19880_s10 + $0x2e8] sm:$0xf]  ;;  %541 = vst [vmem:[#allocation6 + $0x2d8] sm:$0xf] %v540_v61 }
  0x62   :  { %543 = vst [vmem:[#allocation6 + $0x2dc] sm:$0xff] %v542_v62   ;;  %547 = vst [vmem:[#allocation6 + $0x2e4] sm:$0xf] %v546_v63  ;;  %v548_v36 = vld [vmem:[%s19880_s10 + $0x2e4] sm:$0xf]  ;;  %v558_v40 = vld [vmem:[%s19880_s10 + $0x2fc] sm:$0xff]  }
  0x63   :  { %v554_v38 = vld [vmem:[%s19880_s10 + $0x2f8] sm:$0xf]  ;;  %549 = vst [vmem:[#allocation6 + $0x2e8] sm:$0xf] %v548_v36  ;;  %551 = vst [vmem:[#allocation6 + $0x2ec] sm:$0xff] %v550_v37   ;;  %v566_v43 = vld [vmem:[%s19880_s10 + $0x30c] sm:$0xff]  }
  0x64   :  { %555 = vst [vmem:[#allocation6 + $0x2f4] sm:$0xf] %v554_v38  ;;  %v556_v39 = vld [vmem:[%s19880_s10 + $0x2f4] sm:$0xf]  ;;  %v562_v41 = vld [vmem:[%s19880_s10 + $0x308] sm:$0xf] }
  0x65   :  { %557 = vst [vmem:[#allocation6 + $0x2f8] sm:$0xf] %v556_v39  ;;  %559 = vst [vmem:[#allocation6 + $0x2fc] sm:$0xff] %v558_v40   ;;  %v564_v42 = vld [vmem:[%s19880_s10 + $0x304] sm:$0xf]  ;;  %v574_v46 = vld [vmem:[%s19880_s10 + $0x31c] sm:$0xff]  }
  0x66   :  { %563 = vst [vmem:[#allocation6 + $0x304] sm:$0xf] %v562_v41  ;;  %v570_v44 = vld [vmem:[%s19880_s10 + $0x318] sm:$0xf]  ;;  %565 = vst [vmem:[#allocation6 + $0x308] sm:$0xf] %v564_v42 }
  0x67   :  { %567 = vst [vmem:[#allocation6 + $0x30c] sm:$0xff] %v566_v43   ;;  %571 = vst [vmem:[#allocation6 + $0x314] sm:$0xf] %v570_v44  ;;  %v572_v45 = vld [vmem:[%s19880_s10 + $0x314] sm:$0xf]  ;;  %v582_v49 = vld [vmem:[%s19880_s10 + $0x32c] sm:$0xff]  }
  0x68   :  { %v578_v47 = vld [vmem:[%s19880_s10 + $0x328] sm:$0xf]  ;;  %573 = vst [vmem:[#allocation6 + $0x318] sm:$0xf] %v572_v45  ;;  %575 = vst [vmem:[#allocation6 + $0x31c] sm:$0xff] %v574_v46   ;;  %v590_v52 = vld [vmem:[%s19880_s10 + $0x33c] sm:$0xff]  }
  0x69   :  { %579 = vst [vmem:[#allocation6 + $0x324] sm:$0xf] %v578_v47  ;;  %v580_v48 = vld [vmem:[%s19880_s10 + $0x324] sm:$0xf]  ;;  %v586_v50 = vld [vmem:[%s19880_s10 + $0x338] sm:$0xf] }
  0x6a   :  { %581 = vst [vmem:[#allocation6 + $0x328] sm:$0xf] %v580_v48  ;;  %583 = vst [vmem:[#allocation6 + $0x32c] sm:$0xff] %v582_v49   ;;  %v588_v51 = vld [vmem:[%s19880_s10 + $0x334] sm:$0xf]  ;;  %v598_v55 = vld [vmem:[%s19880_s10 + $0x34c] sm:$0xff]  }
  0x6b   :  { %587 = vst [vmem:[#allocation6 + $0x334] sm:$0xf] %v586_v50  ;;  %v594_v53 = vld [vmem:[%s19880_s10 + $0x348] sm:$0xf]  ;;  %589 = vst [vmem:[#allocation6 + $0x338] sm:$0xf] %v588_v51 }
  0x6c   :  { %591 = vst [vmem:[#allocation6 + $0x33c] sm:$0xff] %v590_v52   ;;  %595 = vst [vmem:[#allocation6 + $0x344] sm:$0xf] %v594_v53  ;;  %v596_v54 = vld [vmem:[%s19880_s10 + $0x344] sm:$0xf]  ;;  %v606_v58 = vld [vmem:[%s19880_s10 + $0x35c] sm:$0xff]  }
  0x6d   :  { %v602_v56 = vld [vmem:[%s19880_s10 + $0x358] sm:$0xf]  ;;  %597 = vst [vmem:[#allocation6 + $0x348] sm:$0xf] %v596_v54  ;;  %599 = vst [vmem:[#allocation6 + $0x34c] sm:$0xff] %v598_v55   ;;  %v614_v61 = vld [vmem:[%s19880_s10 + $0x36c] sm:$0xff]  }
  0x6e   :  { %603 = vst [vmem:[#allocation6 + $0x354] sm:$0xf] %v602_v56  ;;  %v604_v57 = vld [vmem:[%s19880_s10 + $0x354] sm:$0xf]  ;;  %v610_v59 = vld [vmem:[%s19880_s10 + $0x368] sm:$0xf] }
  0x6f   :  { %605 = vst [vmem:[#allocation6 + $0x358] sm:$0xf] %v604_v57  ;;  %607 = vst [vmem:[#allocation6 + $0x35c] sm:$0xff] %v606_v58   ;;  %v612_v60 = vld [vmem:[%s19880_s10 + $0x364] sm:$0xf]  ;;  %v622_v36 = vld [vmem:[%s19880_s10 + $0x37c] sm:$0xff]  }
  0x70   :  { %611 = vst [vmem:[#allocation6 + $0x364] sm:$0xf] %v610_v59  ;;  %v618_v62 = vld [vmem:[%s19880_s10 + $0x378] sm:$0xf]  ;;  %613 = vst [vmem:[#allocation6 + $0x368] sm:$0xf] %v612_v60 }
  0x71   :  { %615 = vst [vmem:[#allocation6 + $0x36c] sm:$0xff] %v614_v61   ;;  %619 = vst [vmem:[#allocation6 + $0x374] sm:$0xf] %v618_v62  ;;  %v620_v63 = vld [vmem:[%s19880_s10 + $0x374] sm:$0xf]  ;;  %v630_v39 = vld [vmem:[%s19880_s10 + $0x38c] sm:$0xff]  }
  0x72   :  { %v626_v37 = vld [vmem:[%s19880_s10 + $0x388] sm:$0xf]  ;;  %621 = vst [vmem:[#allocation6 + $0x378] sm:$0xf] %v620_v63  ;;  %623 = vst [vmem:[#allocation6 + $0x37c] sm:$0xff] %v622_v36   ;;  %v638_v42 = vld [vmem:[%s19880_s10 + $0x39c] sm:$0xff]  }
  0x73   :  { %627 = vst [vmem:[#allocation6 + $0x384] sm:$0xf] %v626_v37  ;;  %v628_v38 = vld [vmem:[%s19880_s10 + $0x384] sm:$0xf]  ;;  %v634_v40 = vld [vmem:[%s19880_s10 + $0x398] sm:$0xf] }
  0x74   :  { %629 = vst [vmem:[#allocation6 + $0x388] sm:$0xf] %v628_v38  ;;  %631 = vst [vmem:[#allocation6 + $0x38c] sm:$0xff] %v630_v39   ;;  %v636_v41 = vld [vmem:[%s19880_s10 + $0x394] sm:$0xf]  ;;  %v646_v45 = vld [vmem:[%s19880_s10 + $0x3ac] sm:$0xff]  }
  0x75   :  { %635 = vst [vmem:[#allocation6 + $0x394] sm:$0xf] %v634_v40  ;;  %v642_v43 = vld [vmem:[%s19880_s10 + $0x3a8] sm:$0xf]  ;;  %637 = vst [vmem:[#allocation6 + $0x398] sm:$0xf] %v636_v41 }
  0x76   :  { %639 = vst [vmem:[#allocation6 + $0x39c] sm:$0xff] %v638_v42   ;;  %643 = vst [vmem:[#allocation6 + $0x3a4] sm:$0xf] %v642_v43  ;;  %v644_v44 = vld [vmem:[%s19880_s10 + $0x3a4] sm:$0xf]  ;;  %v654_v48 = vld [vmem:[%s19880_s10 + $0x3bc] sm:$0xff]  }
  0x77   :  { %v650_v46 = vld [vmem:[%s19880_s10 + $0x3b8] sm:$0xf]  ;;  %645 = vst [vmem:[#allocation6 + $0x3a8] sm:$0xf] %v644_v44  ;;  %647 = vst [vmem:[#allocation6 + $0x3ac] sm:$0xff] %v646_v45   ;;  %v662_v51 = vld [vmem:[%s19880_s10 + $0x3cc] sm:$0xff]  }
  0x78   :  { %651 = vst [vmem:[#allocation6 + $0x3b4] sm:$0xf] %v650_v46  ;;  %v652_v47 = vld [vmem:[%s19880_s10 + $0x3b4] sm:$0xf]  ;;  %v658_v49 = vld [vmem:[%s19880_s10 + $0x3c8] sm:$0xf] }
  0x79   :  { %653 = vst [vmem:[#allocation6 + $0x3b8] sm:$0xf] %v652_v47  ;;  %655 = vst [vmem:[#allocation6 + $0x3bc] sm:$0xff] %v654_v48   ;;  %v660_v50 = vld [vmem:[%s19880_s10 + $0x3c4] sm:$0xf]  ;;  %v670_v54 = vld [vmem:[%s19880_s10 + $0x3dc] sm:$0xff]  }
  0x7a   :  { %659 = vst [vmem:[#allocation6 + $0x3c4] sm:$0xf] %v658_v49  ;;  %v666_v52 = vld [vmem:[%s19880_s10 + $0x3d8] sm:$0xf]  ;;  %661 = vst [vmem:[#allocation6 + $0x3c8] sm:$0xf] %v660_v50 }
  0x7b   :  { %663 = vst [vmem:[#allocation6 + $0x3cc] sm:$0xff] %v662_v51   ;;  %667 = vst [vmem:[#allocation6 + $0x3d4] sm:$0xf] %v666_v52  ;;  %v668_v53 = vld [vmem:[%s19880_s10 + $0x3d4] sm:$0xf]  ;;  %v678_v57 = vld [vmem:[%s19880_s10 + $0x3ec] sm:$0xff]  }
  0x7c   :  { %v674_v55 = vld [vmem:[%s19880_s10 + $0x3e8] sm:$0xf]  ;;  %669 = vst [vmem:[#allocation6 + $0x3d8] sm:$0xf] %v668_v53  ;;  %671 = vst [vmem:[#allocation6 + $0x3dc] sm:$0xff] %v670_v54   ;;  %v686_v60 = vld [vmem:[%s19880_s10 + $0x3fc] sm:$0xff]  }
  0x7d   :  { %675 = vst [vmem:[#allocation6 + $0x3e4] sm:$0xf] %v674_v55  ;;  %v676_v56 = vld [vmem:[%s19880_s10 + $0x3e4] sm:$0xf]  ;;  %v682_v58 = vld [vmem:[%s19880_s10 + $0x3f8] sm:$0xf] }
  0x7e   :  { %677 = vst [vmem:[#allocation6 + $0x3e8] sm:$0xf] %v676_v56  ;;  %679 = vst [vmem:[#allocation6 + $0x3ec] sm:$0xff] %v678_v57   ;;  %v684_v59 = vld [vmem:[%s19880_s10 + $0x3f4] sm:$0xf]  ;;  %v694_v63 = vld [vmem:[%s19880_s10 + $0x40c] sm:$0xff]  }
  0x7f   :  { %683 = vst [vmem:[#allocation6 + $0x3f4] sm:$0xf] %v682_v58  ;;  %v690_v61 = vld [vmem:[%s19880_s10 + $0x408] sm:$0xf]  ;;  %685 = vst [vmem:[#allocation6 + $0x3f8] sm:$0xf] %v684_v59 }
  0x80   :  { %687 = vst [vmem:[#allocation6 + $0x3fc] sm:$0xff] %v686_v60   ;;  %691 = vst [vmem:[#allocation6 + $0x404] sm:$0xf] %v690_v61  ;;  %v692_v62 = vld [vmem:[%s19880_s10 + $0x404] sm:$0xf]  ;;  %v702_v38 = vld [vmem:[%s19880_s10 + $0x41c] sm:$0xff]  }
  0x81   :  { %v698_v36 = vld [vmem:[%s19880_s10 + $0x418] sm:$0xf]  ;;  %693 = vst [vmem:[#allocation6 + $0x408] sm:$0xf] %v692_v62  ;;  %695 = vst [vmem:[#allocation6 + $0x40c] sm:$0xff] %v694_v63   ;;  %v710_v41 = vld [vmem:[%s19880_s10 + $0x42c] sm:$0xff]  }
  0x82   :  { %699 = vst [vmem:[#allocation6 + $0x414] sm:$0xf] %v698_v36  ;;  %v700_v37 = vld [vmem:[%s19880_s10 + $0x414] sm:$0xf]  ;;  %v706_v39 = vld [vmem:[%s19880_s10 + $0x428] sm:$0xf] }
  0x83   :  { %701 = vst [vmem:[#allocation6 + $0x418] sm:$0xf] %v700_v37  ;;  %703 = vst [vmem:[#allocation6 + $0x41c] sm:$0xff] %v702_v38   ;;  %v708_v40 = vld [vmem:[%s19880_s10 + $0x424] sm:$0xf]  ;;  %v718_v44 = vld [vmem:[%s19880_s10 + $0x43c] sm:$0xff]  }
  0x84   :  { %707 = vst [vmem:[#allocation6 + $0x424] sm:$0xf] %v706_v39  ;;  %v714_v42 = vld [vmem:[%s19880_s10 + $0x438] sm:$0xf]  ;;  %709 = vst [vmem:[#allocation6 + $0x428] sm:$0xf] %v708_v40 }
  0x85   :  { %711 = vst [vmem:[#allocation6 + $0x42c] sm:$0xff] %v710_v41   ;;  %715 = vst [vmem:[#allocation6 + $0x434] sm:$0xf] %v714_v42  ;;  %v716_v43 = vld [vmem:[%s19880_s10 + $0x434] sm:$0xf]  ;;  %v726_v47 = vld [vmem:[%s19880_s10 + $0x44c] sm:$0xff]  }
  0x86   :  { %v722_v45 = vld [vmem:[%s19880_s10 + $0x448] sm:$0xf]  ;;  %717 = vst [vmem:[#allocation6 + $0x438] sm:$0xf] %v716_v43  ;;  %719 = vst [vmem:[#allocation6 + $0x43c] sm:$0xff] %v718_v44   ;;  %v734_v50 = vld [vmem:[%s19880_s10 + $0x45c] sm:$0xff]  }
  0x87   :  { %723 = vst [vmem:[#allocation6 + $0x444] sm:$0xf] %v722_v45  ;;  %v724_v46 = vld [vmem:[%s19880_s10 + $0x444] sm:$0xf]  ;;  %v730_v48 = vld [vmem:[%s19880_s10 + $0x458] sm:$0xf] }
  0x88   :  { %725 = vst [vmem:[#allocation6 + $0x448] sm:$0xf] %v724_v46  ;;  %727 = vst [vmem:[#allocation6 + $0x44c] sm:$0xff] %v726_v47   ;;  %v732_v49 = vld [vmem:[%s19880_s10 + $0x454] sm:$0xf]  ;;  %v742_v53 = vld [vmem:[%s19880_s10 + $0x46c] sm:$0xff]  }
  0x89   :  { %731 = vst [vmem:[#allocation6 + $0x454] sm:$0xf] %v730_v48  ;;  %v738_v51 = vld [vmem:[%s19880_s10 + $0x468] sm:$0xf]  ;;  %733 = vst [vmem:[#allocation6 + $0x458] sm:$0xf] %v732_v49 }
  0x8a   :  { %735 = vst [vmem:[#allocation6 + $0x45c] sm:$0xff] %v734_v50   ;;  %739 = vst [vmem:[#allocation6 + $0x464] sm:$0xf] %v738_v51  ;;  %v740_v52 = vld [vmem:[%s19880_s10 + $0x464] sm:$0xf] }
  0x8b   :  { %v746_v54 = vld [vmem:[%s19880_s10 + $0x478] sm:$0xf]  ;;  %741 = vst [vmem:[#allocation6 + $0x468] sm:$0xf] %v740_v52  ;;  %743 = vst [vmem:[#allocation6 + $0x46c] sm:$0xff] %v742_v53  }
  0x8c   :  { %747 = vst [vmem:[#allocation6 + $0x474] sm:$0xf] %v746_v54  ;;  %v748_v55 = vld [vmem:[%s19880_s10 + $0x474] sm:$0xf]  ;;  %v750_v56 = vld [vmem:[%s19880_s10 + $0x47c] sm:$0xf] }
  0x8d   :  { %749 = vst [vmem:[#allocation6 + $0x478] sm:$0xf] %v748_v55  ;;  %751 = vst [vmem:[#allocation6 + $0x47c] sm:$0xf] %v750_v56 }
  0x8e   :  { %1358 = vsyncadd [#allocation8 + $0x1], 18432  ;;  %v13258_v57 = vld [vmem:[%s19883_s13] sm:$0xff]  ;;  %v13263_v58 = vld [vmem:[%s19883_s13 + $0x8] sm:$0xff] }
  0x8f   :  { %20659 = vst [vmem:[#allocation54_spill] sm:$0xff] %v13258_v57  ;;  %20660 = vst [vmem:[#allocation55_spill] sm:$0xff] %v13263_v58  ;;  %v13268_v59 = vld [vmem:[%s19883_s13 + $0x10] sm:$0xff]  ;;  %v13273_v60 = vld [vmem:[%s19883_s13 + $0x18] sm:$0xff] }
  0x90   :  { %20661 = vst [vmem:[#allocation56_spill] sm:$0xff] %v13268_v59  ;;  %20662 = vst [vmem:[#allocation57_spill] sm:$0xff] %v13273_v60  ;;  %v13278_v61 = vld [vmem:[%s19883_s13 + $0x20] sm:$0xff]  ;;  %v13283_v62 = vld [vmem:[%s19883_s13 + $0x28] sm:$0xff] }
  0x91   :  { %20663 = vst [vmem:[#allocation58_spill] sm:$0xff] %v13278_v61  ;;  %20664 = vst [vmem:[#allocation59_spill] sm:$0xff] %v13283_v62  ;;  %v13288_v63 = vld [vmem:[%s19883_s13 + $0x30] sm:$0xff]  ;;  %v13293_v36 = vld [vmem:[%s19883_s13 + $0x38] sm:$0xff] }
  0x92   :  { %20665 = vst [vmem:[#allocation60_spill] sm:$0xff] %v13288_v63  ;;  %20666 = vst [vmem:[#allocation61_spill] sm:$0xff] %v13293_v36  ;;  %v13298_v37 = vld [vmem:[%s19883_s13 + $0x40] sm:$0xff]  ;;  %v13303_v38 = vld [vmem:[%s19883_s13 + $0x48] sm:$0xff] }
  0x93   :  { %20667 = vst [vmem:[#allocation62_spill] sm:$0xff] %v13298_v37  ;;  %20668 = vst [vmem:[#allocation63_spill] sm:$0xff] %v13303_v38  ;;  %v13308_v39 = vld [vmem:[%s19883_s13 + $0x50] sm:$0xff]  ;;  %v13313_v40 = vld [vmem:[%s19883_s13 + $0x58] sm:$0xff] }
  0x94   :  { %20669 = vst [vmem:[#allocation64_spill] sm:$0xff] %v13308_v39  ;;  %20670 = vst [vmem:[#allocation65_spill] sm:$0xff] %v13313_v40  ;;  %v13318_v41 = vld [vmem:[%s19883_s13 + $0x60] sm:$0xff]  ;;  %v13323_v42 = vld [vmem:[%s19883_s13 + $0x68] sm:$0xff] }
  0x95   :  { %20671 = vst [vmem:[#allocation66_spill] sm:$0xff] %v13318_v41  ;;  %20672 = vst [vmem:[#allocation67_spill] sm:$0xff] %v13323_v42  ;;  %v13328_v43 = vld [vmem:[%s19883_s13 + $0x70] sm:$0xff]  ;;  %v13333_v44 = vld [vmem:[%s19883_s13 + $0x78] sm:$0xff] }
  0x96   :  { %20673 = vst [vmem:[#allocation68_spill] sm:$0xff] %v13328_v43  ;;  %20674 = vst [vmem:[#allocation69_spill] sm:$0xff] %v13333_v44 }
  0x97   :  { %1431 = vsyncadd [#allocation8 + $0x2], 2048  ;;  %v12174_v45 = vld [vmem:[%s19871_s1] sm:$0x1f]   ;;  %vm1760_vm0 = vcmask 1043456   ;;  %vm1761_vm1 = vcmask 1044480  }
  0x98   :  { %v12175_v46 = vld [vmem:[%s19870_s0] sm:$0xff]   ;;  %v12338_v47 = vmov 65535   ;;  %vm1663_vm2 = vcmask 72704   ;;  %v12176_v51 = vld [vmem:[%s19870_s0 + $0x8] sm:$0xff]   ;;  %v12177_v52 = vld [vmem:[%s19870_s0 + $0x10] sm:$0xff]   ;;  %vm2056_vm3 = vcmask 261120  }
  0x99   :  { %v1762_v48 = vsel %vm1760_vm0, 4294967295, %v12338_v47  ;;  %11624 = vmatprep.mubr.msk.bf16.mxu1 %vm1663_vm2, %v12175_v46  ;;  %v12178_v53 = vld [vmem:[%s19870_s0 + $0x18] sm:$0xff]   ;;  %v12179_v54 = vld [vmem:[%s19870_s0 + $0x20] sm:$0xff]   ;;  %v12180_v55 = vld [vmem:[%s19870_s0 + $0x28] sm:$0xff]   ;;  %vm5914_vm4 = vcmask 1041409   ;;  %vm5916_vm5 = vcmask 1042434  }
  0x9a   :  { %v1763_v49 = vsel %vm1761_vm1, %v1762_v48, 0  ;;  %v12181_v56 = vld [vmem:[%s19870_s0 + $0x30] sm:$0xff]   ;;  %v12183_v46 = vld [vmem:[%s19870_s0 + $0x40] sm:$0xff]   ;;  %v12184_v47 = vld [vmem:[%s19870_s0 + $0x48] sm:$0xff]   ;;  %vm5918_vm6 = vcmask 1043459   ;;  %vm5920_vm7 = vcmask 1044484  }
  0x9b   :  { %v1765_v50 = vand.u32 %v12174_v45, %v1763_v49  ;;  %v12182_v45 = vld [vmem:[%s19870_s0 + $0x38] sm:$0xff]   ;;  %v12185_v48 = vld [vmem:[%s19870_s0 + $0x50] sm:$0xff]   ;;  %vm5922_vm8 = vcmask 1045509   ;;  %vm5924_vm9 = vcmask 1046534   ;;  %vm5926_vm10 = vcmask 1047559  }
  0x9c   :  { %v12186_v49 = vld [vmem:[%s19870_s0 + $0x58] sm:$0xff]   ;;  %vm5224_vm11 = vcmask 254976   ;;  %vm5233_vm12 = vcmask 253952   ;;  %vm7636_vm13 = vcmask 523264  }
  0x9d   :  { %11622 = vmatprep.subr.bf16.mxu1 %v1765_v50 }
  0x9e   :  { %11623 = vmatpush3.bf16.msra.mxu1 %v1765_v50  ;;  %v12187_v50 = vld [vmem:[%s19870_s0 + $0x60] sm:$0xff]  }
  0xa1   :  { %11625 = vmatmul.mubr.msk.bf16.vlgmr.msra.gmra.mrb[0].mxu1 %vm1663_vm2, %v12176_v51  ;;  %v12188_v51 = vld [vmem:[%s19870_s0 + $0x68] sm:$0xff]  }
  0xa2   :  { %11628 = vmatprep.mubr.msk.bf16.mxu1 %vm1663_vm2, %v12177_v52  ;;  %v12189_v52 = vld [vmem:[%s19870_s0 + $0x70] sm:$0xff]  }
  0xa9   :  { %11629 = vmatmul.mubr.msk.bf16.gmra.mrb[4].mxu1 %vm1663_vm2, %v12178_v53  ;;  %v12190_v53 = vld [vmem:[%s19870_s0 + $0x78] sm:$0xff]  }
  0xaa   :  { %11632 = vmatprep.mubr.msk.bf16.mxu1 %vm1663_vm2, %v12179_v54  ;;  %v12191_v54 = vld [vmem:[%s19870_s0 + $0x80] sm:$0xff]  }
  0xb1   :  { %11633 = vmatmul.mubr.msk.bf16.gmra.mrb[8].mxu1 %vm1663_vm2, %v12180_v55  ;;  %v12192_v55 = vld [vmem:[%s19870_s0 + $0x88] sm:$0xff]  }
  0xb2   :  { %11636 = vmatprep.mubr.msk.bf16.mxu1 %vm1663_vm2, %v12181_v56  ;;  %v12193_v56 = vld [vmem:[%s19870_s0 + $0x90] sm:$0xff]  }
  0xb9   :  { %11637 = vmatmul.mubr.msk.bf16.gmra.mrb[12].mxu1 %vm1663_vm2, %v12182_v45  ;;  %v12194_v45 = vld [vmem:[%s19870_s0 + $0x98] sm:$0xff]  }
  0xba   :  { %11640 = vmatprep.mubr.msk.bf16.mxu1 %vm1663_vm2, %v12183_v46  ;;  %v12195_v46 = vld [vmem:[%s19870_s0 + $0xa0] sm:$0xff]  }
  0xc1   :  { %11641 = vmatmul.mubr.msk.bf16.gmra.mrb[16].mxu1 %vm1663_vm2, %v12184_v47  ;;  %v12196_v47 = vld [vmem:[%s19870_s0 + $0xa8] sm:$0xff]  }
  0xc2   :  { %11644 = vmatprep.mubr.msk.bf16.mxu1 %vm1663_vm2, %v12185_v48  ;;  %v12197_v48 = vld [vmem:[%s19870_s0 + $0xb0] sm:$0xff]  }
  0xc9   :  { %11645 = vmatmul.mubr.msk.bf16.gmra.mrb[20].mxu1 %vm1663_vm2, %v12186_v49  ;;  %v12198_v49 = vld [vmem:[%s19870_s0 + $0xb8] sm:$0xff]  }
  0xca   :  { %11648 = vmatprep.mubr.msk.bf16.mxu1 %vm1663_vm2, %v12187_v50  ;;  %v12199_v50 = vld [vmem:[%s19870_s0 + $0xc0] sm:$0xff]  }
  0xd1   :  { %11649 = vmatmul.mubr.msk.bf16.gmra.mrb[24].mxu1 %vm1663_vm2, %v12188_v51  ;;  %v12200_v51 = vld [vmem:[%s19870_s0 + $0xc8] sm:$0xff]  }
  0xd2   :  { %11652 = vmatprep.mubr.msk.bf16.mxu1 %vm1663_vm2, %v12189_v52  ;;  %v12201_v52 = vld [vmem:[%s19870_s0 + $0xd0] sm:$0xff]  }
  0xd9   :  { %11653 = vmatmul.mubr.msk.bf16.gmra.mrb[28].mxu1 %vm1663_vm2, %v12190_v53  ;;  %v12202_v53 = vld [vmem:[%s19870_s0 + $0xd8] sm:$0xff]  }
  0xda   :  { %11656 = vmatprep.mubr.msk.bf16.mxu1 %vm1663_vm2, %v12191_v54  ;;  %v12203_v54 = vld [vmem:[%s19870_s0 + $0xe0] sm:$0xff]  }
  0xe1   :  { %11657 = vmatmul.mubr.msk.bf16.gmra.mrb[32].mxu1 %vm1663_vm2, %v12192_v55  ;;  %v12204_v55 = vld [vmem:[%s19870_s0 + $0xe8] sm:$0xff]  }
  0xe2   :  { %11660 = vmatprep.mubr.msk.bf16.mxu1 %vm1663_vm2, %v12193_v56  ;;  %v12205_v56 = vld [vmem:[%s19870_s0 + $0xf0] sm:$0xff]  }
  0xe9   :  { %11661 = vmatmul.mubr.msk.bf16.gmra.mrb[36].mxu1 %vm1663_vm2, %v12194_v45  ;;  %v12206_v45 = vld [vmem:[%s19870_s0 + $0xf8] sm:$0xff]  }
  0xea   :  { %11664 = vmatprep.mubr.msk.bf16.mxu1 %vm1663_vm2, %v12195_v46 }
  0xf1   :  { %11665 = vmatmul.mubr.msk.bf16.gmra.mrb[40].mxu1 %vm1663_vm2, %v12196_v47 }
  0xf2   :  { %11668 = vmatprep.mubr.msk.bf16.mxu1 %vm1663_vm2, %v12197_v48 }
  0xf9   :  { %11669 = vmatmul.mubr.msk.bf16.gmra.mrb[44].mxu1 %vm1663_vm2, %v12198_v49 }
  0xfa   :  { %11672 = vmatprep.mubr.msk.bf16.mxu1 %vm1663_vm2, %v12199_v50 }
 0x101   :  { %11673 = vmatmul.mubr.msk.bf16.gmra.mrb[48].mxu1 %vm1663_vm2, %v12200_v51 }
 0x102   :  { %11676 = vmatprep.mubr.msk.bf16.mxu1 %vm1663_vm2, %v12201_v52 }
 0x109   :  { %11677 = vmatmul.mubr.msk.bf16.gmra.mrb[52].mxu1 %vm1663_vm2, %v12202_v53 }
 0x10a   :  { %11680 = vmatprep.mubr.msk.bf16.mxu1 %vm1663_vm2, %v12203_v54 }
 0x111   :  { %11681 = vmatmul.mubr.msk.bf16.gmra.mrb[56].mxu1 %vm1663_vm2, %v12204_v55 }
 0x112   :  { %11684 = vmatprep.mubr.msk.bf16.mxu1 %vm1663_vm2, %v12205_v56 }
 0x119   :  { %11685 = vmatmul.mubr.msk.bf16.gmra.mrb[60].mxu1 %vm1663_vm2, %v12206_v45 }
 0x174   :  { %v13466_v46 = vpop.f32.mrb[0].mxu1 }
 0x175   :  { %v13468_v47 = vpop.f32.mrb[1].mxu1  ;;  %v2060_v53 = vsel %vm2056_vm3, %v13466_v46, 0.0 }
 0x176   :  { %v13470_v48 = vpop.f32.mrb[2].mxu1  ;;  %v2057_v50 = vsel %vm2056_vm3, %v13468_v47, 0.0 }
 0x177   :  { %v13472_v49 = vpop.f32.mrb[3].mxu1  ;;  %v2062_v55 = vsel %vm2056_vm3, %v13470_v48, 0.0 }
 0x178   :  { %v2058_v51 = vsel %vm2056_vm3, %v13472_v49, 0.0 }
 0x179   :  { %v2059_v52 = vadd.f32 %v2058_v51, %v2057_v50 }
 0x17b   :  { %v2061_v54 = vadd.f32 %v2060_v53, %v2059_v52 }
 0x17c   :  { %v13482_v56 = vpop.f32.mrb[4].mxu1 }
 0x17d   :  { %v13484_v45 = vpop.f32.mrb[5].mxu1  ;;  %v2063_v36 = vadd.f32 %v2062_v55, %v2061_v54  ;;  %v2068_v52 = vsel %vm2056_vm3, %v13482_v56, 0.0 }
 0x17e   :  { %v2064_v44 = vsel %vm2056_vm3, %v13484_v45, 0.0  ;;  %v13488_v63 = vpop.f32.mrb[6].mxu1 }
 0x17f   :  { %v2065_v43 = vadd.f32 %v2064_v44, %v2063_v36  ;;  %v13490_v62 = vpop.f32.mrb[7].mxu1  ;;  %v2070_v42 = vsel %vm2056_vm3, %v13488_v63, 0.0 }
 0x180   :  { %v2066_v50 = vsel %vm2056_vm3, %v13490_v62, 0.0 }
 0x181   :  { %v2067_v51 = vadd.f32 %v2066_v50, %v2065_v43 }
 0x183   :  { %v2069_v53 = vadd.f32 %v2068_v52, %v2067_v51 }
 0x184   :  { %v13498_v54 = vpop.f32.mrb[8].mxu1 }
 0x185   :  { %v13500_v55 = vpop.f32.mrb[9].mxu1  ;;  %v2071_v61 = vadd.f32 %v2070_v42, %v2069_v53  ;;  %v2076_v51 = vsel %vm2056_vm3, %v13498_v54, 0.0 }
 0x186   :  { %v2072_v36 = vsel %vm2056_vm3, %v13500_v55, 0.0  ;;  %v13504_v44 = vpop.f32.mrb[10].mxu1 }
 0x187   :  { %v2073_v41 = vadd.f32 %v2072_v36, %v2071_v61  ;;  %v13506_v60 = vpop.f32.mrb[11].mxu1  ;;  %v2078_v40 = vsel %vm2056_vm3, %v13504_v44, 0.0 }
 0x188   :  { %v2074_v43 = vsel %vm2056_vm3, %v13506_v60, 0.0 }
 0x189   :  { %v2075_v50 = vadd.f32 %v2074_v43, %v2073_v41 }
 0x18b   :  { %v2077_v52 = vadd.f32 %v2076_v51, %v2075_v50 }
 0x18c   :  { %v13514_v42 = vpop.f32.mrb[12].mxu1 }
 0x18d   :  { %v13516_v53 = vpop.f32.mrb[13].mxu1  ;;  %v2079_v59 = vadd.f32 %v2078_v40, %v2077_v52  ;;  %v2084_v50 = vsel %vm2056_vm3, %v13514_v42, 0.0 }
 0x18e   :  { %v2080_v61 = vsel %vm2056_vm3, %v13516_v53, 0.0  ;;  %v13520_v36 = vpop.f32.mrb[14].mxu1 }
 0x18f   :  { %v2081_v39 = vadd.f32 %v2080_v61, %v2079_v59  ;;  %v13522_v58 = vpop.f32.mrb[15].mxu1  ;;  %v2086_v38 = vsel %vm2056_vm3, %v13520_v36, 0.0 }
 0x190   :  { %v2082_v41 = vsel %vm2056_vm3, %v13522_v58, 0.0 }
 0x191   :  { %v2083_v43 = vadd.f32 %v2082_v41, %v2081_v39 }
 0x193   :  { %v2085_v51 = vadd.f32 %v2084_v50, %v2083_v43 }
 0x194   :  { %v13530_v40 = vpop.f32.mrb[16].mxu1 }
 0x195   :  { %v13532_v52 = vpop.f32.mrb[17].mxu1  ;;  %v2087_v57 = vadd.f32 %v2086_v38, %v2085_v51  ;;  %v2092_v43 = vsel %vm2056_vm3, %v13530_v40, 0.0 }
 0x196   :  { %v2088_v59 = vsel %vm2056_vm3, %v13532_v52, 0.0  ;;  %v13536_v61 = vpop.f32.mrb[18].mxu1 }
 0x197   :  { %v2089_v37 = vadd.f32 %v2088_v59, %v2087_v57  ;;  %v13538_v35 = vpop.f32.mrb[19].mxu1  ;;  %v2094_v34 = vsel %vm2056_vm3, %v13536_v61, 0.0 }
 0x198   :  { %v2090_v39 = vsel %vm2056_vm3, %v13538_v35, 0.0 }
 0x199   :  { %v2091_v41 = vadd.f32 %v2090_v39, %v2089_v37 }
 0x19b   :  { %v2093_v50 = vadd.f32 %v2092_v43, %v2091_v41 }
 0x19c   :  { %v13546_v38 = vpop.f32.mrb[20].mxu1 }
 0x19d   :  { %v13548_v51 = vpop.f32.mrb[21].mxu1  ;;  %v2095_v33 = vadd.f32 %v2094_v34, %v2093_v50  ;;  %v2100_v41 = vsel %vm2056_vm3, %v13546_v38, 0.0 }
 0x19e   :  { %v2096_v57 = vsel %vm2056_vm3, %v13548_v51, 0.0  ;;  %v13552_v59 = vpop.f32.mrb[22].mxu1 }
 0x19f   :  { %v2097_v32 = vadd.f32 %v2096_v57, %v2095_v33  ;;  %v13554_v31 = vpop.f32.mrb[23].mxu1  ;;  %v2102_v30 = vsel %vm2056_vm3, %v13552_v59, 0.0 }
 0x1a0   :  { %v2098_v37 = vsel %vm2056_vm3, %v13554_v31, 0.0 }
 0x1a1   :  { %v2099_v39 = vadd.f32 %v2098_v37, %v2097_v32 }
 0x1a3   :  { %v2101_v43 = vadd.f32 %v2100_v41, %v2099_v39 }
 0x1a4   :  { %v13562_v34 = vpop.f32.mrb[24].mxu1 }
 0x1a5   :  { %v13564_v50 = vpop.f32.mrb[25].mxu1  ;;  %v2103_v29 = vadd.f32 %v2102_v30, %v2101_v43  ;;  %v2108_v39 = vsel %vm2056_vm3, %v13562_v34, 0.0 }
 0x1a6   :  { %v2104_v33 = vsel %vm2056_vm3, %v13564_v50, 0.0  ;;  %v13568_v57 = vpop.f32.mrb[26].mxu1 }
 0x1a7   :  { %v2105_v28 = vadd.f32 %v2104_v33, %v2103_v29  ;;  %v13570_v27 = vpop.f32.mrb[27].mxu1  ;;  %v2110_v26 = vsel %vm2056_vm3, %v13568_v57, 0.0 }
 0x1a8   :  { %v2106_v32 = vsel %vm2056_vm3, %v13570_v27, 0.0 }
 0x1a9   :  { %v2107_v37 = vadd.f32 %v2106_v32, %v2105_v28 }
 0x1ab   :  { %v2109_v41 = vadd.f32 %v2108_v39, %v2107_v37 }
 0x1ac   :  { %v13578_v30 = vpop.f32.mrb[28].mxu1 }
 0x1ad   :  { %v13580_v43 = vpop.f32.mrb[29].mxu1  ;;  %v2111_v25 = vadd.f32 %v2110_v26, %v2109_v41  ;;  %v2116_v37 = vsel %vm2056_vm3, %v13578_v30, 0.0 }
 0x1ae   :  { %v2112_v29 = vsel %vm2056_vm3, %v13580_v43, 0.0  ;;  %v13584_v33 = vpop.f32.mrb[30].mxu1 }
 0x1af   :  { %v2113_v24 = vadd.f32 %v2112_v29, %v2111_v25  ;;  %v13586_v23 = vpop.f32.mrb[31].mxu1  ;;  %v2118_v22 = vsel %vm2056_vm3, %v13584_v33, 0.0 }
 0x1b0   :  { %v2114_v28 = vsel %vm2056_vm3, %v13586_v23, 0.0 }
 0x1b1   :  { %v2115_v32 = vadd.f32 %v2114_v28, %v2113_v24 }
 0x1b3   :  { %v2117_v39 = vadd.f32 %v2116_v37, %v2115_v32 }
 0x1b4   :  { %v13594_v26 = vpop.f32.mrb[32].mxu1 }
 0x1b5   :  { %v13596_v41 = vpop.f32.mrb[33].mxu1  ;;  %v2119_v21 = vadd.f32 %v2118_v22, %v2117_v39  ;;  %v2124_v32 = vsel %vm2056_vm3, %v13594_v26, 0.0 }
 0x1b6   :  { %v2120_v25 = vsel %vm2056_vm3, %v13596_v41, 0.0  ;;  %v13600_v29 = vpop.f32.mrb[34].mxu1 }
 0x1b7   :  { %v2121_v20 = vadd.f32 %v2120_v25, %v2119_v21  ;;  %v13602_v19 = vpop.f32.mrb[35].mxu1  ;;  %v2126_v18 = vsel %vm2056_vm3, %v13600_v29, 0.0 }
 0x1b8   :  { %v2122_v24 = vsel %vm2056_vm3, %v13602_v19, 0.0 }
 0x1b9   :  { %v2123_v28 = vadd.f32 %v2122_v24, %v2121_v20 }
 0x1bb   :  { %v2125_v37 = vadd.f32 %v2124_v32, %v2123_v28 }
 0x1bc   :  { %v13610_v22 = vpop.f32.mrb[36].mxu1 }
 0x1bd   :  { %v13612_v39 = vpop.f32.mrb[37].mxu1  ;;  %v2127_v17 = vadd.f32 %v2126_v18, %v2125_v37  ;;  %v2132_v28 = vsel %vm2056_vm3, %v13610_v22, 0.0 }
 0x1be   :  { %v2128_v21 = vsel %vm2056_vm3, %v13612_v39, 0.0  ;;  %v13616_v25 = vpop.f32.mrb[38].mxu1 }
 0x1bf   :  { %v2129_v16 = vadd.f32 %v2128_v21, %v2127_v17  ;;  %v13618_v15 = vpop.f32.mrb[39].mxu1  ;;  %v2134_v14 = vsel %vm2056_vm3, %v13616_v25, 0.0 }
 0x1c0   :  { %v2130_v20 = vsel %vm2056_vm3, %v13618_v15, 0.0 }
 0x1c1   :  { %v2131_v24 = vadd.f32 %v2130_v20, %v2129_v16 }
 0x1c3   :  { %v2133_v32 = vadd.f32 %v2132_v28, %v2131_v24 }
 0x1c4   :  { %v13626_v18 = vpop.f32.mrb[40].mxu1 }
 0x1c5   :  { %v13628_v37 = vpop.f32.mrb[41].mxu1  ;;  %v2135_v13 = vadd.f32 %v2134_v14, %v2133_v32  ;;  %v2140_v24 = vsel %vm2056_vm3, %v13626_v18, 0.0 }
 0x1c6   :  { %v2136_v17 = vsel %vm2056_vm3, %v13628_v37, 0.0  ;;  %v13632_v21 = vpop.f32.mrb[42].mxu1 }
 0x1c7   :  { %v2137_v12 = vadd.f32 %v2136_v17, %v2135_v13  ;;  %v13634_v11 = vpop.f32.mrb[43].mxu1  ;;  %v2142_v10 = vsel %vm2056_vm3, %v13632_v21, 0.0 }
 0x1c8   :  { %v2138_v16 = vsel %vm2056_vm3, %v13634_v11, 0.0 }
 0x1c9   :  { %v2139_v20 = vadd.f32 %v2138_v16, %v2137_v12 }
 0x1cb   :  { %v2141_v28 = vadd.f32 %v2140_v24, %v2139_v20 }
 0x1cc   :  { %v13642_v14 = vpop.f32.mrb[44].mxu1 }
 0x1cd   :  { %v13644_v32 = vpop.f32.mrb[45].mxu1  ;;  %v2143_v9 = vadd.f32 %v2142_v10, %v2141_v28  ;;  %v2148_v20 = vsel %vm2056_vm3, %v13642_v14, 0.0 }
 0x1ce   :  { %v2144_v13 = vsel %vm2056_vm3, %v13644_v32, 0.0  ;;  %v13648_v17 = vpop.f32.mrb[46].mxu1 }
 0x1cf   :  { %20675 = vst [vmem:[#allocation70_spill] sm:$0xff] %v13648_v17  ;;  %v2145_v8 = vadd.f32 %v2144_v13, %v2143_v9  ;;  %v13650_v3 = vpop.f32.mrb[47].mxu1  ;;  %v2150_v2 = vsel %vm2056_vm3, %v13648_v17, 0.0 }
 0x1d0   :  { %v2146_v12 = vsel %vm2056_vm3, %v13650_v3, 0.0 }
 0x1d1   :  { %v2147_v16 = vadd.f32 %v2146_v12, %v2145_v8 }
 0x1d3   :  { %v2149_v24 = vadd.f32 %v2148_v20, %v2147_v16 }
 0x1d4   :  { %v13658_v10 = vpop.f32.mrb[48].mxu1 }
 0x1d5   :  { %20676 = vst [vmem:[#allocation71_spill] sm:$0xff] %v13658_v10  ;;  %v13660_v28 = vpop.f32.mrb[49].mxu1  ;;  %v2151_v1 = vadd.f32 %v2150_v2, %v2149_v24  ;;  %v2156_v16 = vsel %vm2056_vm3, %v13658_v10, 0.0 }
 0x1d6   :  { %20677 = vst [vmem:[#allocation72_spill] sm:$0xff] %v13660_v28  ;;  %v2152_v9 = vsel %vm2056_vm3, %v13660_v28, 0.0  ;;  %v13664_v13 = vpop.f32.mrb[50].mxu1 }
 0x1d7   :  { %20678 = vst [vmem:[#allocation73_spill] sm:$0xff] %v13664_v13  ;;  %v2153_v0 = vadd.f32 %v2152_v9, %v2151_v1  ;;  %v13666_v7 = vpop.f32.mrb[51].mxu1  ;;  %v2158_v6 = vsel %vm2056_vm3, %v13664_v13, 0.0 }
 0x1d8   :  { %20679 = vst [vmem:[#allocation74_spill] sm:$0xff] %v13666_v7  ;;  %v2154_v8 = vsel %vm2056_vm3, %v13666_v7, 0.0 }
 0x1d9   :  { %v2155_v12 = vadd.f32 %v2154_v8, %v2153_v0 }
 0x1db   :  { %v2157_v20 = vadd.f32 %v2156_v16, %v2155_v12 }
 0x1dc   :  { %v13674_v2 = vpop.f32.mrb[52].mxu1 }
 0x1dd   :  { %20680 = vst [vmem:[#allocation75_spill] sm:$0xff] %v13674_v2  ;;  %v13676_v24 = vpop.f32.mrb[53].mxu1  ;;  %v2159_v5 = vadd.f32 %v2158_v6, %v2157_v20  ;;  %v2164_v12 = vsel %vm2056_vm3, %v13674_v2, 0.0 }
 0x1de   :  { %20681 = vst [vmem:[#allocation76_spill] sm:$0xff] %v13676_v24  ;;  %v2160_v1 = vsel %vm2056_vm3, %v13676_v24, 0.0  ;;  %v13680_v9 = vpop.f32.mrb[54].mxu1 }
 0x1df   :  { %20682 = vst [vmem:[#allocation77_spill] sm:$0xff] %v13680_v9  ;;  %v2161_v4 = vadd.f32 %v2160_v1, %v2159_v5  ;;  %v13682_v7 = vpop.f32.mrb[55].mxu1  ;;  %v2166_v13 = vsel %vm2056_vm3, %v13680_v9, 0.0 }
 0x1e0   :  { %20683 = vst [vmem:[#allocation78_spill] sm:$0xff] %v13682_v7  ;;  %v2162_v0 = vsel %vm2056_vm3, %v13682_v7, 0.0 }
 0x1e1   :  { %v2163_v8 = vadd.f32 %v2162_v0, %v2161_v4 }
 0x1e3   :  { %v2165_v16 = vadd.f32 %v2164_v12, %v2163_v8 }
 0x1e4   :  { %v13690_v6 = vpop.f32.mrb[56].mxu1 }
 0x1e5   :  { %20684 = vst [vmem:[#allocation79_spill] sm:$0xff] %v13690_v6  ;;  %v13692_v20 = vpop.f32.mrb[57].mxu1  ;;  %v2167_v24 = vadd.f32 %v2166_v13, %v2165_v16  ;;  %v2172_v8 = vsel %vm2056_vm3, %v13690_v6, 0.0 }
 0x1e6   :  { %20685 = vst [vmem:[#allocation80_spill] sm:$0xff] %v13692_v20  ;;  %v2168_v5 = vsel %vm2056_vm3, %v13692_v20, 0.0  ;;  %v13696_v1 = vpop.f32.mrb[58].mxu1 }
 0x1e7   :  { %20686 = vst [vmem:[#allocation81_spill] sm:$0xff] %v13696_v1  ;;  %v2169_v10 = vadd.f32 %v2168_v5, %v2167_v24  ;;  %v13698_v7 = vpop.f32.mrb[59].mxu1  ;;  %v2174_v9 = vsel %vm2056_vm3, %v13696_v1, 0.0 }
 0x1e8   :  { %20687 = vst [vmem:[#allocation82_spill] sm:$0xff] %v13698_v7  ;;  %v2170_v4 = vsel %vm2056_vm3, %v13698_v7, 0.0 }
 0x1e9   :  { %v2171_v0 = vadd.f32 %v2170_v4, %v2169_v10 }
 0x1eb   :  { %v2173_v12 = vadd.f32 %v2172_v8, %v2171_v0 }
 0x1ec   :  { %v13706_v13 = vpop.f32.mrb[60].mxu1 }
 0x1ed   :  { %v13708_v16 = vpop.f32.mrb[61].mxu1  ;;  %v2175_v20 = vadd.f32 %v2174_v9, %v2173_v12  ;;  %v2180_v0 = vsel %vm2056_vm3, %v13706_v13, 0.0 }
 0x1ee   :  { %20688 = vst [vmem:[#allocation83_spill] sm:$0xff] %v13708_v16  ;;  %v2176_v24 = vsel %vm2056_vm3, %v13708_v16, 0.0  ;;  %v13712_v5 = vpop.f32.mrb[62].mxu1 }
 0x1ef   :  { %v2177_v2 = vadd.f32 %v2176_v24, %v2175_v20  ;;  %v13714_v7 = vpop.f32.mrb[63].mxu1  ;;  %v2182_v1 = vsel %vm2056_vm3, %v13712_v5, 0.0 }
 0x1f0   :  { %20689 = vst [vmem:[#allocation84_spill] sm:$0xff] %v13714_v7  ;;  %v2178_v10 = vsel %vm2056_vm3, %v13714_v7, 0.0 }
 0x1f1   :  { %v2179_v4 = vadd.f32 %v2178_v10, %v2177_v2 }
 0x1f3   :  { %v2181_v8 = vadd.f32 %v2180_v0, %v2179_v4  ;;  %v20722_v4 = vld [vmem:[#allocation71_spill] sm:$0xff]  ;;  %v20724_v0 = vld [vmem:[#allocation73_spill] sm:$0xff] }
 0x1f5   :  { %v2183_v9 = vadd.f32 %v2182_v1, %v2181_v8  ;;  %v20726_v8 = vld [vmem:[#allocation76_spill] sm:$0xff] }
 0x1f7   :  { %v2184_v12 = vrot.slane %v2183_v9, 4 }
 0x1f9   :  { %v2185_v6 = vadd.f32 %v2184_v12, %v2183_v9  ;;  %v20728_v12 = vld [vmem:[#allocation78_spill] sm:$0xff] }
 0x1fb   :  { %v2186_v16 = vrot.slane %v2185_v6, 2 }
 0x1fd   :  { %v2187_v28 = vadd.f32 %v2186_v16, %v2185_v6  ;;  %v20718_v6 = vld [vmem:[#allocation72_spill] sm:$0xff]  ;;  %v20720_v16 = vld [vmem:[#allocation74_spill] sm:$0xff] }
 0x1ff   :  { %v2188_v17 = vrot.slane %v2187_v28, 1 }
 0x201   :  { %v2189_v20 = vadd.f32 %v2188_v17, %v2187_v28  ;;  %v20716_v28 = vld [vmem:[#allocation70_spill] sm:$0xff] }
 0x203   :  { %v13722_v24 = vmul.f32 0.001953125, %v2189_v20 }
 0x205   :  { %v13726_v7 = vsub.f32 %v13468_v47, %v13722_v24  ;;  %v13730_v2 = vsub.f32 %v13472_v49, %v13722_v24  ;;  %v13734_v10 = vsub.f32 %v13466_v46, %v13722_v24  ;;  %v13738_v1 = vsub.f32 %v13470_v48, %v13722_v24 }
 0x206   :  { %v13742_v17 = vsub.f32 %v13484_v45, %v13722_v24  ;;  %v13746_v47 = vsub.f32 %v13490_v62, %v13722_v24  ;;  %v13750_v49 = vsub.f32 %v13482_v56, %v13722_v24  ;;  %v13754_v46 = vsub.f32 %v13488_v63, %v13722_v24 }
 0x207   :  { %20690 = vst [vmem:[#allocation85_spill] sm:$0xff] %v13726_v7  ;;  %20691 = vst [vmem:[#allocation86_spill] sm:$0xff] %v13730_v2  ;;  %v13758_v48 = vsub.f32 %v13500_v55, %v13722_v24  ;;  %v13762_v45 = vsub.f32 %v13506_v60, %v13722_v24  ;;  %v13766_v62 = vsub.f32 %v13498_v54, %v13722_v24 }
 0x208   :  { %20692 = vst [vmem:[#allocation87_spill] sm:$0xff] %v13734_v10  ;;  %20693 = vst [vmem:[#allocation88_spill] sm:$0xff] %v13738_v1  ;;  %v13770_v56 = vsub.f32 %v13504_v44, %v13722_v24  ;;  %v13774_v63 = vsub.f32 %v13516_v53, %v13722_v24  ;;  %v13778_v55 = vsub.f32 %v13522_v58, %v13722_v24 }
 0x209   :  { %v13782_v60 = vsub.f32 %v13514_v42, %v13722_v24  ;;  %v13786_v54 = vsub.f32 %v13520_v36, %v13722_v24  ;;  %v13790_v44 = vsub.f32 %v13532_v52, %v13722_v24  ;;  %v13794_v53 = vsub.f32 %v13538_v35, %v13722_v24 }
 0x20a   :  { %v13798_v58 = vsub.f32 %v13530_v40, %v13722_v24  ;;  %v13802_v42 = vsub.f32 %v13536_v61, %v13722_v24  ;;  %v13806_v36 = vsub.f32 %v13548_v51, %v13722_v24  ;;  %v13810_v52 = vsub.f32 %v13554_v31, %v13722_v24 }
 0x20b   :  { %v13814_v35 = vsub.f32 %v13546_v38, %v13722_v24  ;;  %v13818_v40 = vsub.f32 %v13552_v59, %v13722_v24  ;;  %v13822_v61 = vsub.f32 %v13564_v50, %v13722_v24  ;;  %v13826_v51 = vsub.f32 %v13570_v27, %v13722_v24 }
 0x20c   :  { %v13830_v31 = vsub.f32 %v13562_v34, %v13722_v24  ;;  %v13834_v38 = vsub.f32 %v13568_v57, %v13722_v24  ;;  %v13838_v59 = vsub.f32 %v13580_v43, %v13722_v24  ;;  %v13842_v50 = vsub.f32 %v13586_v23, %v13722_v24 }
 0x20d   :  { %20694 = vst [vmem:[#allocation89_spill] sm:$0xff] %v13826_v51  ;;  %v13846_v27 = vsub.f32 %v13578_v30, %v13722_v24  ;;  %v13850_v34 = vsub.f32 %v13584_v33, %v13722_v24  ;;  %v13854_v57 = vsub.f32 %v13596_v41, %v13722_v24  ;;  %v13858_v43 = vsub.f32 %v13602_v19, %v13722_v24 }
 0x20e   :  { %20695 = vst [vmem:[#allocation90_spill] sm:$0xff] %v13830_v31  ;;  %20696 = vst [vmem:[#allocation91_spill] sm:$0xff] %v13834_v38  ;;  %v13862_v23 = vsub.f32 %v13594_v26, %v13722_v24  ;;  %v13866_v30 = vsub.f32 %v13600_v29, %v13722_v24  ;;  %v13870_v33 = vsub.f32 %v13612_v39, %v13722_v24 }
 0x20f   :  { %20697 = vst [vmem:[#allocation92_spill] sm:$0xff] %v13838_v59  ;;  %20698 = vst [vmem:[#allocation93_spill] sm:$0xff] %v13842_v50  ;;  %v13874_v41 = vsub.f32 %v13618_v15, %v13722_v24  ;;  %v13878_v19 = vsub.f32 %v13610_v22, %v13722_v24  ;;  %v13882_v26 = vsub.f32 %v13616_v25, %v13722_v24 }
 0x210   :  { %20699 = vst [vmem:[#allocation94_spill] sm:$0xff] %v13846_v27  ;;  %20700 = vst [vmem:[#allocation95_spill] sm:$0xff] %v13850_v34  ;;  %v13886_v29 = vsub.f32 %v13628_v37, %v13722_v24  ;;  %v13890_v39 = vsub.f32 %v13634_v11, %v13722_v24  ;;  %v13894_v15 = vsub.f32 %v13626_v18, %v13722_v24 }
 0x211   :  { %20701 = vst [vmem:[#allocation96_spill] sm:$0xff] %v13854_v57  ;;  %20702 = vst [vmem:[#allocation97_spill] sm:$0xff] %v13858_v43  ;;  %v13898_v22 = vsub.f32 %v13632_v21, %v13722_v24  ;;  %v13902_v25 = vsub.f32 %v13644_v32, %v13722_v24  ;;  %v13906_v37 = vsub.f32 %v13650_v3, %v13722_v24 }
 0x212   :  { %20703 = vst [vmem:[#allocation98_spill] sm:$0xff] %v13862_v23  ;;  %20704 = vst [vmem:[#allocation99_spill] sm:$0xff] %v13866_v30  ;;  %v13910_v11 = vsub.f32 %v13642_v14, %v13722_v24  ;;  %v13914_v18 = vsub.f32 %v20716_v28, %v13722_v24  ;;  %v13918_v21 = vsub.f32 %v20718_v6, %v13722_v24  ;;  %v20730_v28 = vld [vmem:[#allocation75_spill] sm:$0xff] }
 0x213   :  { %20705 = vst [vmem:[#allocation100_spill] sm:$0xff] %v13870_v33  ;;  %20706 = vst [vmem:[#allocation101_spill] sm:$0xff] %v13874_v41  ;;  %v13922_v32 = vsub.f32 %v20720_v16, %v13722_v24  ;;  %v13926_v3 = vsub.f32 %v20722_v4, %v13722_v24  ;;  %v13930_v14 = vsub.f32 %v20724_v0, %v13722_v24  ;;  %v20732_v16 = vld [vmem:[#allocation77_spill] sm:$0xff] }
 0x214   :  { %20707 = vst [vmem:[#allocation102_spill] sm:$0xff] %v13878_v19  ;;  %20708 = vst [vmem:[#allocation103_spill] sm:$0xff] %v13882_v26  ;;  %v13934_v9 = vsub.f32 %v20726_v8, %v13722_v24  ;;  %v13938_v20 = vsub.f32 %v20728_v12, %v13722_v24  ;;  %v13942_v6 = vsub.f32 %v20730_v28, %v13722_v24 }
 0x215   :  { %20709 = vst [vmem:[#allocation104_spill] sm:$0xff] %v13886_v29  ;;  %20710 = vst [vmem:[#allocation105_spill] sm:$0xff] %v13890_v39  ;;  %v13946_v4 = vsub.f32 %v20732_v16, %v13722_v24 }
 0x216   :  { %20711 = vst [vmem:[#allocation106_spill] sm:$0xff] %v13894_v15  ;;  %20712 = vst [vmem:[#allocation107_spill] sm:$0xff] %v13898_v22 }
 0x217   :  { %20713 = vst [vmem:[#allocation108_spill] sm:$0xff] %v13902_v25  ;;  %20714 = vst [vmem:[#allocation109_spill] sm:$0xff] %v13906_v37 }
 0x218   :  { %20715 = vst [vmem:[#allocation110_spill] sm:$0xff] %v13910_v11  ;;  %20717 = vst [vmem:[#allocation70_spill] sm:$0xff] %v13914_v18 }
 0x219   :  { %20719 = vst [vmem:[#allocation72_spill] sm:$0xff] %v13918_v21  ;;  %20721 = vst [vmem:[#allocation74_spill] sm:$0xff] %v13922_v32 }
 0x21a   :  { %20723 = vst [vmem:[#allocation71_spill] sm:$0xff] %v13926_v3  ;;  %20725 = vst [vmem:[#allocation73_spill] sm:$0xff] %v13930_v14  ;;  %v20734_v3 = vld [vmem:[#allocation80_spill] sm:$0xff]  ;;  %v20736_v14 = vld [vmem:[#allocation82_spill] sm:$0xff] }
 0x21b   :  { %20727 = vst [vmem:[#allocation76_spill] sm:$0xff] %v13934_v9  ;;  %20729 = vst [vmem:[#allocation78_spill] sm:$0xff] %v13938_v20  ;;  %v13950_v0 = vsub.f32 %v20734_v3, %v13722_v24  ;;  %v13954_v8 = vsub.f32 %v20736_v14, %v13722_v24  ;;  %v20738_v9 = vld [vmem:[#allocation79_spill] sm:$0xff]  ;;  %v20740_v20 = vld [vmem:[#allocation81_spill] sm:$0xff]  ;;  %v13974_v14 = vsub.f32 %v13706_v13, %v13722_v24 }
 0x21c   :  { %20731 = vst [vmem:[#allocation75_spill] sm:$0xff] %v13942_v6  ;;  %20733 = vst [vmem:[#allocation77_spill] sm:$0xff] %v13946_v4  ;;  %v13958_v12 = vsub.f32 %v20738_v9, %v13722_v24  ;;  %v13962_v28 = vsub.f32 %v20740_v20, %v13722_v24  ;;  %v20742_v6 = vld [vmem:[#allocation83_spill] sm:$0xff]  ;;  %v20744_v4 = vld [vmem:[#allocation84_spill] sm:$0xff]  ;;  %v13978_v9 = vsub.f32 %v13712_v5, %v13722_v24 }
 0x21d   :  { %20735 = vst [vmem:[#allocation80_spill] sm:$0xff] %v13950_v0  ;;  %20737 = vst [vmem:[#allocation82_spill] sm:$0xff] %v13954_v8  ;;  %v13966_v16 = vsub.f32 %v20742_v6, %v13722_v24  ;;  %v13970_v3 = vsub.f32 %v20744_v4, %v13722_v24  ;;  %v2256_v20 = vmul.f32 %v13726_v7, %v13726_v7 }
 0x21e   :  { %20739 = vst [vmem:[#allocation79_spill] sm:$0xff] %v13958_v12  ;;  %20741 = vst [vmem:[#allocation81_spill] sm:$0xff] %v13962_v28  ;;  %v2257_v28 = vmul.f32 %v13730_v2, %v13730_v2  ;;  %v2258_v6 = vmul.f32 %v13734_v10, %v13734_v10  ;;  %v2259_v4 = vmul.f32 %v13738_v1, %v13738_v1 }
 0x21f   :  { %20743 = vst [vmem:[#allocation83_spill] sm:$0xff] %v13966_v16  ;;  %20745 = vst [vmem:[#allocation84_spill] sm:$0xff] %v13970_v3  ;;  %v2320_v3 = vsel %vm2056_vm3, %v2256_v20, 0.0  ;;  %v2260_v5 = vmul.f32 %v13742_v17, %v13742_v17  ;;  %v2261_v2 = vmul.f32 %v13746_v47, %v13746_v47  ;;  %v2262_v1 = vmul.f32 %v13750_v49, %v13750_v49 }
 0x220   :  { %20746 = vst [vmem:[#allocation111_spill] sm:$0xff] %v13974_v14  ;;  %20747 = vst [vmem:[#allocation112_spill] sm:$0xff] %v13978_v9  ;;  %v2321_v13 = vsel %vm2056_vm3, %v2257_v28, 0.0  ;;  %v2323_v24 = vsel %vm2056_vm3, %v2258_v6, 0.0  ;;  %v2325_v9 = vsel %vm2056_vm3, %v2259_v4, 0.0  ;;  %v2263_v28 = vmul.f32 %v13754_v46, %v13754_v46 }
 0x221   :  { %v2322_v14 = vadd.f32 %v2321_v13, %v2320_v3  ;;  %v2327_v20 = vsel %vm2056_vm3, %v2260_v5, 0.0  ;;  %v2329_v3 = vsel %vm2056_vm3, %v2261_v2, 0.0  ;;  %v2331_v6 = vsel %vm2056_vm3, %v2262_v1, 0.0 }
 0x222   :  { %v2267_v2 = vmul.f32 %v13770_v56, %v13770_v56  ;;  %v2268_v1 = vmul.f32 %v13774_v63, %v13774_v63 }
 0x223   :  { %v2324_v7 = vadd.f32 %v2323_v24, %v2322_v14  ;;  %v2264_v14 = vmul.f32 %v13758_v48, %v13758_v48 }
 0x225   :  { %v2326_v10 = vadd.f32 %v2325_v9, %v2324_v7  ;;  %v2265_v7 = vmul.f32 %v13762_v45, %v13762_v45  ;;  %v2333_v9 = vsel %vm2056_vm3, %v2263_v28, 0.0  ;;  %v2335_v5 = vsel %vm2056_vm3, %v2264_v14, 0.0 }
 0x226   :  { %v2269_v28 = vmul.f32 %v13778_v55, %v13778_v55  ;;  %v2270_v14 = vmul.f32 %v13782_v60, %v13782_v60 }
 0x227   :  { %v2328_v16 = vadd.f32 %v2327_v20, %v2326_v10  ;;  %v2266_v10 = vmul.f32 %v13766_v62, %v13766_v62 }
 0x229   :  { %v2330_v13 = vadd.f32 %v2329_v3, %v2328_v16  ;;  %v2337_v16 = vsel %vm2056_vm3, %v2265_v7, 0.0  ;;  %v2271_v7 = vmul.f32 %v13786_v54, %v13786_v54 }
 0x22b   :  { %v2332_v24 = vadd.f32 %v2331_v6, %v2330_v13  ;;  %v2339_v13 = vsel %vm2056_vm3, %v2266_v10, 0.0  ;;  %v2272_v10 = vmul.f32 %v13790_v44, %v13790_v44 }
 0x22d   :  { %v2334_v4 = vadd.f32 %v2333_v9, %v2332_v24  ;;  %v2341_v24 = vsel %vm2056_vm3, %v2267_v2, 0.0  ;;  %v2273_v2 = vmul.f32 %v13794_v53, %v13794_v53 }
 0x22f   :  { %v2336_v20 = vadd.f32 %v2335_v5, %v2334_v4  ;;  %v2343_v4 = vsel %vm2056_vm3, %v2268_v1, 0.0  ;;  %v2274_v1 = vmul.f32 %v13798_v58, %v13798_v58 }
 0x231   :  { %v2338_v3 = vadd.f32 %v2337_v16, %v2336_v20  ;;  %v2345_v20 = vsel %vm2056_vm3, %v2269_v28, 0.0  ;;  %v2275_v28 = vmul.f32 %v13802_v42, %v13802_v42 }
 0x233   :  { %v2340_v6 = vadd.f32 %v2339_v13, %v2338_v3  ;;  %v2347_v3 = vsel %vm2056_vm3, %v2270_v14, 0.0  ;;  %v2276_v14 = vmul.f32 %v13806_v36, %v13806_v36 }
 0x235   :  { %v2342_v9 = vadd.f32 %v2341_v24, %v2340_v6  ;;  %v2349_v6 = vsel %vm2056_vm3, %v2271_v7, 0.0  ;;  %v2277_v7 = vmul.f32 %v13810_v52, %v13810_v52 }
 0x237   :  { %v2344_v5 = vadd.f32 %v2343_v4, %v2342_v9  ;;  %v2351_v9 = vsel %vm2056_vm3, %v2272_v10, 0.0  ;;  %v2278_v10 = vmul.f32 %v13814_v35, %v13814_v35 }
 0x239   :  { %v2346_v16 = vadd.f32 %v2345_v20, %v2344_v5  ;;  %v2353_v5 = vsel %vm2056_vm3, %v2273_v2, 0.0  ;;  %v2279_v2 = vmul.f32 %v13818_v40, %v13818_v40 }
 0x23b   :  { %v2348_v13 = vadd.f32 %v2347_v3, %v2346_v16  ;;  %v2355_v16 = vsel %vm2056_vm3, %v2274_v1, 0.0  ;;  %v2280_v1 = vmul.f32 %v13822_v61, %v13822_v61 }
 0x23d   :  { %v2350_v24 = vadd.f32 %v2349_v6, %v2348_v13  ;;  %v2357_v13 = vsel %vm2056_vm3, %v2275_v28, 0.0  ;;  %v2281_v28 = vmul.f32 %v13826_v51, %v13826_v51 }
 0x23f   :  { %v2352_v4 = vadd.f32 %v2351_v9, %v2350_v24  ;;  %v2359_v24 = vsel %vm2056_vm3, %v2276_v14, 0.0  ;;  %v2282_v14 = vmul.f32 %v13830_v31, %v13830_v31 }
 0x241   :  { %v2354_v20 = vadd.f32 %v2353_v5, %v2352_v4  ;;  %v2361_v4 = vsel %vm2056_vm3, %v2277_v7, 0.0  ;;  %v2283_v7 = vmul.f32 %v13834_v38, %v13834_v38 }
 0x243   :  { %v2356_v3 = vadd.f32 %v2355_v16, %v2354_v20  ;;  %v2363_v20 = vsel %vm2056_vm3, %v2278_v10, 0.0  ;;  %v2284_v10 = vmul.f32 %v13838_v59, %v13838_v59 }
 0x245   :  { %v2358_v6 = vadd.f32 %v2357_v13, %v2356_v3  ;;  %v2365_v3 = vsel %vm2056_vm3, %v2279_v2, 0.0  ;;  %v2285_v2 = vmul.f32 %v13842_v50, %v13842_v50 }
 0x247   :  { %v2360_v9 = vadd.f32 %v2359_v24, %v2358_v6  ;;  %v2367_v6 = vsel %vm2056_vm3, %v2280_v1, 0.0  ;;  %v2286_v1 = vmul.f32 %v13846_v27, %v13846_v27 }
 0x249   :  { %v2362_v5 = vadd.f32 %v2361_v4, %v2360_v9  ;;  %v2369_v9 = vsel %vm2056_vm3, %v2281_v28, 0.0  ;;  %v2287_v28 = vmul.f32 %v13850_v34, %v13850_v34 }
 0x24b   :  { %v2364_v16 = vadd.f32 %v2363_v20, %v2362_v5  ;;  %v2371_v5 = vsel %vm2056_vm3, %v2282_v14, 0.0  ;;  %v2288_v14 = vmul.f32 %v13854_v57, %v13854_v57 }
 0x24d   :  { %v2366_v13 = vadd.f32 %v2365_v3, %v2364_v16  ;;  %v2373_v16 = vsel %vm2056_vm3, %v2283_v7, 0.0  ;;  %v2289_v7 = vmul.f32 %v13858_v43, %v13858_v43 }
 0x24f   :  { %v2368_v24 = vadd.f32 %v2367_v6, %v2366_v13  ;;  %v2375_v13 = vsel %vm2056_vm3, %v2284_v10, 0.0  ;;  %v2290_v10 = vmul.f32 %v13862_v23, %v13862_v23 }
 0x251   :  { %v2370_v4 = vadd.f32 %v2369_v9, %v2368_v24  ;;  %v2377_v24 = vsel %vm2056_vm3, %v2285_v2, 0.0  ;;  %v2291_v2 = vmul.f32 %v13866_v30, %v13866_v30 }
 0x253   :  { %v2372_v20 = vadd.f32 %v2371_v5, %v2370_v4  ;;  %v2379_v4 = vsel %vm2056_vm3, %v2286_v1, 0.0  ;;  %v2292_v1 = vmul.f32 %v13870_v33, %v13870_v33 }
 0x255   :  { %v2374_v3 = vadd.f32 %v2373_v16, %v2372_v20  ;;  %v2381_v20 = vsel %vm2056_vm3, %v2287_v28, 0.0  ;;  %v2293_v28 = vmul.f32 %v13874_v41, %v13874_v41 }
 0x257   :  { %v2376_v6 = vadd.f32 %v2375_v13, %v2374_v3  ;;  %v2383_v3 = vsel %vm2056_vm3, %v2288_v14, 0.0  ;;  %v2294_v14 = vmul.f32 %v13878_v19, %v13878_v19 }
 0x259   :  { %v2378_v9 = vadd.f32 %v2377_v24, %v2376_v6  ;;  %v2385_v6 = vsel %vm2056_vm3, %v2289_v7, 0.0  ;;  %v2295_v7 = vmul.f32 %v13882_v26, %v13882_v26 }
 0x25b   :  { %v2380_v5 = vadd.f32 %v2379_v4, %v2378_v9  ;;  %v2387_v9 = vsel %vm2056_vm3, %v2290_v10, 0.0  ;;  %v2296_v10 = vmul.f32 %v13886_v29, %v13886_v29 }
 0x25d   :  { %v2382_v16 = vadd.f32 %v2381_v20, %v2380_v5  ;;  %v2389_v5 = vsel %vm2056_vm3, %v2291_v2, 0.0  ;;  %v2297_v2 = vmul.f32 %v13890_v39, %v13890_v39 }
 0x25f   :  { %v2384_v13 = vadd.f32 %v2383_v3, %v2382_v16  ;;  %v2391_v16 = vsel %vm2056_vm3, %v2292_v1, 0.0  ;;  %v2298_v1 = vmul.f32 %v13894_v15, %v13894_v15 }
 0x261   :  { %v2386_v24 = vadd.f32 %v2385_v6, %v2384_v13  ;;  %v2393_v13 = vsel %vm2056_vm3, %v2293_v28, 0.0  ;;  %v2299_v28 = vmul.f32 %v13898_v22, %v13898_v22 }
 0x263   :  { %v2388_v4 = vadd.f32 %v2387_v9, %v2386_v24  ;;  %v2395_v24 = vsel %vm2056_vm3, %v2294_v14, 0.0  ;;  %v2300_v14 = vmul.f32 %v13902_v25, %v13902_v25 }
 0x265   :  { %v2390_v20 = vadd.f32 %v2389_v5, %v2388_v4  ;;  %v2397_v4 = vsel %vm2056_vm3, %v2295_v7, 0.0  ;;  %v2301_v7 = vmul.f32 %v13906_v37, %v13906_v37 }
 0x267   :  { %v2392_v3 = vadd.f32 %v2391_v16, %v2390_v20  ;;  %v2399_v20 = vsel %vm2056_vm3, %v2296_v10, 0.0  ;;  %v2302_v10 = vmul.f32 %v13910_v11, %v13910_v11 }
 0x269   :  { %v2394_v6 = vadd.f32 %v2393_v13, %v2392_v3  ;;  %v2401_v3 = vsel %vm2056_vm3, %v2297_v2, 0.0  ;;  %v2303_v2 = vmul.f32 %v13914_v18, %v13914_v18 }
 0x26b   :  { %v2396_v9 = vadd.f32 %v2395_v24, %v2394_v6  ;;  %v2403_v6 = vsel %vm2056_vm3, %v2298_v1, 0.0  ;;  %v2304_v1 = vmul.f32 %v13918_v21, %v13918_v21 }
 0x26d   :  { %v2398_v5 = vadd.f32 %v2397_v4, %v2396_v9  ;;  %v2405_v9 = vsel %vm2056_vm3, %v2299_v28, 0.0  ;;  %v2305_v28 = vmul.f32 %v13922_v32, %v13922_v32 }
 0x26f   :  { %v2400_v16 = vadd.f32 %v2399_v20, %v2398_v5  ;;  %v2407_v5 = vsel %vm2056_vm3, %v2300_v14, 0.0  ;;  %v20748_v14 = vld [vmem:[#allocation71_spill] sm:$0xff] }
 0x271   :  { %v2402_v13 = vadd.f32 %v2401_v3, %v2400_v16  ;;  %v2409_v16 = vsel %vm2056_vm3, %v2301_v7, 0.0  ;;  %v20749_v7 = vld [vmem:[#allocation73_spill] sm:$0xff] }
 0x273   :  { %v2404_v24 = vadd.f32 %v2403_v6, %v2402_v13  ;;  %v2411_v13 = vsel %vm2056_vm3, %v2302_v10, 0.0  ;;  %v20750_v10 = vld [vmem:[#allocation76_spill] sm:$0xff] }
 0x275   :  { %v2406_v4 = vadd.f32 %v2405_v9, %v2404_v24  ;;  %v2413_v24 = vsel %vm2056_vm3, %v2303_v2, 0.0  ;;  %v20751_v2 = vld [vmem:[#allocation78_spill] sm:$0xff] }
 0x277   :  { %v2408_v20 = vadd.f32 %v2407_v5, %v2406_v4  ;;  %v2306_v4 = vmul.f32 %v20748_v14, %v20748_v14  ;;  %v2415_v5 = vsel %vm2056_vm3, %v2304_v1, 0.0  ;;  %v20752_v1 = vld [vmem:[#allocation75_spill] sm:$0xff] }
 0x279   :  { %v2410_v3 = vadd.f32 %v2409_v16, %v2408_v20  ;;  %v2307_v20 = vmul.f32 %v20749_v7, %v20749_v7  ;;  %v2417_v16 = vsel %vm2056_vm3, %v2305_v28, 0.0  ;;  %v20753_v28 = vld [vmem:[#allocation77_spill] sm:$0xff] }
 0x27b   :  { %v2412_v6 = vadd.f32 %v2411_v13, %v2410_v3  ;;  %v2308_v3 = vmul.f32 %v20750_v10, %v20750_v10  ;;  %v2419_v13 = vsel %vm2056_vm3, %v2306_v4, 0.0 }
 0x27d   :  { %v2414_v9 = vadd.f32 %v2413_v24, %v2412_v6  ;;  %v2309_v6 = vmul.f32 %v20751_v2, %v20751_v2  ;;  %v2421_v24 = vsel %vm2056_vm3, %v2307_v20, 0.0 }
 0x27f   :  { %v2416_v18 = vadd.f32 %v2415_v5, %v2414_v9  ;;  %v2310_v9 = vmul.f32 %v20752_v1, %v20752_v1  ;;  %v2423_v5 = vsel %vm2056_vm3, %v2308_v3, 0.0 }
 0x281   :  { %v2418_v21 = vadd.f32 %v2417_v16, %v2416_v18  ;;  %v2311_v18 = vmul.f32 %v20753_v28, %v20753_v28  ;;  %v2425_v16 = vsel %vm2056_vm3, %v2309_v6, 0.0  ;;  %v2427_v4 = vsel %vm2056_vm3, %v2310_v9, 0.0  ;;  %v20754_v6 = vld [vmem:[#allocation81_spill] sm:$0xff]  ;;  %v20755_v9 = vld [vmem:[#allocation83_spill] sm:$0xff] }
 0x283   :  { %v2420_v32 = vadd.f32 %v2419_v13, %v2418_v21  ;;  %v2312_v21 = vmul.f32 %v13950_v0, %v13950_v0  ;;  %v2429_v20 = vsel %vm2056_vm3, %v2311_v18, 0.0  ;;  %v20756_v18 = vld [vmem:[#allocation84_spill] sm:$0xff] }
 0x285   :  { %v2422_v14 = vadd.f32 %v2421_v24, %v2420_v32  ;;  %v2313_v32 = vmul.f32 %v13954_v8, %v13954_v8  ;;  %v2431_v3 = vsel %vm2056_vm3, %v2312_v21, 0.0  ;;  %v20757_v21 = vld [vmem:[#allocation111_spill] sm:$0xff] }
 0x287   :  { %v2424_v7 = vadd.f32 %v2423_v5, %v2422_v14  ;;  %v2314_v14 = vmul.f32 %v13958_v12, %v13958_v12 }
 0x289   :  { %v2426_v10 = vadd.f32 %v2425_v16, %v2424_v7  ;;  %v2315_v7 = vmul.f32 %v20754_v6, %v20754_v6  ;;  %v2433_v16 = vsel %vm2056_vm3, %v2313_v32, 0.0  ;;  %v20758_v32 = vld [vmem:[#allocation112_spill] sm:$0xff] }
 0x28b   :  { %v2428_v13 = vadd.f32 %v2427_v4, %v2426_v10  ;;  %v2316_v10 = vmul.f32 %v20755_v9, %v20755_v9  ;;  %v2435_v4 = vsel %vm2056_vm3, %v2314_v14, 0.0 }
 0x28d   :  { %v2430_v24 = vadd.f32 %v2429_v20, %v2428_v13  ;;  %v2317_v13 = vmul.f32 %v20756_v18, %v20756_v18  ;;  %v2437_v20 = vsel %vm2056_vm3, %v2315_v7, 0.0 }
 0x28f   :  { %v2432_v5 = vadd.f32 %v2431_v3, %v2430_v24  ;;  %v2318_v24 = vmul.f32 %v20757_v21, %v20757_v21  ;;  %v2439_v3 = vsel %vm2056_vm3, %v2316_v10, 0.0 }
 0x291   :  { %v2434_v0 = vadd.f32 %v2433_v16, %v2432_v5  ;;  %v2319_v5 = vmul.f32 %v20758_v32, %v20758_v32  ;;  %v2441_v16 = vsel %vm2056_vm3, %v2317_v13, 0.0  ;;  %v12339_v13 = vmov 1983009808  }
 0x293   :  { %v2436_v8 = vadd.f32 %v2435_v4, %v2434_v0  ;;  %v2443_v0 = vsel %vm2056_vm3, %v2318_v24, 0.0  ;;  %v2445_v4 = vsel %vm2056_vm3, %v2319_v5, 0.0 }
 0x295   :  { %v2438_v12 = vadd.f32 %v2437_v20, %v2436_v8 }
 0x297   :  { %v2440_v6 = vadd.f32 %v2439_v3, %v2438_v12  ;;  %v2459_v3 = vlaneseq }
 0x299   :  { %v2442_v28 = vadd.f32 %v2441_v16, %v2440_v6  ;;  %v14172_v25 = vshrl.u32 %v2459_v3, 7  ;;  %v2729_v6 = vunpack.c.l.s4 %v12339_v13  ;;  %v20767_v3 = vld [vmem:[#allocation87_spill] sm:$0xff]  ;;  %v20769_v13 = vld [vmem:[#allocation88_spill] sm:$0xff] }
 0x29b   :  { %v2444_v14 = vadd.f32 %v2443_v0, %v2442_v28  ;;  %20759 = vst [vmem:[#allocation83_spill] sm:$0xff] %v14172_v25  ;;  %v2454_v28 = vld [vmem:[%s19872_s2] sm:$0x1]  ;;  %v14178_v24 = vsub.s32 0, %v14172_v25  ;;  %v2730_v5 = vunpack.c.0.s8 %v2729_v6 }
 0x29d   :  { %v2446_v1 = vadd.f32 %v2445_v4, %v2444_v14  ;;  %20760 = vst [vmem:[#allocation84_spill] sm:$0xff] %v14178_v24 }
 0x29f   :  { %v2447_v7 = vrot.slane %v2446_v1, 4 }
 0x2a1   :  { %v2448_v8 = vadd.f32 %v2447_v7, %v2446_v1 }
 0x2a3   :  { %v2449_v20 = vrot.slane %v2448_v8, 2 }
 0x2a5   :  { %v2450_v2 = vadd.f32 %v2449_v20, %v2448_v8  ;;  %v20763_v8 = vld [vmem:[#allocation85_spill] sm:$0xff] }
 0x2a7   :  { %v2451_v11 = vrot.slane %v2450_v2, 1 }
 0x2a9   :  { %v2452_v37 = vadd.f32 %v2451_v11, %v2450_v2  ;;  %v14189_v2 = vsub.s32 %v2730_v5, %v14172_v25 }
 0x2ab   :  { %v2453_v10 = vmul.f32 0.001953125, %v2452_v37  ;;  %v14186_v37 = vld [vmem:[%s19873_s3] ss:$0 sm:$0xff]  ;;  %20762 = vst [vmem:[#allocation112_spill] sm:$0xff] %v14189_v2 }
 0x2ac   :  { %20761 = vst [vmem:[#allocation111_spill] sm:$0xff] %v14186_v37 }
 0x2ad   :  { %v2455_v12 = vadd.f32 1e-05, %v2453_v10  ;;  %v20765_v10 = vld [vmem:[#allocation86_spill] sm:$0xff] }
 0x2af   :  { %12225 = vrsqrt.f32 %v2455_v12 }
 0x2b9   :  { %v12226_v1 = vpop.eup %12225 }
 0x2ba   :  { %v2457_v16 = vmul.f32 %v12226_v1, %v2454_v28 }
 0x2bc   :  { %v14181_v11 = vrot.slane %v2457_v16, %v14178_v24 }
 0x2be   :  { %v2524_v0 = vmul.f32 %v14181_v11, %v20755_v9  ;;  %v2525_v14 = vmul.f32 %v14181_v11, %v20756_v18  ;;  %v2526_v4 = vmul.f32 %v14181_v11, %v20757_v21  ;;  %v2527_v7 = vmul.f32 %v14181_v11, %v20758_v32 }
 0x2bf   :  { %v14201_v20 = vmul.f32 %v14181_v11, %v20763_v8  ;;  %v14205_v12 = vmul.f32 %v14181_v11, %v20765_v10  ;;  %v14209_v9 = vmul.f32 %v14181_v11, %v20767_v3  ;;  %v14213_v18 = vmul.f32 %v14181_v11, %v20769_v13 }
 0x2c0   :  { %v2595_v21 = vadd.f32 %v14186_v37, %v2524_v0  ;;  %v2596_v32 = vadd.f32 %v14186_v37, %v2525_v14  ;;  %v2597_v6 = vadd.f32 %v14186_v37, %v2526_v4  ;;  %v2598_v28 = vadd.f32 %v14186_v37, %v2527_v7 }
 0x2c1   :  { %20764 = vst [vmem:[#allocation85_spill] sm:$0xff] %v14201_v20  ;;  %20766 = vst [vmem:[#allocation86_spill] sm:$0xff] %v14205_v12  ;;  %v14221_v1 = vmul.f32 %v14181_v11, %v13742_v17  ;;  %v14225_v5 = vmul.f32 %v14181_v11, %v13746_v47  ;;  %v14229_v16 = vmul.f32 %v14181_v11, %v13750_v49 }
 0x2c2   :  { %20768 = vst [vmem:[#allocation87_spill] sm:$0xff] %v14209_v9  ;;  %20770 = vst [vmem:[#allocation88_spill] sm:$0xff] %v14213_v18  ;;  %v14233_v0 = vmul.f32 %v14181_v11, %v13754_v46  ;;  %v2659_v14 = vmax.f32 %v2595_v21, 0.0  ;;  %v2660_v4 = vmax.f32 %v2596_v32, 0.0  ;;  %v2661_v8 = vmax.f32 %v2597_v6, 0.0 }
 0x2c3   :  { %20771 = vst [vmem:[#allocation113_spill] sm:$0xff] %v14221_v1  ;;  %20772 = vst [vmem:[#allocation114_spill] sm:$0xff] %v14225_v5  ;;  %v2662_v7 = vmax.f32 %v2598_v28, 0.0  ;;  %v14237_v17 = vmul.f32 %v14181_v11, %v13758_v48  ;;  %v14241_v47 = vmul.f32 %v14181_v11, %v13762_v45  ;;  %v14245_v49 = vmul.f32 %v14181_v11, %v13766_v62 }
 0x2c4   :  { %20773 = vst [vmem:[#allocation115_spill] sm:$0xff] %v14229_v16  ;;  %20774 = vst [vmem:[#allocation116_spill] sm:$0xff] %v14233_v0  ;;  %v14249_v46 = vmul.f32 %v14181_v11, %v13770_v56  ;;  %v3747_v10 = vcombine.high %v2659_v14, %v2659_v14  ;;  %v3754_v3 = vrot.slane %v2659_v14, %v14189_v2 }
 0x2c5   :  { %20775 = vst [vmem:[#allocation117_spill] sm:$0xff] %v14237_v17  ;;  %20776 = vst [vmem:[#allocation118_spill] sm:$0xff] %v14241_v47  ;;  %v3764_v13 = vcombine.high %v2660_v4, %v2660_v4  ;;  %v3771_v21 = vrot.slane %v2660_v4, %v14189_v2  ;;  %v3781_v48 = vcombine.high %v2661_v8, %v2661_v8 }
 0x2c6   :  { %20777 = vst [vmem:[#allocation119_spill] sm:$0xff] %v14245_v49  ;;  %20778 = vst [vmem:[#allocation120_spill] sm:$0xff] %v14249_v46  ;;  %v3788_v32 = vrot.slane %v2661_v8, %v14189_v2  ;;  %v3798_v6 = vcombine.high %v2662_v7, %v2662_v7  ;;  %v3805_v45 = vrot.slane %v2662_v7, %v14189_v2  ;;  %v11177_v0 = vrot.slane %v3754_v3, 9 }
 0x2c7   :  { %v3761_v28 = vrot.slane %v3747_v10, %v14189_v2  ;;  %v3762_v62 = vcombine.high %v3754_v3, %v3754_v3  ;;  %v3778_v25 = vrot.slane %v3764_v13, %v14189_v2  ;;  %v3779_v49 = vcombine.high %v3771_v21, %v3771_v21 }
 0x2c8   :  { %v3795_v56 = vrot.slane %v3781_v48, %v14189_v2  ;;  %v3796_v46 = vcombine.high %v3788_v32, %v3788_v32  ;;  %v3812_v14 = vrot.slane %v3798_v6, %v14189_v2  ;;  %v3813_v47 = vcombine.high %v3805_v45, %v3805_v45 }
 0x2c9   :  { %v3763_v17 = vcombine.high %v3761_v28, %v3761_v28  ;;  %v3780_v4 = vcombine.high %v3778_v25, %v3778_v25  ;;  %v11178_v16 = vrot.slane %v3762_v62, 9  ;;  %v11179_v1 = vrot.slane %v3761_v28, 9 }
 0x2ca   :  { %v3797_v8 = vcombine.high %v3795_v56, %v3795_v56  ;;  %v3814_v5 = vcombine.high %v3812_v14, %v3812_v14  ;;  %v11181_v7 = vrot.slane %v3771_v21, 9  ;;  %v11182_v18 = vrot.slane %v3779_v49, 9 }
 0x2cb   :  { %v11180_v10 = vrot.slane %v3763_v17, 9  ;;  %v11183_v9 = vrot.slane %v3778_v25, 9  ;;  %v11184_v13 = vrot.slane %v3780_v4, 9  ;;  %v11185_v12 = vrot.slane %v3788_v32, 9 }
 0x2cc   :  { %v11186_v48 = vrot.slane %v3796_v46, 9  ;;  %v11187_v37 = vrot.slane %v3795_v56, 9  ;;  %v11188_v20 = vrot.slane %v3797_v8, 9  ;;  %v11189_v6 = vrot.slane %v3805_v45, 9 }
 0x2cd   :  { %v11190_v2 = vrot.slane %v3813_v47, 9  ;;  %v11191_v22 = vrot.slane %v3812_v14, 9  ;;  %v11192_v15 = vrot.slane %v3814_v5, 9  ;;  %v5079_v39 = vmax.f32 %v3754_v3, %v11177_v0 }
 0x2ce   :  { %v5080_v29 = vmax.f32 %v3762_v62, %v11178_v16  ;;  %v5081_v26 = vmax.f32 %v3761_v28, %v11179_v1  ;;  %v5082_v19 = vmax.f32 %v3763_v17, %v11180_v10  ;;  %v5083_v41 = vmax.f32 %v3771_v21, %v11181_v7  ;;  %v20791_v28 = vld [vmem:[#allocation97_spill] sm:$0xff]  ;;  %v20794_v7 = vld [vmem:[#allocation100_spill] sm:$0xff] }
 0x2cf   :  { %v5084_v33 = vmax.f32 %v3779_v49, %v11182_v18  ;;  %v5085_v30 = vmax.f32 %v3778_v25, %v11183_v9  ;;  %v5086_v23 = vmax.f32 %v3780_v4, %v11184_v13  ;;  %v5087_v43 = vmax.f32 %v3788_v32, %v11185_v12  ;;  %v20789_v49 = vld [vmem:[#allocation95_spill] sm:$0xff]  ;;  %v20790_v32 = vld [vmem:[#allocation96_spill] sm:$0xff]  ;;  %v20795_v13 = vld [vmem:[#allocation101_spill] sm:$0xff] }
 0x2d0   :  { %v5088_v57 = vmax.f32 %v3796_v46, %v11186_v48  ;;  %v5089_v34 = vmax.f32 %v3795_v56, %v11187_v37  ;;  %v5090_v27 = vmax.f32 %v3797_v8, %v11188_v20  ;;  %v5091_v50 = vmax.f32 %v3805_v45, %v11189_v6  ;;  %v20792_v56 = vld [vmem:[#allocation98_spill] sm:$0xff]  ;;  %v20793_v4 = vld [vmem:[#allocation99_spill] sm:$0xff] }
 0x2d1   :  { %v5092_v59 = vmax.f32 %v3813_v47, %v11190_v2  ;;  %v5093_v38 = vmax.f32 %v3812_v14, %v11191_v22  ;;  %v5094_v31 = vmax.f32 %v3814_v5, %v11192_v15  ;;  %v5215_v51 = vmax.f32 %v5079_v39, %v5087_v43  ;;  %v20787_v22 = vld [vmem:[#allocation93_spill] sm:$0xff]  ;;  %v20788_v5 = vld [vmem:[#allocation94_spill] sm:$0xff] }
 0x2d2   :  { %v5216_v0 = vmax.f32 %v5080_v29, %v5088_v57  ;;  %v5217_v16 = vmax.f32 %v5081_v26, %v5089_v34  ;;  %v5218_v1 = vmax.f32 %v5082_v19, %v5090_v27  ;;  %v5219_v17 = vmax.f32 %v5083_v41, %v5091_v50  ;;  %v20785_v26 = vld [vmem:[#allocation91_spill] sm:$0xff]  ;;  %v20786_v29 = vld [vmem:[#allocation92_spill] sm:$0xff]  ;;  %v20796_v6 = vld [vmem:[#allocation102_spill] sm:$0xff] }
 0x2d3   :  { %v5220_v3 = vmax.f32 %v5084_v33, %v5092_v59  ;;  %v5221_v21 = vmax.f32 %v5085_v30, %v5093_v38  ;;  %v5222_v18 = vmax.f32 %v5086_v23, %v5094_v31  ;;  %v5885_v25 = vrot.slane %v5215_v51, %v14178_v24  ;;  %v20781_v33 = vld [vmem:[#allocation89_spill] sm:$0xff] }
 0x2d4   :  { %v5889_v12 = vrot.slane %v5216_v0, %v14178_v24  ;;  %v5893_v37 = vrot.slane %v5217_v16, %v14178_v24  ;;  %v5897_v20 = vrot.slane %v5218_v1, %v14178_v24  ;;  %v5901_v2 = vrot.slane %v5219_v17, %v14178_v24  ;;  %v20797_v16 = vld [vmem:[#allocation103_spill] sm:$0xff]  ;;  %v20798_v17 = vld [vmem:[#allocation104_spill] sm:$0xff] }
 0x2d5   :  { %v5905_v15 = vrot.slane %v5220_v3, %v14178_v24  ;;  %v5909_v57 = vrot.slane %v5221_v21, %v14178_v24  ;;  %v5913_v27 = vrot.slane %v5222_v18, %v14178_v24  ;;  %v14270_v31 = vmul.f32 %v14181_v11, %v13774_v63  ;;  %v20799_v21 = vld [vmem:[#allocation105_spill] sm:$0xff]  ;;  %v20825_v24 = vld [vmem:[#allocation115_spill] sm:$0xff] }
 0x2d6   :  { %v6026_v59 = vsel %vm5914_vm4, %v5889_v12, %v5885_v25  ;;  %v14274_v51 = vmul.f32 %v14181_v11, %v13778_v55  ;;  %v14278_v38 = vmul.f32 %v14181_v11, %v13782_v60  ;;  %v14283_v34 = vmul.f32 %v14181_v11, %v13786_v54  ;;  %v20800_v25 = vld [vmem:[#allocation106_spill] sm:$0xff] }
 0x2d7   :  { %v6027_v50 = vsel %vm5916_vm5, %v5893_v37, %v6026_v59  ;;  %v14287_v43 = vmul.f32 %v14181_v11, %v13790_v44  ;;  %v14291_v63 = vmul.f32 %v14181_v11, %v13794_v53  ;;  %v14296_v60 = vmul.f32 %v14181_v11, %v13798_v58  ;;  %v20801_v37 = vld [vmem:[#allocation107_spill] sm:$0xff]  ;;  %v20804_v59 = vld [vmem:[#allocation110_spill] sm:$0xff] }
 0x2d8   :  { %v6028_v55 = vsel %vm5918_vm6, %v5897_v20, %v6027_v50  ;;  %v14300_v23 = vmul.f32 %v14181_v11, %v13802_v42  ;;  %v14304_v54 = vmul.f32 %v14181_v11, %v13806_v36  ;;  %v14309_v53 = vmul.f32 %v14181_v11, %v13810_v52  ;;  %v20783_v52 = vld [vmem:[#allocation90_spill] sm:$0xff] }
 0x2d9   :  { %v6029_v44 = vsel %vm5920_vm7, %v5901_v2, %v6028_v55  ;;  %v14313_v30 = vmul.f32 %v14181_v11, %v13814_v35  ;;  %v14317_v58 = vmul.f32 %v14181_v11, %v13818_v40  ;;  %v14322_v36 = vmul.f32 %v14181_v11, %v13822_v61  ;;  %v20802_v2 = vld [vmem:[#allocation108_spill] sm:$0xff]  ;;  %v20805_v55 = vld [vmem:[#allocation70_spill] sm:$0xff] }
 0x2da   :  { %v6030_v42 = vsel %vm5922_vm8, %v5905_v15, %v6029_v44  ;;  %v14326_v41 = vmul.f32 %v14181_v11, %v20781_v33  ;;  %v14330_v19 = vmul.f32 %v14181_v11, %v20783_v52  ;;  %v2491_v40 = vmul.f32 %v14181_v11, %v20785_v26  ;;  %v20807_v52 = vld [vmem:[#allocation74_spill] sm:$0xff]  ;;  %v20808_v26 = vld [vmem:[#allocation71_spill] sm:$0xff] }
 0x2db   :  { %20779 = vst [vmem:[#allocation121_spill] sm:$0xff] %v14317_v58  ;;  %20780 = vst [vmem:[#allocation122_spill] sm:$0xff] %v14322_v36  ;;  %v6031_v35 = vsel %vm5924_vm9, %v5909_v57, %v6030_v42  ;;  %v2492_v39 = vmul.f32 %v14181_v11, %v20786_v29  ;;  %v2493_v61 = vmul.f32 %v14181_v11, %v20787_v22  ;;  %v20803_v57 = vld [vmem:[#allocation109_spill] sm:$0xff]  ;;  %v20806_v42 = vld [vmem:[#allocation72_spill] sm:$0xff] }
 0x2dc   :  { %20782 = vst [vmem:[#allocation89_spill] sm:$0xff] %v14326_v41  ;;  %20784 = vst [vmem:[#allocation90_spill] sm:$0xff] %v14330_v19  ;;  %v6032_v9 = vsel %vm5926_vm10, %v5913_v27, %v6031_v35  ;;  %v2494_v47 = vmul.f32 %v14181_v11, %v20788_v5  ;;  %v2495_v46 = vmul.f32 %v14181_v11, %v20789_v49  ;;  %v20809_v22 = vld [vmem:[#allocation73_spill] sm:$0xff]  ;;  %v20810_v5 = vld [vmem:[#allocation76_spill] sm:$0xff] }
 0x2dd   :  { %v2496_v45 = vmul.f32 %v14181_v11, %v20790_v32  ;;  %6065 = vst.msk [vmem:[#allocation2 + $0x121] sm:$0xff] %vm2056_vm3, %v6032_v9  ;;  %v2497_v62 = vmul.f32 %v14181_v11, %v20791_v28  ;;  %v2498_v14 = vmul.f32 %v14181_v11, %v20792_v56  ;;  %v2499_v8 = vmul.f32 %v14181_v11, %v20793_v4  ;;  %v20811_v32 = vld [vmem:[#allocation78_spill] sm:$0xff]  ;;  %v20812_v56 = vld [vmem:[#allocation75_spill] sm:$0xff]  ;;  %v20827_v19 = vld [vmem:[#allocation117_spill] sm:$0xff] }
 0x2de   :  { %v2500_v10 = vmul.f32 %v14181_v11, %v20794_v7  ;;  %v2501_v48 = vmul.f32 %v14181_v11, %v20795_v13  ;;  %v2502_v0 = vmul.f32 %v14181_v11, %v20796_v6  ;;  %v2503_v1 = vmul.f32 %v14181_v11, %v20797_v16  ;;  %v20813_v7 = vld [vmem:[#allocation77_spill] sm:$0xff]  ;;  %v20814_v6 = vld [vmem:[#allocation80_spill] sm:$0xff]  ;;  %v20828_v41 = vld [vmem:[#allocation118_spill] sm:$0xff] }
 0x2df   :  { %v2504_v3 = vmul.f32 %v14181_v11, %v20798_v17  ;;  %v2505_v18 = vmul.f32 %v14181_v11, %v20799_v21  ;;  %v2506_v12 = vmul.f32 %v14181_v11, %v20800_v25  ;;  %v2507_v20 = vmul.f32 %v14181_v11, %v20801_v37  ;;  %v20815_v17 = vld [vmem:[#allocation82_spill] sm:$0xff]  ;;  %v20816_v25 = vld [vmem:[#allocation79_spill] sm:$0xff]  ;;  %v20830_v58 = vld [vmem:[#allocation120_spill] sm:$0xff] }
 0x2e0   :  { %v2508_v15 = vmul.f32 %v14181_v11, %v20802_v2  ;;  %v2509_v27 = vmul.f32 %v14181_v11, %v20803_v57  ;;  %v2510_v50 = vmul.f32 %v14181_v11, %v20804_v59  ;;  %v2511_v44 = vmul.f32 %v14181_v11, %v20805_v55  ;;  %v20817_v2 = vld [vmem:[#allocation81_spill] sm:$0xff]  ;;  %v20819_v55 = vld [vmem:[#allocation111_spill] sm:$0xff] }
 0x2e1   :  { %v2512_v33 = vmul.f32 %v14181_v11, %v20806_v42  ;;  %v2513_v35 = vmul.f32 %v14181_v11, %v20807_v52  ;;  %v2514_v29 = vmul.f32 %v14181_v11, %v20808_v26  ;;  %v2515_v9 = vmul.f32 %v14181_v11, %v20809_v22  ;;  %v20818_v59 = vld [vmem:[#allocation85_spill] sm:$0xff]  ;;  %v20820_v52 = vld [vmem:[#allocation86_spill] sm:$0xff]  ;;  %v20821_v22 = vld [vmem:[#allocation87_spill] sm:$0xff] }
 0x2e2   :  { %v2516_v49 = vmul.f32 %v14181_v11, %v20810_v5  ;;  %v2517_v28 = vmul.f32 %v14181_v11, %v20811_v32  ;;  %v2518_v4 = vmul.f32 %v14181_v11, %v20812_v56  ;;  %v2519_v13 = vmul.f32 %v14181_v11, %v20813_v7  ;;  %v20822_v32 = vld [vmem:[#allocation88_spill] sm:$0xff]  ;;  %v20823_v7 = vld [vmem:[#allocation113_spill] sm:$0xff]  ;;  %v20829_v36 = vld [vmem:[#allocation119_spill] sm:$0xff] }
 0x2e3   :  { %v2520_v16 = vmul.f32 %v14181_v11, %v20814_v6  ;;  %v2521_v21 = vmul.f32 %v14181_v11, %v20815_v17  ;;  %v2522_v37 = vmul.f32 %v14181_v11, %v20816_v25  ;;  %v2523_v57 = vmul.f32 %v14181_v11, %v20817_v2  ;;  %v20824_v17 = vld [vmem:[#allocation114_spill] sm:$0xff]  ;;  %v20826_v2 = vld [vmem:[#allocation116_spill] sm:$0xff] }
 0x2e4   :  { %v2535_v42 = vadd.f32 %v20819_v55, %v20818_v59  ;;  %v2536_v26 = vadd.f32 %v20819_v55, %v20820_v52  ;;  %v2537_v5 = vadd.f32 %v20819_v55, %v20821_v22  ;;  %v2538_v56 = vadd.f32 %v20819_v55, %v20822_v32 }
 0x2e5   :  { %v2539_v6 = vadd.f32 %v20819_v55, %v20823_v7  ;;  %v2540_v25 = vadd.f32 %v20819_v55, %v20824_v17  ;;  %v2541_v11 = vadd.f32 %v20819_v55, %v20825_v24  ;;  %v2542_v59 = vadd.f32 %v20819_v55, %v20826_v2 }
 0x2e6   :  { %v2543_v52 = vadd.f32 %v20819_v55, %v20827_v19  ;;  %v2544_v22 = vadd.f32 %v20819_v55, %v20828_v41  ;;  %v2545_v32 = vadd.f32 %v20819_v55, %v20829_v36  ;;  %v2546_v7 = vadd.f32 %v20819_v55, %v20830_v58 }
 0x2e7   :  { %v2547_v17 = vadd.f32 %v20819_v55, %v14270_v31  ;;  %v2548_v24 = vadd.f32 %v20819_v55, %v14274_v51  ;;  %v2549_v2 = vadd.f32 %v20819_v55, %v14278_v38  ;;  %v2550_v19 = vadd.f32 %v20819_v55, %v14283_v34 }
 0x2e8   :  { %v2551_v41 = vadd.f32 %v20819_v55, %v14287_v43  ;;  %v2552_v36 = vadd.f32 %v20819_v55, %v14291_v63  ;;  %v2553_v58 = vadd.f32 %v20819_v55, %v14296_v60  ;;  %v2554_v31 = vadd.f32 %v20819_v55, %v14300_v23  ;;  %v20831_v43 = vld [vmem:[#allocation121_spill] sm:$0xff]  ;;  %v20832_v60 = vld [vmem:[#allocation122_spill] sm:$0xff] }
 0x2e9   :  { %v2555_v51 = vadd.f32 %v20819_v55, %v14304_v54  ;;  %v2556_v38 = vadd.f32 %v20819_v55, %v14309_v53  ;;  %v2557_v34 = vadd.f32 %v20819_v55, %v14313_v30  ;;  %v2558_v63 = vadd.f32 %v20819_v55, %v20831_v43  ;;  %v20833_v54 = vld [vmem:[#allocation89_spill] sm:$0xff]  ;;  %v20834_v30 = vld [vmem:[#allocation90_spill] sm:$0xff] }
 0x2ea   :  { %v2559_v23 = vadd.f32 %v20819_v55, %v20832_v60  ;;  %v2560_v53 = vadd.f32 %v20819_v55, %v20833_v54  ;;  %v2561_v43 = vadd.f32 %v20819_v55, %v20834_v30  ;;  %v2562_v60 = vadd.f32 %v20819_v55, %v2491_v40 }
 0x2eb   :  { %v2563_v54 = vadd.f32 %v20819_v55, %v2492_v39  ;;  %v2564_v30 = vadd.f32 %v20819_v55, %v2493_v61  ;;  %v2565_v40 = vadd.f32 %v20819_v55, %v2494_v47  ;;  %v2566_v39 = vadd.f32 %v20819_v55, %v2495_v46 }
 0x2ec   :  { %v2567_v61 = vadd.f32 %v20819_v55, %v2496_v45  ;;  %v2568_v47 = vadd.f32 %v20819_v55, %v2497_v62  ;;  %v2569_v46 = vadd.f32 %v20819_v55, %v2498_v14  ;;  %v2570_v45 = vadd.f32 %v20819_v55, %v2499_v8 }
 0x2ed   :  { %v2571_v62 = vadd.f32 %v20819_v55, %v2500_v10  ;;  %v2572_v14 = vadd.f32 %v20819_v55, %v2501_v48  ;;  %v2573_v8 = vadd.f32 %v20819_v55, %v2502_v0  ;;  %v2574_v10 = vadd.f32 %v20819_v55, %v2503_v1 }
 0x2ee   :  { %v2575_v48 = vadd.f32 %v20819_v55, %v2504_v3  ;;  %v2576_v0 = vadd.f32 %v20819_v55, %v2505_v18  ;;  %v2577_v1 = vadd.f32 %v20819_v55, %v2506_v12  ;;  %v2578_v3 = vadd.f32 %v20819_v55, %v2507_v20 }
 0x2ef   :  { %v2579_v18 = vadd.f32 %v20819_v55, %v2508_v15  ;;  %v2580_v12 = vadd.f32 %v20819_v55, %v2509_v27  ;;  %v2581_v20 = vadd.f32 %v20819_v55, %v2510_v50  ;;  %v2582_v15 = vadd.f32 %v20819_v55, %v2511_v44 }
 0x2f0   :  { %v2583_v27 = vadd.f32 %v20819_v55, %v2512_v33  ;;  %v2584_v50 = vadd.f32 %v20819_v55, %v2513_v35  ;;  %v2585_v44 = vadd.f32 %v20819_v55, %v2514_v29  ;;  %v2586_v33 = vadd.f32 %v20819_v55, %v2515_v9 }
 0x2f1   :  { %v2587_v35 = vadd.f32 %v20819_v55, %v2516_v49  ;;  %v2588_v29 = vadd.f32 %v20819_v55, %v2517_v28  ;;  %v2589_v9 = vadd.f32 %v20819_v55, %v2518_v4  ;;  %v2590_v49 = vadd.f32 %v20819_v55, %v2519_v13 }
 0x2f2   :  { %v2591_v28 = vadd.f32 %v20819_v55, %v2520_v16  ;;  %v2592_v4 = vadd.f32 %v20819_v55, %v2521_v21  ;;  %v2593_v13 = vadd.f32 %v20819_v55, %v2522_v37  ;;  %v2594_v16 = vadd.f32 %v20819_v55, %v2523_v57 }
 0x2f3   :  { %v14488_v21 = vmax.f32 %v2535_v42, 0.0  ;;  %v14490_v37 = vmax.f32 %v2536_v26, 0.0  ;;  %v14492_v55 = vmax.f32 %v2537_v5, 0.0  ;;  %v14494_v57 = vmax.f32 %v2538_v56, 0.0 }
 0x2f4   :  { %v14496_v42 = vmax.f32 %v2539_v6, 0.0  ;;  %v14500_v26 = vmax.f32 %v2541_v11, 0.0  ;;  %v14504_v5 = vmax.f32 %v2543_v52, 0.0  ;;  %v14508_v56 = vmax.f32 %v2545_v32, 0.0 }
 0x2f5   :  { %20835 = vst [vmem:[#allocation91_spill] sm:$0xff] %v14488_v21  ;;  %20836 = vst [vmem:[#allocation92_spill] sm:$0xff] %v14490_v37  ;;  %v14498_v21 = vmax.f32 %v2540_v25, 0.0  ;;  %v14502_v37 = vmax.f32 %v2542_v59, 0.0  ;;  %v14512_v6 = vmax.f32 %v2547_v17, 0.0  ;;  %v14516_v25 = vmax.f32 %v2549_v2, 0.0 }
 0x2f6   :  { %20837 = vst [vmem:[#allocation93_spill] sm:$0xff] %v14492_v55  ;;  %20838 = vst [vmem:[#allocation94_spill] sm:$0xff] %v14494_v57  ;;  %v14506_v55 = vmax.f32 %v2544_v22, 0.0  ;;  %v14510_v57 = vmax.f32 %v2546_v7, 0.0  ;;  %v14520_v11 = vmax.f32 %v2551_v41, 0.0  ;;  %v14522_v59 = vmax.f32 %v2552_v36, 0.0 }
 0x2f7   :  { %20839 = vst [vmem:[#allocation95_spill] sm:$0xff] %v14496_v42  ;;  %20840 = vst [vmem:[#allocation96_spill] sm:$0xff] %v14498_v21  ;;  %v14514_v42 = vmax.f32 %v2548_v24, 0.0  ;;  %v14518_v21 = vmax.f32 %v2550_v19, 0.0  ;;  %v14524_v52 = vmax.f32 %v2553_v58, 0.0  ;;  %v14526_v22 = vmax.f32 %v2554_v31, 0.0 }
 0x2f8   :  { %v14528_v32 = vmax.f32 %v2555_v51, 0.0  ;;  %v14530_v7 = vmax.f32 %v2556_v38, 0.0  ;;  %v14532_v17 = vmax.f32 %v2557_v34, 0.0  ;;  %v14534_v24 = vmax.f32 %v2558_v63, 0.0 }
 0x2f9   :  { %v14536_v2 = vmax.f32 %v2559_v23, 0.0  ;;  %v14538_v19 = vmax.f32 %v2560_v53, 0.0  ;;  %v14540_v41 = vmax.f32 %v2561_v43, 0.0  ;;  %v14542_v36 = vmax.f32 %v2562_v60, 0.0 }
 0x2fa   :  { %v14544_v58 = vmax.f32 %v2563_v54, 0.0  ;;  %v14546_v31 = vmax.f32 %v2564_v30, 0.0  ;;  %v14548_v51 = vmax.f32 %v2565_v40, 0.0  ;;  %v14550_v38 = vmax.f32 %v2566_v39, 0.0 }
 0x2fb   :  { %v14552_v34 = vmax.f32 %v2567_v61, 0.0  ;;  %v14554_v63 = vmax.f32 %v2568_v47, 0.0  ;;  %v14556_v23 = vmax.f32 %v2569_v46, 0.0  ;;  %v14558_v53 = vmax.f32 %v2570_v45, 0.0 }
 0x2fc   :  { %v14560_v43 = vmax.f32 %v2571_v62, 0.0  ;;  %v14562_v60 = vmax.f32 %v2572_v14, 0.0  ;;  %v14564_v54 = vmax.f32 %v2573_v8, 0.0  ;;  %v14566_v30 = vmax.f32 %v2574_v10, 0.0 }
 0x2fd   :  { %v14568_v40 = vmax.f32 %v2575_v48, 0.0  ;;  %v14570_v39 = vmax.f32 %v2576_v0, 0.0  ;;  %v14572_v61 = vmax.f32 %v2577_v1, 0.0  ;;  %v14574_v47 = vmax.f32 %v2578_v3, 0.0 }
 0x2fe   :  { %v14576_v46 = vmax.f32 %v2579_v18, 0.0  ;;  %v14578_v45 = vmax.f32 %v2580_v12, 0.0  ;;  %v14580_v62 = vmax.f32 %v2581_v20, 0.0  ;;  %v14582_v14 = vmax.f32 %v2582_v15, 0.0 }
 0x2ff   :  { %v14584_v8 = vmax.f32 %v2583_v27, 0.0  ;;  %v14586_v10 = vmax.f32 %v2584_v50, 0.0  ;;  %v14588_v48 = vmax.f32 %v2585_v44, 0.0  ;;  %v14590_v0 = vmax.f32 %v2586_v33, 0.0  ;;  %v20846_v44 = vld [vmem:[#allocation91_spill] sm:$0xff] }
 0x300   :  { %v14592_v1 = vmax.f32 %v2587_v35, 0.0  ;;  %v14594_v3 = vmax.f32 %v2588_v29, 0.0  ;;  %v14596_v18 = vmax.f32 %v2589_v9, 0.0  ;;  %v14598_v12 = vmax.f32 %v2590_v49, 0.0  ;;  %v20849_v29 = vld [vmem:[#allocation92_spill] sm:$0xff] }
 0x301   :  { %20841 = vst [vmem:[#allocation97_spill] sm:$0xff] %v14590_v0  ;;  %v14600_v20 = vmax.f32 %v2591_v28, 0.0  ;;  %v14602_v15 = vmax.f32 %v2592_v4, 0.0  ;;  %v14604_v27 = vmax.f32 %v2593_v13, 0.0  ;;  %v14606_v50 = vmax.f32 %v2594_v16, 0.0  ;;  %v20847_v0 = vld [vmem:[#allocation112_spill] sm:$0xff] }
 0x302   :  { %v2727_v33 = vcombine.high %v20846_v44, %v20846_v44  ;;  %v14612_v35 = vrot.slane %v20846_v44, %v20847_v0  ;;  %v2744_v9 = vcombine.high %v20849_v29, %v20849_v29  ;;  %v14618_v49 = vrot.slane %v20849_v29, %v20847_v0  ;;  %v20851_v28 = vld [vmem:[#allocation93_spill] sm:$0xff] }
 0x303   :  { %20842 = vst [vmem:[#allocation98_spill] sm:$0xff] %v14600_v20  ;;  %20843 = vst [vmem:[#allocation99_spill] sm:$0xff] %v14602_v15  ;;  %v2761_v4 = vcombine.high %v20851_v28, %v20851_v28  ;;  %v14627_v16 = vrot.slane %v20851_v28, %v20847_v0 }
 0x304   :  { %20844 = vst [vmem:[#allocation100_spill] sm:$0xff] %v14604_v27  ;;  %20845 = vst [vmem:[#allocation101_spill] sm:$0xff] %v14606_v50  ;;  %v14623_v13 = vrot.slane %v2727_v33, %v20847_v0  ;;  %v20854_v50 = vld [vmem:[#allocation94_spill] sm:$0xff]  ;;  %v14637_v29 = vcombine.high %v14612_v35, %v14612_v35  ;;  %v14640_v15 = vrot.slane %v2744_v9, %v20847_v0 }
 0x305   :  { %20848 = vst [vmem:[#allocation102_spill] sm:$0xff] %v14612_v35  ;;  %20850 = vst [vmem:[#allocation103_spill] sm:$0xff] %v14618_v49  ;;  %v2778_v44 = vcombine.high %v20854_v50, %v20854_v50  ;;  %v14633_v27 = vrot.slane %v20854_v50, %v20847_v0  ;;  %v14644_v33 = vcombine.high %v14618_v49, %v14618_v49  ;;  %v20866_v49 = vld [vmem:[#allocation95_spill] sm:$0xff] }
 0x306   :  { %20852 = vst [vmem:[#allocation104_spill] sm:$0xff] %v14623_v13  ;;  %20853 = vst [vmem:[#allocation105_spill] sm:$0xff] %v14627_v16  ;;  %v14647_v28 = vrot.slane %v2761_v4, %v20847_v0  ;;  %v14651_v20 = vcombine.high %v14623_v13, %v14623_v13  ;;  %v14655_v50 = vcombine.high %v14627_v16, %v14627_v16 }
 0x307   :  { %20855 = vst [vmem:[#allocation106_spill] sm:$0xff] %v14633_v27  ;;  %20856 = vst [vmem:[#allocation107_spill] sm:$0xff] %v14637_v29  ;;  %v14658_v29 = vrot.slane %v2778_v44, %v20847_v0  ;;  %v14662_v9 = vcombine.high %v14633_v27, %v14633_v27 }
 0x308   :  { %20857 = vst [vmem:[#allocation108_spill] sm:$0xff] %v14640_v15  ;;  %20858 = vst [vmem:[#allocation109_spill] sm:$0xff] %v14644_v33  ;;  %v14666_v33 = vcombine.high %v14640_v15, %v14640_v15  ;;  %v14670_v4 = vcombine.high %v14647_v28, %v14647_v28 }
 0x309   :  { %20859 = vst [vmem:[#allocation110_spill] sm:$0xff] %v14647_v28  ;;  %20860 = vst [vmem:[#allocation70_spill] sm:$0xff] %v14651_v20  ;;  %v2795_v20 = vcombine.high %v20866_v49, %v20866_v49  ;;  %v14680_v44 = vcombine.high %v14658_v29, %v14658_v29 }
 0x30a   :  { %20861 = vst [vmem:[#allocation72_spill] sm:$0xff] %v14655_v50  ;;  %20862 = vst [vmem:[#allocation74_spill] sm:$0xff] %v14658_v29  ;;  %v14676_v50 = vrot.slane %v20866_v49, %v20847_v0  ;;  %v2846_v29 = vcombine.high %v14502_v37, %v14502_v37 }
 0x30b   :  { %20863 = vst [vmem:[#allocation71_spill] sm:$0xff] %v14662_v9  ;;  %20864 = vst [vmem:[#allocation73_spill] sm:$0xff] %v14666_v33  ;;  %v20869_v9 = vld [vmem:[#allocation96_spill] sm:$0xff]  ;;  %v14691_v28 = vrot.slane %v2795_v20, %v20847_v0 }
 0x30c   :  { %20865 = vst [vmem:[#allocation76_spill] sm:$0xff] %v14670_v4  ;;  %20867 = vst [vmem:[#allocation78_spill] sm:$0xff] %v14676_v50  ;;  %v2812_v27 = vcombine.high %v20869_v9, %v20869_v9  ;;  %v14686_v16 = vrot.slane %v20869_v9, %v20847_v0  ;;  %v2829_v4 = vcombine.high %v14500_v26, %v14500_v26 }
 0x30d   :  { %20868 = vst [vmem:[#allocation75_spill] sm:$0xff] %v14680_v44  ;;  %20871 = vst [vmem:[#allocation80_spill] sm:$0xff] %v14691_v28  ;;  %v14695_v49 = vcombine.high %v14676_v50, %v14676_v50  ;;  %v14699_v44 = vrot.slane %v14500_v26, %v20847_v0  ;;  %v14719_v26 = vcombine.high %v14691_v28, %v14691_v28 }
 0x30e   :  { %20870 = vst [vmem:[#allocation77_spill] sm:$0xff] %v14686_v16  ;;  %v14704_v9 = vrot.slane %v2812_v27, %v20847_v0  ;;  %v14708_v33 = vcombine.high %v14686_v16, %v14686_v16  ;;  %v14711_v20 = vrot.slane %v2829_v4, %v20847_v0  ;;  %v14726_v27 = vrot.slane %v2846_v29, %v20847_v0 }
 0x30f   :  { %20872 = vst [vmem:[#allocation82_spill] sm:$0xff] %v14695_v49  ;;  %20873 = vst [vmem:[#allocation79_spill] sm:$0xff] %v14699_v44  ;;  %v14715_v49 = vrot.slane %v14502_v37, %v20847_v0  ;;  %v14723_v50 = vcombine.high %v14699_v44, %v14699_v44 }
 0x310   :  { %20874 = vst [vmem:[#allocation81_spill] sm:$0xff] %v14704_v9  ;;  %20875 = vst [vmem:[#allocation85_spill] sm:$0xff] %v14708_v33  ;;  %v2863_v33 = vcombine.high %v14504_v5, %v14504_v5  ;;  %v14732_v4 = vcombine.high %v14704_v9, %v14704_v9  ;;  %v14736_v37 = vcombine.high %v14711_v20, %v14711_v20 }
 0x311   :  { %20876 = vst [vmem:[#allocation111_spill] sm:$0xff] %v14711_v20  ;;  %20877 = vst [vmem:[#allocation86_spill] sm:$0xff] %v14715_v49  ;;  %v14740_v16 = vcombine.high %v14715_v49, %v14715_v49  ;;  %v14748_v29 = vcombine.high %v14726_v27, %v14726_v27 }
 0x312   :  { %20878 = vst [vmem:[#allocation87_spill] sm:$0xff] %v14719_v26  ;;  %20879 = vst [vmem:[#allocation88_spill] sm:$0xff] %v14723_v50  ;;  %v14744_v50 = vrot.slane %v14504_v5, %v20847_v0  ;;  %v14751_v44 = vrot.slane %v2863_v33, %v20847_v0  ;;  %v2897_v5 = vcombine.high %v14508_v56, %v14508_v56 }
 0x313   :  { %20880 = vst [vmem:[#allocation113_spill] sm:$0xff] %v14726_v27  ;;  %20881 = vst [vmem:[#allocation114_spill] sm:$0xff] %v14732_v4  ;;  %v2880_v4 = vcombine.high %v14506_v55, %v14506_v55  ;;  %v2914_v33 = vcombine.high %v14510_v57, %v14510_v57 }
 0x314   :  { %20882 = vst [vmem:[#allocation115_spill] sm:$0xff] %v14736_v37  ;;  %20883 = vst [vmem:[#allocation116_spill] sm:$0xff] %v14740_v16  ;;  %v14757_v37 = vrot.slane %v14506_v55, %v20847_v0  ;;  %v14761_v16 = vcombine.high %v14744_v50, %v14744_v50  ;;  %v14773_v27 = vcombine.high %v14751_v44, %v14751_v44 }
 0x315   :  { %20884 = vst [vmem:[#allocation117_spill] sm:$0xff] %v14744_v50  ;;  %20885 = vst [vmem:[#allocation118_spill] sm:$0xff] %v14748_v29  ;;  %v14767_v29 = vrot.slane %v14508_v56, %v20847_v0  ;;  %v14776_v55 = vrot.slane %v2880_v4, %v20847_v0  ;;  %v14784_v50 = vrot.slane %v14510_v57, %v20847_v0 }
 0x316   :  { %20886 = vst [vmem:[#allocation119_spill] sm:$0xff] %v14751_v44  ;;  %20887 = vst [vmem:[#allocation120_spill] sm:$0xff] %v14757_v37  ;;  %v14787_v56 = vrot.slane %v2897_v5, %v20847_v0  ;;  %v2931_v4 = vcombine.high %v14512_v6, %v14512_v6  ;;  %v14808_v5 = vrot.slane %v14512_v6, %v20847_v0 }
 0x317   :  { %20888 = vst [vmem:[#allocation121_spill] sm:$0xff] %v14761_v16  ;;  %20889 = vst [vmem:[#allocation122_spill] sm:$0xff] %v14767_v29  ;;  %v14780_v16 = vcombine.high %v14757_v37, %v14757_v37  ;;  %v14791_v49 = vcombine.high %v14767_v29, %v14767_v29  ;;  %v14804_v57 = vcombine.high %v14784_v50, %v14784_v50 }
 0x318   :  { %20890 = vst [vmem:[#allocation89_spill] sm:$0xff] %v14773_v27  ;;  %20891 = vst [vmem:[#allocation90_spill] sm:$0xff] %v14776_v55  ;;  %v14794_v27 = vrot.slane %v2914_v33, %v20847_v0  ;;  %v14814_v33 = vcombine.high %v14787_v56, %v14787_v56  ;;  %v14829_v6 = vcombine.high %v14808_v5, %v14808_v5 }
 0x319   :  { %20892 = vst [vmem:[#allocation91_spill] sm:$0xff] %v14780_v16  ;;  %20893 = vst [vmem:[#allocation92_spill] sm:$0xff] %v14784_v50  ;;  %v14800_v16 = vcombine.high %v14776_v55, %v14776_v55 }
 0x31a   :  { %20894 = vst [vmem:[#allocation93_spill] sm:$0xff] %v14787_v56  ;;  %20895 = vst [vmem:[#allocation94_spill] sm:$0xff] %v14791_v49  ;;  %v2948_v49 = vcombine.high %v14514_v42, %v14514_v42  ;;  %v14818_v29 = vcombine.high %v14794_v27, %v14794_v27 }
 0x31b   :  { %20896 = vst [vmem:[#allocation95_spill] sm:$0xff] %v14794_v27  ;;  %20897 = vst [vmem:[#allocation96_spill] sm:$0xff] %v14800_v16  ;;  %v14821_v16 = vrot.slane %v2931_v4, %v20847_v0 }
 0x31c   :  { %20898 = vst [vmem:[#allocation123_spill] sm:$0xff] %v14804_v57  ;;  %20899 = vst [vmem:[#allocation124_spill] sm:$0xff] %v14808_v5  ;;  %v14825_v57 = vrot.slane %v14514_v42, %v20847_v0  ;;  %v14832_v50 = vrot.slane %v2948_v49, %v20847_v0  ;;  %v14852_v49 = vrot.slane %v14518_v21, %v20847_v0  ;;  %v21122_v13 = vld [vmem:[#allocation118_spill] sm:$0xff] }
 0x31d   :  { %20900 = vst [vmem:[#allocation125_spill] sm:$0xff] %v14814_v33  ;;  %20901 = vst [vmem:[#allocation126_spill] sm:$0xff] %v14818_v29  ;;  %v2965_v33 = vcombine.high %v14516_v25, %v14516_v25  ;;  %v14838_v29 = vrot.slane %v14516_v25, %v20847_v0  ;;  %v14842_v4 = vcombine.high %v14821_v16, %v14821_v16 }
 0x31e   :  { %20902 = vst [vmem:[#allocation127_spill] sm:$0xff] %v14821_v16  ;;  %20903 = vst [vmem:[#allocation128_spill] sm:$0xff] %v14825_v57  ;;  %v14846_v42 = vcombine.high %v14825_v57, %v14825_v57  ;;  %v14856_v5 = vcombine.high %v14832_v50, %v14832_v50 }
 0x31f   :  { %20904 = vst [vmem:[#allocation129_spill] sm:$0xff] %v14829_v6  ;;  %20905 = vst [vmem:[#allocation130_spill] sm:$0xff] %v14832_v50  ;;  %v2982_v6 = vcombine.high %v14518_v21, %v14518_v21  ;;  %v14859_v25 = vrot.slane %v2965_v33, %v20847_v0  ;;  %v14872_v21 = vcombine.high %v14852_v49, %v14852_v49 }
 0x320   :  { %20906 = vst [vmem:[#allocation131_spill] sm:$0xff] %v14838_v29  ;;  %20907 = vst [vmem:[#allocation132_spill] sm:$0xff] %v14842_v4  ;;  %v14863_v4 = vcombine.high %v14838_v29, %v14838_v29  ;;  %v3016_v33 = vcombine.high %v14522_v59, %v14522_v59 }
 0x321   :  { %20908 = vst [vmem:[#allocation133_spill] sm:$0xff] %v14846_v42  ;;  %20909 = vst [vmem:[#allocation134_spill] sm:$0xff] %v14852_v49  ;;  %v2999_v42 = vcombine.high %v14520_v11, %v14520_v11  ;;  %v14868_v57 = vrot.slane %v2982_v6, %v20847_v0  ;;  %v14889_v6 = vrot.slane %v14522_v59, %v20847_v0 }
 0x322   :  { %20910 = vst [vmem:[#allocation135_spill] sm:$0xff] %v14856_v5  ;;  %20911 = vst [vmem:[#allocation136_spill] sm:$0xff] %v14859_v25  ;;  %v14876_v5 = vrot.slane %v14520_v11, %v20847_v0  ;;  %v21127_v15 = vld [vmem:[#allocation96_spill] sm:$0xff] }
 0x323   :  { %20912 = vst [vmem:[#allocation137_spill] sm:$0xff] %v14863_v4  ;;  %20913 = vst [vmem:[#allocation138_spill] sm:$0xff] %v14868_v57  ;;  %v14882_v4 = vcombine.high %v14859_v25, %v14859_v25  ;;  %v14885_v29 = vrot.slane %v2999_v42, %v20847_v0  ;;  %v14895_v11 = vcombine.high %v14868_v57, %v14868_v57 }
 0x324   :  { %20914 = vst [vmem:[#allocation139_spill] sm:$0xff] %v14872_v21  ;;  %20915 = vst [vmem:[#allocation140_spill] sm:$0xff] %v14876_v5  ;;  %v3033_v21 = vcombine.high %v14524_v52, %v14524_v52  ;;  %v14899_v49 = vcombine.high %v14876_v5, %v14876_v5  ;;  %v14906_v42 = vrot.slane %v14524_v52, %v20847_v0 }
 0x325   :  { %20916 = vst [vmem:[#allocation141_spill] sm:$0xff] %v14882_v4  ;;  %20917 = vst [vmem:[#allocation142_spill] sm:$0xff] %v14885_v29  ;;  %v14902_v4 = vrot.slane %v3016_v33, %v20847_v0  ;;  %v14910_v59 = vcombine.high %v14885_v29, %v14885_v29  ;;  %v14914_v25 = vcombine.high %v14889_v6, %v14889_v6 }
 0x326   :  { %20918 = vst [vmem:[#allocation143_spill] sm:$0xff] %v14889_v6  ;;  %20919 = vst [vmem:[#allocation144_spill] sm:$0xff] %v14895_v11  ;;  %v14917_v11 = vrot.slane %v3033_v21, %v20847_v0  ;;  %v14927_v52 = vcombine.high %v14906_v42, %v14906_v42 }
 0x327   :  { %20920 = vst [vmem:[#allocation145_spill] sm:$0xff] %v14899_v49  ;;  %20921 = vst [vmem:[#allocation146_spill] sm:$0xff] %v14902_v4  ;;  %v3050_v49 = vcombine.high %v14526_v22, %v14526_v22  ;;  %v14923_v33 = vcombine.high %v14902_v4, %v14902_v4  ;;  %v21136_v28 = vld [vmem:[#allocation132_spill] sm:$0xff] }
 0x328   :  { %20922 = vst [vmem:[#allocation147_spill] sm:$0xff] %v14906_v42  ;;  %20923 = vst [vmem:[#allocation148_spill] sm:$0xff] %v14910_v59  ;;  %v14931_v59 = vrot.slane %v14526_v22, %v20847_v0  ;;  %v14937_v21 = vcombine.high %v14917_v11, %v14917_v11  ;;  %v21138_v56 = vld [vmem:[#allocation133_spill] sm:$0xff] }
 0x329   :  { %20924 = vst [vmem:[#allocation149_spill] sm:$0xff] %v14914_v25  ;;  %20925 = vst [vmem:[#allocation150_spill] sm:$0xff] %v14917_v11  ;;  %v3067_v25 = vcombine.high %v14528_v32, %v14528_v32  ;;  %v14940_v6 = vrot.slane %v3050_v49, %v20847_v0  ;;  %v3101_v49 = vcombine.high %v14532_v17, %v14532_v17  ;;  %v21139_v9 = vld [vmem:[#allocation135_spill] sm:$0xff] }
 0x32a   :  { %20926 = vst [vmem:[#allocation151_spill] sm:$0xff] %v14923_v33  ;;  %20927 = vst [vmem:[#allocation152_spill] sm:$0xff] %v14927_v52  ;;  %v14944_v33 = vrot.slane %v14528_v32, %v20847_v0  ;;  %v3084_v52 = vcombine.high %v14530_v7, %v14530_v7  ;;  %v14950_v22 = vcombine.high %v14931_v59, %v14931_v59 }
 0x32b   :  { %20928 = vst [vmem:[#allocation153_spill] sm:$0xff] %v14931_v59  ;;  %20929 = vst [vmem:[#allocation154_spill] sm:$0xff] %v14937_v21  ;;  %v14953_v42 = vrot.slane %v3067_v25, %v20847_v0  ;;  %v14957_v21 = vrot.slane %v14530_v7, %v20847_v0  ;;  %v14963_v32 = vcombine.high %v14940_v6, %v14940_v6 }
 0x32c   :  { %20930 = vst [vmem:[#allocation155_spill] sm:$0xff] %v14940_v6  ;;  %20931 = vst [vmem:[#allocation156_spill] sm:$0xff] %v14944_v33  ;;  %v14967_v11 = vcombine.high %v14944_v33, %v14944_v33  ;;  %v14974_v25 = vrot.slane %v14532_v17, %v20847_v0  ;;  %v21143_v20 = vld [vmem:[#allocation141_spill] sm:$0xff] }
 0x32d   :  { %20932 = vst [vmem:[#allocation157_spill] sm:$0xff] %v14950_v22  ;;  %20933 = vst [vmem:[#allocation158_spill] sm:$0xff] %v14953_v42  ;;  %v14970_v22 = vrot.slane %v3084_v52, %v20847_v0  ;;  %v14978_v7 = vcombine.high %v14953_v42, %v14953_v42  ;;  %v14982_v59 = vcombine.high %v14957_v21, %v14957_v21 }
 0x32e   :  { %20934 = vst [vmem:[#allocation159_spill] sm:$0xff] %v14957_v21  ;;  %20935 = vst [vmem:[#allocation160_spill] sm:$0xff] %v14963_v32  ;;  %v14985_v32 = vrot.slane %v3101_v49, %v20847_v0  ;;  %v14995_v17 = vcombine.high %v14974_v25, %v14974_v25 }
 0x32f   :  { %20936 = vst [vmem:[#allocation161_spill] sm:$0xff] %v14967_v11  ;;  %20937 = vst [vmem:[#allocation162_spill] sm:$0xff] %v14970_v22  ;;  %v3118_v11 = vcombine.high %v14534_v24, %v14534_v24  ;;  %v14991_v52 = vcombine.high %v14970_v22, %v14970_v22  ;;  %v21148_v44 = vld [vmem:[#allocation148_spill] sm:$0xff] }
 0x330   :  { %20938 = vst [vmem:[#allocation163_spill] sm:$0xff] %v14974_v25  ;;  %20939 = vst [vmem:[#allocation164_spill] sm:$0xff] %v14978_v7  ;;  %v14999_v7 = vrot.slane %v14534_v24, %v20847_v0  ;;  %v15005_v49 = vcombine.high %v14985_v32, %v14985_v32  ;;  %v21150_v37 = vld [vmem:[#allocation149_spill] sm:$0xff] }
 0x331   :  { %20940 = vst [vmem:[#allocation165_spill] sm:$0xff] %v14982_v59  ;;  %20941 = vst [vmem:[#allocation166_spill] sm:$0xff] %v14985_v32  ;;  %v3135_v59 = vcombine.high %v14536_v2, %v14536_v2  ;;  %v15008_v21 = vrot.slane %v3118_v11, %v20847_v0  ;;  %v3169_v11 = vcombine.high %v14540_v41, %v14540_v41  ;;  %v21151_v55 = vld [vmem:[#allocation151_spill] sm:$0xff] }
 0x332   :  { %20942 = vst [vmem:[#allocation167_spill] sm:$0xff] %v14991_v52  ;;  %20943 = vst [vmem:[#allocation168_spill] sm:$0xff] %v14995_v17  ;;  %v15012_v52 = vrot.slane %v14536_v2, %v20847_v0  ;;  %v3152_v17 = vcombine.high %v14538_v19, %v14538_v19  ;;  %v15018_v24 = vcombine.high %v14999_v7, %v14999_v7  ;;  %v21155_v5 = vld [vmem:[#allocation154_spill] sm:$0xff] }
 0x333   :  { %20944 = vst [vmem:[#allocation169_spill] sm:$0xff] %v14999_v7  ;;  %20945 = vst [vmem:[#allocation170_spill] sm:$0xff] %v15005_v49  ;;  %v15021_v25 = vrot.slane %v3135_v59, %v20847_v0  ;;  %v15025_v49 = vrot.slane %v14538_v19, %v20847_v0  ;;  %v15031_v2 = vcombine.high %v15008_v21, %v15008_v21 }
 0x334   :  { %20946 = vst [vmem:[#allocation171_spill] sm:$0xff] %v15008_v21  ;;  %20947 = vst [vmem:[#allocation172_spill] sm:$0xff] %v15012_v52  ;;  %v15035_v32 = vcombine.high %v15012_v52, %v15012_v52  ;;  %v15042_v59 = vrot.slane %v14540_v41, %v20847_v0 }
 0x335   :  { %20948 = vst [vmem:[#allocation173_spill] sm:$0xff] %v15018_v24  ;;  %20949 = vst [vmem:[#allocation174_spill] sm:$0xff] %v15021_v25  ;;  %v15038_v24 = vrot.slane %v3152_v17, %v20847_v0  ;;  %v15046_v19 = vcombine.high %v15021_v25, %v15021_v25  ;;  %v15050_v7 = vcombine.high %v15025_v49, %v15025_v49 }
 0x336   :  { %20950 = vst [vmem:[#allocation175_spill] sm:$0xff] %v15025_v49  ;;  %20951 = vst [vmem:[#allocation176_spill] sm:$0xff] %v15031_v2  ;;  %v15053_v2 = vrot.slane %v3169_v11, %v20847_v0  ;;  %v15063_v41 = vcombine.high %v15042_v59, %v15042_v59 }
 0x337   :  { %20952 = vst [vmem:[#allocation177_spill] sm:$0xff] %v15035_v32  ;;  %20953 = vst [vmem:[#allocation178_spill] sm:$0xff] %v15038_v24  ;;  %v3186_v32 = vcombine.high %v14542_v36, %v14542_v36  ;;  %v15059_v17 = vcombine.high %v15038_v24, %v15038_v24  ;;  %v21160_v16 = vld [vmem:[#allocation164_spill] sm:$0xff] }
 0x338   :  { %20954 = vst [vmem:[#allocation179_spill] sm:$0xff] %v15042_v59  ;;  %20955 = vst [vmem:[#allocation180_spill] sm:$0xff] %v15046_v19  ;;  %v15067_v19 = vrot.slane %v14542_v36, %v20847_v0  ;;  %v15073_v11 = vcombine.high %v15053_v2, %v15053_v2  ;;  %v21162_v26 = vld [vmem:[#allocation165_spill] sm:$0xff] }
 0x339   :  { %20956 = vst [vmem:[#allocation181_spill] sm:$0xff] %v15050_v7  ;;  %20957 = vst [vmem:[#allocation182_spill] sm:$0xff] %v15053_v2  ;;  %v3203_v7 = vcombine.high %v14544_v58, %v14544_v58  ;;  %v15076_v49 = vrot.slane %v3186_v32, %v20847_v0  ;;  %v3237_v32 = vcombine.high %v14548_v51, %v14548_v51  ;;  %v21163_v50 = vld [vmem:[#allocation167_spill] sm:$0xff] }
 0x33a   :  { %20958 = vst [vmem:[#allocation183_spill] sm:$0xff] %v15059_v17  ;;  %20959 = vst [vmem:[#allocation184_spill] sm:$0xff] %v15063_v41  ;;  %v15080_v17 = vrot.slane %v14544_v58, %v20847_v0  ;;  %v3220_v41 = vcombine.high %v14546_v31, %v14546_v31  ;;  %v15086_v36 = vcombine.high %v15067_v19, %v15067_v19  ;;  %v21167_v33 = vld [vmem:[#allocation170_spill] sm:$0xff] }
 0x33b   :  { %20960 = vst [vmem:[#allocation185_spill] sm:$0xff] %v15067_v19  ;;  %20961 = vst [vmem:[#allocation186_spill] sm:$0xff] %v15073_v11  ;;  %v15089_v59 = vrot.slane %v3203_v7, %v20847_v0  ;;  %v15093_v11 = vrot.slane %v14546_v31, %v20847_v0  ;;  %v15099_v58 = vcombine.high %v15076_v49, %v15076_v49 }
 0x33c   :  { %20962 = vst [vmem:[#allocation187_spill] sm:$0xff] %v15076_v49  ;;  %20963 = vst [vmem:[#allocation188_spill] sm:$0xff] %v15080_v17  ;;  %v15103_v2 = vcombine.high %v15080_v17, %v15080_v17  ;;  %v15110_v7 = vrot.slane %v14548_v51, %v20847_v0 }
 0x33d   :  { %20964 = vst [vmem:[#allocation189_spill] sm:$0xff] %v15086_v36  ;;  %20965 = vst [vmem:[#allocation190_spill] sm:$0xff] %v15089_v59  ;;  %v15106_v36 = vrot.slane %v3220_v41, %v20847_v0  ;;  %v15114_v31 = vcombine.high %v15089_v59, %v15089_v59  ;;  %v15118_v19 = vcombine.high %v15093_v11, %v15093_v11 }
 0x33e   :  { %20966 = vst [vmem:[#allocation191_spill] sm:$0xff] %v15093_v11  ;;  %20967 = vst [vmem:[#allocation192_spill] sm:$0xff] %v15099_v58  ;;  %v15121_v58 = vrot.slane %v3237_v32, %v20847_v0  ;;  %v15131_v51 = vcombine.high %v15110_v7, %v15110_v7 }
 0x33f   :  { %20968 = vst [vmem:[#allocation193_spill] sm:$0xff] %v15103_v2  ;;  %20969 = vst [vmem:[#allocation194_spill] sm:$0xff] %v15106_v36  ;;  %v3254_v2 = vcombine.high %v14550_v38, %v14550_v38  ;;  %v15127_v41 = vcombine.high %v15106_v36, %v15106_v36  ;;  %v21172_v29 = vld [vmem:[#allocation180_spill] sm:$0xff] }
 0x340   :  { %20970 = vst [vmem:[#allocation195_spill] sm:$0xff] %v15110_v7  ;;  %20971 = vst [vmem:[#allocation196_spill] sm:$0xff] %v15114_v31  ;;  %v15135_v31 = vrot.slane %v14550_v38, %v20847_v0  ;;  %v15141_v32 = vcombine.high %v15121_v58, %v15121_v58  ;;  %v21174_v27 = vld [vmem:[#allocation181_spill] sm:$0xff] }
 0x341   :  { %20972 = vst [vmem:[#allocation197_spill] sm:$0xff] %v15118_v19  ;;  %20973 = vst [vmem:[#allocation198_spill] sm:$0xff] %v15121_v58  ;;  %v3271_v19 = vcombine.high %v14552_v34, %v14552_v34  ;;  %v15144_v11 = vrot.slane %v3254_v2, %v20847_v0  ;;  %v3305_v2 = vcombine.high %v14556_v23, %v14556_v23  ;;  %v21175_v4 = vld [vmem:[#allocation183_spill] sm:$0xff] }
 0x342   :  { %20974 = vst [vmem:[#allocation199_spill] sm:$0xff] %v15127_v41  ;;  %20975 = vst [vmem:[#allocation200_spill] sm:$0xff] %v15131_v51  ;;  %v15148_v41 = vrot.slane %v14552_v34, %v20847_v0  ;;  %v3288_v51 = vcombine.high %v14554_v63, %v14554_v63  ;;  %v15154_v38 = vcombine.high %v15135_v31, %v15135_v31  ;;  %v21179_v52 = vld [vmem:[#allocation186_spill] sm:$0xff] }
 0x343   :  { %20976 = vst [vmem:[#allocation201_spill] sm:$0xff] %v15135_v31  ;;  %20977 = vst [vmem:[#allocation202_spill] sm:$0xff] %v15141_v32  ;;  %v15157_v7 = vrot.slane %v3271_v19, %v20847_v0  ;;  %v15161_v32 = vrot.slane %v14554_v63, %v20847_v0  ;;  %v15167_v34 = vcombine.high %v15144_v11, %v15144_v11 }
 0x344   :  { %20978 = vst [vmem:[#allocation203_spill] sm:$0xff] %v15144_v11  ;;  %20979 = vst [vmem:[#allocation204_spill] sm:$0xff] %v15148_v41  ;;  %v15171_v58 = vcombine.high %v15148_v41, %v15148_v41  ;;  %v15178_v19 = vrot.slane %v14556_v23, %v20847_v0 }
 0x345   :  { %20980 = vst [vmem:[#allocation205_spill] sm:$0xff] %v15154_v38  ;;  %20981 = vst [vmem:[#allocation206_spill] sm:$0xff] %v15157_v7  ;;  %v15174_v38 = vrot.slane %v3288_v51, %v20847_v0  ;;  %v15182_v63 = vcombine.high %v15157_v7, %v15157_v7  ;;  %v15186_v31 = vcombine.high %v15161_v32, %v15161_v32 }
 0x346   :  { %20982 = vst [vmem:[#allocation207_spill] sm:$0xff] %v15161_v32  ;;  %20983 = vst [vmem:[#allocation208_spill] sm:$0xff] %v15167_v34  ;;  %v15189_v34 = vrot.slane %v3305_v2, %v20847_v0  ;;  %v15199_v23 = vcombine.high %v15178_v19, %v15178_v19 }
 0x347   :  { %20984 = vst [vmem:[#allocation209_spill] sm:$0xff] %v15171_v58  ;;  %20985 = vst [vmem:[#allocation210_spill] sm:$0xff] %v15174_v38  ;;  %v3322_v58 = vcombine.high %v14558_v53, %v14558_v53  ;;  %v15195_v51 = vcombine.high %v15174_v38, %v15174_v38  ;;  %v21184_v42 = vld [vmem:[#allocation196_spill] sm:$0xff] }
 0x348   :  { %20986 = vst [vmem:[#allocation211_spill] sm:$0xff] %v15178_v19  ;;  %20987 = vst [vmem:[#allocation212_spill] sm:$0xff] %v15182_v63  ;;  %v15203_v63 = vrot.slane %v14558_v53, %v20847_v0  ;;  %v15209_v2 = vcombine.high %v15189_v34, %v15189_v34  ;;  %v21186_v57 = vld [vmem:[#allocation197_spill] sm:$0xff] }
 0x349   :  { %20988 = vst [vmem:[#allocation213_spill] sm:$0xff] %v15186_v31  ;;  %20989 = vst [vmem:[#allocation214_spill] sm:$0xff] %v15189_v34  ;;  %v3339_v31 = vcombine.high %v14560_v43, %v14560_v43  ;;  %v15212_v32 = vrot.slane %v3322_v58, %v20847_v0  ;;  %v3373_v58 = vcombine.high %v14564_v54, %v14564_v54  ;;  %v21187_v22 = vld [vmem:[#allocation199_spill] sm:$0xff] }
 0x34a   :  { %20990 = vst [vmem:[#allocation215_spill] sm:$0xff] %v15195_v51  ;;  %20991 = vst [vmem:[#allocation216_spill] sm:$0xff] %v15199_v23  ;;  %v15216_v51 = vrot.slane %v14560_v43, %v20847_v0  ;;  %v3356_v23 = vcombine.high %v14562_v60, %v14562_v60  ;;  %v15222_v53 = vcombine.high %v15203_v63, %v15203_v63  ;;  %v21191_v17 = vld [vmem:[#allocation202_spill] sm:$0xff] }
 0x34b   :  { %20992 = vst [vmem:[#allocation217_spill] sm:$0xff] %v15203_v63  ;;  %20993 = vst [vmem:[#allocation218_spill] sm:$0xff] %v15209_v2  ;;  %v15225_v19 = vrot.slane %v3339_v31, %v20847_v0  ;;  %v15229_v2 = vrot.slane %v14562_v60, %v20847_v0  ;;  %v15235_v43 = vcombine.high %v15212_v32, %v15212_v32 }
 0x34c   :  { %20994 = vst [vmem:[#allocation219_spill] sm:$0xff] %v15212_v32  ;;  %20995 = vst [vmem:[#allocation220_spill] sm:$0xff] %v15216_v51  ;;  %v15239_v34 = vcombine.high %v15216_v51, %v15216_v51  ;;  %v15246_v31 = vrot.slane %v14564_v54, %v20847_v0 }
 0x34d   :  { %20996 = vst [vmem:[#allocation221_spill] sm:$0xff] %v15222_v53  ;;  %20997 = vst [vmem:[#allocation222_spill] sm:$0xff] %v15225_v19  ;;  %v15242_v53 = vrot.slane %v3356_v23, %v20847_v0  ;;  %v15250_v60 = vcombine.high %v15225_v19, %v15225_v19  ;;  %v15254_v63 = vcombine.high %v15229_v2, %v15229_v2 }
 0x34e   :  { %20998 = vst [vmem:[#allocation223_spill] sm:$0xff] %v15229_v2  ;;  %20999 = vst [vmem:[#allocation224_spill] sm:$0xff] %v15235_v43  ;;  %v15257_v43 = vrot.slane %v3373_v58, %v20847_v0  ;;  %v15267_v54 = vcombine.high %v15246_v31, %v15246_v31 }
 0x34f   :  { %21000 = vst [vmem:[#allocation225_spill] sm:$0xff] %v15239_v34  ;;  %21001 = vst [vmem:[#allocation226_spill] sm:$0xff] %v15242_v53  ;;  %v3390_v34 = vcombine.high %v14566_v30, %v14566_v30  ;;  %v15263_v23 = vcombine.high %v15242_v53, %v15242_v53  ;;  %v21196_v25 = vld [vmem:[#allocation212_spill] sm:$0xff] }
 0x350   :  { %21002 = vst [vmem:[#allocation227_spill] sm:$0xff] %v15246_v31  ;;  %21003 = vst [vmem:[#allocation228_spill] sm:$0xff] %v15250_v60  ;;  %v15271_v60 = vrot.slane %v14566_v30, %v20847_v0  ;;  %v15277_v58 = vcombine.high %v15257_v43, %v15257_v43  ;;  %v21198_v6 = vld [vmem:[#allocation213_spill] sm:$0xff] }
 0x351   :  { %21004 = vst [vmem:[#allocation229_spill] sm:$0xff] %v15254_v63  ;;  %21005 = vst [vmem:[#allocation230_spill] sm:$0xff] %v15257_v43  ;;  %v3407_v63 = vcombine.high %v14568_v40, %v14568_v40  ;;  %v15280_v2 = vrot.slane %v3390_v34, %v20847_v0  ;;  %v3441_v34 = vcombine.high %v14572_v61, %v14572_v61  ;;  %v21199_v24 = vld [vmem:[#allocation215_spill] sm:$0xff] }
 0x352   :  { %21006 = vst [vmem:[#allocation231_spill] sm:$0xff] %v15263_v23  ;;  %21007 = vst [vmem:[#allocation232_spill] sm:$0xff] %v15267_v54  ;;  %v15284_v23 = vrot.slane %v14568_v40, %v20847_v0  ;;  %v3424_v54 = vcombine.high %v14570_v39, %v14570_v39  ;;  %v15290_v30 = vcombine.high %v15271_v60, %v15271_v60  ;;  %v21203_v41 = vld [vmem:[#allocation218_spill] sm:$0xff] }
 0x353   :  { %21008 = vst [vmem:[#allocation233_spill] sm:$0xff] %v15271_v60  ;;  %21009 = vst [vmem:[#allocation234_spill] sm:$0xff] %v15277_v58  ;;  %v15293_v31 = vrot.slane %v3407_v63, %v20847_v0  ;;  %v15297_v58 = vrot.slane %v14570_v39, %v20847_v0  ;;  %v15303_v40 = vcombine.high %v15280_v2, %v15280_v2 }
 0x354   :  { %21010 = vst [vmem:[#allocation235_spill] sm:$0xff] %v15280_v2  ;;  %21011 = vst [vmem:[#allocation236_spill] sm:$0xff] %v15284_v23  ;;  %v15307_v43 = vcombine.high %v15284_v23, %v15284_v23  ;;  %v15314_v63 = vrot.slane %v14572_v61, %v20847_v0 }
 0x355   :  { %21012 = vst [vmem:[#allocation237_spill] sm:$0xff] %v15290_v30  ;;  %21013 = vst [vmem:[#allocation238_spill] sm:$0xff] %v15293_v31  ;;  %v15310_v30 = vrot.slane %v3424_v54, %v20847_v0  ;;  %v15318_v39 = vcombine.high %v15293_v31, %v15293_v31  ;;  %v15322_v60 = vcombine.high %v15297_v58, %v15297_v58 }
 0x356   :  { %21014 = vst [vmem:[#allocation239_spill] sm:$0xff] %v15297_v58  ;;  %21015 = vst [vmem:[#allocation240_spill] sm:$0xff] %v15303_v40  ;;  %v15325_v40 = vrot.slane %v3441_v34, %v20847_v0  ;;  %v15335_v61 = vcombine.high %v15314_v63, %v15314_v63 }
 0x357   :  { %21016 = vst [vmem:[#allocation241_spill] sm:$0xff] %v15307_v43  ;;  %21017 = vst [vmem:[#allocation242_spill] sm:$0xff] %v15310_v30  ;;  %v3458_v43 = vcombine.high %v14574_v47, %v14574_v47  ;;  %v15331_v54 = vcombine.high %v15310_v30, %v15310_v30  ;;  %v21208_v59 = vld [vmem:[#allocation228_spill] sm:$0xff] }
 0x358   :  { %21018 = vst [vmem:[#allocation243_spill] sm:$0xff] %v15314_v63  ;;  %21019 = vst [vmem:[#allocation244_spill] sm:$0xff] %v15318_v39  ;;  %v15339_v39 = vrot.slane %v14574_v47, %v20847_v0  ;;  %v15345_v34 = vcombine.high %v15325_v40, %v15325_v40  ;;  %v21210_v21 = vld [vmem:[#allocation229_spill] sm:$0xff] }
 0x359   :  { %21020 = vst [vmem:[#allocation245_spill] sm:$0xff] %v15322_v60  ;;  %21021 = vst [vmem:[#allocation246_spill] sm:$0xff] %v15325_v40  ;;  %v3475_v60 = vcombine.high %v14576_v46, %v14576_v46  ;;  %v15348_v58 = vrot.slane %v3458_v43, %v20847_v0  ;;  %v3509_v43 = vcombine.high %v14580_v62, %v14580_v62  ;;  %v21211_v36 = vld [vmem:[#allocation231_spill] sm:$0xff] }
 0x35a   :  { %21022 = vst [vmem:[#allocation247_spill] sm:$0xff] %v15331_v54  ;;  %21023 = vst [vmem:[#allocation248_spill] sm:$0xff] %v15335_v61  ;;  %v15352_v54 = vrot.slane %v14576_v46, %v20847_v0  ;;  %v3492_v61 = vcombine.high %v14578_v45, %v14578_v45  ;;  %v15358_v47 = vcombine.high %v15339_v39, %v15339_v39  ;;  %v21215_v51 = vld [vmem:[#allocation234_spill] sm:$0xff] }
 0x35b   :  { %21024 = vst [vmem:[#allocation249_spill] sm:$0xff] %v15339_v39  ;;  %21025 = vst [vmem:[#allocation250_spill] sm:$0xff] %v15345_v34  ;;  %v15361_v63 = vrot.slane %v3475_v60, %v20847_v0  ;;  %v15365_v34 = vrot.slane %v14578_v45, %v20847_v0  ;;  %v15371_v46 = vcombine.high %v15348_v58, %v15348_v58 }
 0x35c   :  { %21026 = vst [vmem:[#allocation251_spill] sm:$0xff] %v15348_v58  ;;  %21027 = vst [vmem:[#allocation252_spill] sm:$0xff] %v15352_v54  ;;  %v15375_v40 = vcombine.high %v15352_v54, %v15352_v54  ;;  %v15382_v60 = vrot.slane %v14580_v62, %v20847_v0  ;;  %v21292_v58 = vmov %v14612_v35 }
 0x35d   :  { %21028 = vst [vmem:[#allocation253_spill] sm:$0xff] %v15358_v47  ;;  %21029 = vst [vmem:[#allocation254_spill] sm:$0xff] %v15361_v63  ;;  %v15378_v47 = vrot.slane %v3492_v61, %v20847_v0  ;;  %v15386_v45 = vcombine.high %v15361_v63, %v15361_v63  ;;  %v15390_v39 = vcombine.high %v15365_v34, %v15365_v34 }
 0x35e   :  { %21030 = vst [vmem:[#allocation255_spill] sm:$0xff] %v15365_v34  ;;  %21031 = vst [vmem:[#allocation256_spill] sm:$0xff] %v15371_v46  ;;  %v15393_v46 = vrot.slane %v3509_v43, %v20847_v0  ;;  %v15403_v62 = vcombine.high %v15382_v60, %v15382_v60 }
 0x35f   :  { %21032 = vst [vmem:[#allocation257_spill] sm:$0xff] %v15375_v40  ;;  %21033 = vst [vmem:[#allocation258_spill] sm:$0xff] %v15378_v47  ;;  %v3526_v40 = vcombine.high %v14582_v14, %v14582_v14  ;;  %v15399_v61 = vcombine.high %v15378_v47, %v15378_v47  ;;  %v21220_v7 = vld [vmem:[#allocation244_spill] sm:$0xff] }
 0x360   :  { %21034 = vst [vmem:[#allocation259_spill] sm:$0xff] %v15382_v60  ;;  %21035 = vst [vmem:[#allocation260_spill] sm:$0xff] %v15386_v45  ;;  %v15407_v45 = vrot.slane %v14582_v14, %v20847_v0  ;;  %v15413_v43 = vcombine.high %v15393_v46, %v15393_v46  ;;  %v21222_v49 = vld [vmem:[#allocation245_spill] sm:$0xff] }
 0x361   :  { %21036 = vst [vmem:[#allocation261_spill] sm:$0xff] %v15390_v39  ;;  %21037 = vst [vmem:[#allocation262_spill] sm:$0xff] %v15393_v46  ;;  %v3543_v39 = vcombine.high %v14584_v8, %v14584_v8  ;;  %v15416_v34 = vrot.slane %v3526_v40, %v20847_v0  ;;  %v3577_v40 = vcombine.high %v14588_v48, %v14588_v48  ;;  %v21223_v38 = vld [vmem:[#allocation247_spill] sm:$0xff] }
 0x362   :  { %21038 = vst [vmem:[#allocation263_spill] sm:$0xff] %v15399_v61  ;;  %21039 = vst [vmem:[#allocation264_spill] sm:$0xff] %v15403_v62  ;;  %v15420_v61 = vrot.slane %v14584_v8, %v20847_v0  ;;  %v3560_v62 = vcombine.high %v14586_v10, %v14586_v10  ;;  %v15426_v14 = vcombine.high %v15407_v45, %v15407_v45  ;;  %v21227_v23 = vld [vmem:[#allocation250_spill] sm:$0xff] }
 0x363   :  { %21040 = vst [vmem:[#allocation265_spill] sm:$0xff] %v15407_v45  ;;  %21041 = vst [vmem:[#allocation266_spill] sm:$0xff] %v15413_v43  ;;  %v15429_v60 = vrot.slane %v3543_v39, %v20847_v0  ;;  %v15433_v43 = vrot.slane %v14586_v10, %v20847_v0  ;;  %v15439_v8 = vcombine.high %v15416_v34, %v15416_v34 }
 0x364   :  { %21042 = vst [vmem:[#allocation267_spill] sm:$0xff] %v15416_v34  ;;  %21043 = vst [vmem:[#allocation268_spill] sm:$0xff] %v15420_v61  ;;  %v15443_v46 = vcombine.high %v15420_v61, %v15420_v61  ;;  %v15450_v39 = vrot.slane %v14588_v48, %v20847_v0  ;;  %v21054_v61 = vld [vmem:[#allocation97_spill] sm:$0xff]  ;;  %v21118_v34 = vld [vmem:[#allocation115_spill] sm:$0xff] }
 0x365   :  { %21044 = vst [vmem:[#allocation269_spill] sm:$0xff] %v15426_v14  ;;  %21045 = vst [vmem:[#allocation270_spill] sm:$0xff] %v15429_v60  ;;  %v15446_v14 = vrot.slane %v3560_v62, %v20847_v0  ;;  %v15454_v10 = vcombine.high %v15429_v60, %v15429_v60  ;;  %v15458_v45 = vcombine.high %v15433_v43, %v15433_v43  ;;  %v21298_v60 = vld [vmem:[#allocation104_spill] sm:$0xff] }
 0x366   :  { %21046 = vst [vmem:[#allocation271_spill] sm:$0xff] %v15433_v43  ;;  %21047 = vst [vmem:[#allocation272_spill] sm:$0xff] %v15439_v8  ;;  %v15461_v8 = vrot.slane %v3577_v40, %v20847_v0  ;;  %v15471_v48 = vcombine.high %v15450_v39, %v15450_v39 }
 0x367   :  { %21048 = vst [vmem:[#allocation273_spill] sm:$0xff] %v15443_v46  ;;  %21049 = vst [vmem:[#allocation274_spill] sm:$0xff] %v15446_v14  ;;  %v3594_v46 = vcombine.high %v21054_v61, %v21054_v61  ;;  %v15467_v62 = vcombine.high %v15446_v14, %v15446_v14  ;;  %v21106_v14 = vld [vmem:[#allocation76_spill] sm:$0xff] }
 0x368   :  { %21050 = vst [vmem:[#allocation275_spill] sm:$0xff] %v15450_v39  ;;  %21051 = vst [vmem:[#allocation276_spill] sm:$0xff] %v15454_v10  ;;  %v15475_v10 = vrot.slane %v21054_v61, %v20847_v0  ;;  %v15481_v40 = vcombine.high %v15461_v8, %v15461_v8 }
 0x369   :  { %21052 = vst [vmem:[#allocation277_spill] sm:$0xff] %v15458_v45  ;;  %21053 = vst [vmem:[#allocation278_spill] sm:$0xff] %v15461_v8  ;;  %v3611_v45 = vcombine.high %v14592_v1, %v14592_v1  ;;  %v15484_v43 = vrot.slane %v3594_v46, %v20847_v0  ;;  %v3645_v46 = vcombine.high %v14596_v18, %v14596_v18 }
 0x36a   :  { %21055 = vst [vmem:[#allocation97_spill] sm:$0xff] %v15467_v62  ;;  %21056 = vst [vmem:[#allocation279_spill] sm:$0xff] %v15471_v48  ;;  %v15488_v62 = vrot.slane %v14592_v1, %v20847_v0  ;;  %v3628_v48 = vcombine.high %v14594_v3, %v14594_v3  ;;  %v15494_v61 = vcombine.high %v15475_v10, %v15475_v10 }
 0x36b   :  { %21057 = vst [vmem:[#allocation280_spill] sm:$0xff] %v15475_v10  ;;  %21058 = vst [vmem:[#allocation281_spill] sm:$0xff] %v15481_v40  ;;  %v15497_v39 = vrot.slane %v3611_v45, %v20847_v0  ;;  %v15501_v40 = vrot.slane %v14594_v3, %v20847_v0  ;;  %v15507_v1 = vcombine.high %v15484_v43, %v15484_v43 }
 0x36c   :  { %21059 = vst [vmem:[#allocation282_spill] sm:$0xff] %v15484_v43  ;;  %21060 = vst [vmem:[#allocation283_spill] sm:$0xff] %v15488_v62  ;;  %v15511_v8 = vcombine.high %v15488_v62, %v15488_v62  ;;  %v15518_v45 = vrot.slane %v14596_v18, %v20847_v0  ;;  %v21295_v43 = vld [vmem:[#allocation107_spill] sm:$0xff] }
 0x36d   :  { %21061 = vst [vmem:[#allocation284_spill] sm:$0xff] %v15494_v61  ;;  %21062 = vst [vmem:[#allocation285_spill] sm:$0xff] %v15497_v39  ;;  %v15514_v61 = vrot.slane %v3628_v48, %v20847_v0  ;;  %v15522_v3 = vcombine.high %v15497_v39, %v15497_v39  ;;  %v15526_v10 = vcombine.high %v15501_v40, %v15501_v40  ;;  %v21296_v30 = vrot.slane %v21295_v43, 9 }
 0x36e   :  { %21063 = vst [vmem:[#allocation286_spill] sm:$0xff] %v15501_v40  ;;  %21064 = vst [vmem:[#allocation287_spill] sm:$0xff] %v15507_v1  ;;  %v15529_v1 = vrot.slane %v3645_v46, %v20847_v0  ;;  %v15539_v18 = vcombine.high %v15518_v45, %v15518_v45  ;;  %v21074_v40 = vld [vmem:[#allocation98_spill] sm:$0xff] }
 0x36f   :  { %21065 = vst [vmem:[#allocation288_spill] sm:$0xff] %v15511_v8  ;;  %21066 = vst [vmem:[#allocation289_spill] sm:$0xff] %v15514_v61  ;;  %v3662_v8 = vcombine.high %v14598_v12, %v14598_v12  ;;  %v15535_v48 = vcombine.high %v15514_v61, %v15514_v61  ;;  %v15876_v35 = vmax.f32 %v21295_v43, %v21296_v30  ;;  %v21309_v43 = vld [vmem:[#allocation108_spill] sm:$0xff] }
 0x370   :  { %21067 = vst [vmem:[#allocation290_spill] sm:$0xff] %v15518_v45  ;;  %21068 = vst [vmem:[#allocation291_spill] sm:$0xff] %v15522_v3  ;;  %v15543_v3 = vrot.slane %v14598_v12, %v20847_v0  ;;  %v15549_v46 = vcombine.high %v15529_v1, %v15529_v1  ;;  %v21078_v45 = vld [vmem:[#allocation99_spill] sm:$0xff] }
 0x371   :  { %21069 = vst [vmem:[#allocation292_spill] sm:$0xff] %v15526_v10  ;;  %21070 = vst [vmem:[#allocation293_spill] sm:$0xff] %v15529_v1  ;;  %v3679_v10 = vcombine.high %v21074_v40, %v21074_v40  ;;  %v15552_v39 = vrot.slane %v3662_v8, %v20847_v0  ;;  %v21082_v8 = vld [vmem:[#allocation100_spill] sm:$0xff] }
 0x372   :  { %21071 = vst [vmem:[#allocation294_spill] sm:$0xff] %v15535_v48  ;;  %21072 = vst [vmem:[#allocation295_spill] sm:$0xff] %v15539_v18  ;;  %v15556_v48 = vrot.slane %v21074_v40, %v20847_v0  ;;  %v3696_v18 = vcombine.high %v21078_v45, %v21078_v45  ;;  %v15562_v12 = vcombine.high %v15543_v3, %v15543_v3 }
 0x373   :  { %21073 = vst [vmem:[#allocation296_spill] sm:$0xff] %v15543_v3  ;;  %21075 = vst [vmem:[#allocation98_spill] sm:$0xff] %v15549_v46  ;;  %v15565_v61 = vrot.slane %v3679_v10, %v20847_v0  ;;  %v15569_v46 = vrot.slane %v21078_v45, %v20847_v0  ;;  %v3713_v1 = vcombine.high %v21082_v8, %v21082_v8 }
 0x374   :  { %21076 = vst [vmem:[#allocation297_spill] sm:$0xff] %v15552_v39  ;;  %21077 = vst [vmem:[#allocation298_spill] sm:$0xff] %v15556_v48  ;;  %v15575_v40 = vcombine.high %v15552_v39, %v15552_v39  ;;  %v15579_v62 = vcombine.high %v15556_v48, %v15556_v48  ;;  %v15586_v10 = vrot.slane %v21082_v8, %v20847_v0  ;;  %v21090_v48 = vld [vmem:[#allocation101_spill] sm:$0xff] }
 0x375   :  { %21079 = vst [vmem:[#allocation99_spill] sm:$0xff] %v15562_v12  ;;  %21080 = vst [vmem:[#allocation299_spill] sm:$0xff] %v15565_v61  ;;  %v15582_v12 = vrot.slane %v3696_v18, %v20847_v0  ;;  %v15590_v45 = vcombine.high %v15565_v61, %v15565_v61  ;;  %v15594_v3 = vcombine.high %v15569_v46, %v15569_v46  ;;  %v21103_v61 = vld [vmem:[#allocation105_spill] sm:$0xff] }
 0x376   :  { %21081 = vst [vmem:[#allocation300_spill] sm:$0xff] %v15569_v46  ;;  %21083 = vst [vmem:[#allocation100_spill] sm:$0xff] %v15575_v40  ;;  %v15597_v40 = vrot.slane %v3713_v1, %v20847_v0  ;;  %v15607_v8 = vcombine.high %v15586_v10, %v15586_v10  ;;  %v21125_v39 = vld [vmem:[#allocation89_spill] sm:$0xff] }
 0x377   :  { %21084 = vst [vmem:[#allocation301_spill] sm:$0xff] %v15579_v62  ;;  %21085 = vst [vmem:[#allocation302_spill] sm:$0xff] %v15582_v12  ;;  %v3730_v62 = vcombine.high %v21090_v48, %v21090_v48  ;;  %v15603_v18 = vcombine.high %v15582_v12, %v15582_v12  ;;  %v21282_v32 = vmov %v15582_v12  ;;  %v21300_v12 = vld [vmem:[#allocation70_spill] sm:$0xff] }
 0x378   :  { %21086 = vst [vmem:[#allocation303_spill] sm:$0xff] %v15586_v10  ;;  %21087 = vst [vmem:[#allocation304_spill] sm:$0xff] %v15590_v45  ;;  %v15611_v45 = vrot.slane %v21090_v48, %v20847_v0  ;;  %v15616_v1 = vcombine.high %v15597_v40, %v15597_v40  ;;  %v21115_v10 = vld [vmem:[#allocation114_spill] sm:$0xff]  ;;  %v21286_v19 = vmov %v15597_v40  ;;  %v21301_v47 = vrot.slane %v21300_v12, 9 }
 0x379   :  { %21088 = vst [vmem:[#allocation305_spill] sm:$0xff] %v15594_v3  ;;  %21089 = vst [vmem:[#allocation306_spill] sm:$0xff] %v15597_v40  ;;  %v15619_v46 = vrot.slane %v3730_v62, %v20847_v0  ;;  %v21102_v0 = vld [vmem:[#allocation73_spill] sm:$0xff]  ;;  %v21117_v3 = vld [vmem:[#allocation88_spill] sm:$0xff]  ;;  %v21283_v54 = vmov %v15603_v18 }
 0x37a   :  { %21091 = vst [vmem:[#allocation101_spill] sm:$0xff] %v15603_v18  ;;  %21092 = vst [vmem:[#allocation307_spill] sm:$0xff] %v15607_v8  ;;  %v15625_v8 = vcombine.high %v15611_v45, %v15611_v45  ;;  %v15886_v18 = vmax.f32 %v21300_v12, %v21301_v47  ;;  %v21303_v40 = vld [vmem:[#allocation103_spill] sm:$0xff]  ;;  %v21314_v12 = vrot.slane %v21103_v61, 9 }
 0x37b   :  { %21093 = vst [vmem:[#allocation308_spill] sm:$0xff] %v15611_v45  ;;  %21094 = vst [vmem:[#allocation309_spill] sm:$0xff] %v15616_v1  ;;  %v15632_v1 = vcombine.high %v15619_v46, %v15619_v46  ;;  %v21130_v45 = vld [vmem:[#allocation125_spill] sm:$0xff]  ;;  %v21304_v31 = vrot.slane %v21303_v40, 9 }
 0x37c   :  { %21095 = vst [vmem:[#allocation310_spill] sm:$0xff] %v15619_v46  ;;  %21097 = vst [vmem:[#allocation311_spill] sm:$0xff] %v15625_v8  ;;  %v21110_v46 = vld [vmem:[#allocation75_spill] sm:$0xff]  ;;  %v21293_v8 = vrot.slane %v21292_v58, 9 }
 0x37d   :  { %21101 = vst [vmem:[#allocation312_spill] sm:$0xff] %v15632_v1  ;;  %21297 = vst [vmem:[#allocation105_spill] sm:$0xff] %v15876_v35  ;;  %v21299_v1 = vrot.slane %v21298_v60, 9  ;;  %v21310_v35 = vrot.slane %v21309_v43, 9 }
 0x37e   :  { %v15871_v48 = vmax.f32 %v21292_v58, %v21293_v8  ;;  %21302 = vst [vmem:[#allocation76_spill] sm:$0xff] %v15886_v18  ;;  %v15891_v58 = vmax.f32 %v21303_v40, %v21304_v31  ;;  %v21306_v8 = vld [vmem:[#allocation109_spill] sm:$0xff]  ;;  %v15911_v31 = vmax.f32 %v21103_v61, %v21314_v12  ;;  %v21316_v40 = vld [vmem:[#allocation72_spill] sm:$0xff]  ;;  %v21327_v12 = vld [vmem:[#allocation71_spill] sm:$0xff] }
 0x37f   :  { %v15881_v62 = vmax.f32 %v21298_v60, %v21299_v1  ;;  %v15901_v60 = vmax.f32 %v21309_v43, %v21310_v35  ;;  %v21312_v1 = vrot.slane %v21102_v0, 9  ;;  %v21322_v43 = vrot.slane %v21106_v14, 9 }
 0x380   :  { %21294 = vst [vmem:[#allocation73_spill] sm:$0xff] %v15871_v48  ;;  %21305 = vst [vmem:[#allocation75_spill] sm:$0xff] %v15891_v58  ;;  %v21307_v48 = vrot.slane %v21306_v8, 9  ;;  %v21317_v58 = vrot.slane %v21316_v40, 9 }
 0x381   :  { %v21285_v63 = vld [vmem:[#allocation307_spill] sm:$0xff]  ;;  %21311 = vst [vmem:[#allocation88_spill] sm:$0xff] %v15901_v60  ;;  %v15906_v47 = vmax.f32 %v21102_v0, %v21312_v1  ;;  %21315 = vst [vmem:[#allocation118_spill] sm:$0xff] %v15911_v31  ;;  %v15926_v0 = vmax.f32 %v21106_v14, %v21322_v43  ;;  %v21324_v1 = vld [vmem:[#allocation106_spill] sm:$0xff]  ;;  %v21328_v60 = vrot.slane %v21327_v12, 9 }
 0x382   :  { %v21287_v2 = vld [vmem:[#allocation309_spill] sm:$0xff]  ;;  %v21288_v11 = vld [vmem:[#allocation308_spill] sm:$0xff]  ;;  %v15896_v30 = vmax.f32 %v21306_v8, %v21307_v48  ;;  %v15916_v48 = vmax.f32 %v21316_v40, %v21317_v58  ;;  %v21319_v8 = vld [vmem:[#allocation110_spill] sm:$0xff] }
 0x383   :  { %v21290_v53 = vld [vmem:[#allocation310_spill] sm:$0xff]  ;;  %21313 = vst [vmem:[#allocation115_spill] sm:$0xff] %v15906_v47  ;;  %21323 = vst [vmem:[#allocation125_spill] sm:$0xff] %v15926_v0  ;;  %v21325_v47 = vrot.slane %v21324_v1, 9  ;;  %v15936_v58 = vmax.f32 %v21327_v12, %v21328_v60  ;;  %v21341_v12 = vld [vmem:[#allocation80_spill] sm:$0xff] }
 0x384   :  { %21308 = vst [vmem:[#allocation114_spill] sm:$0xff] %v15896_v30  ;;  %21318 = vst [vmem:[#allocation89_spill] sm:$0xff] %v15916_v48  ;;  %v21320_v30 = vrot.slane %v21319_v8, 9  ;;  %v21330_v40 = vld [vmem:[#allocation74_spill] sm:$0xff] }
 0x385   :  { %v15931_v61 = vmax.f32 %v21324_v1, %v21325_v47  ;;  %21329 = vst [vmem:[#allocation133_spill] sm:$0xff] %v15936_v58  ;;  %v21331_v18 = vrot.slane %v21330_v40, 9  ;;  %v21335_v43 = vld [vmem:[#allocation78_spill] sm:$0xff]  ;;  %v21342_v58 = vrot.slane %v21341_v12, 9 }
 0x386   :  { %v15921_v35 = vmax.f32 %v21319_v8, %v21320_v30  ;;  %v21333_v8 = vrot.slane %v21110_v46, 9  ;;  %v21336_v0 = vrot.slane %v21335_v43, 9  ;;  %v21338_v1 = vld [vmem:[#allocation82_spill] sm:$0xff] }
 0x387   :  { %21326 = vst [vmem:[#allocation132_spill] sm:$0xff] %v15931_v61  ;;  %v15941_v30 = vmax.f32 %v21330_v40, %v21331_v18  ;;  %v21339_v61 = vrot.slane %v21338_v1, 9  ;;  %v15961_v18 = vmax.f32 %v21341_v12, %v21342_v58  ;;  %v21344_v40 = vld [vmem:[#allocation87_spill] sm:$0xff]  ;;  %v21356_v12 = vrot.slane %v21115_v10, 9 }
 0x388   :  { %21321 = vst [vmem:[#allocation96_spill] sm:$0xff] %v15921_v35  ;;  %v15946_v14 = vmax.f32 %v21110_v46, %v21333_v8  ;;  %v15951_v47 = vmax.f32 %v21335_v43, %v21336_v0  ;;  %v21347_v8 = vld [vmem:[#allocation77_spill] sm:$0xff] }
 0x389   :  { %21332 = vst [vmem:[#allocation135_spill] sm:$0xff] %v15941_v30  ;;  %v15956_v60 = vmax.f32 %v21338_v1, %v21339_v61  ;;  %21343 = vst [vmem:[#allocation151_spill] sm:$0xff] %v15961_v18  ;;  %v21345_v30 = vrot.slane %v21344_v40, 9  ;;  %v21350_v43 = vld [vmem:[#allocation85_spill] sm:$0xff] }
 0x38a   :  { %21334 = vst [vmem:[#allocation141_spill] sm:$0xff] %v15946_v14  ;;  %21337 = vst [vmem:[#allocation148_spill] sm:$0xff] %v15951_v47  ;;  %v21348_v14 = vrot.slane %v21347_v8, 9  ;;  %v21351_v47 = vrot.slane %v21350_v43, 9  ;;  %v21353_v1 = vld [vmem:[#allocation81_spill] sm:$0xff] }
 0x38b   :  { %21340 = vst [vmem:[#allocation149_spill] sm:$0xff] %v15956_v60  ;;  %v15966_v46 = vmax.f32 %v21344_v40, %v21345_v30  ;;  %v21354_v60 = vrot.slane %v21353_v1, 9  ;;  %v15986_v30 = vmax.f32 %v21115_v10, %v21356_v12  ;;  %v21358_v40 = vld [vmem:[#allocation79_spill] sm:$0xff]  ;;  %v21368_v12 = vld [vmem:[#allocation86_spill] sm:$0xff] }
 0x38c   :  { %v15971_v0 = vmax.f32 %v21347_v8, %v21348_v14  ;;  %v15976_v61 = vmax.f32 %v21350_v43, %v21351_v47  ;;  %v21361_v8 = vrot.slane %v21117_v3, 9  ;;  %v21363_v43 = vld [vmem:[#allocation111_spill] sm:$0xff] }
 0x38d   :  { %21346 = vst [vmem:[#allocation154_spill] sm:$0xff] %v15966_v46  ;;  %v15981_v58 = vmax.f32 %v21353_v1, %v21354_v60  ;;  %21357 = vst [vmem:[#allocation170_spill] sm:$0xff] %v15986_v30  ;;  %v21359_v46 = vrot.slane %v21358_v40, 9  ;;  %v21366_v1 = vrot.slane %v21118_v34, 9  ;;  %v21369_v30 = vrot.slane %v21368_v12, 9 }
 0x38e   :  { %21349 = vst [vmem:[#allocation164_spill] sm:$0xff] %v15971_v0  ;;  %21352 = vst [vmem:[#allocation165_spill] sm:$0xff] %v15976_v61  ;;  %v15996_v47 = vmax.f32 %v21117_v3, %v21361_v8  ;;  %v21364_v61 = vrot.slane %v21363_v43, 9  ;;  %v21374_v8 = vld [vmem:[#allocation113_spill] sm:$0xff] }
 0x38f   :  { %21355 = vst [vmem:[#allocation167_spill] sm:$0xff] %v15981_v58  ;;  %v15991_v14 = vmax.f32 %v21358_v40, %v21359_v46  ;;  %v16006_v10 = vmax.f32 %v21118_v34, %v21366_v1  ;;  %v16011_v46 = vmax.f32 %v21368_v12, %v21369_v30  ;;  %v21371_v40 = vld [vmem:[#allocation116_spill] sm:$0xff]  ;;  %v21375_v0 = vrot.slane %v21374_v8, 9  ;;  %v21379_v1 = vld [vmem:[#allocation117_spill] sm:$0xff] }
 0x390   :  { %21362 = vst [vmem:[#allocation181_spill] sm:$0xff] %v15996_v47  ;;  %v16001_v60 = vmax.f32 %v21363_v43, %v21364_v61  ;;  %v21372_v58 = vrot.slane %v21371_v40, 9  ;;  %v21377_v43 = vrot.slane %v21122_v13, 9  ;;  %v21382_v12 = vld [vmem:[#allocation121_spill] sm:$0xff] }
 0x391   :  { %21360 = vst [vmem:[#allocation180_spill] sm:$0xff] %v15991_v14  ;;  %21367 = vst [vmem:[#allocation186_spill] sm:$0xff] %v16006_v10  ;;  %v16021_v61 = vmax.f32 %v21374_v8, %v21375_v0  ;;  %v21380_v10 = vrot.slane %v21379_v1, 9  ;;  %v21388_v8 = vrot.slane %v21125_v39, 9 }
 0x392   :  { %21365 = vst [vmem:[#allocation183_spill] sm:$0xff] %v16001_v60  ;;  %21370 = vst [vmem:[#allocation196_spill] sm:$0xff] %v16011_v46  ;;  %v16016_v3 = vmax.f32 %v21371_v40, %v21372_v58  ;;  %v16026_v34 = vmax.f32 %v21122_v13, %v21377_v43  ;;  %v21383_v46 = vrot.slane %v21382_v12, 9  ;;  %v21385_v40 = vld [vmem:[#allocation119_spill] sm:$0xff]  ;;  %v21390_v43 = vld [vmem:[#allocation120_spill] sm:$0xff] }
 0x393   :  { %21376 = vst [vmem:[#allocation199_spill] sm:$0xff] %v16021_v61  ;;  %v16031_v30 = vmax.f32 %v21379_v1, %v21380_v10  ;;  %v16046_v13 = vmax.f32 %v21125_v39, %v21388_v8  ;;  %v21393_v1 = vld [vmem:[#allocation91_spill] sm:$0xff]  ;;  %v21401_v8 = vld [vmem:[#allocation122_spill] sm:$0xff] }
 0x394   :  { %21373 = vst [vmem:[#allocation197_spill] sm:$0xff] %v16016_v3  ;;  %21378 = vst [vmem:[#allocation202_spill] sm:$0xff] %v16026_v34  ;;  %v16036_v58 = vmax.f32 %v21382_v12, %v21383_v46  ;;  %v21386_v3 = vrot.slane %v21385_v40, 9  ;;  %v21391_v34 = vrot.slane %v21390_v43, 9  ;;  %v21396_v12 = vld [vmem:[#allocation90_spill] sm:$0xff] }
 0x395   :  { %21381 = vst [vmem:[#allocation212_spill] sm:$0xff] %v16031_v30  ;;  %21389 = vst [vmem:[#allocation218_spill] sm:$0xff] %v16046_v13  ;;  %v21394_v30 = vrot.slane %v21393_v1, 9  ;;  %v21402_v13 = vrot.slane %v21401_v8, 9 }
 0x396   :  { %21384 = vst [vmem:[#allocation213_spill] sm:$0xff] %v16036_v58  ;;  %v16041_v0 = vmax.f32 %v21385_v40, %v21386_v3  ;;  %v16051_v10 = vmax.f32 %v21390_v43, %v21391_v34  ;;  %v21397_v58 = vrot.slane %v21396_v12, 9  ;;  %v21399_v40 = vrot.slane %v21127_v15, 9  ;;  %v21404_v43 = vld [vmem:[#allocation94_spill] sm:$0xff]  ;;  %v21967_v31 = vld [vmem:[#allocation167_spill] sm:$0xff] }
 0x397   :  { %v16056_v46 = vmax.f32 %v21393_v1, %v21394_v30  ;;  %v16071_v34 = vmax.f32 %v21401_v8, %v21402_v13  ;;  %v21406_v1 = vld [vmem:[#allocation93_spill] sm:$0xff]  ;;  %v21414_v8 = vld [vmem:[#allocation123_spill] sm:$0xff] }
 0x398   :  { %21387 = vst [vmem:[#allocation215_spill] sm:$0xff] %v16041_v0  ;;  %21392 = vst [vmem:[#allocation228_spill] sm:$0xff] %v16051_v10  ;;  %v16061_v3 = vmax.f32 %v21396_v12, %v21397_v58  ;;  %v16066_v39 = vmax.f32 %v21127_v15, %v21399_v40  ;;  %v21405_v10 = vrot.slane %v21404_v43, 9  ;;  %v21409_v12 = vrot.slane %v21130_v45, 9  ;;  %v21411_v40 = vld [vmem:[#allocation92_spill] sm:$0xff] }
 0x399   :  { %21395 = vst [vmem:[#allocation229_spill] sm:$0xff] %v16056_v46  ;;  %21403 = vst [vmem:[#allocation244_spill] sm:$0xff] %v16071_v34  ;;  %v21407_v46 = vrot.slane %v21406_v1, 9 }
 0x39a   :  { %21398 = vst [vmem:[#allocation231_spill] sm:$0xff] %v16061_v3  ;;  %21400 = vst [vmem:[#allocation234_spill] sm:$0xff] %v16066_v39  ;;  %v16076_v30 = vmax.f32 %v21404_v43, %v21405_v10  ;;  %v16086_v15 = vmax.f32 %v21130_v45, %v21409_v12  ;;  %v21412_v39 = vrot.slane %v21411_v40, 9  ;;  %v21415_v3 = vrot.slane %v21414_v8, 9  ;;  %v21417_v43 = vld [vmem:[#allocation95_spill] sm:$0xff]  ;;  %v21423_v12 = vld [vmem:[#allocation124_spill] sm:$0xff] }
 0x39b   :  { %v16081_v58 = vmax.f32 %v21406_v1, %v21407_v46  ;;  %v21418_v0 = vrot.slane %v21417_v43, 9  ;;  %v21420_v1 = vld [vmem:[#allocation126_spill] sm:$0xff] }
 0x39c   :  { %21410 = vst [vmem:[#allocation247_spill] sm:$0xff] %v16086_v15  ;;  %v16091_v13 = vmax.f32 %v21411_v40, %v21412_v39  ;;  %v16096_v10 = vmax.f32 %v21414_v8, %v21415_v3  ;;  %v21424_v15 = vrot.slane %v21423_v12, 9  ;;  %v21425_v40 = vld [vmem:[#allocation129_spill] sm:$0xff]  ;;  %v21428_v8 = vld [vmem:[#allocation127_spill] sm:$0xff]  ;;  %v21970_v35 = vld [vmem:[#allocation212_spill] sm:$0xff] }
 0x39d   :  { %21408 = vst [vmem:[#allocation245_spill] sm:$0xff] %v16081_v58  ;;  %v16101_v46 = vmax.f32 %v21417_v43, %v21418_v0  ;;  %v21421_v58 = vrot.slane %v21420_v1, 9  ;;  %v21431_v43 = vrot.slane %v21136_v28, 9 }
 0x39e   :  { %21413 = vst [vmem:[#allocation250_spill] sm:$0xff] %v16091_v13  ;;  %21416 = vst [vmem:[#allocation302_spill] sm:$0xff] %v16096_v10  ;;  %v16111_v39 = vmax.f32 %v21423_v12, %v21424_v15  ;;  %v21426_v13 = vrot.slane %v21425_v40, 9  ;;  %v21429_v10 = vrot.slane %v21428_v8, 9  ;;  %v21436_v12 = vrot.slane %v21138_v56, 9 }
 0x39f   :  { %21419 = vst [vmem:[#allocation101_spill] sm:$0xff] %v16101_v46  ;;  %v16106_v45 = vmax.f32 %v21420_v1, %v21421_v58  ;;  %v16126_v58 = vmax.f32 %v21136_v28, %v21431_v43  ;;  %v21433_v1 = vld [vmem:[#allocation128_spill] sm:$0xff]  ;;  %v21443_v43 = vld [vmem:[#allocation131_spill] sm:$0xff] }
 0x3a0   :  { %v16116_v3 = vmax.f32 %v21425_v40, %v21426_v13  ;;  %v16121_v0 = vmax.f32 %v21428_v8, %v21429_v10  ;;  %v16136_v13 = vmax.f32 %v21138_v56, %v21436_v12  ;;  %v21438_v40 = vld [vmem:[#allocation130_spill] sm:$0xff]  ;;  %v21441_v8 = vrot.slane %v21139_v9, 9  ;;  %v21448_v12 = vld [vmem:[#allocation136_spill] sm:$0xff] }
 0x3a1   :  { %21422 = vst [vmem:[#allocation307_spill] sm:$0xff] %v16106_v45  ;;  %21432 = vst [vmem:[#allocation308_spill] sm:$0xff] %v16126_v58  ;;  %v21434_v45 = vrot.slane %v21433_v1, 9  ;;  %v21444_v58 = vrot.slane %v21443_v43, 9  ;;  %v21980_v14 = vld [vmem:[#allocation231_spill] sm:$0xff] }
 0x3a2   :  { %21427 = vst [vmem:[#allocation306_spill] sm:$0xff] %v16116_v3  ;;  %21430 = vst [vmem:[#allocation309_spill] sm:$0xff] %v16121_v0  ;;  %v21439_v3 = vrot.slane %v21438_v40, 9  ;;  %v16146_v28 = vmax.f32 %v21139_v9, %v21441_v8  ;;  %v21453_v8 = vld [vmem:[#allocation134_spill] sm:$0xff] }
 0x3a3   :  { %v16131_v15 = vmax.f32 %v21433_v1, %v21434_v45  ;;  %21437 = vst [vmem:[#allocation102_spill] sm:$0xff] %v16136_v13  ;;  %v16151_v45 = vmax.f32 %v21443_v43, %v21444_v58  ;;  %v21446_v1 = vld [vmem:[#allocation137_spill] sm:$0xff]  ;;  %v21449_v13 = vrot.slane %v21448_v12, 9  ;;  %v21456_v43 = vld [vmem:[#allocation139_spill] sm:$0xff] }
 0x3a4   :  { %v16141_v10 = vmax.f32 %v21438_v40, %v21439_v3  ;;  %21442 = vst [vmem:[#allocation104_spill] sm:$0xff] %v16146_v28  ;;  %v21451_v40 = vrot.slane %v21143_v20, 9  ;;  %v21454_v28 = vrot.slane %v21453_v8, 9 }
 0x3a5   :  { %21435 = vst [vmem:[#allocation310_spill] sm:$0xff] %v16131_v15  ;;  %21445 = vst [vmem:[#allocation70_spill] sm:$0xff] %v16151_v45  ;;  %v21447_v15 = vrot.slane %v21446_v1, 9  ;;  %v16161_v3 = vmax.f32 %v21448_v12, %v21449_v13  ;;  %v21462_v12 = vld [vmem:[#allocation144_spill] sm:$0xff] }
 0x3a6   :  { %21440 = vst [vmem:[#allocation107_spill] sm:$0xff] %v16141_v10  ;;  %v16166_v9 = vmax.f32 %v21143_v20, %v21451_v40  ;;  %v16171_v58 = vmax.f32 %v21453_v8, %v21454_v28  ;;  %v21457_v10 = vrot.slane %v21456_v43, 9  ;;  %v21465_v40 = vld [vmem:[#allocation140_spill] sm:$0xff]  ;;  %v21467_v8 = vld [vmem:[#allocation145_spill] sm:$0xff] }
 0x3a7   :  { %v16156_v56 = vmax.f32 %v21446_v1, %v21447_v15  ;;  %21450 = vst [vmem:[#allocation103_spill] sm:$0xff] %v16161_v3  ;;  %v21459_v1 = vld [vmem:[#allocation138_spill] sm:$0xff]  ;;  %v21463_v3 = vrot.slane %v21462_v12, 9 }
 0x3a8   :  { %21452 = vst [vmem:[#allocation109_spill] sm:$0xff] %v16166_v9  ;;  %21455 = vst [vmem:[#allocation108_spill] sm:$0xff] %v16171_v58  ;;  %v16176_v15 = vmax.f32 %v21456_v43, %v21457_v10  ;;  %v21460_v0 = vrot.slane %v21459_v1, 9  ;;  %v21466_v9 = vrot.slane %v21465_v40, 9  ;;  %v21468_v58 = vrot.slane %v21467_v8, 9  ;;  %v21470_v43 = vld [vmem:[#allocation142_spill] sm:$0xff] }
 0x3a9   :  { %v16186_v20 = vmax.f32 %v21462_v12, %v21463_v3  ;;  %v21475_v12 = vld [vmem:[#allocation143_spill] sm:$0xff] }
 0x3aa   :  { %21458 = vst [vmem:[#allocation72_spill] sm:$0xff] %v16176_v15  ;;  %v16181_v13 = vmax.f32 %v21459_v1, %v21460_v0  ;;  %v16191_v28 = vmax.f32 %v21465_v40, %v21466_v9  ;;  %v16196_v10 = vmax.f32 %v21467_v8, %v21468_v58  ;;  %v21471_v15 = vrot.slane %v21470_v43, 9  ;;  %v21480_v8 = vld [vmem:[#allocation146_spill] sm:$0xff] }
 0x3ab   :  { %21464 = vst [vmem:[#allocation106_spill] sm:$0xff] %v16186_v20  ;;  %v21473_v1 = vrot.slane %v21148_v44, 9  ;;  %v21476_v20 = vrot.slane %v21475_v12, 9  ;;  %v21478_v40 = vrot.slane %v21150_v37, 9 }
 0x3ac   :  { %21461 = vst [vmem:[#allocation110_spill] sm:$0xff] %v16181_v13  ;;  %21469 = vst [vmem:[#allocation71_spill] sm:$0xff] %v16196_v10  ;;  %v16201_v0 = vmax.f32 %v21470_v43, %v21471_v15  ;;  %v21481_v10 = vrot.slane %v21480_v8, 9  ;;  %v21483_v43 = vrot.slane %v21151_v55, 9 }
 0x3ad   :  { %v16206_v3 = vmax.f32 %v21148_v44, %v21473_v1  ;;  %v16211_v9 = vmax.f32 %v21475_v12, %v21476_v20  ;;  %v16216_v58 = vmax.f32 %v21150_v37, %v21478_v40  ;;  %v21485_v1 = vld [vmem:[#allocation147_spill] sm:$0xff]  ;;  %v21488_v12 = vld [vmem:[#allocation152_spill] sm:$0xff]  ;;  %v21491_v40 = vld [vmem:[#allocation150_spill] sm:$0xff] }
 0x3ae   :  { %21472 = vst [vmem:[#allocation74_spill] sm:$0xff] %v16201_v0  ;;  %v16221_v15 = vmax.f32 %v21480_v8, %v21481_v10  ;;  %v16226_v44 = vmax.f32 %v21151_v55, %v21483_v43  ;;  %v21494_v8 = vrot.slane %v21155_v5, 9  ;;  %v21496_v43 = vld [vmem:[#allocation153_spill] sm:$0xff]  ;;  %v21992_v34 = vld [vmem:[#allocation107_spill] sm:$0xff] }
 0x3af   :  { %21474 = vst [vmem:[#allocation78_spill] sm:$0xff] %v16206_v3  ;;  %21477 = vst [vmem:[#allocation82_spill] sm:$0xff] %v16211_v9  ;;  %v21486_v3 = vrot.slane %v21485_v1, 9  ;;  %v21489_v9 = vrot.slane %v21488_v12, 9 }
 0x3b0   :  { %21479 = vst [vmem:[#allocation80_spill] sm:$0xff] %v16216_v58  ;;  %21482 = vst [vmem:[#allocation87_spill] sm:$0xff] %v16221_v15  ;;  %v21492_v58 = vrot.slane %v21491_v40, 9  ;;  %v16246_v55 = vmax.f32 %v21155_v5, %v21494_v8  ;;  %v21508_v8 = vld [vmem:[#allocation156_spill] sm:$0xff] }
 0x3b1   :  { %21484 = vst [vmem:[#allocation77_spill] sm:$0xff] %v16226_v44  ;;  %v16231_v20 = vmax.f32 %v21485_v1, %v21486_v3  ;;  %v16236_v37 = vmax.f32 %v21488_v12, %v21489_v9  ;;  %v21497_v44 = vrot.slane %v21496_v43, 9  ;;  %v21499_v1 = vld [vmem:[#allocation157_spill] sm:$0xff]  ;;  %v21502_v12 = vld [vmem:[#allocation155_spill] sm:$0xff] }
 0x3b2   :  { %v16241_v10 = vmax.f32 %v21491_v40, %v21492_v58  ;;  %21495 = vst [vmem:[#allocation111_spill] sm:$0xff] %v16246_v55  ;;  %v21500_v15 = vrot.slane %v21499_v1, 9  ;;  %v21503_v0 = vrot.slane %v21502_v12, 9  ;;  %v21505_v40 = vld [vmem:[#allocation160_spill] sm:$0xff]  ;;  %v21509_v55 = vrot.slane %v21508_v8, 9 }
 0x3b3   :  { %21487 = vst [vmem:[#allocation85_spill] sm:$0xff] %v16231_v20  ;;  %21490 = vst [vmem:[#allocation81_spill] sm:$0xff] %v16236_v37  ;;  %v16251_v3 = vmax.f32 %v21496_v43, %v21497_v44  ;;  %v21511_v43 = vld [vmem:[#allocation161_spill] sm:$0xff]  ;;  %v22142_v37 = vld [vmem:[#allocation118_spill] sm:$0xff] }
 0x3b4   :  { %21493 = vst [vmem:[#allocation79_spill] sm:$0xff] %v16241_v10  ;;  %v16256_v9 = vmax.f32 %v21499_v1, %v21500_v15  ;;  %v16261_v58 = vmax.f32 %v21502_v12, %v21503_v0  ;;  %v21506_v10 = vrot.slane %v21505_v40, 9  ;;  %v16271_v44 = vmax.f32 %v21508_v8, %v21509_v55  ;;  %v21514_v1 = vld [vmem:[#allocation158_spill] sm:$0xff]  ;;  %v12208_v8 = vld [vmem:[%s19874_s4 + $0x18] sm:$0xff]  }
 0x3b5   :  { %21498 = vst [vmem:[#allocation86_spill] sm:$0xff] %v16251_v3  ;;  %v21512_v3 = vrot.slane %v21511_v43, 9  ;;  %v21517_v12 = vrot.slane %v21160_v16, 9 }
 0x3b6   :  { %21501 = vst [vmem:[#allocation116_spill] sm:$0xff] %v16256_v9  ;;  %21504 = vst [vmem:[#allocation113_spill] sm:$0xff] %v16261_v58  ;;  %v16266_v5 = vmax.f32 %v21505_v40, %v21506_v10  ;;  %v21515_v9 = vrot.slane %v21514_v1, 9  ;;  %v21519_v40 = vld [vmem:[#allocation159_spill] sm:$0xff] }
 0x3b7   :  { %21510 = vst [vmem:[#allocation121_spill] sm:$0xff] %v16271_v44  ;;  %v16276_v15 = vmax.f32 %v21511_v43, %v21512_v3  ;;  %v16286_v10 = vmax.f32 %v21160_v16, %v21517_v12  ;;  %v12207_v3 = vld [vmem:[%s19874_s4 + $0x10] sm:$0xff]   ;;  %v21524_v16 = vld [vmem:[#allocation162_spill] sm:$0xff] }
 0x3b8   :  { %21507 = vst [vmem:[#allocation117_spill] sm:$0xff] %v16266_v5  ;;  %v16281_v0 = vmax.f32 %v21514_v1, %v21515_v9  ;;  %v21520_v5 = vrot.slane %v21519_v40, 9  ;;  %v21522_v9 = vrot.slane %v21162_v26, 9  ;;  %v21525_v1 = vrot.slane %v21524_v16, 9  ;;  %11688 = vmatprep.subr.bf16.mxu1 %v12207_v3  ;;  %v22004_v45 = vld [vmem:[#allocation87_spill] sm:$0xff] }
 0x3b9   :  { %21513 = vst [vmem:[#allocation119_spill] sm:$0xff] %v16276_v15  ;;  %21518 = vst [vmem:[#allocation91_spill] sm:$0xff] %v16286_v10  ;;  %v21532_v15 = vld [vmem:[#allocation168_spill] sm:$0xff]  ;;  %11689 = vmatpush3.bf16.msra.mxu1 %v12207_v3  ;;  %v21565_v3 = vrot.slane %v21174_v27, 9 }
 0x3ba   :  { %21516 = vst [vmem:[#allocation120_spill] sm:$0xff] %v16281_v0  ;;  %v16291_v55 = vmax.f32 %v21519_v40, %v21520_v5  ;;  %v16302_v43 = vmax.f32 %v21162_v26, %v21522_v9  ;;  %v16307_v12 = vmax.f32 %v21524_v16, %v21525_v1  ;;  %v21527_v5 = vrot.slane %v21163_v50, 9  ;;  %v21535_v9 = vld [vmem:[#allocation166_spill] sm:$0xff]  ;;  %11690 = vmatprep.subr.bf16.mxu1 %v12208_v8 }
 0x3bb   :  { %v21533_v44 = vrot.slane %v21532_v15, 9  ;;  %v21538_v1 = vrot.slane %v21167_v33, 9 }
 0x3bc   :  { %21521 = vst [vmem:[#allocation90_spill] sm:$0xff] %v16291_v55  ;;  %21523 = vst [vmem:[#allocation122_spill] sm:$0xff] %v16302_v43  ;;  %v16312_v40 = vmax.f32 %v21163_v50, %v21527_v5  ;;  %v21529_v55 = vld [vmem:[#allocation163_spill] sm:$0xff]  ;;  %v21536_v43 = vrot.slane %v21535_v9, 9  ;;  %v21540_v5 = vld [vmem:[#allocation169_spill] sm:$0xff] }
 0x3bd   :  { %21526 = vst [vmem:[#allocation94_spill] sm:$0xff] %v16307_v12  ;;  %v21530_v10 = vrot.slane %v21529_v55, 9  ;;  %v16322_v26 = vmax.f32 %v21532_v15, %v21533_v44  ;;  %v16332_v50 = vmax.f32 %v21167_v33, %v21538_v1  ;;  %v21546_v15 = vld [vmem:[#allocation171_spill] sm:$0xff]  ;;  %v21552_v1 = vld [vmem:[#allocation172_spill] sm:$0xff]  ;;  %11691 = vmatpush3.bf16.msra.mxu1 %v12208_v8  ;;  %v21606_v8 = vrot.slane %v21186_v57, 9 }
 0x3be   :  { %21528 = vst [vmem:[#allocation93_spill] sm:$0xff] %v16312_v40  ;;  %v16327_v16 = vmax.f32 %v21535_v9, %v21536_v43  ;;  %v21541_v40 = vrot.slane %v21540_v5, 9  ;;  %v21549_v9 = vld [vmem:[#allocation176_spill] sm:$0xff] }
 0x3bf   :  { %v16317_v0 = vmax.f32 %v21529_v55, %v21530_v10  ;;  %21534 = vst [vmem:[#allocation123_spill] sm:$0xff] %v16322_v26  ;;  %21539 = vst [vmem:[#allocation126_spill] sm:$0xff] %v16332_v50  ;;  %v21543_v55 = vld [vmem:[#allocation173_spill] sm:$0xff]  ;;  %v21547_v26 = vrot.slane %v21546_v15, 9  ;;  %v21553_v50 = vrot.slane %v21552_v1, 9 }
 0x3c0   :  { %21537 = vst [vmem:[#allocation95_spill] sm:$0xff] %v16327_v16  ;;  %v16337_v10 = vmax.f32 %v21540_v5, %v21541_v40  ;;  %v21544_v12 = vrot.slane %v21543_v55, 9  ;;  %v21550_v16 = vrot.slane %v21549_v9, 9  ;;  %v21554_v5 = vld [vmem:[#allocation177_spill] sm:$0xff] }
 0x3c1   :  { %21531 = vst [vmem:[#allocation92_spill] sm:$0xff] %v16317_v0  ;;  %v16347_v43 = vmax.f32 %v21546_v15, %v21547_v26  ;;  %v16357_v40 = vmax.f32 %v21552_v1, %v21553_v50  ;;  %v21560_v15 = vrot.slane %v21172_v29, 9  ;;  %v21567_v1 = vld [vmem:[#allocation178_spill] sm:$0xff] }
 0x3c2   :  { %21542 = vst [vmem:[#allocation124_spill] sm:$0xff] %v16337_v10  ;;  %v16342_v44 = vmax.f32 %v21543_v55, %v21544_v12  ;;  %v16352_v33 = vmax.f32 %v21549_v9, %v21550_v16  ;;  %v21555_v10 = vrot.slane %v21554_v5, 9  ;;  %v21557_v55 = vld [vmem:[#allocation174_spill] sm:$0xff]  ;;  %v21562_v9 = vld [vmem:[#allocation175_spill] sm:$0xff] }
 0x3c3   :  { %21548 = vst [vmem:[#allocation127_spill] sm:$0xff] %v16347_v43  ;;  %v16372_v16 = vmax.f32 %v21172_v29, %v21560_v15  ;;  %v21572_v15 = vld [vmem:[#allocation179_spill] sm:$0xff] }
 0x3c4   :  { %21545 = vst [vmem:[#allocation129_spill] sm:$0xff] %v16342_v44  ;;  %21551 = vst [vmem:[#allocation128_spill] sm:$0xff] %v16352_v33  ;;  %v16362_v12 = vmax.f32 %v21554_v5, %v21555_v10  ;;  %v21558_v44 = vrot.slane %v21557_v55, 9  ;;  %v21563_v33 = vrot.slane %v21562_v9, 9  ;;  %v16382_v10 = vmax.f32 %v21174_v27, %v21565_v3  ;;  %v12209_v27 = vld [vmem:[%s19874_s4] sm:$0xff]  }
 0x3c5   :  { %21561 = vst [vmem:[#allocation137_spill] sm:$0xff] %v16372_v16  ;;  %v21568_v5 = vrot.slane %v21567_v1, 9  ;;  %v21573_v16 = vrot.slane %v21572_v15, 9  ;;  %11708 = vmatprep.subr.bf16.mxu1 %v12209_v27  ;;  %v21616_v27 = vld [vmem:[#allocation200_spill] sm:$0xff]  ;;  %v22018_v20 = vld [vmem:[#allocation94_spill] sm:$0xff] }
 0x3c6   :  { %21556 = vst [vmem:[#allocation130_spill] sm:$0xff] %v16362_v12  ;;  %v16367_v26 = vmax.f32 %v21557_v55, %v21558_v44  ;;  %v16377_v50 = vmax.f32 %v21562_v9, %v21563_v33  ;;  %21566 = vst [vmem:[#allocation134_spill] sm:$0xff] %v16382_v10  ;;  %v21570_v55 = vrot.slane %v21175_v4, 9  ;;  %v21575_v9 = vld [vmem:[#allocation184_spill] sm:$0xff] }
 0x3c7   :  { %v16387_v44 = vmax.f32 %v21567_v1, %v21568_v5  ;;  %v16397_v33 = vmax.f32 %v21572_v15, %v21573_v16  ;;  %v21576_v3 = vrot.slane %v21575_v9, 9  ;;  %v21577_v1 = vld [vmem:[#allocation182_spill] sm:$0xff]  ;;  %v21582_v16 = vld [vmem:[#allocation185_spill] sm:$0xff] }
 0x3c8   :  { %21559 = vst [vmem:[#allocation131_spill] sm:$0xff] %v16367_v26  ;;  %21564 = vst [vmem:[#allocation136_spill] sm:$0xff] %v16377_v50  ;;  %v16392_v29 = vmax.f32 %v21175_v4, %v21570_v55  ;;  %v21578_v5 = vrot.slane %v21577_v1, 9  ;;  %v21580_v4 = vrot.slane %v21179_v52, 9  ;;  %v21583_v15 = vrot.slane %v21582_v16, 9  ;;  %v21585_v50 = vld [vmem:[#allocation189_spill] sm:$0xff] }
 0x3c9   :  { %21569 = vst [vmem:[#allocation139_spill] sm:$0xff] %v16387_v44  ;;  %21574 = vst [vmem:[#allocation144_spill] sm:$0xff] %v16397_v33  ;;  %v16405_v10 = vmax.f32 %v21575_v9, %v21576_v3  ;;  %v21586_v26 = vrot.slane %v21585_v50, 9  ;;  %v21588_v3 = vld [vmem:[#allocation187_spill] sm:$0xff] }
 0x3ca   :  { %21571 = vst [vmem:[#allocation138_spill] sm:$0xff] %v16392_v29  ;;  %v16410_v44 = vmax.f32 %v21577_v1, %v21578_v5  ;;  %v16415_v55 = vmax.f32 %v21179_v52, %v21580_v4  ;;  %v16420_v29 = vmax.f32 %v21582_v16, %v21583_v15  ;;  %v21589_v12 = vrot.slane %v21588_v3, 9  ;;  %v21591_v5 = vld [vmem:[#allocation192_spill] sm:$0xff]  ;;  %v21596_v15 = vld [vmem:[#allocation193_spill] sm:$0xff] }
 0x3cb   :  { %v16425_v9 = vmax.f32 %v21585_v50, %v21586_v26  ;;  %v21594_v4 = vld [vmem:[#allocation188_spill] sm:$0xff]  ;;  %v21598_v50 = vld [vmem:[#allocation190_spill] sm:$0xff] }
 0x3cc   :  { %21579 = vst [vmem:[#allocation140_spill] sm:$0xff] %v16410_v44  ;;  %21581 = vst [vmem:[#allocation145_spill] sm:$0xff] %v16415_v55  ;;  %v16430_v1 = vmax.f32 %v21588_v3, %v21589_v12  ;;  %v21592_v44 = vrot.slane %v21591_v5, 9  ;;  %v21595_v55 = vrot.slane %v21594_v4, 9  ;;  %v21601_v3 = vrot.slane %v21184_v42, 9 }
 0x3cd   :  { %21584 = vst [vmem:[#allocation142_spill] sm:$0xff] %v16420_v29  ;;  %21587 = vst [vmem:[#allocation143_spill] sm:$0xff] %v16425_v9  ;;  %v21597_v29 = vrot.slane %v21596_v15, 9  ;;  %v21599_v9 = vrot.slane %v21598_v50, 9 }
 0x3ce   :  { %21590 = vst [vmem:[#allocation146_spill] sm:$0xff] %v16430_v1  ;;  %v16435_v52 = vmax.f32 %v21591_v5, %v21592_v44  ;;  %v16440_v16 = vmax.f32 %v21594_v4, %v21595_v55  ;;  %v16455_v44 = vmax.f32 %v21184_v42, %v21601_v3  ;;  %v21603_v5 = vld [vmem:[#allocation191_spill] sm:$0xff]  ;;  %v21608_v4 = vld [vmem:[#allocation194_spill] sm:$0xff]  ;;  %v22141_v1 = vld [vmem:[#allocation84_spill] sm:$0xff] }
 0x3cf   :  { %v16445_v26 = vmax.f32 %v21596_v15, %v21597_v29  ;;  %v16450_v12 = vmax.f32 %v21598_v50, %v21599_v9  ;;  %v16465_v29 = vmax.f32 %v21186_v57, %v21606_v8  ;;  %v21609_v15 = vrot.slane %v21608_v4, 9  ;;  %v21613_v3 = vld [vmem:[#allocation195_spill] sm:$0xff]  ;;  %v21618_v8 = vld [vmem:[#allocation198_spill] sm:$0xff] }
 0x3d0   :  { %21593 = vst [vmem:[#allocation147_spill] sm:$0xff] %v16435_v52  ;;  %21602 = vst [vmem:[#allocation150_spill] sm:$0xff] %v16455_v44  ;;  %v21604_v52 = vrot.slane %v21603_v5, 9  ;;  %v21611_v50 = vrot.slane %v21187_v22, 9  ;;  %v21614_v44 = vrot.slane %v21613_v3, 9  ;;  %v22023_v61 = vld [vmem:[#allocation131_spill] sm:$0xff] }
 0x3d1   :  { %21600 = vst [vmem:[#allocation152_spill] sm:$0xff] %v16450_v12  ;;  %21607 = vst [vmem:[#allocation157_spill] sm:$0xff] %v16465_v29  ;;  %v16470_v9 = vmax.f32 %v21608_v4, %v21609_v15  ;;  %v21619_v29 = vrot.slane %v21618_v8, 9  ;;  %v21621_v15 = vrot.slane %v21191_v17, 9  ;;  %v22030_v0 = vld [vmem:[#allocation139_spill] sm:$0xff] }
 0x3d2   :  { %v16460_v55 = vmax.f32 %v21603_v5, %v21604_v52  ;;  %v16475_v42 = vmax.f32 %v21187_v22, %v21611_v50  ;;  %v16480_v52 = vmax.f32 %v21613_v3, %v21614_v44  ;;  %v21617_v5 = vrot.slane %v21616_v27, 9  ;;  %v21623_v50 = vld [vmem:[#allocation201_spill] sm:$0xff] }
 0x3d3   :  { %21610 = vst [vmem:[#allocation155_spill] sm:$0xff] %v16470_v9  ;;  %v16490_v4 = vmax.f32 %v21618_v8, %v21619_v29  ;;  %v16495_v22 = vmax.f32 %v21191_v17, %v21621_v15  ;;  %v21626_v3 = vld [vmem:[#allocation205_spill] sm:$0xff]  ;;  %v21632_v8 = vld [vmem:[#allocation208_spill] sm:$0xff] }
 0x3d4   :  { %21605 = vst [vmem:[#allocation153_spill] sm:$0xff] %v16460_v55  ;;  %21612 = vst [vmem:[#allocation160_spill] sm:$0xff] %v16475_v42  ;;  %v16485_v57 = vmax.f32 %v21616_v27, %v21617_v5  ;;  %v21624_v42 = vrot.slane %v21623_v50, 9  ;;  %v21627_v9 = vrot.slane %v21626_v3, 9  ;;  %v21629_v5 = vld [vmem:[#allocation203_spill] sm:$0xff]  ;;  %v21633_v12 = vrot.slane %v21632_v8, 9 }
 0x3d5   :  { %21615 = vst [vmem:[#allocation156_spill] sm:$0xff] %v16480_v52  ;;  %21620 = vst [vmem:[#allocation161_spill] sm:$0xff] %v16490_v4  ;;  %v21630_v55 = vrot.slane %v21629_v5, 9  ;;  %v21635_v15 = vld [vmem:[#allocation204_spill] sm:$0xff] }
 0x3d6   :  { %21622 = vst [vmem:[#allocation158_spill] sm:$0xff] %v16495_v22  ;;  %v16500_v44 = vmax.f32 %v21623_v50, %v21624_v42  ;;  %v16505_v27 = vmax.f32 %v21626_v3, %v21627_v9  ;;  %v16515_v17 = vmax.f32 %v21632_v8, %v21633_v12  ;;  %v21636_v22 = vrot.slane %v21635_v15, 9  ;;  %v21637_v50 = vld [vmem:[#allocation209_spill] sm:$0xff]  ;;  %v21640_v3 = vld [vmem:[#allocation206_spill] sm:$0xff]  ;;  %v21645_v8 = vld [vmem:[#allocation207_spill] sm:$0xff] }
 0x3d7   :  { %v16510_v29 = vmax.f32 %v21629_v5, %v21630_v55  ;;  %v21643_v5 = vrot.slane %v21196_v25, 9 }
 0x3d8   :  { %21625 = vst [vmem:[#allocation159_spill] sm:$0xff] %v16500_v44  ;;  %21628 = vst [vmem:[#allocation162_spill] sm:$0xff] %v16505_v27  ;;  %v16520_v42 = vmax.f32 %v21635_v15, %v21636_v22  ;;  %v21638_v44 = vrot.slane %v21637_v50, 9  ;;  %v21641_v27 = vrot.slane %v21640_v3, 9  ;;  %v21648_v15 = vrot.slane %v21198_v6, 9 }
 0x3d9   :  { %21631 = vst [vmem:[#allocation163_spill] sm:$0xff] %v16510_v29  ;;  %21634 = vst [vmem:[#allocation168_spill] sm:$0xff] %v16515_v17  ;;  %v16535_v12 = vmax.f32 %v21196_v25, %v21643_v5  ;;  %v21646_v17 = vrot.slane %v21645_v8, 9  ;;  %v21655_v5 = vld [vmem:[#allocation211_spill] sm:$0xff] }
 0x3da   :  { %v16525_v9 = vmax.f32 %v21637_v50, %v21638_v44  ;;  %v16530_v55 = vmax.f32 %v21640_v3, %v21641_v27  ;;  %v16545_v44 = vmax.f32 %v21198_v6, %v21648_v15  ;;  %v21650_v50 = vld [vmem:[#allocation210_spill] sm:$0xff]  ;;  %v21653_v3 = vrot.slane %v21199_v24, 9  ;;  %v22040_v33 = vld [vmem:[#allocation155_spill] sm:$0xff] }
 0x3db   :  { %21644 = vst [vmem:[#allocation173_spill] sm:$0xff] %v16535_v12  ;;  %v16540_v22 = vmax.f32 %v21645_v8, %v21646_v17  ;;  %v21656_v12 = vrot.slane %v21655_v5, 9  ;;  %v21658_v8 = vld [vmem:[#allocation216_spill] sm:$0xff]  ;;  %v21660_v15 = vld [vmem:[#allocation214_spill] sm:$0xff] }
 0x3dc   :  { %21639 = vst [vmem:[#allocation166_spill] sm:$0xff] %v16525_v9  ;;  %21642 = vst [vmem:[#allocation169_spill] sm:$0xff] %v16530_v55  ;;  %v21651_v9 = vrot.slane %v21650_v50, 9  ;;  %v16555_v25 = vmax.f32 %v21199_v24, %v21653_v3  ;;  %v21665_v3 = vld [vmem:[#allocation217_spill] sm:$0xff] }
 0x3dd   :  { %21647 = vst [vmem:[#allocation171_spill] sm:$0xff] %v16540_v22  ;;  %21649 = vst [vmem:[#allocation176_spill] sm:$0xff] %v16545_v44  ;;  %v16560_v17 = vmax.f32 %v21655_v5, %v21656_v12  ;;  %v21659_v22 = vrot.slane %v21658_v8, 9  ;;  %v21661_v44 = vrot.slane %v21660_v15, 9  ;;  %v21668_v5 = vld [vmem:[#allocation221_spill] sm:$0xff] }
 0x3de   :  { %v16550_v27 = vmax.f32 %v21650_v50, %v21651_v9  ;;  %21654 = vst [vmem:[#allocation177_spill] sm:$0xff] %v16555_v25  ;;  %v21663_v50 = vrot.slane %v21203_v41, 9  ;;  %v21666_v25 = vrot.slane %v21665_v3, 9 }
 0x3df   :  { %21657 = vst [vmem:[#allocation174_spill] sm:$0xff] %v16560_v17  ;;  %v16565_v6 = vmax.f32 %v21658_v8, %v21659_v22  ;;  %v16570_v9 = vmax.f32 %v21660_v15, %v21661_v44  ;;  %v21671_v8 = vld [vmem:[#allocation219_spill] sm:$0xff]  ;;  %v21674_v15 = vld [vmem:[#allocation224_spill] sm:$0xff]  ;;  %v22144_v17 = vld [vmem:[#allocation89_spill] sm:$0xff] }
 0x3e0   :  { %21652 = vst [vmem:[#allocation172_spill] sm:$0xff] %v16550_v27  ;;  %v16575_v24 = vmax.f32 %v21203_v41, %v21663_v50  ;;  %v16580_v12 = vmax.f32 %v21665_v3, %v21666_v25  ;;  %v21669_v27 = vrot.slane %v21668_v5, 9  ;;  %v21672_v55 = vrot.slane %v21671_v8, 9  ;;  %v21677_v50 = vld [vmem:[#allocation220_spill] sm:$0xff]  ;;  %v21679_v3 = vld [vmem:[#allocation225_spill] sm:$0xff] }
 0x3e1   :  { %21662 = vst [vmem:[#allocation175_spill] sm:$0xff] %v16570_v9  ;;  %v21675_v9 = vrot.slane %v21674_v15, 9 }
 0x3e2   :  { %21664 = vst [vmem:[#allocation178_spill] sm:$0xff] %v16575_v24  ;;  %21667 = vst [vmem:[#allocation179_spill] sm:$0xff] %v16580_v12  ;;  %v16585_v22 = vmax.f32 %v21668_v5, %v21669_v27  ;;  %v16590_v44 = vmax.f32 %v21671_v8, %v21672_v55  ;;  %v21678_v24 = vrot.slane %v21677_v50, 9  ;;  %v21680_v12 = vrot.slane %v21679_v3, 9  ;;  %v21682_v5 = vld [vmem:[#allocation222_spill] sm:$0xff] }
 0x3e3   :  { %v16595_v41 = vmax.f32 %v21674_v15, %v21675_v9  ;;  %v21685_v8 = vrot.slane %v21208_v59, 9  ;;  %v21687_v15 = vld [vmem:[#allocation223_spill] sm:$0xff] }
 0x3e4   :  { %21670 = vst [vmem:[#allocation184_spill] sm:$0xff] %v16585_v22  ;;  %21673 = vst [vmem:[#allocation182_spill] sm:$0xff] %v16590_v44  ;;  %v16600_v25 = vmax.f32 %v21677_v50, %v21678_v24  ;;  %v16605_v27 = vmax.f32 %v21679_v3, %v21680_v12  ;;  %v21683_v22 = vrot.slane %v21682_v5, 9  ;;  %v21690_v50 = vrot.slane %v21210_v21, 9  ;;  %v21692_v3 = vld [vmem:[#allocation226_spill] sm:$0xff] }
 0x3e5   :  { %21676 = vst [vmem:[#allocation185_spill] sm:$0xff] %v16595_v41  ;;  %v16615_v9 = vmax.f32 %v21208_v59, %v21685_v8  ;;  %v21688_v41 = vrot.slane %v21687_v15, 9  ;;  %v21697_v8 = vld [vmem:[#allocation227_spill] sm:$0xff] }
 0x3e6   :  { %21681 = vst [vmem:[#allocation189_spill] sm:$0xff] %v16605_v27  ;;  %v16610_v55 = vmax.f32 %v21682_v5, %v21683_v22  ;;  %v16625_v12 = vmax.f32 %v21210_v21, %v21690_v50  ;;  %v21693_v27 = vrot.slane %v21692_v3, 9  ;;  %v21695_v5 = vrot.slane %v21211_v36, 9  ;;  %v21702_v50 = vld [vmem:[#allocation230_spill] sm:$0xff] }
 0x3e7   :  { %21686 = vst [vmem:[#allocation192_spill] sm:$0xff] %v16615_v9  ;;  %v16620_v24 = vmax.f32 %v21687_v15, %v21688_v41  ;;  %v21698_v9 = vrot.slane %v21697_v8, 9  ;;  %v21700_v15 = vld [vmem:[#allocation232_spill] sm:$0xff] }
 0x3e8   :  { %21684 = vst [vmem:[#allocation187_spill] sm:$0xff] %v16610_v55  ;;  %21691 = vst [vmem:[#allocation193_spill] sm:$0xff] %v16625_v12  ;;  %v16630_v22 = vmax.f32 %v21692_v3, %v21693_v27  ;;  %v16635_v59 = vmax.f32 %v21211_v36, %v21695_v5  ;;  %v21703_v12 = vrot.slane %v21702_v50, 9  ;;  %v21705_v3 = vrot.slane %v21215_v51, 9  ;;  %v21707_v5 = vld [vmem:[#allocation233_spill] sm:$0xff]  ;;  %v22052_v52 = vld [vmem:[#allocation172_spill] sm:$0xff] }
 0x3e9   :  { %21689 = vst [vmem:[#allocation188_spill] sm:$0xff] %v16620_v24  ;;  %v16640_v41 = vmax.f32 %v21697_v8, %v21698_v9  ;;  %v21701_v24 = vrot.slane %v21700_v15, 9  ;;  %v21710_v8 = vld [vmem:[#allocation237_spill] sm:$0xff] }
 0x3ea   :  { %21694 = vst [vmem:[#allocation190_spill] sm:$0xff] %v16630_v22  ;;  %21696 = vst [vmem:[#allocation191_spill] sm:$0xff] %v16635_v59  ;;  %v16650_v27 = vmax.f32 %v21702_v50, %v21703_v12  ;;  %v16655_v36 = vmax.f32 %v21215_v51, %v21705_v3  ;;  %v21708_v59 = vrot.slane %v21707_v5, 9  ;;  %v21711_v22 = vrot.slane %v21710_v8, 9  ;;  %v21716_v50 = vld [vmem:[#allocation240_spill] sm:$0xff] }
 0x3eb   :  { %21699 = vst [vmem:[#allocation194_spill] sm:$0xff] %v16640_v41  ;;  %v16645_v21 = vmax.f32 %v21700_v15, %v21701_v24  ;;  %v21713_v15 = vld [vmem:[#allocation235_spill] sm:$0xff]  ;;  %v21719_v3 = vld [vmem:[#allocation236_spill] sm:$0xff] }
 0x3ec   :  { %21704 = vst [vmem:[#allocation195_spill] sm:$0xff] %v16650_v27  ;;  %21706 = vst [vmem:[#allocation200_spill] sm:$0xff] %v16655_v36  ;;  %v16660_v9 = vmax.f32 %v21707_v5, %v21708_v59  ;;  %v16665_v24 = vmax.f32 %v21710_v8, %v21711_v22  ;;  %v21714_v55 = vrot.slane %v21713_v15, 9  ;;  %v21717_v27 = vrot.slane %v21716_v50, 9  ;;  %v21722_v5 = vld [vmem:[#allocation241_spill] sm:$0xff]  ;;  %v21725_v8 = vld [vmem:[#allocation238_spill] sm:$0xff] }
 0x3ed   :  { %v21720_v36 = vrot.slane %v21719_v3, 9 }
 0x3ee   :  { %21709 = vst [vmem:[#allocation198_spill] sm:$0xff] %v16660_v9  ;;  %21712 = vst [vmem:[#allocation201_spill] sm:$0xff] %v16665_v24  ;;  %v16670_v12 = vmax.f32 %v21713_v15, %v21714_v55  ;;  %v16675_v51 = vmax.f32 %v21716_v50, %v21717_v27  ;;  %v21723_v9 = vrot.slane %v21722_v5, 9  ;;  %v21726_v24 = vrot.slane %v21725_v8, 9  ;;  %v21730_v50 = vld [vmem:[#allocation239_spill] sm:$0xff] }
 0x3ef   :  { %v16680_v59 = vmax.f32 %v21719_v3, %v21720_v36  ;;  %v21728_v15 = vrot.slane %v21220_v7, 9  ;;  %v21733_v3 = vrot.slane %v21222_v49, 9 }
 0x3f0   :  { %21715 = vst [vmem:[#allocation205_spill] sm:$0xff] %v16670_v12  ;;  %21718 = vst [vmem:[#allocation203_spill] sm:$0xff] %v16675_v51  ;;  %v16685_v22 = vmax.f32 %v21722_v5, %v21723_v9  ;;  %v16690_v55 = vmax.f32 %v21725_v8, %v21726_v24  ;;  %v21731_v51 = vrot.slane %v21730_v50, 9  ;;  %v21735_v5 = vld [vmem:[#allocation242_spill] sm:$0xff]  ;;  %v21738_v8 = vrot.slane %v21223_v38, 9 }
 0x3f1   :  { %21721 = vst [vmem:[#allocation208_spill] sm:$0xff] %v16680_v59  ;;  %v16695_v27 = vmax.f32 %v21220_v7, %v21728_v15  ;;  %v16705_v9 = vmax.f32 %v21222_v49, %v21733_v3  ;;  %v21740_v15 = vld [vmem:[#allocation243_spill] sm:$0xff]  ;;  %v21746_v3 = vld [vmem:[#allocation246_spill] sm:$0xff]  ;;  %v22146_v59 = vld [vmem:[#allocation96_spill] sm:$0xff] }
 0x3f2   :  { %21724 = vst [vmem:[#allocation204_spill] sm:$0xff] %v16685_v22  ;;  %21727 = vst [vmem:[#allocation209_spill] sm:$0xff] %v16690_v55  ;;  %v16700_v36 = vmax.f32 %v21730_v50, %v21731_v51  ;;  %v21736_v22 = vrot.slane %v21735_v5, 9  ;;  %v16715_v7 = vmax.f32 %v21223_v38, %v21738_v8  ;;  %v21743_v50 = vld [vmem:[#allocation248_spill] sm:$0xff]  ;;  %v21751_v8 = vld [vmem:[#allocation249_spill] sm:$0xff]  ;;  %v22147_v46 = vmax.f32 %v15881_v62, %v22146_v59 }
 0x3f3   :  { %21729 = vst [vmem:[#allocation206_spill] sm:$0xff] %v16695_v27  ;;  %21734 = vst [vmem:[#allocation210_spill] sm:$0xff] %v16705_v9  ;;  %v21741_v27 = vrot.slane %v21740_v15, 9  ;;  %v21747_v9 = vrot.slane %v21746_v3, 9  ;;  %v22158_v62 = vld [vmem:[#allocation135_spill] sm:$0xff] }
 0x3f4   :  { %21732 = vst [vmem:[#allocation207_spill] sm:$0xff] %v16700_v36  ;;  %v16710_v24 = vmax.f32 %v21735_v5, %v21736_v22  ;;  %21739 = vst [vmem:[#allocation216_spill] sm:$0xff] %v16715_v7  ;;  %v21744_v36 = vrot.slane %v21743_v50, 9  ;;  %v21749_v5 = vrot.slane %v21227_v23, 9  ;;  %v21752_v7 = vrot.slane %v21751_v8, 9 }
 0x3f5   :  { %v16720_v51 = vmax.f32 %v21740_v15, %v21741_v27  ;;  %v16730_v22 = vmax.f32 %v21746_v3, %v21747_v9  ;;  %v21754_v15 = vld [vmem:[#allocation253_spill] sm:$0xff]  ;;  %v21760_v3 = vld [vmem:[#allocation256_spill] sm:$0xff]  ;;  %v17333_v48 = vrot.slane %v22147_v46, %v22141_v1 }
 0x3f6   :  { %21737 = vst [vmem:[#allocation211_spill] sm:$0xff] %v16710_v24  ;;  %v16725_v49 = vmax.f32 %v21743_v50, %v21744_v36  ;;  %v16735_v38 = vmax.f32 %v21227_v23, %v21749_v5  ;;  %v16740_v27 = vmax.f32 %v21751_v8, %v21752_v7  ;;  %v21755_v24 = vrot.slane %v21754_v15, 9  ;;  %v21757_v50 = vld [vmem:[#allocation251_spill] sm:$0xff]  ;;  %v21763_v5 = vld [vmem:[#allocation252_spill] sm:$0xff]  ;;  %v21766_v8 = vld [vmem:[#allocation257_spill] sm:$0xff] }
 0x3f7   :  { %21742 = vst [vmem:[#allocation214_spill] sm:$0xff] %v16720_v51  ;;  %21748 = vst [vmem:[#allocation221_spill] sm:$0xff] %v16730_v22  ;;  %v21758_v55 = vrot.slane %v21757_v50, 9  ;;  %v21761_v22 = vrot.slane %v21760_v3, 9 }
 0x3f8   :  { %21745 = vst [vmem:[#allocation217_spill] sm:$0xff] %v16725_v49  ;;  %21750 = vst [vmem:[#allocation219_spill] sm:$0xff] %v16735_v38  ;;  %v16745_v36 = vmax.f32 %v21754_v15, %v21755_v24  ;;  %v21764_v38 = vrot.slane %v21763_v5, 9  ;;  %v21769_v15 = vld [vmem:[#allocation254_spill] sm:$0xff] }
 0x3f9   :  { %21753 = vst [vmem:[#allocation224_spill] sm:$0xff] %v16740_v27  ;;  %v16750_v9 = vmax.f32 %v21757_v50, %v21758_v55  ;;  %v16755_v23 = vmax.f32 %v21760_v3, %v21761_v22  ;;  %v21767_v27 = vrot.slane %v21766_v8, 9  ;;  %v21772_v50 = vld [vmem:[#allocation260_spill] sm:$0xff]  ;;  %v21775_v3 = vld [vmem:[#allocation255_spill] sm:$0xff] }
 0x3fa   :  { %21756 = vst [vmem:[#allocation220_spill] sm:$0xff] %v16745_v36  ;;  %v16760_v7 = vmax.f32 %v21763_v5, %v21764_v38  ;;  %v21770_v36 = vrot.slane %v21769_v15, 9  ;;  %v21778_v5 = vld [vmem:[#allocation261_spill] sm:$0xff] }
 0x3fb   :  { %21759 = vst [vmem:[#allocation225_spill] sm:$0xff] %v16750_v9  ;;  %21762 = vst [vmem:[#allocation222_spill] sm:$0xff] %v16755_v23  ;;  %v16765_v24 = vmax.f32 %v21766_v8, %v21767_v27  ;;  %v21773_v9 = vrot.slane %v21772_v50, 9  ;;  %v21776_v23 = vrot.slane %v21775_v3, 9  ;;  %v21781_v8 = vld [vmem:[#allocation258_spill] sm:$0xff] }
 0x3fc   :  { %21765 = vst [vmem:[#allocation223_spill] sm:$0xff] %v16760_v7  ;;  %v16770_v55 = vmax.f32 %v21769_v15, %v21770_v36  ;;  %v21779_v7 = vrot.slane %v21778_v5, 9  ;;  %v21784_v15 = vld [vmem:[#allocation263_spill] sm:$0xff] }
 0x3fd   :  { %21768 = vst [vmem:[#allocation226_spill] sm:$0xff] %v16765_v24  ;;  %v16775_v22 = vmax.f32 %v21772_v50, %v21773_v9  ;;  %v16780_v38 = vmax.f32 %v21775_v3, %v21776_v23  ;;  %v21782_v24 = vrot.slane %v21781_v8, 9  ;;  %v21787_v50 = vld [vmem:[#allocation259_spill] sm:$0xff]  ;;  %v21790_v3 = vld [vmem:[#allocation264_spill] sm:$0xff] }
 0x3fe   :  { %21771 = vst [vmem:[#allocation227_spill] sm:$0xff] %v16770_v55  ;;  %v16785_v27 = vmax.f32 %v21778_v5, %v21779_v7  ;;  %v21785_v55 = vrot.slane %v21784_v15, 9  ;;  %v21793_v5 = vld [vmem:[#allocation262_spill] sm:$0xff] }
 0x3ff   :  { %21774 = vst [vmem:[#allocation232_spill] sm:$0xff] %v16775_v22  ;;  %21777 = vst [vmem:[#allocation230_spill] sm:$0xff] %v16780_v38  ;;  %v16790_v36 = vmax.f32 %v21781_v8, %v21782_v24  ;;  %v21788_v22 = vrot.slane %v21787_v50, 9  ;;  %v21791_v38 = vrot.slane %v21790_v3, 9  ;;  %v21796_v8 = vld [vmem:[#allocation266_spill] sm:$0xff] }
 0x400   :  { %21780 = vst [vmem:[#allocation233_spill] sm:$0xff] %v16785_v27  ;;  %v16795_v9 = vmax.f32 %v21784_v15, %v21785_v55  ;;  %v21794_v27 = vrot.slane %v21793_v5, 9  ;;  %v21799_v15 = vld [vmem:[#allocation265_spill] sm:$0xff] }
 0x401   :  { %21783 = vst [vmem:[#allocation237_spill] sm:$0xff] %v16790_v36  ;;  %v16800_v23 = vmax.f32 %v21787_v50, %v21788_v22  ;;  %v16805_v7 = vmax.f32 %v21790_v3, %v21791_v38  ;;  %v21797_v36 = vrot.slane %v21796_v8, 9  ;;  %v21802_v50 = vld [vmem:[#allocation269_spill] sm:$0xff]  ;;  %v21805_v3 = vld [vmem:[#allocation267_spill] sm:$0xff] }
 0x402   :  { %21786 = vst [vmem:[#allocation235_spill] sm:$0xff] %v16795_v9  ;;  %v16810_v24 = vmax.f32 %v21793_v5, %v21794_v27  ;;  %v21800_v9 = vrot.slane %v21799_v15, 9  ;;  %v21808_v5 = vld [vmem:[#allocation272_spill] sm:$0xff] }
 0x403   :  { %21789 = vst [vmem:[#allocation240_spill] sm:$0xff] %v16800_v23  ;;  %21792 = vst [vmem:[#allocation236_spill] sm:$0xff] %v16805_v7  ;;  %v16815_v55 = vmax.f32 %v21796_v8, %v21797_v36  ;;  %v21803_v23 = vrot.slane %v21802_v50, 9  ;;  %v21806_v7 = vrot.slane %v21805_v3, 9  ;;  %v21811_v8 = vld [vmem:[#allocation268_spill] sm:$0xff] }
 0x404   :  { %21795 = vst [vmem:[#allocation241_spill] sm:$0xff] %v16810_v24  ;;  %v16820_v22 = vmax.f32 %v21799_v15, %v21800_v9  ;;  %v21809_v24 = vrot.slane %v21808_v5, 9  ;;  %v21814_v15 = vld [vmem:[#allocation273_spill] sm:$0xff] }
 0x405   :  { %21798 = vst [vmem:[#allocation238_spill] sm:$0xff] %v16815_v55  ;;  %v16825_v38 = vmax.f32 %v21802_v50, %v21803_v23  ;;  %v16830_v27 = vmax.f32 %v21805_v3, %v21806_v7  ;;  %v21812_v55 = vrot.slane %v21811_v8, 9  ;;  %v21817_v50 = vld [vmem:[#allocation270_spill] sm:$0xff]  ;;  %v21820_v3 = vld [vmem:[#allocation276_spill] sm:$0xff] }
 0x406   :  { %21801 = vst [vmem:[#allocation239_spill] sm:$0xff] %v16820_v22  ;;  %v16835_v36 = vmax.f32 %v21808_v5, %v21809_v24  ;;  %v21815_v22 = vrot.slane %v21814_v15, 9  ;;  %v21823_v5 = vld [vmem:[#allocation271_spill] sm:$0xff] }
 0x407   :  { %21804 = vst [vmem:[#allocation242_spill] sm:$0xff] %v16825_v38  ;;  %21807 = vst [vmem:[#allocation243_spill] sm:$0xff] %v16830_v27  ;;  %v16840_v9 = vmax.f32 %v21811_v8, %v21812_v55  ;;  %v21818_v38 = vrot.slane %v21817_v50, 9  ;;  %v21821_v27 = vrot.slane %v21820_v3, 9  ;;  %v21826_v8 = vld [vmem:[#allocation277_spill] sm:$0xff] }
 0x408   :  { %21810 = vst [vmem:[#allocation248_spill] sm:$0xff] %v16835_v36  ;;  %v16845_v23 = vmax.f32 %v21814_v15, %v21815_v22  ;;  %v21824_v36 = vrot.slane %v21823_v5, 9  ;;  %v21829_v15 = vld [vmem:[#allocation274_spill] sm:$0xff] }
 0x409   :  { %21813 = vst [vmem:[#allocation246_spill] sm:$0xff] %v16840_v9  ;;  %v16850_v7 = vmax.f32 %v21817_v50, %v21818_v38  ;;  %v16855_v24 = vmax.f32 %v21820_v3, %v21821_v27  ;;  %v21827_v9 = vrot.slane %v21826_v8, 9  ;;  %v21832_v50 = vld [vmem:[#allocation97_spill] sm:$0xff]  ;;  %v21835_v3 = vld [vmem:[#allocation275_spill] sm:$0xff] }
 0x40a   :  { %21816 = vst [vmem:[#allocation249_spill] sm:$0xff] %v16845_v23  ;;  %v16860_v55 = vmax.f32 %v21823_v5, %v21824_v36  ;;  %v21830_v23 = vrot.slane %v21829_v15, 9  ;;  %v21838_v5 = vld [vmem:[#allocation279_spill] sm:$0xff] }
 0x40b   :  { %21819 = vst [vmem:[#allocation253_spill] sm:$0xff] %v16850_v7  ;;  %21822 = vst [vmem:[#allocation251_spill] sm:$0xff] %v16855_v24  ;;  %v16865_v22 = vmax.f32 %v21826_v8, %v21827_v9  ;;  %v21833_v7 = vrot.slane %v21832_v50, 9  ;;  %v21836_v24 = vrot.slane %v21835_v3, 9  ;;  %v21841_v8 = vld [vmem:[#allocation278_spill] sm:$0xff] }
 0x40c   :  { %21825 = vst [vmem:[#allocation256_spill] sm:$0xff] %v16860_v55  ;;  %v16870_v38 = vmax.f32 %v21829_v15, %v21830_v23  ;;  %v21839_v55 = vrot.slane %v21838_v5, 9  ;;  %v21844_v15 = vld [vmem:[#allocation281_spill] sm:$0xff] }
 0x40d   :  { %21828 = vst [vmem:[#allocation252_spill] sm:$0xff] %v16865_v22  ;;  %v16875_v27 = vmax.f32 %v21832_v50, %v21833_v7  ;;  %v16880_v36 = vmax.f32 %v21835_v3, %v21836_v24  ;;  %v21842_v22 = vrot.slane %v21841_v8, 9  ;;  %v21847_v50 = vld [vmem:[#allocation280_spill] sm:$0xff] }
 0x40e   :  { %21831 = vst [vmem:[#allocation257_spill] sm:$0xff] %v16870_v38  ;;  %v16885_v9 = vmax.f32 %v21838_v5, %v21839_v55  ;;  %v21845_v38 = vrot.slane %v21844_v15, 9  ;;  %v21850_v3 = vld [vmem:[#allocation284_spill] sm:$0xff]  ;;  %v21853_v5 = vld [vmem:[#allocation282_spill] sm:$0xff] }
 0x40f   :  { %21834 = vst [vmem:[#allocation254_spill] sm:$0xff] %v16875_v27  ;;  %21837 = vst [vmem:[#allocation260_spill] sm:$0xff] %v16880_v36  ;;  %v16890_v23 = vmax.f32 %v21841_v8, %v21842_v22  ;;  %v21848_v27 = vrot.slane %v21847_v50, 9  ;;  %v21851_v36 = vrot.slane %v21850_v3, 9  ;;  %v21856_v8 = vld [vmem:[#allocation287_spill] sm:$0xff] }
 0x410   :  { %21840 = vst [vmem:[#allocation255_spill] sm:$0xff] %v16885_v9  ;;  %v16895_v7 = vmax.f32 %v21844_v15, %v21845_v38  ;;  %v21854_v9 = vrot.slane %v21853_v5, 9  ;;  %v21859_v15 = vld [vmem:[#allocation283_spill] sm:$0xff] }
 0x411   :  { %21843 = vst [vmem:[#allocation261_spill] sm:$0xff] %v16890_v23  ;;  %v16900_v24 = vmax.f32 %v21847_v50, %v21848_v27  ;;  %v16905_v55 = vmax.f32 %v21850_v3, %v21851_v36  ;;  %v21857_v23 = vrot.slane %v21856_v8, 9  ;;  %v21862_v50 = vld [vmem:[#allocation288_spill] sm:$0xff]  ;;  %v21865_v3 = vld [vmem:[#allocation285_spill] sm:$0xff] }
 0x412   :  { %21846 = vst [vmem:[#allocation258_spill] sm:$0xff] %v16895_v7  ;;  %v16910_v22 = vmax.f32 %v21853_v5, %v21854_v9  ;;  %v21860_v7 = vrot.slane %v21859_v15, 9  ;;  %v21868_v5 = vld [vmem:[#allocation291_spill] sm:$0xff] }
 0x413   :  { %21849 = vst [vmem:[#allocation263_spill] sm:$0xff] %v16900_v24  ;;  %21852 = vst [vmem:[#allocation259_spill] sm:$0xff] %v16905_v55  ;;  %v16915_v38 = vmax.f32 %v21856_v8, %v21857_v23  ;;  %v21863_v24 = vrot.slane %v21862_v50, 9  ;;  %v21866_v55 = vrot.slane %v21865_v3, 9  ;;  %v21871_v8 = vld [vmem:[#allocation286_spill] sm:$0xff] }
 0x414   :  { %21855 = vst [vmem:[#allocation264_spill] sm:$0xff] %v16910_v22  ;;  %v16920_v27 = vmax.f32 %v21859_v15, %v21860_v7  ;;  %v21869_v22 = vrot.slane %v21868_v5, 9  ;;  %v21874_v15 = vld [vmem:[#allocation292_spill] sm:$0xff] }
 0x415   :  { %21858 = vst [vmem:[#allocation262_spill] sm:$0xff] %v16915_v38  ;;  %v16925_v36 = vmax.f32 %v21862_v50, %v21863_v24  ;;  %v16930_v9 = vmax.f32 %v21865_v3, %v21866_v55  ;;  %v21872_v38 = vrot.slane %v21871_v8, 9  ;;  %v21877_v50 = vld [vmem:[#allocation289_spill] sm:$0xff]  ;;  %v21880_v3 = vld [vmem:[#allocation294_spill] sm:$0xff] }
 0x416   :  { %21861 = vst [vmem:[#allocation266_spill] sm:$0xff] %v16920_v27  ;;  %v16935_v23 = vmax.f32 %v21868_v5, %v21869_v22  ;;  %v21875_v27 = vrot.slane %v21874_v15, 9  ;;  %v21883_v5 = vld [vmem:[#allocation290_spill] sm:$0xff] }
 0x417   :  { %21864 = vst [vmem:[#allocation265_spill] sm:$0xff] %v16925_v36  ;;  %21867 = vst [vmem:[#allocation269_spill] sm:$0xff] %v16930_v9  ;;  %v16940_v7 = vmax.f32 %v21871_v8, %v21872_v38  ;;  %v21878_v36 = vrot.slane %v21877_v50, 9  ;;  %v21881_v9 = vrot.slane %v21880_v3, 9  ;;  %v21886_v8 = vld [vmem:[#allocation295_spill] sm:$0xff] }
 0x418   :  { %21870 = vst [vmem:[#allocation267_spill] sm:$0xff] %v16935_v23  ;;  %v16945_v24 = vmax.f32 %v21874_v15, %v21875_v27  ;;  %v21884_v23 = vrot.slane %v21883_v5, 9  ;;  %v21889_v15 = vld [vmem:[#allocation293_spill] sm:$0xff] }
 0x419   :  { %21873 = vst [vmem:[#allocation272_spill] sm:$0xff] %v16940_v7  ;;  %v16950_v55 = vmax.f32 %v21877_v50, %v21878_v36  ;;  %v16955_v22 = vmax.f32 %v21880_v3, %v21881_v9  ;;  %v21887_v7 = vrot.slane %v21886_v8, 9  ;;  %v21892_v50 = vld [vmem:[#allocation98_spill] sm:$0xff]  ;;  %v21895_v3 = vld [vmem:[#allocation296_spill] sm:$0xff] }
 0x41a   :  { %21876 = vst [vmem:[#allocation268_spill] sm:$0xff] %v16945_v24  ;;  %v16960_v38 = vmax.f32 %v21883_v5, %v21884_v23  ;;  %v21890_v24 = vrot.slane %v21889_v15, 9  ;;  %v21898_v5 = vld [vmem:[#allocation99_spill] sm:$0xff] }
 0x41b   :  { %21879 = vst [vmem:[#allocation273_spill] sm:$0xff] %v16950_v55  ;;  %21882 = vst [vmem:[#allocation270_spill] sm:$0xff] %v16955_v22  ;;  %v16965_v27 = vmax.f32 %v21886_v8, %v21887_v7  ;;  %v21893_v55 = vrot.slane %v21892_v50, 9  ;;  %v21896_v22 = vrot.slane %v21895_v3, 9  ;;  %v21901_v8 = vld [vmem:[#allocation297_spill] sm:$0xff] }
 0x41c   :  { %21885 = vst [vmem:[#allocation276_spill] sm:$0xff] %v16960_v38  ;;  %v16970_v36 = vmax.f32 %v21889_v15, %v21890_v24  ;;  %v21899_v38 = vrot.slane %v21898_v5, 9  ;;  %v21904_v15 = vld [vmem:[#allocation100_spill] sm:$0xff] }
 0x41d   :  { %21888 = vst [vmem:[#allocation271_spill] sm:$0xff] %v16965_v27  ;;  %v16975_v9 = vmax.f32 %v21892_v50, %v21893_v55  ;;  %v16980_v23 = vmax.f32 %v21895_v3, %v21896_v22  ;;  %v21902_v27 = vrot.slane %v21901_v8, 9  ;;  %v21907_v50 = vld [vmem:[#allocation298_spill] sm:$0xff]  ;;  %v21910_v3 = vld [vmem:[#allocation301_spill] sm:$0xff] }
 0x41e   :  { %21891 = vst [vmem:[#allocation277_spill] sm:$0xff] %v16970_v36  ;;  %v16985_v7 = vmax.f32 %v21898_v5, %v21899_v38  ;;  %v21905_v36 = vrot.slane %v21904_v15, 9  ;;  %v21912_v5 = vld [vmem:[#allocation299_spill] sm:$0xff]  ;;  %v22113_v43 = vld [vmem:[#allocation266_spill] sm:$0xff]  ;;  %v22115_v18 = vld [vmem:[#allocation265_spill] sm:$0xff] }
 0x41f   :  { %21894 = vst [vmem:[#allocation274_spill] sm:$0xff] %v16975_v9  ;;  %21897 = vst [vmem:[#allocation97_spill] sm:$0xff] %v16980_v23  ;;  %v16990_v24 = vmax.f32 %v21901_v8, %v21902_v27  ;;  %v21908_v9 = vrot.slane %v21907_v50, 9  ;;  %v21911_v23 = vrot.slane %v21910_v3, 9  ;;  %v21915_v8 = vld [vmem:[#allocation304_spill] sm:$0xff]  ;;  %v22117_v44 = vld [vmem:[#allocation269_spill] sm:$0xff] }
 0x420   :  { %21900 = vst [vmem:[#allocation275_spill] sm:$0xff] %v16985_v7  ;;  %v16995_v55 = vmax.f32 %v21904_v15, %v21905_v36  ;;  %v21913_v7 = vrot.slane %v21912_v5, 9  ;;  %v21918_v15 = vld [vmem:[#allocation300_spill] sm:$0xff] }
 0x421   :  { %21903 = vst [vmem:[#allocation279_spill] sm:$0xff] %v16990_v24  ;;  %v17000_v22 = vmax.f32 %v21907_v50, %v21908_v9  ;;  %v17005_v38 = vmax.f32 %v21910_v3, %v21911_v23  ;;  %v21916_v24 = vrot.slane %v21915_v8, 9  ;;  %v21921_v50 = vld [vmem:[#allocation305_spill] sm:$0xff]  ;;  %v21924_v3 = vrot.slane %v21282_v32, 9 }
 0x422   :  { %21906 = vst [vmem:[#allocation278_spill] sm:$0xff] %v16995_v55  ;;  %v17010_v27 = vmax.f32 %v21912_v5, %v21913_v7  ;;  %v21919_v55 = vrot.slane %v21918_v15, 9  ;;  %v21926_v5 = vrot.slane %v21283_v54, 9 }
 0x423   :  { %21909 = vst [vmem:[#allocation281_spill] sm:$0xff] %v17000_v22  ;;  %v17015_v36 = vmax.f32 %v21915_v8, %v21916_v24  ;;  %v21922_v22 = vrot.slane %v21921_v50, 9  ;;  %v17030_v7 = vmax.f32 %v21282_v32, %v21924_v3  ;;  %v21928_v8 = vld [vmem:[#allocation303_spill] sm:$0xff]  ;;  %v21935_v3 = vrot.slane %v21287_v2, 9 }
 0x424   :  { %21914 = vst [vmem:[#allocation280_spill] sm:$0xff] %v17010_v27  ;;  %v17020_v9 = vmax.f32 %v21918_v15, %v21919_v55  ;;  %v17035_v24 = vmax.f32 %v21283_v54, %v21926_v5  ;;  %v21931_v15 = vrot.slane %v21285_v63, 9  ;;  %v21937_v5 = vrot.slane %v21288_v11, 9 }
 0x425   :  { %21917 = vst [vmem:[#allocation284_spill] sm:$0xff] %v17015_v36  ;;  %v17025_v23 = vmax.f32 %v21921_v50, %v21922_v22  ;;  %21925 = vst [vmem:[#allocation283_spill] sm:$0xff] %v17030_v7  ;;  %v21929_v36 = vrot.slane %v21928_v8, 9  ;;  %v21933_v50 = vrot.slane %v21286_v19, 9  ;;  %v17055_v54 = vmax.f32 %v21287_v2, %v21935_v3  ;;  %v21947_v3 = vld [vmem:[#allocation73_spill] sm:$0xff] }
 0x426   :  { %21920 = vst [vmem:[#allocation282_spill] sm:$0xff] %v17020_v9  ;;  %21927 = vst [vmem:[#allocation288_spill] sm:$0xff] %v17035_v24  ;;  %v17045_v22 = vmax.f32 %v21285_v63, %v21931_v15  ;;  %v21942_v15 = vrot.slane %v21290_v53, 9  ;;  %v21971_v9 = vld [vmem:[#allocation213_spill] sm:$0xff] }
 0x427   :  { %21923 = vst [vmem:[#allocation287_spill] sm:$0xff] %v17025_v23  ;;  %v17040_v55 = vmax.f32 %v21928_v8, %v21929_v36  ;;  %v17050_v32 = vmax.f32 %v21286_v19, %v21933_v50  ;;  %21936 = vst [vmem:[#allocation292_spill] sm:$0xff] %v17055_v54  ;;  %v17060_v36 = vmax.f32 %v21288_v11, %v21937_v5  ;;  %v21939_v8 = vld [vmem:[#allocation311_spill] sm:$0xff]  ;;  %v21944_v50 = vld [vmem:[#allocation312_spill] sm:$0xff] }
 0x428   :  { %21932 = vst [vmem:[#allocation291_spill] sm:$0xff] %v17045_v22  ;;  %v21940_v24 = vrot.slane %v21939_v8, 9  ;;  %v17070_v19 = vmax.f32 %v21290_v53, %v21942_v15  ;;  %v21945_v7 = vrot.slane %v21944_v50, 9  ;;  %v21948_v11 = vld [vmem:[#allocation105_spill] sm:$0xff]  ;;  %v21959_v5 = vld [vmem:[#allocation148_spill] sm:$0xff]  ;;  %v22008_v15 = vld [vmem:[#allocation123_spill] sm:$0xff]  ;;  %v22143_v22 = vmax.f32 %v21947_v3, %v22142_v37 }
 0x429   :  { %21930 = vst [vmem:[#allocation285_spill] sm:$0xff] %v17040_v55  ;;  %21934 = vst [vmem:[#allocation286_spill] sm:$0xff] %v17050_v32  ;;  %v22021_v54 = vld [vmem:[#allocation130_spill] sm:$0xff]  ;;  %v22055_v23 = vld [vmem:[#allocation189_spill] sm:$0xff]  ;;  %v22145_v27 = vmax.f32 %v21948_v11, %v22144_v17 }
 0x42a   :  { %21938 = vst [vmem:[#allocation289_spill] sm:$0xff] %v17060_v36  ;;  %v17065_v63 = vmax.f32 %v21939_v8, %v21940_v24  ;;  %21943 = vst [vmem:[#allocation290_spill] sm:$0xff] %v17070_v19  ;;  %v17075_v2 = vmax.f32 %v21944_v50, %v21945_v7  ;;  %v21956_v50 = vld [vmem:[#allocation88_spill] sm:$0xff]  ;;  %v21960_v24 = vld [vmem:[#allocation149_spill] sm:$0xff]  ;;  %v17321_v53 = vrot.slane %v22143_v22, %v22141_v1 }
 0x42b   :  { %v21983_v8 = vld [vmem:[#allocation306_spill] sm:$0xff]  ;;  %v22007_v36 = vld [vmem:[#allocation121_spill] sm:$0xff]  ;;  %v22009_v19 = vld [vmem:[#allocation119_spill] sm:$0xff]  ;;  %v17327_v4 = vrot.slane %v22145_v27, %v22141_v1  ;;  %v22159_v46 = vmax.f32 %v21956_v50, %v22158_v62 }
 0x42c   :  { %21941 = vst [vmem:[#allocation294_spill] sm:$0xff] %v17065_v63  ;;  %21946 = vst [vmem:[#allocation295_spill] sm:$0xff] %v17075_v2  ;;  %v21950_v63 = vld [vmem:[#allocation76_spill] sm:$0xff]  ;;  %v22043_v32 = vld [vmem:[#allocation166_spill] sm:$0xff] }
 0x42d   :  { %v22022_v7 = vld [vmem:[#allocation140_spill] sm:$0xff]  ;;  %v22134_v51 = vld [vmem:[#allocation282_spill] sm:$0xff]  ;;  %v22148_v55 = vld [vmem:[#allocation125_spill] sm:$0xff]  ;;  %v17357_v59 = vrot.slane %v22159_v46, %v22141_v1 }
 0x42e   :  { %v22130_v12 = vld [vmem:[#allocation280_spill] sm:$0xff]  ;;  %v22149_v47 = vmax.f32 %v21950_v63, %v22148_v55  ;;  %v22150_v37 = vld [vmem:[#allocation75_spill] sm:$0xff]  ;;  %v22154_v17 = vld [vmem:[#allocation114_spill] sm:$0xff] }
 0x42f   :  { %v22132_v2 = vld [vmem:[#allocation284_spill] sm:$0xff]  ;;  %v22155_v27 = vld [vmem:[#allocation133_spill] sm:$0xff]  ;;  %22160 = vst [vmem:[#allocation296_spill] sm:$0xff] %v17357_v59  ;;  %v22169_v50 = vld [vmem:[#allocation151_spill] sm:$0xff] }
 0x430   :  { %v22129_v29 = vld [vmem:[#allocation286_spill] sm:$0xff]  ;;  %v17339_v60 = vrot.slane %v22149_v47, %v22141_v1  ;;  %v22151_v22 = vld [vmem:[#allocation132_spill] sm:$0xff]  ;;  %v22156_v11 = vmax.f32 %v22154_v17, %v22155_v27  ;;  %v22161_v47 = vld [vmem:[#allocation115_spill] sm:$0xff] }
 0x431   :  { %v22133_v41 = vld [vmem:[#allocation289_spill] sm:$0xff]  ;;  %v22152_v3 = vmax.f32 %v22150_v37, %v22151_v22  ;;  %v22165_v37 = vld [vmem:[#allocation180_spill] sm:$0xff]  ;;  %v22170_v62 = vld [vmem:[#allocation183_spill] sm:$0xff] }
 0x432   :  { %v17351_v58 = vrot.slane %v22156_v11, %v22141_v1  ;;  %v22162_v55 = vld [vmem:[#allocation141_spill] sm:$0xff]  ;;  %v22166_v22 = vmax.f32 %v21959_v5, %v22165_v37  ;;  %v22171_v46 = vmax.f32 %v22169_v50, %v22170_v62  ;;  %v22176_v5 = vld [vmem:[#allocation164_spill] sm:$0xff]  ;;  %v22184_v50 = vld [vmem:[#allocation199_spill] sm:$0xff] }
 0x433   :  { %v17345_v13 = vrot.slane %v22152_v3, %v22141_v1  ;;  %v22163_v63 = vmax.f32 %v22161_v47, %v22162_v55  ;;  %v22167_v17 = vld [vmem:[#allocation181_spill] sm:$0xff]  ;;  %v22172_v47 = vld [vmem:[#allocation154_spill] sm:$0xff]  ;;  %v22177_v37 = vld [vmem:[#allocation196_spill] sm:$0xff]  ;;  %v22185_v62 = vmax.f32 %v21967_v31, %v22184_v50 }
 0x434   :  { %22157 = vst [vmem:[#allocation98_spill] sm:$0xff] %v17351_v58  ;;  %v17369_v3 = vrot.slane %v22166_v22, %v22141_v1  ;;  %v22168_v27 = vmax.f32 %v21960_v24, %v22167_v17  ;;  %v17381_v59 = vrot.slane %v22171_v46, %v22141_v1  ;;  %v22173_v55 = vld [vmem:[#allocation186_spill] sm:$0xff]  ;;  %v22178_v22 = vmax.f32 %v22176_v5, %v22177_v37  ;;  %v22180_v24 = vld [vmem:[#allocation165_spill] sm:$0xff]  ;;  %v22191_v5 = vld [vmem:[#allocation244_spill] sm:$0xff] }
 0x435   :  { %22153 = vst [vmem:[#allocation293_spill] sm:$0xff] %v17345_v13  ;;  %v17363_v49 = vrot.slane %v22163_v63, %v22141_v1  ;;  %v22174_v63 = vmax.f32 %v22172_v47, %v22173_v55  ;;  %v22181_v17 = vld [vmem:[#allocation197_spill] sm:$0xff]  ;;  %v17405_v46 = vrot.slane %v22185_v62, %v22141_v1  ;;  %v22187_v47 = vld [vmem:[#allocation170_spill] sm:$0xff]  ;;  %v22192_v37 = vmax.f32 %v21970_v35, %v22191_v5  ;;  %v22194_v31 = vld [vmem:[#allocation215_spill] sm:$0xff] }
 0x436   :  { %v17375_v11 = vrot.slane %v22168_v27, %v22141_v1  ;;  %v17393_v58 = vrot.slane %v22178_v22, %v22141_v1  ;;  %v22182_v27 = vmax.f32 %v22180_v24, %v22181_v17  ;;  %v22188_v55 = vld [vmem:[#allocation202_spill] sm:$0xff]  ;;  %v22193_v24 = vmax.f32 %v21971_v9, %v16076_v30  ;;  %v22200_v35 = vld [vmem:[#allocation228_spill] sm:$0xff]  ;;  %v22204_v30 = vld [vmem:[#allocation229_spill] sm:$0xff] }
 0x437   :  { %22164 = vst [vmem:[#allocation99_spill] sm:$0xff] %v17363_v49  ;;  %v17387_v49 = vrot.slane %v22174_v63, %v22141_v1  ;;  %22186 = vst [vmem:[#allocation301_spill] sm:$0xff] %v17405_v46  ;;  %v22189_v63 = vmax.f32 %v22187_v47, %v22188_v55  ;;  %v17417_v22 = vrot.slane %v22192_v37, %v22141_v1  ;;  %v22197_v47 = vld [vmem:[#allocation218_spill] sm:$0xff]  ;;  %v22198_v55 = vld [vmem:[#allocation247_spill] sm:$0xff] }
 0x438   :  { %22179 = vst [vmem:[#allocation100_spill] sm:$0xff] %v17393_v58  ;;  %v17399_v13 = vrot.slane %v22182_v27, %v22141_v1  ;;  %v17423_v17 = vrot.slane %v22193_v24, %v22141_v1  ;;  %v22195_v27 = vld [vmem:[#allocation245_spill] sm:$0xff]  ;;  %v22201_v5 = vld [vmem:[#allocation250_spill] sm:$0xff] }
 0x439   :  { %22175 = vst [vmem:[#allocation297_spill] sm:$0xff] %v17387_v49  ;;  %v17411_v49 = vrot.slane %v22189_v63, %v22141_v1  ;;  %v22196_v50 = vmax.f32 %v22194_v31, %v22195_v27  ;;  %v22199_v63 = vmax.f32 %v22197_v47, %v22198_v55  ;;  %v22202_v37 = vmax.f32 %v22200_v35, %v22201_v5  ;;  %v22205_v9 = vld [vmem:[#allocation302_spill] sm:$0xff]  ;;  %v22208_v31 = vld [vmem:[#allocation101_spill] sm:$0xff]  ;;  %v22212_v55 = vld [vmem:[#allocation307_spill] sm:$0xff] }
 0x43a   :  { %22183 = vst [vmem:[#allocation298_spill] sm:$0xff] %v17399_v13  ;;  %v22206_v24 = vmax.f32 %v22204_v30, %v22205_v9  ;;  %v22209_v27 = vmax.f32 %v21980_v14, %v22208_v31  ;;  %v22211_v47 = vld [vmem:[#allocation234_spill] sm:$0xff]  ;;  %v22217_v30 = vmax.f32 %v21983_v8, %v16156_v56  ;;  %v22218_v14 = vld [vmem:[#allocation309_spill] sm:$0xff]  ;;  %v22228_v8 = vld [vmem:[#allocation72_spill] sm:$0xff] }
 0x43b   :  { %22190 = vst [vmem:[#allocation299_spill] sm:$0xff] %v17411_v49  ;;  %v17429_v62 = vrot.slane %v22196_v50, %v22141_v1  ;;  %v17435_v49 = vrot.slane %v22199_v63, %v22141_v1  ;;  %v17441_v46 = vrot.slane %v22202_v37, %v22141_v1  ;;  %v22213_v63 = vmax.f32 %v22211_v47, %v22212_v55  ;;  %v22215_v35 = vld [vmem:[#allocation70_spill] sm:$0xff]  ;;  %v22221_v47 = vld [vmem:[#allocation308_spill] sm:$0xff]  ;;  %v22222_v55 = vld [vmem:[#allocation109_spill] sm:$0xff] }
 0x43c   :  { %v17447_v13 = vrot.slane %v22206_v24, %v22141_v1  ;;  %v17453_v50 = vrot.slane %v22209_v27, %v22141_v1  ;;  %v22216_v5 = vmax.f32 %v16111_v39, %v22215_v35  ;;  %v17471_v9 = vrot.slane %v22217_v30, %v22141_v1  ;;  %v22219_v24 = vld [vmem:[#allocation103_spill] sm:$0xff]  ;;  %v22224_v39 = vld [vmem:[#allocation310_spill] sm:$0xff]  ;;  %v22225_v35 = vld [vmem:[#allocation108_spill] sm:$0xff] }
 0x43d   :  { %22203 = vst [vmem:[#allocation304_spill] sm:$0xff] %v17441_v46  ;;  %v17459_v58 = vrot.slane %v22213_v63, %v22141_v1  ;;  %v22220_v31 = vmax.f32 %v22218_v14, %v22219_v24  ;;  %v22223_v63 = vmax.f32 %v22221_v47, %v22222_v55  ;;  %v22227_v56 = vld [vmem:[#allocation102_spill] sm:$0xff]  ;;  %v22234_v47 = vld [vmem:[#allocation104_spill] sm:$0xff] }
 0x43e   :  { %22207 = vst [vmem:[#allocation300_spill] sm:$0xff] %v17447_v13  ;;  %22210 = vst [vmem:[#allocation305_spill] sm:$0xff] %v17453_v50  ;;  %v17465_v37 = vrot.slane %v22216_v5, %v22141_v1  ;;  %v22226_v5 = vmax.f32 %v22224_v39, %v22225_v35  ;;  %v22229_v30 = vmax.f32 %v22227_v56, %v22228_v8  ;;  %v22231_v14 = vld [vmem:[#allocation110_spill] sm:$0xff]  ;;  %v22238_v39 = vld [vmem:[#allocation85_spill] sm:$0xff] }
 0x43f   :  { %22214 = vst [vmem:[#allocation303_spill] sm:$0xff] %v17459_v58  ;;  %v17477_v27 = vrot.slane %v22220_v31, %v22141_v1  ;;  %v17483_v58 = vrot.slane %v22223_v63, %v22141_v1  ;;  %v22232_v24 = vmax.f32 %v21992_v34, %v22231_v14  ;;  %v22235_v55 = vld [vmem:[#allocation106_spill] sm:$0xff]  ;;  %v22239_v35 = vmax.f32 %v16191_v28, %v22238_v39  ;;  %v22241_v56 = vld [vmem:[#allocation71_spill] sm:$0xff]  ;;  %v22242_v8 = vld [vmem:[#allocation81_spill] sm:$0xff] }
 0x440   :  { %v17489_v50 = vrot.slane %v22226_v5, %v22141_v1  ;;  %v17495_v13 = vrot.slane %v22229_v30, %v22141_v1  ;;  %v22236_v63 = vmax.f32 %v22234_v47, %v22235_v55  ;;  %v22243_v30 = vmax.f32 %v22241_v56, %v22242_v8  ;;  %v22245_v34 = vld [vmem:[#allocation74_spill] sm:$0xff]  ;;  %v22246_v14 = vld [vmem:[#allocation79_spill] sm:$0xff]  ;;  %v22255_v56 = vld [vmem:[#allocation80_spill] sm:$0xff] }
 0x441   :  { %v17501_v31 = vrot.slane %v22232_v24, %v22141_v1  ;;  %v17513_v5 = vrot.slane %v22239_v35, %v22141_v1  ;;  %v22247_v24 = vmax.f32 %v22245_v34, %v22246_v14  ;;  %v22248_v47 = vld [vmem:[#allocation78_spill] sm:$0xff]  ;;  %v22249_v55 = vld [vmem:[#allocation111_spill] sm:$0xff]  ;;  %v22256_v8 = vld [vmem:[#allocation116_spill] sm:$0xff] }
 0x442   :  { %22230 = vst [vmem:[#allocation311_spill] sm:$0xff] %v17495_v13  ;;  %v17507_v46 = vrot.slane %v22236_v63, %v22141_v1  ;;  %v17519_v13 = vrot.slane %v22243_v30, %v22141_v1  ;;  %v22250_v63 = vmax.f32 %v22248_v47, %v22249_v55  ;;  %v22252_v28 = vld [vmem:[#allocation82_spill] sm:$0xff]  ;;  %v22257_v30 = vmax.f32 %v22255_v56, %v22256_v8  ;;  %v22259_v34 = vld [vmem:[#allocation113_spill] sm:$0xff] }
 0x443   :  { %22233 = vst [vmem:[#allocation312_spill] sm:$0xff] %v17501_v31  ;;  %22240 = vst [vmem:[#allocation105_spill] sm:$0xff] %v17513_v5  ;;  %v17525_v31 = vrot.slane %v22247_v24, %v22141_v1  ;;  %v22253_v39 = vld [vmem:[#allocation86_spill] sm:$0xff]  ;;  %v22260_v14 = vmax.f32 %v22004_v45, %v22259_v34  ;;  %v22262_v47 = vld [vmem:[#allocation77_spill] sm:$0xff]  ;;  %v22268_v56 = vmax.f32 %v22009_v19, %v22008_v15 }
 0x444   :  { %22237 = vst [vmem:[#allocation73_spill] sm:$0xff] %v17507_v46  ;;  %22244 = vst [vmem:[#allocation76_spill] sm:$0xff] %v17519_v13  ;;  %v17531_v46 = vrot.slane %v22250_v63, %v22141_v1  ;;  %v22254_v35 = vmax.f32 %v22252_v28, %v22253_v39  ;;  %v17543_v13 = vrot.slane %v22257_v30, %v22141_v1  ;;  %v22263_v55 = vld [vmem:[#allocation117_spill] sm:$0xff]  ;;  %v22266_v28 = vld [vmem:[#allocation92_spill] sm:$0xff] }
 0x445   :  { %v17549_v24 = vrot.slane %v22260_v14, %v22141_v1  ;;  %v22264_v63 = vmax.f32 %v22262_v47, %v22263_v55  ;;  %v22267_v39 = vmax.f32 %v22007_v36, %v22266_v28  ;;  %v17567_v8 = vrot.slane %v22268_v56, %v22141_v1  ;;  %v22269_v45 = vld [vmem:[#allocation120_spill] sm:$0xff]  ;;  %v22270_v30 = vld [vmem:[#allocation95_spill] sm:$0xff]  ;;  %v22273_v55 = vld [vmem:[#allocation126_spill] sm:$0xff] }
 0x446   :  { %22251 = vst [vmem:[#allocation88_spill] sm:$0xff] %v17531_v46  ;;  %v17537_v5 = vrot.slane %v22254_v35, %v22141_v1  ;;  %22258 = vst [vmem:[#allocation148_spill] sm:$0xff] %v17543_v13  ;;  %v22271_v34 = vmax.f32 %v22269_v45, %v22270_v30  ;;  %v22272_v47 = vld [vmem:[#allocation91_spill] sm:$0xff]  ;;  %v22276_v36 = vld [vmem:[#allocation90_spill] sm:$0xff] }
 0x447   :  { %22261 = vst [vmem:[#allocation149_spill] sm:$0xff] %v17549_v24  ;;  %v17555_v46 = vrot.slane %v22264_v63, %v22141_v1  ;;  %v17561_v35 = vrot.slane %v22267_v39, %v22141_v1  ;;  %v22274_v63 = vmax.f32 %v22272_v47, %v22273_v55  ;;  %v22277_v28 = vld [vmem:[#allocation124_spill] sm:$0xff]  ;;  %v22279_v19 = vld [vmem:[#allocation122_spill] sm:$0xff]  ;;  %v22280_v15 = vld [vmem:[#allocation129_spill] sm:$0xff] }
 0x448   :  { %v17573_v14 = vrot.slane %v22271_v34, %v22141_v1  ;;  %v22278_v39 = vmax.f32 %v22276_v36, %v22277_v28  ;;  %v22281_v56 = vmax.f32 %v22279_v19, %v22280_v15  ;;  %v22283_v45 = vld [vmem:[#allocation127_spill] sm:$0xff]  ;;  %v22286_v47 = vld [vmem:[#allocation93_spill] sm:$0xff]  ;;  %v22287_v55 = vld [vmem:[#allocation128_spill] sm:$0xff]  ;;  %v22292_v19 = vmax.f32 %v22021_v54, %v16405_v10 }
 0x449   :  { %22265 = vst [vmem:[#allocation167_spill] sm:$0xff] %v17555_v46  ;;  %v17579_v46 = vrot.slane %v22274_v63, %v22141_v1  ;;  %v22284_v30 = vmax.f32 %v22018_v20, %v22283_v45  ;;  %v22288_v63 = vmax.f32 %v22286_v47, %v22287_v55  ;;  %v22290_v36 = vld [vmem:[#allocation144_spill] sm:$0xff]  ;;  %v22293_v20 = vmax.f32 %v22023_v61, %v22022_v7  ;;  %v22294_v45 = vld [vmem:[#allocation137_spill] sm:$0xff]  ;;  %v22300_v10 = vld [vmem:[#allocation134_spill] sm:$0xff] }
 0x44a   :  { %v17585_v24 = vrot.slane %v22278_v39, %v22141_v1  ;;  %v17591_v13 = vrot.slane %v22281_v56, %v22141_v1  ;;  %v22291_v28 = vmax.f32 %v16357_v40, %v22290_v36  ;;  %v17615_v15 = vrot.slane %v22292_v19, %v22141_v1  ;;  %v22297_v40 = vld [vmem:[#allocation136_spill] sm:$0xff]  ;;  %v22301_v54 = vld [vmem:[#allocation143_spill] sm:$0xff]  ;;  %v22304_v61 = vld [vmem:[#allocation146_spill] sm:$0xff] }
 0x44b   :  { %22275 = vst [vmem:[#allocation212_spill] sm:$0xff] %v17579_v46  ;;  %v17597_v34 = vrot.slane %v22284_v30, %v22141_v1  ;;  %v17603_v46 = vrot.slane %v22288_v63, %v22141_v1  ;;  %v17621_v56 = vrot.slane %v22293_v20, %v22141_v1  ;;  %v22295_v30 = vld [vmem:[#allocation145_spill] sm:$0xff]  ;;  %v22298_v63 = vld [vmem:[#allocation142_spill] sm:$0xff]  ;;  %v22302_v19 = vmax.f32 %v22300_v10, %v22301_v54 }
 0x44c   :  { %22282 = vst [vmem:[#allocation213_spill] sm:$0xff] %v17591_v13  ;;  %v17609_v39 = vrot.slane %v22291_v28, %v22141_v1  ;;  %v22296_v47 = vmax.f32 %v22294_v45, %v22295_v30  ;;  %v22299_v36 = vmax.f32 %v22297_v40, %v22298_v63  ;;  %v22305_v7 = vmax.f32 %v22030_v0, %v22304_v61  ;;  %v22307_v45 = vld [vmem:[#allocation138_spill] sm:$0xff]  ;;  %v22308_v30 = vld [vmem:[#allocation147_spill] sm:$0xff]  ;;  %v22311_v40 = vld [vmem:[#allocation156_spill] sm:$0xff] }
 0x44d   :  { %22285 = vst [vmem:[#allocation231_spill] sm:$0xff] %v17597_v34  ;;  %22289 = vst [vmem:[#allocation306_spill] sm:$0xff] %v17603_v46  ;;  %v17639_v46 = vrot.slane %v22302_v19, %v22141_v1  ;;  %v22312_v63 = vmax.f32 %v16440_v16, %v22311_v40  ;;  %v22313_v10 = vmax.f32 %v16445_v26, %v16485_v57  ;;  %v22314_v0 = vld [vmem:[#allocation152_spill] sm:$0xff]  ;;  %v22315_v19 = vld [vmem:[#allocation161_spill] sm:$0xff] }
 0x44e   :  { %v17627_v55 = vrot.slane %v22296_v47, %v22141_v1  ;;  %v17633_v28 = vrot.slane %v22299_v36, %v22141_v1  ;;  %v17645_v20 = vrot.slane %v22305_v7, %v22141_v1  ;;  %v22309_v47 = vmax.f32 %v22307_v45, %v22308_v30  ;;  %v22317_v45 = vld [vmem:[#allocation150_spill] sm:$0xff]  ;;  %v22320_v16 = vld [vmem:[#allocation153_spill] sm:$0xff]  ;;  %v22321_v40 = vld [vmem:[#allocation159_spill] sm:$0xff] }
 0x44f   :  { %22303 = vst [vmem:[#allocation107_spill] sm:$0xff] %v17639_v46  ;;  %v17657_v36 = vrot.slane %v22312_v63, %v22141_v1  ;;  %v17663_v54 = vrot.slane %v22313_v10, %v22141_v1  ;;  %v22316_v61 = vmax.f32 %v22314_v0, %v22315_v19  ;;  %v22318_v30 = vld [vmem:[#allocation158_spill] sm:$0xff]  ;;  %v22322_v63 = vmax.f32 %v22320_v16, %v22321_v40  ;;  %v22323_v26 = vld [vmem:[#allocation157_spill] sm:$0xff]  ;;  %v22326_v0 = vld [vmem:[#allocation163_spill] sm:$0xff] }
 0x450   :  { %22306 = vst [vmem:[#allocation87_spill] sm:$0xff] %v17645_v20  ;;  %v17651_v34 = vrot.slane %v22309_v47, %v22141_v1  ;;  %v22319_v47 = vmax.f32 %v22317_v45, %v22318_v30  ;;  %v22324_v57 = vld [vmem:[#allocation162_spill] sm:$0xff]  ;;  %v22327_v19 = vmax.f32 %v22040_v33, %v22326_v0  ;;  %v22328_v45 = vld [vmem:[#allocation160_spill] sm:$0xff]  ;;  %v22337_v33 = vld [vmem:[#allocation169_spill] sm:$0xff] }
 0x451   :  { %v17669_v7 = vrot.slane %v22316_v61, %v22141_v1  ;;  %v17681_v20 = vrot.slane %v22322_v63, %v22141_v1  ;;  %v22325_v10 = vmax.f32 %v22323_v26, %v22324_v57  ;;  %v22329_v30 = vld [vmem:[#allocation168_spill] sm:$0xff]  ;;  %v22332_v16 = vld [vmem:[#allocation174_spill] sm:$0xff]  ;;  %v22335_v26 = vmax.f32 %v22043_v32, %v16565_v6 }
 0x452   :  { %22310 = vst [vmem:[#allocation121_spill] sm:$0xff] %v17651_v34  ;;  %v17675_v34 = vrot.slane %v22319_v47, %v22141_v1  ;;  %v17693_v61 = vrot.slane %v22327_v19, %v22141_v1  ;;  %v22330_v47 = vmax.f32 %v22328_v45, %v22329_v30  ;;  %v22333_v40 = vmax.f32 %v16520_v42, %v22332_v16  ;;  %v22340_v45 = vld [vmem:[#allocation173_spill] sm:$0xff]  ;;  %v22341_v30 = vld [vmem:[#allocation178_spill] sm:$0xff]  ;;  %v22344_v42 = vld [vmem:[#allocation171_spill] sm:$0xff] }
 0x453   :  { %v17687_v46 = vrot.slane %v22325_v10, %v22141_v1  ;;  %v17711_v57 = vrot.slane %v22335_v26, %v22141_v1  ;;  %v22338_v10 = vld [vmem:[#allocation175_spill] sm:$0xff]  ;;  %v22348_v6 = vld [vmem:[#allocation176_spill] sm:$0xff] }
 0x454   :  { %v17699_v13 = vrot.slane %v22330_v47, %v22141_v1  ;;  %v17705_v63 = vrot.slane %v22333_v40, %v22141_v1  ;;  %v22339_v0 = vmax.f32 %v22337_v33, %v22338_v10  ;;  %v22342_v47 = vmax.f32 %v22340_v45, %v22341_v30  ;;  %v22345_v16 = vld [vmem:[#allocation179_spill] sm:$0xff]  ;;  %v22349_v32 = vld [vmem:[#allocation184_spill] sm:$0xff]  ;;  %v22352_v33 = vld [vmem:[#allocation182_spill] sm:$0xff] }
 0x455   :  { %22336 = vst [vmem:[#allocation94_spill] sm:$0xff] %v17711_v57  ;;  %v22346_v40 = vmax.f32 %v22344_v42, %v22345_v16  ;;  %v22350_v26 = vmax.f32 %v22348_v6, %v22349_v32  ;;  %v22353_v10 = vmax.f32 %v22052_v52, %v22352_v33  ;;  %v22355_v45 = vld [vmem:[#allocation177_spill] sm:$0xff]  ;;  %v22359_v42 = vld [vmem:[#allocation194_spill] sm:$0xff]  ;;  %v22361_v6 = vmax.f32 %v22055_v23, %v16645_v21  ;;  %v22362_v52 = vld [vmem:[#allocation187_spill] sm:$0xff] }
 0x456   :  { %22331 = vst [vmem:[#allocation123_spill] sm:$0xff] %v17699_v13  ;;  %22334 = vst [vmem:[#allocation119_spill] sm:$0xff] %v17705_v63  ;;  %v17717_v19 = vrot.slane %v22339_v0, %v22141_v1  ;;  %v17723_v13 = vrot.slane %v22342_v47, %v22141_v1  ;;  %v22356_v30 = vld [vmem:[#allocation185_spill] sm:$0xff]  ;;  %v22360_v16 = vmax.f32 %v16600_v25, %v22359_v42  ;;  %v22370_v25 = vld [vmem:[#allocation188_spill] sm:$0xff] }
 0x457   :  { %v17729_v63 = vrot.slane %v22346_v40, %v22141_v1  ;;  %v17735_v57 = vrot.slane %v22350_v26, %v22141_v1  ;;  %v17741_v0 = vrot.slane %v22353_v10, %v22141_v1  ;;  %v22357_v47 = vmax.f32 %v22355_v45, %v22356_v30  ;;  %v22363_v26 = vld [vmem:[#allocation195_spill] sm:$0xff]  ;;  %v22366_v45 = vld [vmem:[#allocation192_spill] sm:$0xff]  ;;  %v22371_v42 = vld [vmem:[#allocation198_spill] sm:$0xff] }
 0x458   :  { %22343 = vst [vmem:[#allocation130_spill] sm:$0xff] %v17723_v13  ;;  %v17753_v40 = vrot.slane %v22360_v16, %v22141_v1  ;;  %v17759_v32 = vrot.slane %v22361_v6, %v22141_v1  ;;  %v22364_v33 = vmax.f32 %v22362_v52, %v22363_v26  ;;  %v22367_v30 = vld [vmem:[#allocation200_spill] sm:$0xff]  ;;  %v22372_v16 = vmax.f32 %v22370_v25, %v22371_v42  ;;  %v22374_v21 = vld [vmem:[#allocation193_spill] sm:$0xff]  ;;  %v22378_v52 = vld [vmem:[#allocation190_spill] sm:$0xff] }
 0x459   :  { %22347 = vst [vmem:[#allocation140_spill] sm:$0xff] %v17729_v63  ;;  %22351 = vst [vmem:[#allocation131_spill] sm:$0xff] %v17735_v57  ;;  %v17747_v13 = vrot.slane %v22357_v47, %v22141_v1  ;;  %v22368_v47 = vmax.f32 %v22366_v45, %v22367_v30  ;;  %v22375_v23 = vld [vmem:[#allocation201_spill] sm:$0xff]  ;;  %v22382_v45 = vld [vmem:[#allocation191_spill] sm:$0xff] }
 0x45a   :  { %22354 = vst [vmem:[#allocation139_spill] sm:$0xff] %v17741_v0  ;;  %v17765_v10 = vrot.slane %v22364_v33, %v22141_v1  ;;  %v17777_v0 = vrot.slane %v22372_v16, %v22141_v1  ;;  %v22376_v6 = vmax.f32 %v22374_v21, %v22375_v23  ;;  %v22379_v26 = vld [vmem:[#allocation205_spill] sm:$0xff]  ;;  %v22383_v30 = vld [vmem:[#allocation203_spill] sm:$0xff]  ;;  %v22386_v25 = vld [vmem:[#allocation208_spill] sm:$0xff] }
 0x45b   :  { %22358 = vst [vmem:[#allocation155_spill] sm:$0xff] %v17747_v13  ;;  %v17771_v13 = vrot.slane %v22368_v47, %v22141_v1  ;;  %v22380_v33 = vmax.f32 %v22378_v52, %v22379_v26  ;;  %v22384_v47 = vmax.f32 %v22382_v45, %v22383_v30  ;;  %v22387_v42 = vld [vmem:[#allocation214_spill] sm:$0xff]  ;;  %v22389_v21 = vld [vmem:[#allocation204_spill] sm:$0xff]  ;;  %v22390_v23 = vld [vmem:[#allocation217_spill] sm:$0xff] }
 0x45c   :  { %22365 = vst [vmem:[#allocation166_spill] sm:$0xff] %v17765_v10  ;;  %22373 = vst [vmem:[#allocation189_spill] sm:$0xff] %v17777_v0  ;;  %v17783_v57 = vrot.slane %v22376_v6, %v22141_v1  ;;  %v22388_v16 = vmax.f32 %v22386_v25, %v22387_v42  ;;  %v22391_v6 = vmax.f32 %v22389_v21, %v22390_v23  ;;  %v22393_v52 = vld [vmem:[#allocation209_spill] sm:$0xff]  ;;  %v22397_v45 = vld [vmem:[#allocation206_spill] sm:$0xff] }
 0x45d   :  { %22369 = vst [vmem:[#allocation172_spill] sm:$0xff] %v17771_v13  ;;  %v17789_v63 = vrot.slane %v22380_v33, %v22141_v1  ;;  %v17795_v13 = vrot.slane %v22384_v47, %v22141_v1  ;;  %v22394_v26 = vld [vmem:[#allocation221_spill] sm:$0xff]  ;;  %v22398_v30 = vld [vmem:[#allocation219_spill] sm:$0xff]  ;;  %v22402_v42 = vld [vmem:[#allocation224_spill] sm:$0xff] }
 0x45e   :  { %22377 = vst [vmem:[#allocation266_spill] sm:$0xff] %v17783_v57  ;;  %v17801_v0 = vrot.slane %v22388_v16, %v22141_v1  ;;  %v17807_v57 = vrot.slane %v22391_v6, %v22141_v1  ;;  %v22395_v33 = vmax.f32 %v22393_v52, %v22394_v26  ;;  %v22399_v47 = vmax.f32 %v22397_v45, %v22398_v30  ;;  %v22401_v25 = vld [vmem:[#allocation207_spill] sm:$0xff]  ;;  %v22405_v21 = vld [vmem:[#allocation210_spill] sm:$0xff]  ;;  %v22406_v23 = vld [vmem:[#allocation220_spill] sm:$0xff] }
 0x45f   :  { %22381 = vst [vmem:[#allocation265_spill] sm:$0xff] %v17789_v63  ;;  %22385 = vst [vmem:[#allocation269_spill] sm:$0xff] %v17795_v13  ;;  %v22403_v16 = vmax.f32 %v22401_v25, %v22402_v42  ;;  %v22407_v6 = vmax.f32 %v22405_v21, %v22406_v23  ;;  %v22409_v52 = vld [vmem:[#allocation211_spill] sm:$0xff]  ;;  %v22410_v26 = vld [vmem:[#allocation225_spill] sm:$0xff] }
 0x460   :  { %22392 = vst [vmem:[#allocation286_spill] sm:$0xff] %v17807_v57  ;;  %v17813_v63 = vrot.slane %v22395_v33, %v22141_v1  ;;  %v17819_v13 = vrot.slane %v22399_v47, %v22141_v1  ;;  %v22411_v33 = vmax.f32 %v22409_v52, %v22410_v26  ;;  %v22413_v45 = vld [vmem:[#allocation216_spill] sm:$0xff]  ;;  %v22414_v30 = vld [vmem:[#allocation222_spill] sm:$0xff]  ;;  %v22417_v25 = vld [vmem:[#allocation223_spill] sm:$0xff] }
 0x461   :  { %v17825_v10 = vrot.slane %v22403_v16, %v22141_v1  ;;  %v17831_v57 = vrot.slane %v22407_v6, %v22141_v1  ;;  %v22415_v47 = vmax.f32 %v22413_v45, %v22414_v30  ;;  %v22418_v42 = vld [vmem:[#allocation240_spill] sm:$0xff]  ;;  %v22421_v21 = vld [vmem:[#allocation226_spill] sm:$0xff]  ;;  %v22425_v52 = vld [vmem:[#allocation227_spill] sm:$0xff] }
 0x462   :  { %22396 = vst [vmem:[#allocation280_spill] sm:$0xff] %v17813_v63  ;;  %22400 = vst [vmem:[#allocation284_spill] sm:$0xff] %v17819_v13  ;;  %v17837_v63 = vrot.slane %v22411_v33, %v22141_v1  ;;  %v22419_v16 = vmax.f32 %v22417_v25, %v22418_v42  ;;  %v22422_v23 = vld [vmem:[#allocation236_spill] sm:$0xff]  ;;  %v22426_v26 = vld [vmem:[#allocation241_spill] sm:$0xff] }
 0x463   :  { %22404 = vst [vmem:[#allocation289_spill] sm:$0xff] %v17825_v10  ;;  %22408 = vst [vmem:[#allocation282_spill] sm:$0xff] %v17831_v57  ;;  %v17843_v13 = vrot.slane %v22415_v47, %v22141_v1  ;;  %v22423_v6 = vmax.f32 %v22421_v21, %v22422_v23  ;;  %v22427_v33 = vmax.f32 %v22425_v52, %v22426_v26  ;;  %v22429_v45 = vld [vmem:[#allocation232_spill] sm:$0xff]  ;;  %v22430_v30 = vld [vmem:[#allocation238_spill] sm:$0xff] }
 0x464   :  { %22412 = vst [vmem:[#allocation118_spill] sm:$0xff] %v17837_v63  ;;  %v17849_v10 = vrot.slane %v22419_v16, %v22141_v1  ;;  %v22431_v47 = vmax.f32 %v22429_v45, %v22430_v30  ;;  %v22433_v25 = vld [vmem:[#allocation230_spill] sm:$0xff]  ;;  %v22434_v42 = vld [vmem:[#allocation239_spill] sm:$0xff]  ;;  %v22437_v21 = vld [vmem:[#allocation233_spill] sm:$0xff] }
 0x465   :  { %22416 = vst [vmem:[#allocation89_spill] sm:$0xff] %v17843_v13  ;;  %v17855_v57 = vrot.slane %v22423_v6, %v22141_v1  ;;  %v17861_v63 = vrot.slane %v22427_v33, %v22141_v1  ;;  %v22435_v16 = vmax.f32 %v22433_v25, %v22434_v42  ;;  %v22438_v23 = vld [vmem:[#allocation242_spill] sm:$0xff]  ;;  %v22441_v52 = vld [vmem:[#allocation237_spill] sm:$0xff]  ;;  %v22442_v26 = vld [vmem:[#allocation243_spill] sm:$0xff] }
 0x466   :  { %22420 = vst [vmem:[#allocation96_spill] sm:$0xff] %v17849_v10  ;;  %v17867_v13 = vrot.slane %v22431_v47, %v22141_v1  ;;  %v22439_v6 = vmax.f32 %v22437_v21, %v22438_v23  ;;  %v22443_v33 = vmax.f32 %v22441_v52, %v22442_v26  ;;  %v22445_v45 = vld [vmem:[#allocation235_spill] sm:$0xff]  ;;  %v22446_v30 = vld [vmem:[#allocation248_spill] sm:$0xff]  ;;  %v22449_v25 = vld [vmem:[#allocation246_spill] sm:$0xff] }
 0x467   :  { %22424 = vst [vmem:[#allocation125_spill] sm:$0xff] %v17855_v57  ;;  %22428 = vst [vmem:[#allocation75_spill] sm:$0xff] %v17861_v63  ;;  %v17873_v10 = vrot.slane %v22435_v16, %v22141_v1  ;;  %v22447_v47 = vmax.f32 %v22445_v45, %v22446_v30  ;;  %v22450_v42 = vld [vmem:[#allocation260_spill] sm:$0xff]  ;;  %v22453_v21 = vld [vmem:[#allocation249_spill] sm:$0xff] }
 0x468   :  { %22432 = vst [vmem:[#allocation132_spill] sm:$0xff] %v17867_v13  ;;  %v17879_v57 = vrot.slane %v22439_v6, %v22141_v1  ;;  %v17885_v63 = vrot.slane %v22443_v33, %v22141_v1  ;;  %v22451_v16 = vmax.f32 %v22449_v25, %v22450_v42  ;;  %v22454_v23 = vld [vmem:[#allocation255_spill] sm:$0xff]  ;;  %v22457_v52 = vld [vmem:[#allocation253_spill] sm:$0xff]  ;;  %v22462_v30 = vld [vmem:[#allocation258_spill] sm:$0xff] }
 0x469   :  { %22436 = vst [vmem:[#allocation114_spill] sm:$0xff] %v17873_v10  ;;  %v17891_v13 = vrot.slane %v22447_v47, %v22141_v1  ;;  %v22455_v6 = vmax.f32 %v22453_v21, %v22454_v23  ;;  %v22458_v26 = vld [vmem:[#allocation261_spill] sm:$0xff]  ;;  %v22461_v45 = vld [vmem:[#allocation251_spill] sm:$0xff]  ;;  %v22465_v25 = vld [vmem:[#allocation256_spill] sm:$0xff] }
 0x46a   :  { %22440 = vst [vmem:[#allocation133_spill] sm:$0xff] %v17879_v57  ;;  %22444 = vst [vmem:[#allocation135_spill] sm:$0xff] %v17885_v63  ;;  %v17897_v10 = vrot.slane %v22451_v16, %v22141_v1  ;;  %v22459_v33 = vmax.f32 %v22457_v52, %v22458_v26  ;;  %v22463_v47 = vmax.f32 %v22461_v45, %v22462_v30  ;;  %v22466_v42 = vld [vmem:[#allocation263_spill] sm:$0xff]  ;;  %v22469_v21 = vld [vmem:[#allocation252_spill] sm:$0xff] }
 0x46b   :  { %22448 = vst [vmem:[#allocation115_spill] sm:$0xff] %v17891_v13  ;;  %v17903_v57 = vrot.slane %v22455_v6, %v22141_v1  ;;  %v22467_v16 = vmax.f32 %v22465_v25, %v22466_v42  ;;  %v22470_v23 = vld [vmem:[#allocation259_spill] sm:$0xff]  ;;  %v22473_v52 = vld [vmem:[#allocation257_spill] sm:$0xff]  ;;  %v22474_v26 = vld [vmem:[#allocation264_spill] sm:$0xff] }
 0x46c   :  { %22452 = vst [vmem:[#allocation141_spill] sm:$0xff] %v17897_v10  ;;  %v17909_v63 = vrot.slane %v22459_v33, %v22141_v1  ;;  %v17915_v13 = vrot.slane %v22463_v47, %v22141_v1  ;;  %v22471_v6 = vmax.f32 %v22469_v21, %v22470_v23  ;;  %v22475_v33 = vmax.f32 %v22473_v52, %v22474_v26  ;;  %v22477_v45 = vld [vmem:[#allocation254_spill] sm:$0xff]  ;;  %v22481_v25 = vld [vmem:[#allocation276_spill] sm:$0xff]  ;;  %v22483_v21 = vld [vmem:[#allocation271_spill] sm:$0xff] }
 0x46d   :  { %22456 = vst [vmem:[#allocation180_spill] sm:$0xff] %v17903_v57  ;;  %v17921_v10 = vrot.slane %v22467_v16, %v22141_v1  ;;  %v22478_v30 = vld [vmem:[#allocation262_spill] sm:$0xff]  ;;  %v22482_v42 = vmax.f32 %v22113_v43, %v22481_v25  ;;  %v22484_v23 = vmax.f32 %v22115_v18, %v22483_v21  ;;  %v22485_v52 = vld [vmem:[#allocation277_spill] sm:$0xff]  ;;  %v22491_v43 = vld [vmem:[#allocation272_spill] sm:$0xff] }
 0x46e   :  { %22460 = vst [vmem:[#allocation181_spill] sm:$0xff] %v17909_v63  ;;  %22464 = vst [vmem:[#allocation151_spill] sm:$0xff] %v17915_v13  ;;  %v17927_v57 = vrot.slane %v22471_v6, %v22141_v1  ;;  %v17933_v63 = vrot.slane %v22475_v33, %v22141_v1  ;;  %v22479_v47 = vmax.f32 %v22477_v45, %v22478_v30  ;;  %v22487_v45 = vld [vmem:[#allocation267_spill] sm:$0xff]  ;;  %v22488_v30 = vld [vmem:[#allocation274_spill] sm:$0xff] }
 0x46f   :  { %22468 = vst [vmem:[#allocation183_spill] sm:$0xff] %v17921_v10  ;;  %v17945_v16 = vrot.slane %v22482_v42, %v22141_v1  ;;  %v17951_v6 = vrot.slane %v22484_v23, %v22141_v1  ;;  %v22486_v26 = vmax.f32 %v22117_v44, %v22485_v52  ;;  %v22492_v25 = vld [vmem:[#allocation97_spill] sm:$0xff]  ;;  %v22495_v18 = vld [vmem:[#allocation268_spill] sm:$0xff]  ;;  %v22496_v21 = vld [vmem:[#allocation275_spill] sm:$0xff] }
 0x470   :  { %22472 = vst [vmem:[#allocation154_spill] sm:$0xff] %v17927_v57  ;;  %22476 = vst [vmem:[#allocation186_spill] sm:$0xff] %v17933_v63  ;;  %v17939_v13 = vrot.slane %v22479_v47, %v22141_v1  ;;  %v22489_v47 = vmax.f32 %v22487_v45, %v22488_v30  ;;  %v22493_v42 = vmax.f32 %v22491_v43, %v22492_v25  ;;  %v22498_v44 = vld [vmem:[#allocation273_spill] sm:$0xff]  ;;  %v22499_v52 = vld [vmem:[#allocation279_spill] sm:$0xff] }
 0x471   :  { %v17957_v33 = vrot.slane %v22486_v26, %v22141_v1  ;;  %v22497_v23 = vmax.f32 %v22495_v18, %v22496_v21  ;;  %v22500_v26 = vmax.f32 %v22498_v44, %v22499_v52  ;;  %v22501_v45 = vld [vmem:[#allocation270_spill] sm:$0xff]  ;;  %v22504_v43 = vld [vmem:[#allocation281_spill] sm:$0xff]  ;;  %v22507_v18 = vld [vmem:[#allocation291_spill] sm:$0xff]  ;;  %v22509_v44 = vmax.f32 %v22130_v12, %v22129_v29 }
 0x472   :  { %22480 = vst [vmem:[#allocation164_spill] sm:$0xff] %v17939_v13  ;;  %v17963_v13 = vrot.slane %v22489_v47, %v22141_v1  ;;  %v17969_v63 = vrot.slane %v22493_v42, %v22141_v1  ;;  %v22502_v30 = vld [vmem:[#allocation278_spill] sm:$0xff]  ;;  %v22505_v25 = vld [vmem:[#allocation285_spill] sm:$0xff]  ;;  %v22508_v21 = vmax.f32 %v17005_v38, %v22507_v18  ;;  %v5915_v38 = vsel %vm5914_vm4, %v17327_v4, %v17321_v53 }
 0x473   :  { %v17975_v57 = vrot.slane %v22497_v23, %v22141_v1  ;;  %v17981_v10 = vrot.slane %v22500_v26, %v22141_v1  ;;  %v22503_v47 = vmax.f32 %v22501_v45, %v22502_v30  ;;  %v22506_v42 = vmax.f32 %v22504_v43, %v22505_v25  ;;  %v22510_v26 = vld [vmem:[#allocation292_spill] sm:$0xff] }
 0x474   :  { %22490 = vst [vmem:[#allocation196_spill] sm:$0xff] %v17963_v13  ;;  %22494 = vst [vmem:[#allocation165_spill] sm:$0xff] %v17969_v63  ;;  %v17999_v23 = vrot.slane %v22508_v21, %v22141_v1  ;;  %v18005_v52 = vrot.slane %v22509_v44, %v22141_v1  ;;  %v22511_v45 = vmax.f32 %v22132_v2, %v22510_v26  ;;  %v22516_v25 = vld [vmem:[#allocation100_spill] sm:$0xff]  ;;  %v22519_v26 = vld [vmem:[#allocation298_spill] sm:$0xff] }
 0x475   :  { %v17987_v13 = vrot.slane %v22503_v47, %v22141_v1  ;;  %v17993_v63 = vrot.slane %v22506_v42, %v22141_v1  ;;  %v22512_v47 = vmax.f32 %v22134_v51, %v22133_v41  ;;  %v5917_v29 = vsel %vm5916_vm5, %v17333_v48, %v5915_v38  ;;  %v22517_v42 = vld [vmem:[#allocation304_spill] sm:$0xff] }
 0x476   :  { %v18011_v30 = vrot.slane %v22511_v45, %v22141_v1  ;;  %v5928_v12 = vsel %vm5914_vm4, %v17375_v11, %v17369_v3  ;;  %v5935_v2 = vsel %vm5914_vm4, %v17423_v17, %v17417_v22  ;;  %v5942_v41 = vsel %vm5914_vm4, %v17471_v9, %v17465_v37  ;;  %v22513_v3 = vld [vmem:[#allocation293_spill] sm:$0xff]  ;;  %v22515_v9 = vld [vmem:[#allocation98_spill] sm:$0xff]  ;;  %v22518_v21 = vld [vmem:[#allocation296_spill] sm:$0xff] }
 0x477   :  { %v18017_v43 = vrot.slane %v22512_v47, %v22141_v1  ;;  %v5919_v51 = vsel %vm5918_vm6, %v17339_v60, %v5917_v29  ;;  %v5929_v4 = vsel %vm5916_vm5, %v17381_v59, %v5928_v12  ;;  %v5936_v48 = vsel %vm5916_vm5, %v17429_v62, %v5935_v2  ;;  %v22514_v22 = vld [vmem:[#allocation297_spill] sm:$0xff]  ;;  %v22520_v45 = vld [vmem:[#allocation300_spill] sm:$0xff]  ;;  %v22521_v47 = vld [vmem:[#allocation311_spill] sm:$0xff] }
 0x478   :  { %v5943_v53 = vsel %vm5916_vm5, %v17477_v27, %v5942_v41  ;;  %v5921_v11 = vsel %vm5920_vm7, %v22513_v3, %v5919_v51  ;;  %v5930_v17 = vsel %vm5918_vm6, %v22514_v22, %v5929_v4  ;;  %v5937_v37 = vsel %vm5918_vm6, %v17435_v49, %v5936_v48  ;;  %v22522_v29 = vld [vmem:[#allocation99_spill] sm:$0xff]  ;;  %v22523_v2 = vld [vmem:[#allocation301_spill] sm:$0xff]  ;;  %v22525_v4 = vld [vmem:[#allocation312_spill] sm:$0xff] }
 0x479   :  { %v5944_v60 = vsel %vm5918_vm6, %v17483_v58, %v5943_v53  ;;  %v5923_v59 = vsel %vm5922_vm8, %v22515_v9, %v5921_v11  ;;  %v5931_v62 = vsel %vm5920_vm7, %v22516_v25, %v5930_v17  ;;  %v5938_v27 = vsel %vm5920_vm7, %v22517_v42, %v5937_v37  ;;  %v22524_v51 = vld [vmem:[#allocation305_spill] sm:$0xff]  ;;  %v22526_v53 = vld [vmem:[#allocation299_spill] sm:$0xff]  ;;  %v22530_v9 = vld [vmem:[#allocation76_spill] sm:$0xff] }
 0x47a   :  { %v5945_v18 = vsel %vm5920_vm7, %v17489_v50, %v5944_v60  ;;  %v5925_v44 = vsel %vm5924_vm9, %v22518_v21, %v5923_v59  ;;  %v5932_v49 = vsel %vm5922_vm8, %v22519_v26, %v5931_v62  ;;  %v5939_v58 = vsel %vm5922_vm8, %v22520_v45, %v5938_v27  ;;  %v22527_v11 = vld [vmem:[#allocation303_spill] sm:$0xff]  ;;  %v22528_v17 = vld [vmem:[#allocation73_spill] sm:$0xff]  ;;  %v22533_v26 = vld [vmem:[#allocation148_spill] sm:$0xff] }
 0x47b   :  { %v5946_v38 = vsel %vm5922_vm8, %v22521_v47, %v5945_v18  ;;  %v5927_v12 = vsel %vm5926_vm10, %v22522_v29, %v5925_v44  ;;  %v5933_v41 = vsel %vm5924_vm9, %v22523_v2, %v5932_v49  ;;  %v5940_v50 = vsel %vm5924_vm9, %v22524_v51, %v5939_v58  ;;  %v22529_v60 = vld [vmem:[#allocation105_spill] sm:$0xff]  ;;  %v22531_v18 = vld [vmem:[#allocation88_spill] sm:$0xff]  ;;  %v22536_v47 = vld [vmem:[#allocation107_spill] sm:$0xff] }
 0x47c   :  { %v5947_v48 = vsel %vm5924_vm9, %v22525_v4, %v5946_v38  ;;  %v5934_v3 = vsel %vm5926_vm10, %v22526_v53, %v5933_v41  ;;  %v5941_v22 = vsel %vm5926_vm10, %v22527_v11, %v5940_v50  ;;  %v5949_v59 = vsel %vm5914_vm4, %v22530_v9, %v22529_v60  ;;  %6050 = vst.msk [vmem:[#allocation2 + $0x11] sm:$0xff] %vm2056_vm3, %v5927_v12  ;;  %v22534_v49 = vld [vmem:[#allocation149_spill] sm:$0xff]  ;;  %v22537_v29 = vld [vmem:[#allocation167_spill] sm:$0xff]  ;;  %v22540_v51 = vld [vmem:[#allocation306_spill] sm:$0xff] }
 0x47d   :  { %v5948_v37 = vsel %vm5926_vm10, %v22528_v17, %v5947_v48  ;;  %v5950_v25 = vsel %vm5916_vm5, %v17525_v31, %v5949_v59  ;;  %v5956_v62 = vsel %vm5914_vm4, %v17567_v8, %v17561_v35  ;;  %v5963_v42 = vsel %vm5914_vm4, %v17615_v15, %v17609_v39  ;;  %6051 = vst.msk [vmem:[#allocation2 + $0x21] sm:$0xff] %vm2056_vm3, %v5934_v3  ;;  %v22535_v58 = vld [vmem:[#allocation213_spill] sm:$0xff]  ;;  %v22538_v12 = vld [vmem:[#allocation231_spill] sm:$0xff]  ;;  %v22544_v11 = vld [vmem:[#allocation94_spill] sm:$0xff] }
 0x47e   :  { %v5970_v27 = vsel %vm5914_vm4, %v17663_v54, %v17657_v36  ;;  %6052 = vst.msk [vmem:[#allocation2 + $0x31] sm:$0xff] %vm2056_vm3, %v5941_v22  ;;  %6053 = vst.msk [vmem:[#allocation2 + $0x41] sm:$0xff] %vm2056_vm3, %v5948_v37  ;;  %v5951_v31 = vsel %vm5918_vm6, %v22531_v18, %v5950_v25  ;;  %v5957_v35 = vsel %vm5916_vm5, %v17573_v14, %v5956_v62  ;;  %v22532_v36 = vld [vmem:[#allocation212_spill] sm:$0xff]  ;;  %v22539_v2 = vld [vmem:[#allocation87_spill] sm:$0xff] }
 0x47f   :  { %v5964_v8 = vsel %vm5916_vm5, %v17621_v56, %v5963_v42  ;;  %v5971_v39 = vsel %vm5916_vm5, %v17669_v7, %v5970_v27  ;;  %v5952_v15 = vsel %vm5920_vm7, %v17537_v5, %v5951_v31  ;;  %v5958_v54 = vsel %vm5918_vm6, %v22532_v36, %v5957_v35  ;;  %v22541_v4 = vld [vmem:[#allocation121_spill] sm:$0xff]  ;;  %v22542_v53 = vld [vmem:[#allocation123_spill] sm:$0xff]  ;;  %v22545_v37 = vld [vmem:[#allocation286_spill] sm:$0xff] }
 0x480   :  { %v5965_v21 = vsel %vm5918_vm6, %v17627_v55, %v5964_v8  ;;  %v5972_v44 = vsel %vm5918_vm6, %v17675_v34, %v5971_v39  ;;  %v5953_v14 = vsel %vm5922_vm8, %v22533_v26, %v5952_v15  ;;  %v5959_v56 = vsel %vm5920_vm7, %v17585_v24, %v5958_v54  ;;  %v22543_v3 = vld [vmem:[#allocation119_spill] sm:$0xff]  ;;  %v22546_v9 = vld [vmem:[#allocation96_spill] sm:$0xff]  ;;  %v22547_v59 = vld [vmem:[#allocation125_spill] sm:$0xff] }
 0x481   :  { %v5966_v7 = vsel %vm5920_vm7, %v17633_v28, %v5965_v21  ;;  %v5973_v5 = vsel %vm5920_vm7, %v17681_v20, %v5972_v44  ;;  %v5954_v45 = vsel %vm5924_vm9, %v22534_v49, %v5953_v14  ;;  %v5960_v55 = vsel %vm5922_vm8, %v22535_v58, %v5959_v56  ;;  %v22548_v62 = vld [vmem:[#allocation130_spill] sm:$0xff]  ;;  %v22552_v31 = vld [vmem:[#allocation140_spill] sm:$0xff]  ;;  %v22556_v44 = vld [vmem:[#allocation131_spill] sm:$0xff] }
 0x482   :  { %v5967_v34 = vsel %vm5922_vm8, %v22536_v47, %v5966_v7  ;;  %v5974_v38 = vsel %vm5922_vm8, %v17687_v46, %v5973_v5  ;;  %v5955_v24 = vsel %vm5926_vm10, %v22537_v29, %v5954_v45  ;;  %v5961_v28 = vsel %vm5924_vm9, %v22538_v12, %v5960_v55  ;;  %v22549_v42 = vld [vmem:[#allocation166_spill] sm:$0xff]  ;;  %v22553_v8 = vld [vmem:[#allocation172_spill] sm:$0xff]  ;;  %v22557_v14 = vld [vmem:[#allocation189_spill] sm:$0xff] }
 0x483   :  { %v5968_v20 = vsel %vm5924_vm9, %v22539_v2, %v5967_v34  ;;  %v5975_v41 = vsel %vm5924_vm9, %v17693_v61, %v5974_v38  ;;  %v5962_v50 = vsel %vm5926_vm10, %v22540_v51, %v5961_v28  ;;  %v5977_v22 = vsel %vm5914_vm4, %v22544_v11, %v22543_v3  ;;  %6054 = vst.msk [vmem:[#allocation2 + $0x51] sm:$0xff] %vm2056_vm3, %v5955_v24  ;;  %v22554_v15 = vld [vmem:[#allocation284_spill] sm:$0xff]  ;;  %v22558_v7 = vld [vmem:[#allocation289_spill] sm:$0xff]  ;;  %v22559_v49 = vld [vmem:[#allocation114_spill] sm:$0xff] }
 0x484   :  { %v5969_v48 = vsel %vm5926_vm10, %v22541_v4, %v5968_v20  ;;  %v5976_v46 = vsel %vm5926_vm10, %v22542_v53, %v5975_v41  ;;  %v5978_v17 = vsel %vm5916_vm5, %v17717_v19, %v5977_v22  ;;  %v5984_v61 = vsel %vm5914_vm4, %v17759_v32, %v17753_v40  ;;  %6055 = vst.msk [vmem:[#allocation2 + $0x61] sm:$0xff] %vm2056_vm3, %v5962_v50  ;;  %v22550_v32 = vld [vmem:[#allocation280_spill] sm:$0xff]  ;;  %v22560_v58 = vld [vmem:[#allocation139_spill] sm:$0xff]  ;;  %v22561_v47 = vld [vmem:[#allocation266_spill] sm:$0xff] }
 0x485   :  { %v5991_v60 = vsel %vm5914_vm4, %v22545_v37, %v17801_v0  ;;  %v5998_v25 = vsel %vm5914_vm4, %v22547_v59, %v22546_v9  ;;  %6056 = vst.msk [vmem:[#allocation2 + $0x71] sm:$0xff] %vm2056_vm3, %v5969_v48  ;;  %6057 = vst.msk [vmem:[#allocation2 + $0x81] sm:$0xff] %vm2056_vm3, %v5976_v46  ;;  %v5979_v19 = vsel %vm5918_vm6, %v22548_v62, %v5978_v17  ;;  %v22551_v0 = vld [vmem:[#allocation75_spill] sm:$0xff]  ;;  %v22555_v54 = vld [vmem:[#allocation132_spill] sm:$0xff] }
 0x486   :  { %v5985_v40 = vsel %vm5916_vm5, %v22549_v42, %v5984_v61  ;;  %v5992_v27 = vsel %vm5916_vm5, %v22550_v32, %v5991_v60  ;;  %v5999_v18 = vsel %vm5916_vm5, %v22551_v0, %v5998_v25  ;;  %v5980_v35 = vsel %vm5920_vm7, %v22552_v31, %v5979_v19  ;;  %v22562_v38 = vld [vmem:[#allocation282_spill] sm:$0xff]  ;;  %v22563_v24 = vld [vmem:[#allocation133_spill] sm:$0xff]  ;;  %v22564_v28 = vld [vmem:[#allocation155_spill] sm:$0xff] }
 0x487   :  { %v5986_v39 = vsel %vm5918_vm6, %v22553_v8, %v5985_v40  ;;  %v5993_v36 = vsel %vm5918_vm6, %v22554_v15, %v5992_v27  ;;  %v6000_v21 = vsel %vm5918_vm6, %v22555_v54, %v5999_v18  ;;  %v5981_v26 = vsel %vm5922_vm8, %v22556_v44, %v5980_v35  ;;  %v22565_v20 = vld [vmem:[#allocation265_spill] sm:$0xff]  ;;  %v22566_v51 = vld [vmem:[#allocation118_spill] sm:$0xff]  ;;  %v22567_v4 = vld [vmem:[#allocation135_spill] sm:$0xff] }
 0x488   :  { %v5987_v56 = vsel %vm5920_vm7, %v22557_v14, %v5986_v39  ;;  %v5994_v5 = vsel %vm5920_vm7, %v22558_v7, %v5993_v36  ;;  %v6001_v45 = vsel %vm5920_vm7, %v22559_v49, %v6000_v21  ;;  %v5982_v55 = vsel %vm5924_vm9, %v22560_v58, %v5981_v26  ;;  %v22568_v53 = vld [vmem:[#allocation269_spill] sm:$0xff]  ;;  %v22570_v22 = vld [vmem:[#allocation115_spill] sm:$0xff]  ;;  %v22572_v37 = vld [vmem:[#allocation180_spill] sm:$0xff] }
 0x489   :  { %v5988_v34 = vsel %vm5922_vm8, %v22561_v47, %v5987_v56  ;;  %v5995_v29 = vsel %vm5922_vm8, %v22562_v38, %v5994_v5  ;;  %v6002_v12 = vsel %vm5922_vm8, %v22563_v24, %v6001_v45  ;;  %v5983_v2 = vsel %vm5926_vm10, %v22564_v28, %v5982_v55  ;;  %v22569_v3 = vld [vmem:[#allocation89_spill] sm:$0xff]  ;;  %v22574_v19 = vld [vmem:[#allocation151_spill] sm:$0xff]  ;;  %v22579_v0 = vld [vmem:[#allocation196_spill] sm:$0xff] }
 0x48a   :  { %v5989_v41 = vsel %vm5924_vm9, %v22565_v20, %v5988_v34  ;;  %v5996_v50 = vsel %vm5924_vm9, %v22566_v51, %v5995_v29  ;;  %v6003_v48 = vsel %vm5924_vm9, %v22567_v4, %v6002_v12  ;;  %v22571_v61 = vld [vmem:[#allocation141_spill] sm:$0xff]  ;;  %6058 = vst.msk [vmem:[#allocation2 + $0xb1] sm:$0xff] %vm2056_vm3, %v5983_v2  ;;  %v6012_v25 = vsel %vm5914_vm4, %v17951_v6, %v17945_v16  ;;  %v22576_v6 = vld [vmem:[#allocation294_spill] sm:$0xff]  ;;  %v18247_v35 = vld [vmem:[#allocation2 + $0x11] sm:$0xff] }
 0x48b   :  { %v5990_v46 = vsel %vm5926_vm10, %v22568_v53, %v5989_v41  ;;  %v5997_v11 = vsel %vm5926_vm10, %v22569_v3, %v5996_v50  ;;  %v6004_v17 = vsel %vm5926_vm10, %v22570_v22, %v6003_v48  ;;  %v6005_v60 = vsel %vm5914_vm4, %v22572_v37, %v22571_v61  ;;  %v22573_v9 = vld [vmem:[#allocation181_spill] sm:$0xff]  ;;  %v22580_v8 = vld [vmem:[#allocation283_spill] sm:$0xff]  ;;  %v22581_v39 = vld [vmem:[#allocation290_spill] sm:$0xff] }
 0x48c   :  { %v6006_v59 = vsel %vm5916_vm5, %v22573_v9, %v6005_v60  ;;  %v6019_v62 = vsel %vm5914_vm4, %v17999_v23, %v17993_v63  ;;  %6059 = vst.msk [vmem:[#allocation2 + $0xc1] sm:$0xff] %vm2056_vm3, %v5990_v46  ;;  %6060 = vst.msk [vmem:[#allocation2 + $0xd1] sm:$0xff] %vm2056_vm3, %v5997_v11  ;;  %v6013_v40 = vsel %vm5916_vm5, %v17957_v33, %v6012_v25  ;;  %v20586_v16 = vmov 0.0   ;;  %v22575_v63 = vld [vmem:[#allocation287_spill] sm:$0xff]  ;;  %v22583_v54 = vld [vmem:[#allocation154_spill] sm:$0xff] }
 0x48d   :  { %6061 = vst.msk [vmem:[#allocation2 + $0xe1] sm:$0xff] %vm2056_vm3, %v6004_v17  ;;  %v6007_v42 = vsel %vm5918_vm6, %v22574_v19, %v6006_v59  ;;  %v6020_v32 = vsel %vm5916_vm5, %v18005_v52, %v6019_v62  ;;  %5223 = vst.msk [vmem:[#allocation2] sm:$0xff] %vm2056_vm3, %v20586_v16  ;;  %v22577_v33 = vmax.f32 %v22575_v63, %v22576_v6  ;;  %v22578_v52 = vld [vmem:[#allocation183_spill] sm:$0xff]  ;;  %v22584_v44 = vld [vmem:[#allocation165_spill] sm:$0xff] }
 0x48e   :  { %5226 = vst.msk [vmem:[#allocation2 + $0xa0] sm:$0xff] %vm2056_vm3, %v20586_v16  ;;  %5229 = vst.msk [vmem:[#allocation2 + $0x90] sm:$0xff] %vm2056_vm3, %v20586_v16  ;;  %v6008_v27 = vsel %vm5920_vm7, %v22578_v52, %v6007_v42  ;;  %v6014_v18 = vsel %vm5918_vm6, %v22579_v0, %v6013_v40  ;;  %v6021_v31 = vsel %vm5918_vm6, %v18011_v30, %v6020_v32  ;;  %v18262_v14 = vld [vmem:[#allocation2 + $0x21] sm:$0xff]  ;;  %v18264_v56 = vld [vmem:[#allocation2 + $0x31] sm:$0xff] }
 0x48f   :  { %5231 = vst.msk [vmem:[#allocation2 + $0x130] sm:$0xff] %vm2056_vm3, %v20586_v16  ;;  %v5873_v23 = vrot.slane %v22577_v33, %v22141_v1  ;;  %v22582_v15 = vmax.f32 %v22580_v8, %v22581_v39  ;;  %v6009_v21 = vsel %vm5922_vm8, %v22583_v54, %v6008_v27  ;;  %v6015_v30 = vsel %vm5920_vm7, %v22584_v44, %v6014_v18  ;;  %v18266_v7 = vld [vmem:[#allocation2 + $0x41] sm:$0xff]  ;;  %v22585_v5 = vld [vmem:[#allocation288_spill] sm:$0xff]  ;;  %v22586_v49 = vld [vmem:[#allocation295_spill] sm:$0xff] }
 0x490   :  { %5225 = vst.msk [vmem:[#allocation2 + $0x8] sm:$0x3] %vm5224_vm11, %v20586_v16  ;;  %5227 = vst.msk [vmem:[#allocation2 + $0xa8] sm:$0x3] %vm5224_vm11, %v20586_v16  ;;  %v6022_v26 = vsel %vm5920_vm7, %v18017_v43, %v6021_v31  ;;  %v22587_v45 = vmax.f32 %v22585_v5, %v22586_v49  ;;  %v22588_v55 = vld [vmem:[#allocation186_spill] sm:$0xff]  ;;  %v6016_v34 = vsel %vm5922_vm8, %v17975_v57, %v6015_v30  ;;  %v18277_v43 = vld [vmem:[#allocation2 + $0x51] sm:$0xff] }
 0x491   :  { %5230 = vst.msk [vmem:[#allocation2 + $0x98] sm:$0x3] %vm5224_vm11, %v20586_v16  ;;  %5232 = vst.msk [vmem:[#allocation2 + $0x138] sm:$0x3] %vm5224_vm11, %v20586_v16  ;;  %v5877_v36 = vrot.slane %v22582_v15, %v22141_v1  ;;  %v6010_v47 = vsel %vm5924_vm9, %v22588_v55, %v6009_v21  ;;  %v6023_v38 = vsel %vm5922_vm8, %v5873_v23, %v6022_v26  ;;  %v18279_v29 = vld [vmem:[#allocation2 + $0x61] sm:$0xff]  ;;  %v22589_v24 = vld [vmem:[#allocation164_spill] sm:$0xff] }
 0x492   :  { %v5881_v58 = vrot.slane %v22587_v45, %v22141_v1  ;;  %v6011_v12 = vsel %vm5926_vm10, %v22589_v24, %v6010_v47  ;;  %v6017_v28 = vsel %vm5924_vm9, %v17981_v10, %v6016_v34  ;;  %v18290_v41 = vld [vmem:[#allocation2 + $0xb1] sm:$0xff]  ;;  %5234 = vst.msk [vmem:[#allocation2] sm:$0x1] %vm5233_vm12, %v20586_v16  ;;  %5235 = vst.msk [vmem:[#allocation2 + $0x10] sm:$0x1] %vm5233_vm12, %v20586_v16  ;;  %v12210_v17 = vld [vmem:[%s19874_s4 + $0x8] sm:$0xff]  }
 0x493   :  { %v6024_v2 = vsel %vm5924_vm9, %v5877_v36, %v6023_v38  ;;  %v6018_v20 = vsel %vm5926_vm10, %v17987_v13, %v6017_v28  ;;  %6062 = vst.msk [vmem:[#allocation2 + $0xf1] sm:$0xff] %vm2056_vm3, %v6011_v12  ;;  %v18378_v51 = vld [vmem:[#allocation2 + $0xc1] sm:$0xff]  ;;  %v18380_v50 = vld [vmem:[#allocation2 + $0xd1] sm:$0xff]  ;;  %v18392_v11 = vpack.c.bf16 %v18264_v56, %v18262_v14  ;;  %v18401_v61 = vpack.c.bf16 %v18277_v43, %v18266_v7 }
 0x494   :  { %v6025_v57 = vsel %vm5926_vm10, %v5881_v58, %v6024_v2  ;;  %5236 = vst.msk [vmem:[#allocation2 + $0x20] sm:$0x1] %vm5233_vm12, %v20586_v16  ;;  %5237 = vst.msk [vmem:[#allocation2 + $0x30] sm:$0x1] %vm5233_vm12, %v20586_v16  ;;  %v18382_v4 = vld [vmem:[#allocation2 + $0xe1] sm:$0xff]  ;;  %v18419_v62 = vld [vmem:[#allocation2 + $0x71] sm:$0xff]  ;;  %v18467_v26 = vpack.c.bf16 %v18380_v50, %v18378_v51 }
 0x495   :  { %5238 = vst.msk [vmem:[#allocation2 + $0x40] sm:$0x1] %vm5233_vm12, %v20586_v16  ;;  %5239 = vst.msk [vmem:[#allocation2 + $0x50] sm:$0x1] %vm5233_vm12, %v20586_v16  ;;  %v12229_v60 = vld [vmem:[%s19874_s4] sm:$0xff]   ;;  %v18423_v42 = vpack.c.bf16 %v18419_v62, %v18279_v29  ;;  %v12212_v2 = vld [vmem:[%s19874_s4 + $0x28] sm:$0xff]  }
 0x496   :  { %5240 = vst.msk [vmem:[#allocation2 + $0x60] sm:$0x1] %vm5233_vm12, %v20586_v16  ;;  %5241 = vst.msk [vmem:[#allocation2 + $0x70] sm:$0x1] %vm5233_vm12, %v20586_v16  ;;  %v12211_v59 = vld [vmem:[%s19874_s4 + $0x20] sm:$0xff]   ;;  %v12214_v27 = vld [vmem:[%s19874_s4 + $0x38] sm:$0xff]  }
 0x497   :  { %5242 = vst.msk [vmem:[#allocation2 + $0x80] sm:$0x1] %vm5233_vm12, %v20586_v16  ;;  %5243 = vst.msk [vmem:[#allocation2 + $0x90] sm:$0x1] %vm5233_vm12, %v20586_v16  ;;  %v6094_v3 = vld [vmem:[#allocation2 + $0x1] sm:$0xff] }
 0x498   :  { %5244 = vst.msk [vmem:[#allocation2 + $0xa0] sm:$0x1] %vm5233_vm12, %v20586_v16  ;;  %5245 = vst.msk [vmem:[#allocation2 + $0xb0] sm:$0x1] %vm5233_vm12, %v20586_v16  ;;  %v6110_v22 = vpack.c.bf16 %v18247_v35, %v6094_v3  ;;  %v6102_v19 = vld [vmem:[#allocation2 + $0xa1] sm:$0xff] }
 0x499   :  { %5246 = vst.msk [vmem:[#allocation2 + $0xc0] sm:$0x1] %vm5233_vm12, %v20586_v16  ;;  %5247 = vst.msk [vmem:[#allocation2 + $0xd0] sm:$0x1] %vm5233_vm12, %v20586_v16  ;;  %v6114_v32 = vpack.c.bf16 %v18290_v41, %v6102_v19  ;;  %v6066_v45 = vld [vmem:[#allocation2] sm:$0xff]  ;;  %v18479_v58 = vld [vmem:[#allocation2 + $0x10] sm:$0xff] }
 0x49a   :  { %5248 = vst.msk [vmem:[#allocation2 + $0xe0] sm:$0x1] %vm5233_vm12, %v20586_v16  ;;  %5249 = vst.msk [vmem:[#allocation2 + $0xf0] sm:$0x1] %vm5233_vm12, %v20586_v16  ;;  %11692 = vmatprep.mubr.msk.bf16.mxu1 %vm2056_vm3, %v6110_v22  ;;  %v18405_v37 = vld [vmem:[#allocation2 + $0xf1] sm:$0xff]  ;;  %v6082_v47 = vpack.c.bf16 %v18479_v58, %v6066_v45  ;;  %v12216_v1 = vld [vmem:[%s19874_s4 + $0x48] sm:$0xff]  }
 0x49b   :  { %5250 = vst.msk [vmem:[#allocation2 + $0x100] sm:$0x1] %vm5233_vm12, %v20586_v16  ;;  %5251 = vst.msk [vmem:[#allocation2 + $0x110] sm:$0x1] %vm5233_vm12, %v20586_v16  ;;  %11693 = vmatmul.mubr.msk.bf16.vlgmr.msra.gmra.mrb[64].mxu1 %vm2056_vm3, %v18392_v11  ;;  %v18471_v5 = vpack.c.bf16 %v18405_v37, %v18382_v4  ;;  %v6068_v34 = vld [vmem:[#allocation2 + $0x20] sm:$0xff]  ;;  %v18489_v38 = vld [vmem:[#allocation2 + $0x30] sm:$0xff] }
 0x49c   :  { %5252 = vst.msk [vmem:[#allocation2 + $0x120] sm:$0x1] %vm5233_vm12, %v20586_v16  ;;  %5253 = vst.msk [vmem:[#allocation2 + $0x130] sm:$0x1] %vm5233_vm12, %v20586_v16  ;;  %11709 = vmatpush3.bf16.msra.mxu1 %v12229_v60  ;;  %11696 = vmatprep.mubr.msk.bf16.mxu1 %vm2056_vm3, %v18401_v61  ;;  %v18491_v24 = vld [vmem:[#allocation2 + $0x40] sm:$0xff]  ;;  %v18493_v12 = vld [vmem:[#allocation2 + $0x50] sm:$0xff]  ;;  %v18496_v28 = vpack.c.bf16 %v18489_v38, %v6068_v34 }
 0x49d   :  { %5254 = vst.msk [vmem:[#allocation2 + $0x9] sm:$0x1] %vm5233_vm12, %v20586_v16  ;;  %5255 = vst.msk [vmem:[#allocation2 + $0x19] sm:$0x1] %vm5233_vm12, %v20586_v16  ;;  %11710 = vmatprep.subr.bf16.mxu1 %v12210_v17  ;;  %v6072_v3 = vld [vmem:[#allocation2 + $0x60] sm:$0xff]  ;;  %v18512_v22 = vld [vmem:[#allocation2 + $0x70] sm:$0xff]  ;;  %v6584_v13 = vpack.c.bf16 %v18491_v24, %v18489_v38 }
 0x49e   :  { %5256 = vst.msk [vmem:[#allocation2 + $0x29] sm:$0x1] %vm5233_vm12, %v20586_v16  ;;  %5257 = vst.msk [vmem:[#allocation2 + $0x39] sm:$0x1] %vm5233_vm12, %v20586_v16  ;;  %v18515_v19 = vpack.c.bf16 %v18512_v22, %v6072_v3 }
 0x49f   :  { %5258 = vst.msk [vmem:[#allocation2 + $0x49] sm:$0x1] %vm5233_vm12, %v20586_v16  ;;  %5259 = vst.msk [vmem:[#allocation2 + $0x59] sm:$0x1] %vm5233_vm12, %v20586_v16  ;;  %v6075_v60 = vld [vmem:[#allocation2 + $0xb0] sm:$0xff] }
 0x4a0   :  { %5260 = vst.msk [vmem:[#allocation2 + $0x69] sm:$0x1] %vm5233_vm12, %v20586_v16  ;;  %5261 = vst.msk [vmem:[#allocation2 + $0x79] sm:$0x1] %vm5233_vm12, %v20586_v16  ;;  %11711 = vmatpush3.bf16.msra.mxu1 %v12210_v17  ;;  %v6074_v17 = vld [vmem:[#allocation2 + $0xa0] sm:$0xff]  ;;  %v6077_v45 = vld [vmem:[#allocation2 + $0xd0] sm:$0xff] }
 0x4a1   :  { %5262 = vst.msk [vmem:[#allocation2 + $0x89] sm:$0x1] %vm5233_vm12, %v20586_v16  ;;  %5263 = vst.msk [vmem:[#allocation2 + $0x99] sm:$0x1] %vm5233_vm12, %v20586_v16  ;;  %11728 = vmatprep.subr.bf16.mxu1 %v12211_v59 }
 0x4a2   :  { %5264 = vst.msk [vmem:[#allocation2 + $0xa9] sm:$0x1] %vm5233_vm12, %v20586_v16  ;;  %5265 = vst.msk [vmem:[#allocation2 + $0xb9] sm:$0x1] %vm5233_vm12, %v20586_v16 }
 0x4a3   :  { %5266 = vst.msk [vmem:[#allocation2 + $0xc9] sm:$0x1] %vm5233_vm12, %v20586_v16  ;;  %5267 = vst.msk [vmem:[#allocation2 + $0xd9] sm:$0x1] %vm5233_vm12, %v20586_v16  ;;  %11697 = vmatmul.mubr.msk.bf16.gmra.mrb[68].mxu1 %vm2056_vm3, %v18423_v42 }
 0x4a4   :  { %5268 = vst.msk [vmem:[#allocation2 + $0xe9] sm:$0x1] %vm5233_vm12, %v20586_v16  ;;  %5269 = vst.msk [vmem:[#allocation2 + $0xf9] sm:$0x1] %vm5233_vm12, %v20586_v16  ;;  %v18425_v40 = vld [vmem:[#allocation2 + $0x12] sm:$0xff]  ;;  %11700 = vmatprep.mubr.msk.bf16.mxu1 %vm2056_vm3, %v6114_v32  ;;  %v6086_v32 = vpack.c.bf16 %v6075_v60, %v6074_v17  ;;  %v6389_v54 = vld [vmem:[#allocation2 + $0x2] sm:$0xff] }
 0x4a5   :  { %5270 = vst.msk [vmem:[#allocation2 + $0x109] sm:$0x1] %vm5233_vm12, %v20586_v16  ;;  %5271 = vst.msk [vmem:[#allocation2 + $0x119] sm:$0x1] %vm5233_vm12, %v20586_v16  ;;  %v18428_v63 = vld [vmem:[#allocation2 + $0x22] sm:$0xff]  ;;  %v18430_v6 = vld [vmem:[#allocation2 + $0x32] sm:$0xff] }
 0x4a6   :  { %5272 = vst.msk [vmem:[#allocation2 + $0x129] sm:$0x1] %vm5233_vm12, %v20586_v16  ;;  %5273 = vst.msk [vmem:[#allocation2 + $0x139] sm:$0x1] %vm5233_vm12, %v20586_v16  ;;  %v18432_v33 = vld [vmem:[#allocation2 + $0x42] sm:$0xff]  ;;  %v18436_v23 = vld [vmem:[#allocation2 + $0x52] sm:$0xff]  ;;  %v18536_v0 = vpack.c.bf16 %v18430_v6, %v18428_v63 }
 0x4a7   :  { %6063 = vst.msk [vmem:[#allocation2 + $0x101] sm:$0xff] %vm2056_vm3, %v6018_v20  ;;  %6064 = vst.msk [vmem:[#allocation2 + $0x111] sm:$0xff] %vm2056_vm3, %v6025_v57  ;;  %v18438_v52 = vld [vmem:[#allocation2 + $0x62] sm:$0xff]  ;;  %v18503_v20 = vpack.c.bf16 %v18493_v12, %v18491_v24  ;;  %v12213_v57 = vld [vmem:[%s19874_s4 + $0x30] sm:$0xff]   ;;  %v18543_v25 = vpack.c.bf16 %v18436_v23, %v18432_v33 }
 0x4a8   :  { %v6079_v16 = vld [vmem:[#allocation2 + $0xf0] sm:$0xff] }
 0x4a9   :  { %v18445_v18 = vld [vmem:[#allocation2 + $0xb2] sm:$0xff]  ;;  %v6397_v46 = vld [vmem:[#allocation2 + $0xa2] sm:$0xff] }
 0x4aa   :  { %v18447_v31 = vld [vmem:[#allocation2 + $0xc2] sm:$0xff]  ;;  %v18451_v39 = vld [vmem:[#allocation2 + $0xd2] sm:$0xff]  ;;  %v6409_v48 = vpack.c.bf16 %v18445_v18, %v6397_v46 }
 0x4ab   :  { %v18453_v15 = vld [vmem:[#allocation2 + $0xe2] sm:$0xff]  ;;  %v18455_v36 = vld [vmem:[#allocation2 + $0xf2] sm:$0xff]  ;;  %11701 = vmatmul.mubr.msk.bf16.gmra.mrb[72].mxu1 %vm2056_vm3, %v18467_v26 }
 0x4ac   :  { %11704 = vmatprep.mubr.msk.bf16.mxu1 %vm2056_vm3, %v18471_v5  ;;  %v18568_v10 = vpack.c.bf16 %v18455_v36, %v18453_v15 }
 0x4ae   :  { %v18412_v9 = vld [vmem:[#allocation2 + $0x101] sm:$0xff]  ;;  %v18477_v49 = vld [vmem:[#allocation2 + $0x111] sm:$0xff]  ;;  %22590 = vst [vmem:[#allocation197_spill] sm:$0xff] %v18568_v10 }
 0x4af   :  { %v18459_v21 = vld [vmem:[#allocation2 + $0x102] sm:$0xff]  ;;  %v18483_v55 = vpack.c.bf16 %v18477_v49, %v18412_v9  ;;  %v6081_v17 = vld [vmem:[#allocation2 + $0x110] sm:$0xff] }
 0x4b0   :  { %v18574_v46 = vld [vmem:[#allocation2 + $0x112] sm:$0xff] }
 0x4b3   :  { %11705 = vmatmul.mubr.msk.bf16.gmra.mrb[76].mxu1 %vm2056_vm3, %v18483_v55 }
 0x4b4   :  { %11712 = vmatprep.mubr.msk.bf16.mxu1 %vm2056_vm3, %v6082_v47  ;;  %v6078_v47 = vld [vmem:[#allocation2 + $0xe0] sm:$0xff] }
 0x4b5   :  { %v18522_v44 = vpack.c.bf16 %v6079_v16, %v6078_v47 }
 0x4bb   :  { %11713 = vmatmul.mubr.msk.bf16.vlgmr.msra.gmra.mrb[64].mxu1 %vm2056_vm3, %v18496_v28 }
 0x4bc   :  { %11729 = vmatpush3.bf16.msra.mxu1 %v12211_v59  ;;  %11716 = vmatprep.mubr.msk.bf16.mxu1 %vm2056_vm3, %v18503_v20  ;;  %v6076_v59 = vld [vmem:[#allocation2 + $0xc0] sm:$0xff] }
 0x4bd   :  { %11730 = vmatprep.subr.bf16.mxu1 %v12212_v2  ;;  %v18520_v30 = vpack.c.bf16 %v6077_v45, %v6076_v59  ;;  %v6587_v24 = vpack.c.bf16 %v6076_v59, %v6075_v60  ;;  %v22593_v60 = vpack.c.bf16 %v18279_v29, %v18277_v43  ;;  %v22596_v43 = vpack.c.bf16 %v18412_v9, %v18405_v37  ;;  %v6760_v29 = vld [vmem:[#allocation2 + $0x121] sm:$0xff]  ;;  %v12221_v37 = vld [vmem:[%s19874_s4 + $0x70] sm:$0xff]  }
 0x4be   :  { %v6930_v9 = vld [vmem:[#allocation2 + $0x82] sm:$0xff] }
 0x4c0   :  { %11731 = vmatpush3.bf16.msra.mxu1 %v12212_v2  ;;  %v6080_v2 = vld [vmem:[#allocation2 + $0x100] sm:$0xff] }
 0x4c1   :  { %11748 = vmatprep.subr.bf16.mxu1 %v12213_v57  ;;  %v18528_v8 = vpack.c.bf16 %v6081_v17, %v6080_v2 }
 0x4c3   :  { %11717 = vmatmul.mubr.msk.bf16.gmra.mrb[68].mxu1 %vm2056_vm3, %v18515_v19 }
 0x4c4   :  { %11720 = vmatprep.mubr.msk.bf16.mxu1 %vm2056_vm3, %v6086_v32  ;;  %v6405_v32 = vpack.c.bf16 %v18425_v40, %v6389_v54  ;;  %v12215_v54 = vld [vmem:[%s19874_s4 + $0x40] sm:$0xff]  }
 0x4cb   :  { %11721 = vmatmul.mubr.msk.bf16.gmra.mrb[72].mxu1 %vm2056_vm3, %v18520_v30 }
 0x4cc   :  { %11724 = vmatprep.mubr.msk.bf16.mxu1 %vm2056_vm3, %v18522_v44 }
 0x4d3   :  { %11725 = vmatmul.mubr.msk.bf16.gmra.mrb[76].mxu1 %vm2056_vm3, %v18528_v8 }
 0x4d4   :  { %11732 = vmatprep.mubr.msk.bf16.mxu1 %vm2056_vm3, %v6405_v32  ;;  %v18552_v32 = vld [vmem:[#allocation2 + $0x72] sm:$0xff] }
 0x4d5   :  { %v18556_v53 = vpack.c.bf16 %v18552_v32, %v18438_v52 }
 0x4db   :  { %11733 = vmatmul.mubr.msk.bf16.vlgmr.msra.gmra.mrb[64].mxu1 %vm2056_vm3, %v18536_v0 }
 0x4dc   :  { %11749 = vmatpush3.bf16.msra.mxu1 %v12213_v57  ;;  %11736 = vmatprep.mubr.msk.bf16.mxu1 %vm2056_vm3, %v18543_v25  ;;  %v18564_v57 = vpack.c.bf16 %v18451_v39, %v18447_v31 }
 0x4dd   :  { %11750 = vmatprep.subr.bf16.mxu1 %v12214_v27 }
 0x4e0   :  { %11751 = vmatpush3.bf16.msra.mxu1 %v12214_v27  ;;  %v18578_v27 = vpack.c.bf16 %v18574_v46, %v18459_v21 }
 0x4e1   :  { %11768 = vmatprep.subr.bf16.mxu1 %v12215_v54 }
 0x4e3   :  { %11737 = vmatmul.mubr.msk.bf16.gmra.mrb[68].mxu1 %vm2056_vm3, %v18556_v53 }
 0x4e4   :  { %11740 = vmatprep.mubr.msk.bf16.mxu1 %vm2056_vm3, %v6409_v48  ;;  %v6583_v48 = vpack.c.bf16 %v6068_v34, %v18479_v58  ;;  %v12217_v58 = vld [vmem:[%s19874_s4 + $0x50] sm:$0xff]   ;;  %v6574_v34 = vld [vmem:[#allocation2 + $0x80] sm:$0xff] }
 0x4e5   :  { %v6586_v38 = vpack.c.bf16 %v6574_v34, %v18512_v22  ;;  %v12218_v22 = vld [vmem:[%s19874_s4 + $0x58] sm:$0xff]  }
 0x4eb   :  { %11741 = vmatmul.mubr.msk.bf16.gmra.mrb[72].mxu1 %vm2056_vm3, %v18564_v57 }
 0x4ec   :  { %11744 = vmatprep.mubr.msk.bf16.mxu1 %vm2056_vm3, %v18568_v10  ;;  %v6585_v10 = vpack.c.bf16 %v6072_v3, %v18493_v12  ;;  %v6588_v12 = vpack.c.bf16 %v6078_v47, %v6077_v45 }
 0x4f3   :  { %11745 = vmatmul.mubr.msk.bf16.gmra.mrb[76].mxu1 %vm2056_vm3, %v18578_v27 }
 0x4f4   :  { %11752 = vmatprep.mubr.msk.bf16.mxu1 %vm2056_vm3, %v6583_v48 }
 0x4fb   :  { %11753 = vmatmul.mubr.msk.bf16.vlgmr.msra.gmra.mrb[64].mxu1 %vm2056_vm3, %v6584_v13  ;;  %v6589_v13 = vpack.c.bf16 %v6080_v2, %v6079_v16  ;;  %v22592_v16 = vpack.c.bf16 %v18266_v7, %v18264_v56  ;;  %v22594_v56 = vpack.c.bf16 %v18378_v51, %v18290_v41  ;;  %v22595_v7 = vpack.c.bf16 %v18382_v4, %v18380_v50  ;;  %v12220_v51 = vld [vmem:[%s19874_s4 + $0x68] sm:$0xff]  }
 0x4fc   :  { %11769 = vmatpush3.bf16.msra.mxu1 %v12215_v54  ;;  %11756 = vmatprep.mubr.msk.bf16.mxu1 %vm2056_vm3, %v6585_v10  ;;  %v6582_v10 = vld [vmem:[#allocation2 + $0x120] sm:$0xff]  ;;  %v22597_v41 = vpack.c.bf16 %v18428_v63, %v18425_v40  ;;  %v22598_v50 = vpack.c.bf16 %v18432_v33, %v18430_v6  ;;  %v22599_v4 = vpack.c.bf16 %v18438_v52, %v18436_v23 }
 0x4fd   :  { %11770 = vmatprep.subr.bf16.mxu1 %v12216_v1  ;;  %v6590_v3 = vpack.c.bf16 %v6582_v10, %v6081_v17  ;;  %v6942_v40 = vpack.c.bf16 %v6930_v9, %v18552_v32  ;;  %v22600_v63 = vpack.c.bf16 %v18447_v31, %v18445_v18  ;;  %v22601_v6 = vpack.c.bf16 %v18453_v15, %v18451_v39  ;;  %v6938_v23 = vld [vmem:[#allocation2 + $0x122] sm:$0xff]  ;;  %v12222_v18 = vld [vmem:[%s19874_s4 + $0x78] sm:$0xff]   ;;  %v7109_v39 = vld [vmem:[#allocation2 + $0x90] sm:$0xff] }
 0x4fe   :  { %v22602_v33 = vpack.c.bf16 %v18459_v21, %v18455_v36  ;;  %v6946_v52 = vpack.c.bf16 %v6938_v23, %v18574_v46  ;;  %v12223_v31 = vld [vmem:[%s19874_s4 + $0x80] sm:$0xff]   ;;  %v7121_v15 = vpack.c.bf16 %v7109_v39, %v6574_v34  ;;  %v7117_v36 = vld [vmem:[#allocation2 + $0x130] sm:$0xff] }
 0x4ff   :  { %v7125_v21 = vpack.c.bf16 %v7117_v36, %v6582_v10 }
 0x500   :  { %11771 = vmatpush3.bf16.msra.mxu1 %v12216_v1  ;;  %v22591_v1 = vpack.c.bf16 %v18262_v14, %v18247_v35  ;;  %v12219_v35 = vld [vmem:[%s19874_s4 + $0x60] sm:$0xff]  }
 0x501   :  { %11788 = vmatprep.subr.bf16.mxu1 %v12217_v58  ;;  %v6752_v14 = vld [vmem:[#allocation2 + $0x81] sm:$0xff] }
 0x502   :  { %v6764_v59 = vpack.c.bf16 %v6752_v14, %v18419_v62  ;;  %v6768_v62 = vpack.c.bf16 %v6760_v29, %v18477_v49  ;;  %v12224_v49 = vld [vmem:[%s19874_s4 + $0x88] sm:$0xff]  }
 0x503   :  { %11757 = vmatmul.mubr.msk.bf16.gmra.mrb[68].mxu1 %vm2056_vm3, %v6586_v38 }
 0x504   :  { %11760 = vmatprep.mubr.msk.bf16.mxu1 %vm2056_vm3, %v6587_v24 }
 0x50b   :  { %11761 = vmatmul.mubr.msk.bf16.gmra.mrb[72].mxu1 %vm2056_vm3, %v6588_v12 }
 0x50c   :  { %11764 = vmatprep.mubr.msk.bf16.mxu1 %vm2056_vm3, %v6589_v13 }
 0x513   :  { %11765 = vmatmul.mubr.msk.bf16.gmra.mrb[76].mxu1 %vm2056_vm3, %v6590_v3 }
 0x514   :  { %11772 = vmatprep.mubr.msk.bf16.mxu1 %vm2056_vm3, %v22591_v1 }
 0x51b   :  { %11773 = vmatmul.mubr.msk.bf16.vlgmr.msra.gmra.mrb[64].mxu1 %vm2056_vm3, %v22592_v16 }
 0x51c   :  { %11789 = vmatpush3.bf16.msra.mxu1 %v12217_v58  ;;  %11776 = vmatprep.mubr.msk.bf16.mxu1 %vm2056_vm3, %v22593_v60 }
 0x51d   :  { %11790 = vmatprep.subr.bf16.mxu1 %v12218_v22 }
 0x520   :  { %11791 = vmatpush3.bf16.msra.mxu1 %v12218_v22 }
 0x521   :  { %11808 = vmatprep.subr.bf16.mxu1 %v12219_v35 }
 0x523   :  { %11777 = vmatmul.mubr.msk.bf16.gmra.mrb[68].mxu1 %vm2056_vm3, %v6764_v59 }
 0x524   :  { %11780 = vmatprep.mubr.msk.bf16.mxu1 %vm2056_vm3, %v22594_v56 }
 0x52b   :  { %11781 = vmatmul.mubr.msk.bf16.gmra.mrb[72].mxu1 %vm2056_vm3, %v22595_v7 }
 0x52c   :  { %11784 = vmatprep.mubr.msk.bf16.mxu1 %vm2056_vm3, %v22596_v43 }
 0x533   :  { %11785 = vmatmul.mubr.msk.bf16.gmra.mrb[76].mxu1 %vm2056_vm3, %v6768_v62 }
 0x534   :  { %11792 = vmatprep.mubr.msk.bf16.mxu1 %vm2056_vm3, %v22597_v41 }
 0x53b   :  { %11793 = vmatmul.mubr.msk.bf16.vlgmr.msra.gmra.mrb[64].mxu1 %vm2056_vm3, %v22598_v50 }
 0x53c   :  { %11809 = vmatpush3.bf16.msra.mxu1 %v12219_v35  ;;  %11796 = vmatprep.mubr.msk.bf16.mxu1 %vm2056_vm3, %v22599_v4 }
 0x53d   :  { %11810 = vmatprep.subr.bf16.mxu1 %v12220_v51 }
 0x540   :  { %11811 = vmatpush3.bf16.msra.mxu1 %v12220_v51 }
 0x541   :  { %11828 = vmatprep.subr.bf16.mxu1 %v12221_v37 }
 0x543   :  { %11797 = vmatmul.mubr.msk.bf16.gmra.mrb[68].mxu1 %vm2056_vm3, %v6942_v40 }
 0x544   :  { %11800 = vmatprep.mubr.msk.bf16.mxu1 %vm2056_vm3, %v22600_v63 }
 0x54b   :  { %11801 = vmatmul.mubr.msk.bf16.gmra.mrb[72].mxu1 %vm2056_vm3, %v22601_v6 }
 0x54c   :  { %11804 = vmatprep.mubr.msk.bf16.mxu1 %vm2056_vm3, %v22602_v33 }
 0x553   :  { %11805 = vmatmul.mubr.msk.bf16.gmra.mrb[76].mxu1 %vm2056_vm3, %v6946_v52 }
 0x554   :  { %11812 = vmatprep.mubr.msk.bf16.mxu1 %vm2056_vm3, %v18496_v28 }
 0x55b   :  { %11813 = vmatmul.mubr.msk.bf16.vlgmr.msra.gmra.mrb[64].mxu1 %vm2056_vm3, %v18503_v20 }
 0x55c   :  { %11829 = vmatpush3.bf16.msra.mxu1 %v12221_v37  ;;  %11816 = vmatprep.mubr.msk.bf16.mxu1 %vm2056_vm3, %v18515_v19 }
 0x55d   :  { %11830 = vmatprep.subr.bf16.mxu1 %v12222_v18 }
 0x560   :  { %11831 = vmatpush3.bf16.msra.mxu1 %v12222_v18 }
 0x561   :  { %11848 = vmatprep.subr.bf16.mxu1 %v12223_v31 }
 0x563   :  { %11817 = vmatmul.mubr.msk.bf16.gmra.mrb[68].mxu1 %vm2056_vm3, %v7121_v15 }
 0x564   :  { %11820 = vmatprep.mubr.msk.bf16.mxu1 %vm2056_vm3, %v18520_v30 }
 0x56b   :  { %11821 = vmatmul.mubr.msk.bf16.gmra.mrb[72].mxu1 %vm2056_vm3, %v18522_v44 }
 0x56c   :  { %11824 = vmatprep.mubr.msk.bf16.mxu1 %vm2056_vm3, %v18528_v8  ;;  %v7287_v8 = vld [vmem:[#allocation2 + $0x91] sm:$0xff] }
 0x56d   :  { %v7299_v44 = vpack.c.bf16 %v7287_v8, %v6752_v14 }
 0x573   :  { %11825 = vmatmul.mubr.msk.bf16.gmra.mrb[76].mxu1 %vm2056_vm3, %v7125_v21 }
 0x574   :  { %11832 = vmatprep.mubr.msk.bf16.mxu1 %vm2056_vm3, %v18392_v11  ;;  %v7295_v11 = vld [vmem:[#allocation2 + $0x131] sm:$0xff] }
 0x57b   :  { %11833 = vmatmul.mubr.msk.bf16.vlgmr.msra.gmra.mrb[64].mxu1 %vm2056_vm3, %v18401_v61  ;;  %v7303_v61 = vpack.c.bf16 %v7295_v11, %v6760_v29 }
 0x57c   :  { %11849 = vmatpush3.bf16.msra.mxu1 %v12223_v31  ;;  %11836 = vmatprep.mubr.msk.bf16.mxu1 %vm2056_vm3, %v18423_v42  ;;  %v7465_v42 = vld [vmem:[#allocation2 + $0x92] sm:$0xff] }
 0x57d   :  { %11850 = vmatprep.subr.bf16.mxu1 %v12224_v49  ;;  %v7477_v30 = vpack.c.bf16 %v7465_v42, %v6930_v9 }
 0x580   :  { %11851 = vmatpush3.bf16.msra.mxu1 %v12224_v49 }
 0x583   :  { %11837 = vmatmul.mubr.msk.bf16.gmra.mrb[68].mxu1 %vm2056_vm3, %v7299_v44 }
 0x584   :  { %11840 = vmatprep.mubr.msk.bf16.mxu1 %vm2056_vm3, %v18467_v26  ;;  %v22603_v26 = vld [vmem:[#allocation197_spill] sm:$0xff] }
 0x58b   :  { %11841 = vmatmul.mubr.msk.bf16.gmra.mrb[72].mxu1 %vm2056_vm3, %v18471_v5 }
 0x58c   :  { %11844 = vmatprep.mubr.msk.bf16.mxu1 %vm2056_vm3, %v18483_v55 }
 0x593   :  { %11845 = vmatmul.mubr.msk.bf16.gmra.mrb[76].mxu1 %vm2056_vm3, %v7303_v61 }
 0x594   :  { %11852 = vmatprep.mubr.msk.bf16.mxu1 %vm2056_vm3, %v18536_v0  ;;  %v7473_v0 = vld [vmem:[#allocation2 + $0x132] sm:$0xff] }
 0x595   :  { %v7481_v5 = vpack.c.bf16 %v7473_v0, %v6938_v23 }
 0x59b   :  { %11853 = vmatmul.mubr.msk.bf16.vlgmr.msra.gmra.mrb[64].mxu1 %vm2056_vm3, %v18543_v25 }
 0x59c   :  { %11856 = vmatprep.mubr.msk.bf16.mxu1 %vm2056_vm3, %v18556_v53 }
 0x5a3   :  { %11857 = vmatmul.mubr.msk.bf16.gmra.mrb[68].mxu1 %vm2056_vm3, %v7477_v30 }
 0x5a4   :  { %11860 = vmatprep.mubr.msk.bf16.mxu1 %vm2056_vm3, %v18564_v57 }
 0x5ab   :  { %11861 = vmatmul.mubr.msk.bf16.gmra.mrb[72].mxu1 %vm2056_vm3, %v22603_v26 }
 0x5ac   :  { %11864 = vmatprep.mubr.msk.bf16.mxu1 %vm2056_vm3, %v18578_v27 }
 0x5b3   :  { %11865 = vmatmul.mubr.msk.bf16.gmra.mrb[76].mxu1 %vm2056_vm3, %v7481_v5 }
 0x66e   :  { %v11854_v25 = vpop.f32.mrb[64].mxu1 }
 0x66f   :  { %v7557_v53 = vpop.f32.mrb[65].mxu1  ;;  %v7640_v47 = vsel %vm7636_vm13, %v11854_v25, 0.0 }
 0x670   :  { %v11855_v55 = vpop.f32.mrb[66].mxu1  ;;  %v7637_v20 = vsel %vm7636_vm13, %v7557_v53, 0.0 }
 0x671   :  { %v7560_v28 = vpop.f32.mrb[67].mxu1  ;;  %v7642_v17 = vsel %vm7636_vm13, %v11855_v55, 0.0 }
 0x672   :  { %v7638_v19 = vsel %vm7636_vm13, %v7560_v28, 0.0 }
 0x673   :  { %v7639_v45 = vadd.f32 %v7638_v19, %v7637_v20 }
 0x675   :  { %v7641_v2 = vadd.f32 %v7640_v47, %v7639_v45 }
 0x676   :  { %v11858_v54 = vpop.f32.mrb[68].mxu1 }
 0x677   :  { %v7573_v32 = vpop.f32.mrb[69].mxu1  ;;  %v7643_v57 = vadd.f32 %v7642_v17, %v7641_v2  ;;  %v7648_v24 = vsel %vm7636_vm13, %v11858_v54, 0.0 }
 0x678   :  { %v7644_v46 = vsel %vm7636_vm13, %v7573_v32, 0.0  ;;  %v11859_v27 = vpop.f32.mrb[70].mxu1 }
 0x679   :  { %v7645_v48 = vadd.f32 %v7644_v46, %v7643_v57  ;;  %v7576_v58 = vpop.f32.mrb[71].mxu1  ;;  %v7650_v13 = vsel %vm7636_vm13, %v11859_v27, 0.0 }
 0x67a   :  { %v7646_v34 = vsel %vm7636_vm13, %v7576_v58, 0.0 }
 0x67b   :  { %v7647_v38 = vadd.f32 %v7646_v34, %v7645_v48 }
 0x67d   :  { %v7649_v12 = vadd.f32 %v7648_v24, %v7647_v38 }
 0x67e   :  { %v11862_v10 = vpop.f32.mrb[72].mxu1 }
 0x67f   :  { %v7589_v3 = vpop.f32.mrb[73].mxu1  ;;  %v7651_v1 = vadd.f32 %v7650_v13, %v7649_v12  ;;  %v7656_v56 = vsel %vm7636_vm13, %v11862_v10, 0.0 }
 0x680   :  { %v7652_v22 = vsel %vm7636_vm13, %v7589_v3, 0.0  ;;  %v11863_v16 = vpop.f32.mrb[74].mxu1 }
 0x681   :  { %v7653_v60 = vadd.f32 %v7652_v22, %v7651_v1  ;;  %v7592_v35 = vpop.f32.mrb[75].mxu1  ;;  %v7658_v43 = vsel %vm7636_vm13, %v11863_v16, 0.0 }
 0x682   :  { %v7654_v14 = vsel %vm7636_vm13, %v7592_v35, 0.0 }
 0x683   :  { %v7655_v59 = vadd.f32 %v7654_v14, %v7653_v60 }
 0x685   :  { %v7657_v7 = vadd.f32 %v7656_v56, %v7655_v59 }
 0x686   :  { %v11866_v29 = vpop.f32.mrb[76].mxu1 }
 0x687   :  { %v7605_v62 = vpop.f32.mrb[77].mxu1  ;;  %v7659_v41 = vadd.f32 %v7658_v43, %v7657_v7  ;;  %v7664_v63 = vsel %vm7636_vm13, %v11866_v29, 0.0 }
 0x688   :  { %v7660_v51 = vsel %vm7636_vm13, %v7605_v62, 0.0  ;;  %v11867_v50 = vpop.f32.mrb[78].mxu1 }
 0x689   :  { %v7661_v4 = vadd.f32 %v7660_v51, %v7659_v41  ;;  %v7608_v37 = vpop.f32.mrb[79].mxu1  ;;  %v7666_v33 = vsel %vm7636_vm13, %v11867_v50, 0.0 }
 0x68a   :  { %v7662_v9 = vsel %vm7636_vm13, %v7608_v37, 0.0 }
 0x68b   :  { %v7663_v40 = vadd.f32 %v7662_v9, %v7661_v4 }
 0x68d   :  { %v7665_v6 = vadd.f32 %v7664_v63, %v7663_v40 }
 0x68f   :  { %v7667_v23 = vadd.f32 %v7666_v33, %v7665_v6 }
 0x691   :  { %v7668_v52 = vrot.slane %v7667_v23, 4 }
 0x693   :  { %v7669_v18 = vadd.f32 %v7668_v52, %v7667_v23 }
 0x695   :  { %v7670_v31 = vrot.slane %v7669_v18, 2 }
 0x697   :  { %v7671_v39 = vadd.f32 %v7670_v31, %v7669_v18 }
 0x699   :  { %v7672_v15 = vrot.slane %v7671_v39, 1 }
 0x69b   :  { %v7673_v36 = vadd.f32 %v7672_v15, %v7671_v39 }
 0x69d   :  { %v7675_v21 = vmul.f32 0.0078125, %v7673_v36 }
 0x69f   :  { %v18736_v49 = vsub.f32 %v7557_v53, %v7675_v21  ;;  %v18738_v8 = vsub.f32 %v7560_v28, %v7675_v21  ;;  %v18740_v44 = vsub.f32 %v11854_v25, %v7675_v21  ;;  %v18742_v11 = vsub.f32 %v11855_v55, %v7675_v21 }
 0x6a0   :  { %v18744_v61 = vsub.f32 %v7573_v32, %v7675_v21  ;;  %v18746_v42 = vsub.f32 %v7576_v58, %v7675_v21  ;;  %v18748_v30 = vsub.f32 %v11858_v54, %v7675_v21  ;;  %v18750_v26 = vsub.f32 %v11859_v27, %v7675_v21 }
 0x6a1   :  { %v18752_v0 = vsub.f32 %v7589_v3, %v7675_v21  ;;  %v18754_v5 = vsub.f32 %v7592_v35, %v7675_v21  ;;  %v18756_v53 = vsub.f32 %v11862_v10, %v7675_v21  ;;  %v18758_v28 = vsub.f32 %v11863_v16, %v7675_v21 }
 0x6a2   :  { %v18760_v25 = vsub.f32 %v7605_v62, %v7675_v21  ;;  %v18762_v55 = vsub.f32 %v7608_v37, %v7675_v21  ;;  %v18764_v20 = vsub.f32 %v11866_v29, %v7675_v21  ;;  %v18766_v19 = vsub.f32 %v11867_v50, %v7675_v21 }
 0x6a3   :  { %v7692_v45 = vmul.f32 %v18736_v49, %v18736_v49  ;;  %v7693_v47 = vmul.f32 %v18738_v8, %v18738_v8  ;;  %v7694_v2 = vmul.f32 %v18740_v44, %v18740_v44  ;;  %v7701_v17 = vmul.f32 %v18754_v5, %v18754_v5 }
 0x6a4   :  { %v7702_v54 = vmul.f32 %v18756_v53, %v18756_v53  ;;  %v7695_v32 = vmul.f32 %v18742_v11, %v18742_v11  ;;  %v7703_v57 = vmul.f32 %v18758_v28, %v18758_v28  ;;  %v7704_v46 = vmul.f32 %v18760_v25, %v18760_v25 }
 0x6a5   :  { %v7705_v27 = vmul.f32 %v18762_v55, %v18762_v55  ;;  %v7706_v48 = vmul.f32 %v18764_v20, %v18764_v20  ;;  %v7707_v58 = vmul.f32 %v18766_v19, %v18766_v19  ;;  %v7708_v34 = vsel %vm7636_vm13, %v7692_v45, 0.0 }
 0x6a6   :  { %v7709_v38 = vsel %vm7636_vm13, %v7693_v47, 0.0  ;;  %v7696_v12 = vmul.f32 %v18744_v61, %v18744_v61  ;;  %v7711_v13 = vsel %vm7636_vm13, %v7694_v2, 0.0  ;;  %v7725_v10 = vsel %vm7636_vm13, %v7701_v17, 0.0 }
 0x6a7   :  { %v7710_v24 = vadd.f32 %v7709_v38, %v7708_v34  ;;  %v7727_v3 = vsel %vm7636_vm13, %v7702_v54, 0.0  ;;  %v7729_v22 = vsel %vm7636_vm13, %v7703_v57, 0.0  ;;  %v7731_v16 = vsel %vm7636_vm13, %v7704_v46, 0.0  ;;  %v7746_v46 = vld [vmem:[%s19875_s5] sm:$0x1] }
 0x6a8   :  { %v7733_v60 = vsel %vm7636_vm13, %v7705_v27, 0.0  ;;  %v7697_v35 = vmul.f32 %v18746_v42, %v18746_v42  ;;  %v7713_v14 = vsel %vm7636_vm13, %v7695_v32, 0.0  ;;  %v7735_v59 = vsel %vm7636_vm13, %v7706_v48, 0.0 }
 0x6a9   :  { %v7712_v1 = vadd.f32 %v7711_v13, %v7710_v24  ;;  %v7737_v56 = vsel %vm7636_vm13, %v7707_v58, 0.0  ;;  %v7698_v43 = vmul.f32 %v18748_v30, %v18748_v30  ;;  %v7715_v29 = vsel %vm7636_vm13, %v7696_v12, 0.0  ;;  %v22604_v58 = vld [vmem:[#allocation84_spill] sm:$0xff] }
 0x6aa   :  { %v7699_v41 = vmul.f32 %v18750_v26, %v18750_v26  ;;  %v7717_v51 = vsel %vm7636_vm13, %v7697_v35, 0.0  ;;  %v7700_v4 = vmul.f32 %v18752_v0, %v18752_v0 }
 0x6ab   :  { %v7714_v7 = vadd.f32 %v7713_v14, %v7712_v1  ;;  %v7719_v37 = vsel %vm7636_vm13, %v7698_v43, 0.0 }
 0x6ac   :  { %v7721_v40 = vsel %vm7636_vm13, %v7699_v41, 0.0  ;;  %v7723_v6 = vsel %vm7636_vm13, %v7700_v4, 0.0 }
 0x6ad   :  { %v7716_v62 = vadd.f32 %v7715_v29, %v7714_v7 }
 0x6af   :  { %v7718_v50 = vadd.f32 %v7717_v51, %v7716_v62 }
 0x6b1   :  { %v7720_v9 = vadd.f32 %v7719_v37, %v7718_v50 }
 0x6b3   :  { %v7722_v63 = vadd.f32 %v7721_v40, %v7720_v9 }
 0x6b5   :  { %v7724_v33 = vadd.f32 %v7723_v6, %v7722_v63 }
 0x6b7   :  { %v7726_v23 = vadd.f32 %v7725_v10, %v7724_v33 }
 0x6b9   :  { %v7728_v52 = vadd.f32 %v7727_v3, %v7726_v23 }
 0x6bb   :  { %v7730_v18 = vadd.f32 %v7729_v22, %v7728_v52 }
 0x6bd   :  { %v7732_v31 = vadd.f32 %v7731_v16, %v7730_v18  ;;  %v11315_v16 = vld [vmem:[%s19876_s6] ss:$0 sm:$0xff] }
 0x6bf   :  { %v7734_v39 = vadd.f32 %v7733_v60, %v7732_v31 }
 0x6c1   :  { %v7736_v15 = vadd.f32 %v7735_v59, %v7734_v39 }
 0x6c3   :  { %v7738_v36 = vadd.f32 %v7737_v56, %v7736_v15 }
 0x6c5   :  { %v7739_v21 = vrot.slane %v7738_v36, 4 }
 0x6c7   :  { %v7740_v45 = vadd.f32 %v7739_v21, %v7738_v36  ;;  %v22605_v36 = vld [vmem:[#allocation112_spill] sm:$0xff] }
 0x6c9   :  { %v7741_v47 = vrot.slane %v7740_v45, 2 }
 0x6cb   :  { %v7742_v2 = vadd.f32 %v7741_v47, %v7740_v45 }
 0x6cd   :  { %v7743_v17 = vrot.slane %v7742_v2, 1 }
 0x6cf   :  { %v7744_v54 = vadd.f32 %v7743_v17, %v7742_v2 }
 0x6d1   :  { %v7745_v32 = vmul.f32 0.0078125, %v7744_v54 }
 0x6d3   :  { %v7747_v57 = vadd.f32 1e-05, %v7745_v32 }
 0x6d5   :  { %12227 = vrsqrt.f32 %v7747_v57 }
 0x6df   :  { %v12228_v27 = vpop.eup %12227 }
 0x6e0   :  { %v7749_v48 = vmul.f32 %v12228_v27, %v7746_v46 }
 0x6e2   :  { %v7754_v34 = vrot.slane %v7749_v48, %v22604_v58 }
 0x6e4   :  { %v7756_v38 = vmul.f32 %v7754_v34, %v18736_v49  ;;  %v7757_v24 = vmul.f32 %v7754_v34, %v18738_v8  ;;  %v7758_v12 = vmul.f32 %v7754_v34, %v18740_v44  ;;  %v7759_v13 = vmul.f32 %v7754_v34, %v18742_v11 }
 0x6e5   :  { %v7760_v10 = vmul.f32 %v7754_v34, %v18744_v61  ;;  %v7761_v3 = vmul.f32 %v7754_v34, %v18746_v42  ;;  %v7762_v1 = vmul.f32 %v7754_v34, %v18748_v30  ;;  %v7763_v22 = vmul.f32 %v7754_v34, %v18750_v26 }
 0x6e6   :  { %v7764_v49 = vmul.f32 %v7754_v34, %v18752_v0  ;;  %v7765_v8 = vmul.f32 %v7754_v34, %v18754_v5  ;;  %v7766_v44 = vmul.f32 %v7754_v34, %v18756_v53  ;;  %v7767_v11 = vmul.f32 %v7754_v34, %v18758_v28 }
 0x6e7   :  { %v7768_v61 = vmul.f32 %v7754_v34, %v18760_v25  ;;  %v7769_v42 = vmul.f32 %v7754_v34, %v18762_v55  ;;  %v7770_v30 = vmul.f32 %v7754_v34, %v18764_v20  ;;  %v7771_v26 = vmul.f32 %v7754_v34, %v18766_v19 }
 0x6e8   :  { %v7779_v60 = vadd.f32 %v11315_v16, %v7756_v38  ;;  %v7780_v35 = vadd.f32 %v11315_v16, %v7757_v24  ;;  %v7781_v14 = vadd.f32 %v11315_v16, %v7758_v12  ;;  %v7782_v59 = vadd.f32 %v11315_v16, %v7759_v13 }
 0x6e9   :  { %v7783_v56 = vadd.f32 %v11315_v16, %v7760_v10  ;;  %v7784_v0 = vadd.f32 %v11315_v16, %v7761_v3  ;;  %v7785_v7 = vadd.f32 %v11315_v16, %v7762_v1  ;;  %v7786_v5 = vadd.f32 %v11315_v16, %v7763_v22 }
 0x6ea   :  { %v7787_v43 = vadd.f32 %v11315_v16, %v7764_v49  ;;  %v7788_v53 = vadd.f32 %v11315_v16, %v7765_v8  ;;  %v7789_v29 = vadd.f32 %v11315_v16, %v7766_v44  ;;  %v7790_v28 = vadd.f32 %v11315_v16, %v7767_v11 }
 0x6eb   :  { %v7791_v62 = vadd.f32 %v11315_v16, %v7768_v61  ;;  %v7792_v25 = vadd.f32 %v11315_v16, %v7769_v42  ;;  %v7793_v41 = vadd.f32 %v11315_v16, %v7770_v30  ;;  %v7794_v55 = vadd.f32 %v11315_v16, %v7771_v26 }
 0x6ec   :  { %v7795_v51 = vmax.f32 %v7779_v60, 0.0  ;;  %v7796_v20 = vmax.f32 %v7780_v35, 0.0  ;;  %v7797_v50 = vmax.f32 %v7781_v14, 0.0  ;;  %v7798_v19 = vmax.f32 %v7782_v59, 0.0 }
 0x6ed   :  { %v7799_v4 = vmax.f32 %v7783_v56, 0.0  ;;  %v7800_v37 = vmax.f32 %v7784_v0, 0.0  ;;  %v7801_v9 = vmax.f32 %v7785_v7, 0.0  ;;  %v7802_v40 = vmax.f32 %v7786_v5, 0.0 }
 0x6ee   :  { %v7803_v63 = vmax.f32 %v7787_v43, 0.0  ;;  %v7804_v6 = vmax.f32 %v7788_v53, 0.0  ;;  %v7805_v33 = vmax.f32 %v7789_v29, 0.0  ;;  %v18839_v23 = vmax.f32 %v7790_v28, 0.0 }
 0x6ef   :  { %v18841_v52 = vmax.f32 %v7791_v62, 0.0  ;;  %v18843_v18 = vmax.f32 %v7792_v25, 0.0  ;;  %v18845_v31 = vmax.f32 %v7793_v41, 0.0  ;;  %v18847_v39 = vmax.f32 %v7794_v55, 0.0 }
 0x6f0   :  { %v7827_v15 = vcombine.high %v7795_v51, %v7795_v51  ;;  %v18850_v21 = vrot.slane %v7795_v51, %v22605_v36  ;;  %v7844_v45 = vcombine.high %v7796_v20, %v7796_v20  ;;  %v18853_v47 = vrot.slane %v7796_v20, %v22605_v36 }
 0x6f1   :  { %v7861_v2 = vcombine.high %v7797_v50, %v7797_v50  ;;  %v18856_v17 = vrot.slane %v7797_v50, %v22605_v36  ;;  %v7878_v54 = vcombine.high %v7798_v19, %v7798_v19  ;;  %v18859_v32 = vrot.slane %v7798_v19, %v22605_v36 }
 0x6f2   :  { %22606 = vst [vmem:[#allocation199_spill] sm:$0xff] %v18850_v21  ;;  %22607 = vst [vmem:[#allocation170_spill] sm:$0xff] %v18853_v47  ;;  %v18862_v57 = vrot.slane %v7827_v15, %v22605_v36  ;;  %v18866_v46 = vcombine.high %v18850_v21, %v18850_v21  ;;  %v18869_v27 = vrot.slane %v7844_v45, %v22605_v36 }
 0x6f3   :  { %v18873_v48 = vcombine.high %v18853_v47, %v18853_v47  ;;  %v18876_v34 = vrot.slane %v7861_v2, %v22605_v36  ;;  %v18880_v38 = vcombine.high %v18856_v17, %v18856_v17  ;;  %v18883_v24 = vrot.slane %v7878_v54, %v22605_v36 }
 0x6f4   :  { %22608 = vst [vmem:[#allocation202_spill] sm:$0xff] %v18862_v57  ;;  %22609 = vst [vmem:[#allocation244_spill] sm:$0xff] %v18866_v46  ;;  %v18887_v12 = vcombine.high %v18859_v32, %v18859_v32  ;;  %v18891_v13 = vcombine.high %v18862_v57, %v18862_v57  ;;  %v18895_v10 = vcombine.high %v18869_v27, %v18869_v27 }
 0x6f5   :  { %v7895_v3 = vcombine.high %v7799_v4, %v7799_v4  ;;  %v18898_v1 = vrot.slane %v7799_v4, %v22605_v36  ;;  %v18902_v22 = vcombine.high %v18876_v34, %v18876_v34  ;;  %v18906_v16 = vcombine.high %v18883_v24, %v18883_v24 }
 0x6f6   :  { %22610 = vst [vmem:[#allocation215_spill] sm:$0xff] %v18891_v13  ;;  %v7912_v49 = vcombine.high %v7800_v37, %v7800_v37  ;;  %v18909_v8 = vrot.slane %v7800_v37, %v22605_v36  ;;  %v7929_v61 = vcombine.high %v7801_v9, %v7801_v9  ;;  %v18919_v42 = vrot.slane %v7801_v9, %v22605_v36 }
 0x6f7   :  { %v18912_v44 = vrot.slane %v7895_v3, %v22605_v36  ;;  %v18916_v11 = vcombine.high %v18898_v1, %v18898_v1  ;;  %v7946_v60 = vcombine.high %v7802_v40, %v7802_v40  ;;  %v18929_v35 = vrot.slane %v7802_v40, %v22605_v36 }
 0x6f8   :  { %v18922_v30 = vrot.slane %v7912_v49, %v22605_v36  ;;  %v18926_v26 = vcombine.high %v18909_v8, %v18909_v8  ;;  %v18936_v59 = vrot.slane %v7929_v61, %v22605_v36  ;;  %v18940_v56 = vcombine.high %v18919_v42, %v18919_v42 }
 0x6f9   :  { %v18933_v14 = vcombine.high %v18912_v44, %v18912_v44  ;;  %v7963_v0 = vcombine.high %v7803_v63, %v7803_v63  ;;  %v18947_v5 = vrot.slane %v7946_v60, %v22605_v36  ;;  %v18951_v43 = vcombine.high %v18929_v35, %v18929_v35 }
 0x6fa   :  { %v18944_v7 = vcombine.high %v18922_v30, %v18922_v30  ;;  %v18954_v53 = vrot.slane %v7803_v63, %v22605_v36  ;;  %v18958_v29 = vcombine.high %v18936_v59, %v18936_v59  ;;  %v7980_v62 = vcombine.high %v7804_v6, %v7804_v6 }
 0x6fb   :  { %v18961_v28 = vrot.slane %v7963_v0, %v22605_v36  ;;  %v18964_v25 = vrot.slane %v7804_v6, %v22605_v36  ;;  %v18968_v41 = vcombine.high %v18947_v5, %v18947_v5  ;;  %v7997_v51 = vcombine.high %v7805_v33, %v7805_v33 }
 0x6fc   :  { %v18972_v55 = vcombine.high %v18954_v53, %v18954_v53  ;;  %v18975_v20 = vrot.slane %v7805_v33, %v22605_v36  ;;  %v18982_v19 = vrot.slane %v7980_v62, %v22605_v36  ;;  %v8014_v37 = vcombine.high %v18839_v23, %v18839_v23 }
 0x6fd   :  { %v18979_v50 = vcombine.high %v18961_v28, %v18961_v28  ;;  %v18986_v4 = vcombine.high %v18964_v25, %v18964_v25  ;;  %v18991_v9 = vrot.slane %v7997_v51, %v22605_v36  ;;  %v18999_v63 = vrot.slane %v18839_v23, %v22605_v36 }
 0x6fe   :  { %22611 = vst [vmem:[#allocation245_spill] sm:$0xff] %v18975_v20  ;;  %v18995_v40 = vcombine.high %v18975_v20, %v18975_v20  ;;  %v8031_v6 = vcombine.high %v18841_v52, %v18841_v52  ;;  %v19005_v33 = vcombine.high %v18982_v19, %v18982_v19  ;;  %v19008_v15 = vrot.slane %v8014_v37, %v22605_v36 }
 0x6ff   :  { %22612 = vst [vmem:[#allocation218_spill] sm:$0xff] %v18991_v9  ;;  %22614 = vst [vmem:[#allocation228_spill] sm:$0xff] %v18999_v63  ;;  %v19012_v45 = vrot.slane %v18841_v52, %v22605_v36  ;;  %v8048_v2 = vcombine.high %v18843_v18, %v18843_v18  ;;  %v19018_v23 = vcombine.high %v18991_v9, %v18991_v9  ;;  %v22628_v9 = vmov %v18850_v21 }
 0x700   :  { %22613 = vst [vmem:[#allocation247_spill] sm:$0xff] %v18995_v40  ;;  %v19022_v54 = vcombine.high %v18999_v63, %v18999_v63  ;;  %v19025_v3 = vrot.slane %v8031_v6, %v22605_v36  ;;  %v19029_v49 = vrot.slane %v18843_v18, %v22605_v36  ;;  %v19033_v52 = vcombine.high %v19008_v15, %v19008_v15 }
 0x701   :  { %v19037_v61 = vcombine.high %v19012_v45, %v19012_v45  ;;  %v19040_v60 = vrot.slane %v8048_v2, %v22605_v36  ;;  %v8065_v0 = vcombine.high %v18845_v31, %v18845_v31  ;;  %v19054_v51 = vrot.slane %v18845_v31, %v22605_v36 }
 0x702   :  { %22615 = vst [vmem:[#allocation250_spill] sm:$0xff] %v19025_v3  ;;  %22616 = vst [vmem:[#allocation229_spill] sm:$0xff] %v19029_v49  ;;  %v19046_v62 = vcombine.high %v19025_v3, %v19025_v3  ;;  %v19050_v18 = vcombine.high %v19029_v49, %v19029_v49  ;;  %v8082_v37 = vcombine.high %v18847_v39, %v18847_v39  ;;  %v22629_v13 = vrot.slane %v22628_v9, 9 }
 0x703   :  { %22619 = vst [vmem:[#allocation234_spill] sm:$0xff] %v19054_v51  ;;  %v19060_v6 = vcombine.high %v19040_v60, %v19040_v60  ;;  %v19063_v2 = vrot.slane %v8065_v0, %v22605_v36  ;;  %v19067_v58 = vrot.slane %v18847_v39, %v22605_v36  ;;  %v19072_v31 = vcombine.high %v19054_v51, %v19054_v51 }
 0x704   :  { %22617 = vst [vmem:[#allocation302_spill] sm:$0xff] %v19046_v62  ;;  %22618 = vst [vmem:[#allocation101_spill] sm:$0xff] %v19050_v18  ;;  %v19075_v49 = vrot.slane %v8082_v37, %v22605_v36  ;;  %v22623_v20 = vmov %v19046_v62  ;;  %v19155_v62 = vmax.f32 %v22628_v9, %v22629_v13  ;;  %v22633_v18 = vld [vmem:[#allocation215_spill] sm:$0xff]  ;;  %v22636_v9 = vrot.slane %v18873_v48, 9 }
 0x705   :  { %22620 = vst [vmem:[#allocation307_spill] sm:$0xff] %v19060_v6  ;;  %v19081_v0 = vcombine.high %v19063_v2, %v19063_v2  ;;  %v19085_v39 = vcombine.high %v19067_v58, %v19067_v58  ;;  %v22626_v63 = vmov %v19060_v6  ;;  %v22630_v6 = vmov %v18866_v46 }
 0x706   :  { %v19091_v37 = vcombine.high %v19075_v49, %v19075_v49  ;;  %v22631_v51 = vrot.slane %v22630_v6, 9  ;;  %v22632_v46 = vrot.slane %v18862_v57, 9  ;;  %v22634_v3 = vrot.slane %v22633_v18, 9 }
 0x707   :  { %22621 = vst [vmem:[#allocation70_spill] sm:$0xff] %v19085_v39 }
 0x708   :  { %22622 = vst [vmem:[#allocation309_spill] sm:$0xff] %v19091_v37  ;;  %v19160_v36 = vmax.f32 %v22630_v6, %v22631_v51  ;;  %v19165_v39 = vmax.f32 %v18862_v57, %v22632_v46  ;;  %v19170_v21 = vmax.f32 %v22633_v18, %v22634_v3  ;;  %v22635_v37 = vrot.slane %v18853_v47, 9 }
 0x709   :  { %v22624_v40 = vld [vmem:[#allocation229_spill] sm:$0xff]  ;;  %v19180_v51 = vmax.f32 %v18873_v48, %v22636_v9  ;;  %v22637_v6 = vrot.slane %v18869_v27, 9  ;;  %v22638_v46 = vrot.slane %v18895_v10, 9  ;;  %v22639_v18 = vrot.slane %v18856_v17, 9 }
 0x70a   :  { %v19175_v13 = vmax.f32 %v18853_v47, %v22635_v37  ;;  %v22640_v37 = vrot.slane %v18880_v38, 9  ;;  %v22641_v9 = vrot.slane %v18876_v34, 9 }
 0x70b   :  { %v19185_v57 = vmax.f32 %v18869_v27, %v22637_v6  ;;  %v19190_v3 = vmax.f32 %v18895_v10, %v22638_v46  ;;  %v19195_v47 = vmax.f32 %v18856_v17, %v22639_v18  ;;  %v22642_v6 = vrot.slane %v18902_v22, 9 }
 0x70c   :  { %v19200_v48 = vmax.f32 %v18880_v38, %v22640_v37  ;;  %v19205_v27 = vmax.f32 %v18876_v34, %v22641_v9  ;;  %v22643_v46 = vrot.slane %v18859_v32, 9  ;;  %v22644_v18 = vrot.slane %v18887_v12, 9 }
 0x70d   :  { %v19210_v10 = vmax.f32 %v18902_v22, %v22642_v6  ;;  %v22645_v37 = vrot.slane %v18883_v24, 9  ;;  %v22646_v9 = vrot.slane %v18906_v16, 9  ;;  %v22647_v6 = vrot.slane %v18898_v1, 9 }
 0x70e   :  { %v19215_v17 = vmax.f32 %v18859_v32, %v22643_v46  ;;  %v19220_v38 = vmax.f32 %v18887_v12, %v22644_v18  ;;  %v22648_v46 = vrot.slane %v18916_v11, 9  ;;  %v22649_v18 = vrot.slane %v18912_v44, 9 }
 0x70f   :  { %v19225_v34 = vmax.f32 %v18883_v24, %v22645_v37  ;;  %v19230_v22 = vmax.f32 %v18906_v16, %v22646_v9  ;;  %v19235_v32 = vmax.f32 %v18898_v1, %v22647_v6  ;;  %v22650_v37 = vrot.slane %v18933_v14, 9 }
 0x710   :  { %v19240_v12 = vmax.f32 %v18916_v11, %v22648_v46  ;;  %v19245_v24 = vmax.f32 %v18912_v44, %v22649_v18  ;;  %v22651_v9 = vrot.slane %v18909_v8, 9  ;;  %v22652_v6 = vrot.slane %v18926_v26, 9 }
 0x711   :  { %v19250_v16 = vmax.f32 %v18933_v14, %v22650_v37  ;;  %v22653_v46 = vrot.slane %v18922_v30, 9  ;;  %v22654_v18 = vrot.slane %v18944_v7, 9  ;;  %v22655_v37 = vrot.slane %v18919_v42, 9 }
 0x712   :  { %v19255_v1 = vmax.f32 %v18909_v8, %v22651_v9  ;;  %v19260_v11 = vmax.f32 %v18926_v26, %v22652_v6  ;;  %v22656_v9 = vrot.slane %v18940_v56, 9  ;;  %v22657_v6 = vrot.slane %v18936_v59, 9 }
 0x713   :  { %v19265_v44 = vmax.f32 %v18922_v30, %v22653_v46  ;;  %v19270_v14 = vmax.f32 %v18944_v7, %v22654_v18  ;;  %v19275_v8 = vmax.f32 %v18919_v42, %v22655_v37  ;;  %v22658_v46 = vrot.slane %v18958_v29, 9 }
 0x714   :  { %v19280_v26 = vmax.f32 %v18940_v56, %v22656_v9  ;;  %v19285_v30 = vmax.f32 %v18936_v59, %v22657_v6  ;;  %v22659_v18 = vrot.slane %v18929_v35, 9  ;;  %v22660_v37 = vrot.slane %v18951_v43, 9 }
 0x715   :  { %v19290_v7 = vmax.f32 %v18958_v29, %v22658_v46  ;;  %v22661_v9 = vrot.slane %v18947_v5, 9  ;;  %v22662_v6 = vrot.slane %v18968_v41, 9  ;;  %v22663_v46 = vrot.slane %v18954_v53, 9 }
 0x716   :  { %v19295_v42 = vmax.f32 %v18929_v35, %v22659_v18  ;;  %v19300_v56 = vmax.f32 %v18951_v43, %v22660_v37  ;;  %v22664_v18 = vrot.slane %v18972_v55, 9  ;;  %v22666_v37 = vrot.slane %v18961_v28, 9 }
 0x717   :  { %v19305_v59 = vmax.f32 %v18947_v5, %v22661_v9  ;;  %v19310_v29 = vmax.f32 %v18968_v41, %v22662_v6  ;;  %v19315_v35 = vmax.f32 %v18954_v53, %v22663_v46  ;;  %v22668_v9 = vrot.slane %v18979_v50, 9 }
 0x718   :  { %v19320_v43 = vmax.f32 %v18972_v55, %v22664_v18  ;;  %v19325_v5 = vmax.f32 %v18961_v28, %v22666_v37  ;;  %v22670_v6 = vrot.slane %v18964_v25, 9  ;;  %v22671_v46 = vrot.slane %v18986_v4, 9 }
 0x719   :  { %v19330_v41 = vmax.f32 %v18979_v50, %v22668_v9  ;;  %v22672_v18 = vrot.slane %v18982_v19, 9  ;;  %v22673_v37 = vrot.slane %v19005_v33, 9  ;;  %v22675_v9 = vld [vmem:[#allocation245_spill] sm:$0xff] }
 0x71a   :  { %22665 = vst [vmem:[#allocation103_spill] sm:$0xff] %v19320_v43  ;;  %22667 = vst [vmem:[#allocation308_spill] sm:$0xff] %v19325_v5  ;;  %v19335_v53 = vmax.f32 %v18964_v25, %v22670_v6  ;;  %v19340_v55 = vmax.f32 %v18986_v4, %v22671_v46  ;;  %v22677_v6 = vld [vmem:[#allocation247_spill] sm:$0xff]  ;;  %v22679_v46 = vld [vmem:[#allocation218_spill] sm:$0xff] }
 0x71b   :  { %22669 = vst [vmem:[#allocation109_spill] sm:$0xff] %v19330_v41  ;;  %v19345_v28 = vmax.f32 %v18982_v19, %v22672_v18  ;;  %v19350_v50 = vmax.f32 %v19005_v33, %v22673_v37  ;;  %v22676_v41 = vrot.slane %v22675_v9, 9  ;;  %v22678_v5 = vrot.slane %v22677_v6, 9  ;;  %v22683_v37 = vld [vmem:[#allocation228_spill] sm:$0xff] }
 0x71c   :  { %v22680_v43 = vrot.slane %v22679_v46, 9  ;;  %v22681_v18 = vrot.slane %v19018_v23, 9 }
 0x71d   :  { %22674 = vst [vmem:[#allocation310_spill] sm:$0xff] %v19350_v50  ;;  %v19355_v25 = vmax.f32 %v22675_v9, %v22676_v41  ;;  %v19360_v4 = vmax.f32 %v22677_v6, %v22678_v5  ;;  %v22684_v50 = vrot.slane %v22683_v37, 9  ;;  %v22685_v9 = vrot.slane %v19022_v54, 9 }
 0x71e   :  { %v19365_v19 = vmax.f32 %v22679_v46, %v22680_v43  ;;  %v19370_v33 = vmax.f32 %v19018_v23, %v22681_v18  ;;  %v22686_v6 = vrot.slane %v19008_v15, 9  ;;  %v22687_v46 = vrot.slane %v19033_v52, 9 }
 0x71f   :  { %v19375_v41 = vmax.f32 %v22683_v37, %v22684_v50  ;;  %v19380_v5 = vmax.f32 %v19022_v54, %v22685_v9  ;;  %v22688_v18 = vrot.slane %v19012_v45, 9  ;;  %v22690_v37 = vrot.slane %v19037_v61, 9  ;;  %v22691_v9 = vld [vmem:[#allocation250_spill] sm:$0xff] }
 0x720   :  { %22682 = vst [vmem:[#allocation108_spill] sm:$0xff] %v19370_v33  ;;  %v19385_v43 = vmax.f32 %v19008_v15, %v22686_v6  ;;  %v19390_v23 = vmax.f32 %v19033_v52, %v22687_v46  ;;  %v22692_v33 = vrot.slane %v22691_v9, 9  ;;  %v22693_v6 = vrot.slane %v22623_v20, 9 }
 0x721   :  { %v19395_v50 = vmax.f32 %v19012_v45, %v22688_v18  ;;  %v19400_v54 = vmax.f32 %v19037_v61, %v22690_v37  ;;  %v22695_v46 = vrot.slane %v22624_v40, 9  ;;  %v22696_v18 = vld [vmem:[#allocation101_spill] sm:$0xff]  ;;  %v22698_v37 = vrot.slane %v19040_v60, 9 }
 0x722   :  { %v19405_v15 = vmax.f32 %v22691_v9, %v22692_v33  ;;  %v19410_v52 = vmax.f32 %v22623_v20, %v22693_v6  ;;  %v22699_v9 = vrot.slane %v22626_v63, 9  ;;  %v22700_v6 = vld [vmem:[#allocation234_spill] sm:$0xff] }
 0x723   :  { %22689 = vst [vmem:[#allocation102_spill] sm:$0xff] %v19395_v50  ;;  %v19415_v45 = vmax.f32 %v22624_v40, %v22695_v46  ;;  %v22697_v50 = vrot.slane %v22696_v18, 9  ;;  %v19425_v33 = vmax.f32 %v19040_v60, %v22698_v37  ;;  %v22703_v46 = vrot.slane %v19072_v31, 9 }
 0x724   :  { %22694 = vst [vmem:[#allocation72_spill] sm:$0xff] %v19410_v52  ;;  %v19430_v20 = vmax.f32 %v22626_v63, %v22699_v9  ;;  %v22701_v52 = vrot.slane %v22700_v6, 9  ;;  %v22706_v37 = vrot.slane %v19081_v0, 9  ;;  %v22707_v9 = vrot.slane %v19067_v58, 9 }
 0x725   :  { %v19420_v61 = vmax.f32 %v22696_v18, %v22697_v50  ;;  %v19440_v50 = vmax.f32 %v19072_v31, %v22703_v46  ;;  %v22704_v18 = vrot.slane %v19063_v2, 9  ;;  %v22710_v46 = vrot.slane %v19075_v49, 9 }
 0x726   :  { %v19435_v40 = vmax.f32 %v22700_v6, %v22701_v52  ;;  %v19450_v63 = vmax.f32 %v19081_v0, %v22706_v37  ;;  %v19455_v52 = vmax.f32 %v19067_v58, %v22707_v9  ;;  %v22708_v6 = vld [vmem:[#allocation70_spill] sm:$0xff]  ;;  %v8419_v37 = vmax.f32 %v19155_v62, %v19175_v13 }
 0x727   :  { %v19445_v60 = vmax.f32 %v19063_v2, %v22704_v18  ;;  %v19465_v2 = vmax.f32 %v19075_v49, %v22710_v46  ;;  %v22711_v18 = vld [vmem:[#allocation309_spill] sm:$0xff]  ;;  %v8420_v58 = vmax.f32 %v19160_v36, %v19180_v51  ;;  %v8422_v9 = vmax.f32 %v19170_v21, %v19190_v3 }
 0x728   :  { %22702 = vst [vmem:[#allocation110_spill] sm:$0xff] %v19435_v40  ;;  %v22709_v40 = vrot.slane %v22708_v6, 9  ;;  %v8423_v49 = vmax.f32 %v19195_v47, %v19215_v17  ;;  %v8426_v62 = vmax.f32 %v19210_v10, %v19230_v22  ;;  %v8427_v36 = vmax.f32 %v19235_v32, %v19255_v1  ;;  %v22714_v17 = vld [vmem:[#allocation308_spill] sm:$0xff]  ;;  %v22716_v22 = vld [vmem:[#allocation109_spill] sm:$0xff] }
 0x729   :  { %22705 = vst [vmem:[#allocation104_spill] sm:$0xff] %v19445_v60  ;;  %v22712_v60 = vrot.slane %v22711_v18, 9  ;;  %v8429_v21 = vmax.f32 %v19245_v24, %v19265_v44  ;;  %v8430_v13 = vmax.f32 %v19250_v16, %v19270_v14  ;;  %v8431_v51 = vmax.f32 %v19275_v8, %v19295_v42  ;;  %v22717_v1 = vld [vmem:[#allocation108_spill] sm:$0xff] }
 0x72a   :  { %v19460_v31 = vmax.f32 %v22708_v6, %v22709_v40  ;;  %v8421_v40 = vmax.f32 %v19165_v39, %v19185_v57  ;;  %v8424_v6 = vmax.f32 %v19200_v48, %v19220_v38  ;;  %v8428_v39 = vmax.f32 %v19240_v12, %v19260_v11  ;;  %v22718_v44 = vld [vmem:[#allocation102_spill] sm:$0xff] }
 0x72b   :  { %v19470_v0 = vmax.f32 %v22711_v18, %v22712_v60  ;;  %v8425_v60 = vmax.f32 %v19205_v27, %v19225_v34  ;;  %v8432_v57 = vmax.f32 %v19280_v26, %v19300_v56  ;;  %v8433_v3 = vmax.f32 %v19285_v30, %v19305_v59  ;;  %v22713_v27 = vld [vmem:[#allocation103_spill] sm:$0xff]  ;;  %v22715_v34 = vld [vmem:[#allocation310_spill] sm:$0xff] }
 0x72c   :  { %v8434_v47 = vmax.f32 %v19290_v7, %v19310_v29  ;;  %v8435_v48 = vmax.f32 %v19315_v35, %v19335_v53  ;;  %v8436_v10 = vmax.f32 %v22713_v27, %v19340_v55  ;;  %v8437_v38 = vmax.f32 %v22714_v17, %v19345_v28  ;;  %v22719_v55 = vld [vmem:[#allocation72_spill] sm:$0xff] }
 0x72d   :  { %v8438_v32 = vmax.f32 %v22716_v22, %v22715_v34  ;;  %v8439_v12 = vmax.f32 %v19355_v25, %v19375_v41  ;;  %v8440_v24 = vmax.f32 %v19360_v4, %v19380_v5  ;;  %v8441_v16 = vmax.f32 %v19365_v19, %v19385_v43 }
 0x72e   :  { %v8442_v11 = vmax.f32 %v22717_v1, %v19390_v23  ;;  %v8443_v14 = vmax.f32 %v22718_v44, %v19415_v45  ;;  %v8444_v35 = vmax.f32 %v19400_v54, %v19420_v61  ;;  %v8445_v53 = vmax.f32 %v19405_v15, %v19425_v33  ;;  %v22722_v23 = vld [vmem:[#allocation22_spill] sm:$0xff] }
 0x72f   :  { %v8446_v28 = vmax.f32 %v22719_v55, %v19430_v20  ;;  %v22720_v25 = vld [vmem:[#allocation110_spill] sm:$0xff]  ;;  %v8448_v19 = vmax.f32 %v19440_v50, %v19460_v31  ;;  %v8450_v43 = vmax.f32 %v19450_v63, %v19470_v0  ;;  %11868 = vmatprep.subr.bf16.mxu0 %v22722_v23 }
 0x730   :  { %v8447_v4 = vmax.f32 %v22720_v25, %v19455_v52  ;;  %v22721_v41 = vld [vmem:[#allocation104_spill] sm:$0xff] }
 0x731   :  { %v8449_v5 = vmax.f32 %v22721_v41, %v19465_v2 }
 0x732   :  { %12330 = dma.done.wait [#allocation8], 4608 }
 0x733   :  { %12331 = vsyncadd [#allocation8], 4294962688  ;;  %vm8456_vm14 = vcmask 521216   ;;  %v22723_v54 = vld [vmem:[#allocation84_spill] sm:$0xff]  ;;  %11869 = vmatpush3.bf16.msra.mxu0 %v22722_v23  ;;  %v22724_v33 = vmov 0.0   ;;  %vm8680_vm15 = vcmask 519168  }
 0x734   :  { %v8522_v15 = vrot.slane %v8419_v37, %v22723_v54  ;;  %v8526_v45 = vrot.slane %v8420_v58, %v22723_v54  ;;  %v8530_v61 = vrot.slane %v8421_v40, %v22723_v54  ;;  %8457 = vst.msk [vmem:[#allocation3] sm:$0x3f] %vm8456_vm14, %v22724_v33  ;;  %v8534_v20 = vrot.slane %v8422_v9, %v22723_v54  ;;  %v22725_v37 = vld [vmem:[#allocation23_spill] sm:$0xff]  ;;  %v22726_v44 = vld [vmem:[#allocation24_spill] sm:$0xff]  ;;  %v22728_v50 = vld [vmem:[#allocation18_spill] sm:$0xff] }
 0x735   :  { %v8538_v46 = vrot.slane %v8423_v49, %v22723_v54  ;;  %v8542_v18 = vrot.slane %v8424_v6, %v22723_v54  ;;  %v8546_v27 = vrot.slane %v8425_v60, %v22723_v54  ;;  %8458 = vst.msk [vmem:[#allocation3 + $0x30] sm:$0x3f] %vm8456_vm14, %v22724_v33  ;;  %8460 = vst.msk [vmem:[#allocation3 + $0x28] sm:$0x3f] %vm8456_vm14, %v22724_v33  ;;  %11870 = vmatprep.subr.bf16.mxu0 %v22725_v37  ;;  %vm8462_vm0 = vcmask 516096  }
 0x736   :  { %8461 = vst.msk [vmem:[#allocation3 + $0x58] sm:$0x3f] %vm8456_vm14, %v22724_v33  ;;  %v8550_v58 = vrot.slane %v8426_v62, %v22723_v54  ;;  %v8554_v40 = vrot.slane %v8427_v36, %v22723_v54  ;;  %v8558_v9 = vrot.slane %v8428_v39, %v22723_v54  ;;  %v8562_v49 = vrot.slane %v8429_v21, %v22723_v54 }
 0x737   :  { %v8566_v6 = vrot.slane %v8430_v13, %v22723_v54  ;;  %v8647_v60 = vsel %vm5914_vm4, %v8526_v45, %v8522_v15  ;;  %v8650_v17 = vsel %vm5914_vm4, %v8542_v18, %v8538_v46  ;;  %v8586_v62 = vrot.slane %v8435_v48, %v22723_v54  ;;  %11871 = vmatpush3.bf16.msra.mxu0 %v22725_v37 }
 0x738   :  { %v8648_v34 = vsel %vm5916_vm5, %v8530_v61, %v8647_v60  ;;  %v8651_v22 = vsel %vm5916_vm5, %v8546_v27, %v8650_v17  ;;  %v8653_v1 = vsel %vm5914_vm4, %v8558_v9, %v8554_v40  ;;  %v8590_v13 = vrot.slane %v8436_v10, %v22723_v54  ;;  %11872 = vmatprep.subr.bf16.mxu0 %v22726_v44  ;;  %v22731_v60 = vld [vmem:[#allocation21_spill] sm:$0xff] }
 0x739   :  { %v8649_v36 = vsel %vm5918_vm6, %v8534_v20, %v8648_v34  ;;  %v8652_v39 = vsel %vm5918_vm6, %v8550_v58, %v8651_v22  ;;  %v8654_v21 = vsel %vm5916_vm5, %v8562_v49, %v8653_v1  ;;  %v8594_v48 = vrot.slane %v8437_v38, %v22723_v54  ;;  %8463 = vst.msk [vmem:[#allocation3] sm:$0x1] %vm8462_vm0, %v22724_v33  ;;  %v22730_v58 = vld [vmem:[#allocation20_spill] sm:$0xff]  ;;  %v22732_v22 = vld [vmem:[#allocation26_spill] sm:$0xff]  ;;  %v22733_v1 = vld [vmem:[#allocation27_spill] sm:$0xff] }
 0x73a   :  { %v8655_v55 = vsel %vm5918_vm6, %v8566_v6, %v8654_v21  ;;  %8681 = vst.msk [vmem:[#allocation3 + $0x9] sm:$0xf] %vm8680_vm15, %v8649_v36  ;;  %8682 = vst.msk [vmem:[#allocation3 + $0x11] sm:$0xf] %vm8680_vm15, %v8652_v39  ;;  %v8598_v23 = vrot.slane %v8438_v32, %v22723_v54  ;;  %v8602_v15 = vrot.slane %v8439_v12, %v22723_v54 }
 0x73b   :  { %8683 = vst.msk [vmem:[#allocation3 + $0x19] sm:$0xf] %vm8680_vm15, %v8655_v55  ;;  %v8606_v45 = vrot.slane %v8440_v24, %v22723_v54  ;;  %v8610_v10 = vrot.slane %v8441_v16, %v22723_v54  ;;  %v8614_v61 = vrot.slane %v8442_v11, %v22723_v54  ;;  %v8618_v20 = vrot.slane %v8443_v14, %v22723_v54  ;;  %v22727_v11 = vld [vmem:[#allocation25_spill] sm:$0xff] }
 0x73c   :  { %v8622_v46 = vrot.slane %v8444_v35, %v22723_v54  ;;  %v8626_v18 = vrot.slane %v8445_v53, %v22723_v54  ;;  %v8630_v38 = vrot.slane %v8446_v28, %v22723_v54  ;;  %v8659_v32 = vsel %vm5914_vm4, %v8590_v13, %v8586_v62  ;;  %11873 = vmatpush3.bf16.msra.mxu0 %v22726_v44  ;;  %v22734_v62 = vld [vmem:[#allocation28_spill] sm:$0xff]  ;;  %v22735_v44 = vld [vmem:[#allocation29_spill] sm:$0xff] }
 0x73d   :  { %v8660_v12 = vsel %vm5916_vm5, %v8594_v48, %v8659_v32  ;;  %v8662_v24 = vsel %vm5914_vm4, %v8606_v45, %v8602_v15  ;;  %v8570_v16 = vrot.slane %v8431_v51, %v22723_v54  ;;  %11874 = vmatprep.subr.bf16.mxu0 %v22727_v11  ;;  %8464 = vst.msk [vmem:[#allocation3 + $0x8] sm:$0x1] %vm8462_vm0, %v22724_v33  ;;  %8465 = vst.msk [vmem:[#allocation3 + $0x10] sm:$0x1] %vm8462_vm0, %v22724_v33  ;;  %v22737_v15 = vld [vmem:[#allocation31_spill] sm:$0xff]  ;;  %v22738_v45 = vld [vmem:[#allocation32_spill] sm:$0xff] }
 0x73e   :  { %v8661_v14 = vsel %vm5918_vm6, %v8598_v23, %v8660_v12  ;;  %v8663_v35 = vsel %vm5916_vm5, %v8610_v10, %v8662_v24  ;;  %v8665_v53 = vsel %vm5914_vm4, %v8622_v46, %v8618_v20  ;;  %8466 = vst.msk [vmem:[#allocation3 + $0x18] sm:$0x1] %vm8462_vm0, %v22724_v33  ;;  %8467 = vst.msk [vmem:[#allocation3 + $0x20] sm:$0x1] %vm8462_vm0, %v22724_v33  ;;  %v22736_v23 = vld [vmem:[#allocation30_spill] sm:$0xff]  ;;  %v22741_v24 = vld [vmem:[#allocation35_spill] sm:$0xff] }
 0x73f   :  { %8468 = vst.msk [vmem:[#allocation3 + $0x28] sm:$0x1] %vm8462_vm0, %v22724_v33  ;;  %8469 = vst.msk [vmem:[#allocation3 + $0x30] sm:$0x1] %vm8462_vm0, %v22724_v33  ;;  %v8574_v8 = vrot.slane %v8432_v57, %v22723_v54  ;;  %v8664_v42 = vsel %vm5918_vm6, %v8614_v61, %v8663_v35  ;;  %v8666_v51 = vsel %vm5916_vm5, %v8626_v18, %v8665_v53  ;;  %v22739_v18 = vld [vmem:[#allocation33_spill] sm:$0xff]  ;;  %v22740_v12 = vld [vmem:[#allocation34_spill] sm:$0xff] }
 0x740   :  { %8470 = vst.msk [vmem:[#allocation3 + $0x38] sm:$0x1] %vm8462_vm0, %v22724_v33  ;;  %8471 = vst.msk [vmem:[#allocation3 + $0x40] sm:$0x1] %vm8462_vm0, %v22724_v33  ;;  %v8578_v28 = vrot.slane %v8433_v3, %v22723_v54  ;;  %v8582_v27 = vrot.slane %v8434_v47, %v22723_v54  ;;  %v8667_v37 = vsel %vm5918_vm6, %v8630_v38, %v8666_v51  ;;  %11875 = vmatpush3.bf16.msra.mxu0 %v22727_v11 }
 0x741   :  { %8472 = vst.msk [vmem:[#allocation3 + $0x48] sm:$0x1] %vm8462_vm0, %v22724_v33  ;;  %8473 = vst.msk [vmem:[#allocation3 + $0x50] sm:$0x1] %vm8462_vm0, %v22724_v33  ;;  %v8656_v26 = vsel %vm5914_vm4, %v8574_v8, %v8570_v16  ;;  %v8634_v56 = vrot.slane %v8447_v4, %v22723_v54  ;;  %v8638_v30 = vrot.slane %v8448_v19, %v22723_v54  ;;  %v12230_v7 = vld [vmem:[#allocation3 + $0x1] ss:$8 sps:$4 sm:$0xff]   ;;  %11880 = vmatprep.subr.bf16.mxu0 %v22728_v50 }
 0x742   :  { %8474 = vst.msk [vmem:[#allocation3 + $0x58] sm:$0x1] %vm8462_vm0, %v22724_v33  ;;  %8475 = vst.msk [vmem:[#allocation3 + $0x5] sm:$0x1] %vm8462_vm0, %v22724_v33  ;;  %v8657_v59 = vsel %vm5916_vm5, %v8578_v28, %v8656_v26  ;;  %v8642_v29 = vrot.slane %v8449_v5, %v22723_v54  ;;  %v8646_v52 = vrot.slane %v8450_v43, %v22723_v54  ;;  %v12231_v57 = vld [vmem:[#allocation3 + $0x11] ss:$8 sps:$4 sm:$0xff]  }
 0x743   :  { %8476 = vst.msk [vmem:[#allocation3 + $0xd] sm:$0x1] %vm8462_vm0, %v22724_v33  ;;  %8477 = vst.msk [vmem:[#allocation3 + $0x15] sm:$0x1] %vm8462_vm0, %v22724_v33  ;;  %v8658_v31 = vsel %vm5918_vm6, %v8582_v27, %v8657_v59  ;;  %v8668_v3 = vsel %vm5914_vm4, %v8638_v30, %v8634_v56  ;;  %v8743_v25 = vpack.c.bf16 %v12231_v57, %v12230_v7  ;;  %v22729_v43 = vld [vmem:[#allocation19_spill] sm:$0xff]  ;;  %v22742_v16 = vld [vmem:[#allocation36_spill] sm:$0xff] }
 0x744   :  { %8478 = vst.msk [vmem:[#allocation3 + $0x1d] sm:$0x1] %vm8462_vm0, %v22724_v33  ;;  %8479 = vst.msk [vmem:[#allocation3 + $0x25] sm:$0x1] %vm8462_vm0, %v22724_v33  ;;  %v8669_v47 = vsel %vm5916_vm5, %v8642_v29, %v8668_v3  ;;  %v12234_v0 = vld [vmem:[#allocation3] ss:$8 sps:$4 sm:$0xff]  }
 0x745   :  { %8480 = vst.msk [vmem:[#allocation3 + $0x2d] sm:$0x1] %vm8462_vm0, %v22724_v33  ;;  %8481 = vst.msk [vmem:[#allocation3 + $0x35] sm:$0x1] %vm8462_vm0, %v22724_v33  ;;  %v8670_v2 = vsel %vm5918_vm6, %v8646_v52, %v8669_v47  ;;  %11876 = vmatprep.mubr.msk.bf16.mxu0 %vm7636_vm13, %v8743_v25  ;;  %v12235_v4 = vld [vmem:[#allocation3 + $0x10] ss:$8 sps:$4 sm:$0xff]  }
 0x746   :  { %8482 = vst.msk [vmem:[#allocation3 + $0x3d] sm:$0x1] %vm8462_vm0, %v22724_v33  ;;  %8483 = vst.msk [vmem:[#allocation3 + $0x45] sm:$0x1] %vm8462_vm0, %v22724_v33  ;;  %v8713_v41 = vpack.c.bf16 %v12235_v4, %v12234_v0  ;;  %v12242_v21 = vld [vmem:[#allocation3 + $0x8] ss:$8 sps:$4 sm:$0xff]  }
 0x747   :  { %8484 = vst.msk [vmem:[#allocation3 + $0x4d] sm:$0x1] %vm8462_vm0, %v22724_v33  ;;  %8485 = vst.msk [vmem:[#allocation3 + $0x55] sm:$0x1] %vm8462_vm0, %v22724_v33  ;;  %v12246_v20 = vld [vmem:[#allocation3 + $0x9] ss:$8 sps:$4 sm:$0xff]  }
 0x748   :  { %8486 = vst.msk [vmem:[#allocation3 + $0x5d] sm:$0x1] %vm8462_vm0, %v22724_v33  ;;  %v22743_v8 = vld [vmem:[#allocation37_spill] sm:$0xff]  ;;  %v22744_v28 = vld [vmem:[#allocation38_spill] sm:$0xff]  ;;  %v22745_v27 = vld [vmem:[#allocation39_spill] sm:$0xff] }
 0x749   :  { %8685 = vst.msk [vmem:[#allocation3 + $0x39] sm:$0xf] %vm8680_vm15, %v8661_v14  ;;  %8686 = vst.msk [vmem:[#allocation3 + $0x41] sm:$0xf] %vm8680_vm15, %v8664_v42  ;;  %v12254_v30 = vld [vmem:[#allocation3 + $0x10] ss:$8 sps:$4 sm:$0xff]  }
 0x74a   :  { %8687 = vst.msk [vmem:[#allocation3 + $0x49] sm:$0xf] %vm8680_vm15, %v8667_v37  ;;  %8684 = vst.msk [vmem:[#allocation3 + $0x21] sm:$0xf] %vm8680_vm15, %v8658_v31  ;;  %v12238_v49 = vld [vmem:[#allocation3 + $0x2] ss:$8 sps:$4 sm:$0xff]  }
 0x74b   :  { %8688 = vst.msk [vmem:[#allocation3 + $0x51] sm:$0xf] %vm8680_vm15, %v8670_v2  ;;  %v12239_v6 = vld [vmem:[#allocation3 + $0x12] ss:$8 sps:$4 sm:$0xff]   ;;  %v22748_v57 = vld [vmem:[#allocation42_spill] sm:$0xff] }
 0x74c   :  { %v8884_v34 = vpack.c.bf16 %v12239_v6, %v12238_v49  ;;  %v12250_v35 = vld [vmem:[#allocation3 + $0xa] ss:$8 sps:$4 sm:$0xff]   ;;  %v22747_v59 = vld [vmem:[#allocation41_spill] sm:$0xff] }
 0x74d   :  { %v22746_v37 = vld [vmem:[#allocation40_spill] sm:$0xff]  ;;  %v22755_v49 = vld [vmem:[#allocation49_spill] sm:$0xff] }
 0x74e   :  { %v22750_v31 = vld [vmem:[#allocation44_spill] sm:$0xff] }
 0x74f   :  { %v12258_v25 = vld [vmem:[#allocation3 + $0x11] ss:$8 sps:$4 sm:$0xff]  }
 0x750   :  { %v12232_v63 = vld [vmem:[#allocation3 + $0x31] ss:$8 sps:$4 sm:$0xff]  }
 0x751   :  { %v12233_v19 = vld [vmem:[#allocation3 + $0x41] ss:$8 sps:$4 sm:$0xff]   ;;  %v12236_v40 = vld [vmem:[#allocation3 + $0x30] ss:$8 sps:$4 sm:$0xff]  }
 0x752   :  { %v8744_v5 = vpack.c.bf16 %v12233_v19, %v12232_v63  ;;  %v12237_v9 = vld [vmem:[#allocation3 + $0x40] ss:$8 sps:$4 sm:$0xff]   ;;  %v12240_v36 = vld [vmem:[#allocation3 + $0x32] ss:$8 sps:$4 sm:$0xff]  }
 0x753   :  { %v8714_v17 = vpack.c.bf16 %v12237_v9, %v12236_v40  ;;  %v12241_v39 = vld [vmem:[#allocation3 + $0x42] ss:$8 sps:$4 sm:$0xff]   ;;  %v12257_v47 = vld [vmem:[#allocation3 + $0x50] ss:$8 sps:$4 sm:$0xff]  }
 0x754   :  { %11877 = vmatmul.mubr.msk.bf16.vlgmr.msra.gmra.mrb[0].mxu0 %vm7636_vm13, %v8744_v5  ;;  %v12243_v13 = vld [vmem:[#allocation3 + $0x18] ss:$8 sps:$4 sm:$0xff]   ;;  %v8885_v55 = vpack.c.bf16 %v12241_v39, %v12240_v36  ;;  %v12245_v61 = vld [vmem:[#allocation3 + $0x48] ss:$8 sps:$4 sm:$0xff]  }
 0x755   :  { %11881 = vmatpush3.bf16.msra.mxu0 %v22728_v50  ;;  %11888 = vmatprep.mubr.msk.bf16.mxu0 %vm7636_vm13, %v8713_v41  ;;  %v8974_v48 = vpack.c.bf16 %v12243_v13, %v12242_v21  ;;  %v12244_v10 = vld [vmem:[#allocation3 + $0x38] ss:$8 sps:$4 sm:$0xff]   ;;  %v12249_v14 = vld [vmem:[#allocation3 + $0x49] ss:$8 sps:$4 sm:$0xff]  }
 0x756   :  { %11882 = vmatprep.subr.bf16.mxu0 %v22729_v43  ;;  %v12247_v46 = vld [vmem:[#allocation3 + $0x19] ss:$8 sps:$4 sm:$0xff]   ;;  %v8975_v38 = vpack.c.bf16 %v12245_v61, %v12244_v10  ;;  %v12253_v56 = vld [vmem:[#allocation3 + $0x4a] ss:$8 sps:$4 sm:$0xff]  }
 0x757   :  { %v9064_v32 = vpack.c.bf16 %v12247_v46, %v12246_v20  ;;  %v12248_v11 = vld [vmem:[#allocation3 + $0x39] ss:$8 sps:$4 sm:$0xff]   ;;  %v22749_v50 = vld [vmem:[#allocation43_spill] sm:$0xff] }
 0x758   :  { %v12251_v53 = vld [vmem:[#allocation3 + $0x1a] ss:$8 sps:$4 sm:$0xff]   ;;  %v9065_v42 = vpack.c.bf16 %v12249_v14, %v12248_v11  ;;  %v22753_v41 = vld [vmem:[#allocation47_spill] sm:$0xff]  ;;  %v22754_v5 = vld [vmem:[#allocation48_spill] sm:$0xff] }
 0x759   :  { %11883 = vmatpush3.bf16.msra.mxu0 %v22729_v43  ;;  %v9154_v51 = vpack.c.bf16 %v12251_v53, %v12250_v35  ;;  %v12252_v26 = vld [vmem:[#allocation3 + $0x3a] ss:$8 sps:$4 sm:$0xff]  }
 0x75a   :  { %11884 = vmatprep.subr.bf16.mxu0 %v22730_v58  ;;  %v12255_v7 = vld [vmem:[#allocation3 + $0x20] ss:$8 sps:$4 sm:$0xff]   ;;  %v9155_v29 = vpack.c.bf16 %v12253_v56, %v12252_v26  ;;  %v12262_v40 = vld [vmem:[#allocation3 + $0x12] ss:$8 sps:$4 sm:$0xff]  }
 0x75b   :  { %v9245_v52 = vpack.c.bf16 %v12255_v7, %v12254_v30  ;;  %v12256_v3 = vld [vmem:[#allocation3 + $0x40] ss:$8 sps:$4 sm:$0xff]  }
 0x75c   :  { %v12259_v2 = vld [vmem:[#allocation3 + $0x21] ss:$8 sps:$4 sm:$0xff]   ;;  %v9246_v0 = vpack.c.bf16 %v12257_v47, %v12256_v3 }
 0x75d   :  { %11885 = vmatpush3.bf16.msra.mxu0 %v22730_v58  ;;  %v22751_v63 = vld [vmem:[#allocation45_spill] sm:$0xff]  ;;  %v9335_v4 = vpack.c.bf16 %v12259_v2, %v12258_v25  ;;  %v22752_v19 = vld [vmem:[#allocation46_spill] sm:$0xff] }
 0x75e   :  { %11886 = vmatprep.subr.bf16.mxu0 %v22731_v60  ;;  %v12260_v43 = vld [vmem:[#allocation3 + $0x41] ss:$8 sps:$4 sm:$0xff]   ;;  %v12261_v58 = vld [vmem:[#allocation3 + $0x51] ss:$8 sps:$4 sm:$0xff]  }
 0x75f   :  { %v12263_v9 = vld [vmem:[#allocation3 + $0x22] ss:$8 sps:$4 sm:$0xff]   ;;  %v9336_v6 = vpack.c.bf16 %v12261_v58, %v12260_v43  ;;  %v22759_v36 = vld [vmem:[#allocation53_spill] sm:$0xff] }
 0x761   :  { %11887 = vmatpush3.bf16.msra.mxu0 %v22731_v60  ;;  %v9425_v60 = vpack.c.bf16 %v12263_v9, %v12262_v40  ;;  %v22760_v9 = vld [vmem:[#allocation112_spill] sm:$0xff] }
 0x762   :  { %11892 = vmatprep.subr.bf16.mxu0 %v22732_v22 }
 0x764   :  { %11889 = vmatmul.mubr.msk.bf16.vlgmr.msra.gmra.mrb[0].mxu0 %vm7636_vm13, %v8714_v17  ;;  %v22756_v17 = vld [vmem:[#allocation50_spill] sm:$0xff] }
 0x765   :  { %11893 = vmatpush3.bf16.msra.mxu0 %v22732_v22  ;;  %11900 = vmatprep.mubr.msk.bf16.mxu0 %vm7636_vm13, %v8884_v34  ;;  %v22757_v34 = vld [vmem:[#allocation51_spill] sm:$0xff]  ;;  %v22758_v22 = vld [vmem:[#allocation52_spill] sm:$0xff] }
 0x766   :  { %11894 = vmatprep.subr.bf16.mxu0 %v22733_v1 }
 0x769   :  { %11895 = vmatpush3.bf16.msra.mxu0 %v22733_v1  ;;  %v12264_v1 = vld [vmem:[#allocation3 + $0x42] ss:$8 sps:$4 sm:$0xff]  }
 0x76a   :  { %11896 = vmatprep.subr.bf16.mxu0 %v22734_v62 }
 0x76d   :  { %11897 = vmatpush3.bf16.msra.mxu0 %v22734_v62  ;;  %v12265_v62 = vld [vmem:[#allocation3 + $0x52] ss:$8 sps:$4 sm:$0xff]  }
 0x76e   :  { %11898 = vmatprep.subr.bf16.mxu0 %v22735_v44  ;;  %v9426_v39 = vpack.c.bf16 %v12265_v62, %v12264_v1 }
 0x771   :  { %11899 = vmatpush3.bf16.msra.mxu0 %v22735_v44 }
 0x772   :  { %11904 = vmatprep.subr.bf16.mxu0 %v22736_v23 }
 0x774   :  { %11901 = vmatmul.mubr.msk.bf16.vlgmr.msra.gmra.mrb[0].mxu0 %vm7636_vm13, %v8885_v55 }
 0x775   :  { %11905 = vmatpush3.bf16.msra.mxu0 %v22736_v23  ;;  %11912 = vmatprep.mubr.msk.bf16.mxu0 %vm7636_vm13, %v8974_v48 }
 0x776   :  { %11906 = vmatprep.subr.bf16.mxu0 %v22737_v15 }
 0x779   :  { %11907 = vmatpush3.bf16.msra.mxu0 %v22737_v15 }
 0x77a   :  { %11908 = vmatprep.subr.bf16.mxu0 %v22738_v45 }
 0x77d   :  { %11909 = vmatpush3.bf16.msra.mxu0 %v22738_v45 }
 0x77e   :  { %11910 = vmatprep.subr.bf16.mxu0 %v22739_v18 }
 0x781   :  { %11911 = vmatpush3.bf16.msra.mxu0 %v22739_v18 }
 0x782   :  { %11916 = vmatprep.subr.bf16.mxu0 %v22740_v12 }
 0x784   :  { %11913 = vmatmul.mubr.msk.bf16.vlgmr.msra.gmra.mrb[0].mxu0 %vm7636_vm13, %v8975_v38 }
 0x785   :  { %11917 = vmatpush3.bf16.msra.mxu0 %v22740_v12  ;;  %11924 = vmatprep.mubr.msk.bf16.mxu0 %vm7636_vm13, %v9064_v32 }
 0x786   :  { %11918 = vmatprep.subr.bf16.mxu0 %v22741_v24 }
 0x789   :  { %11919 = vmatpush3.bf16.msra.mxu0 %v22741_v24 }
 0x78a   :  { %11920 = vmatprep.subr.bf16.mxu0 %v22742_v16 }
 0x78d   :  { %11921 = vmatpush3.bf16.msra.mxu0 %v22742_v16 }
 0x78e   :  { %11922 = vmatprep.subr.bf16.mxu0 %v22743_v8 }
 0x791   :  { %11923 = vmatpush3.bf16.msra.mxu0 %v22743_v8 }
 0x792   :  { %11928 = vmatprep.subr.bf16.mxu0 %v22744_v28 }
 0x794   :  { %11925 = vmatmul.mubr.msk.bf16.vlgmr.msra.gmra.mrb[0].mxu0 %vm7636_vm13, %v9065_v42 }
 0x795   :  { %11929 = vmatpush3.bf16.msra.mxu0 %v22744_v28  ;;  %11936 = vmatprep.mubr.msk.bf16.mxu0 %vm7636_vm13, %v9154_v51 }
 0x796   :  { %11930 = vmatprep.subr.bf16.mxu0 %v22745_v27 }
 0x799   :  { %11931 = vmatpush3.bf16.msra.mxu0 %v22745_v27 }
 0x79a   :  { %11932 = vmatprep.subr.bf16.mxu0 %v22746_v37 }
 0x79d   :  { %11933 = vmatpush3.bf16.msra.mxu0 %v22746_v37 }
 0x79e   :  { %11934 = vmatprep.subr.bf16.mxu0 %v22747_v59 }
 0x7a1   :  { %11935 = vmatpush3.bf16.msra.mxu0 %v22747_v59 }
 0x7a2   :  { %11940 = vmatprep.subr.bf16.mxu0 %v22748_v57 }
 0x7a4   :  { %11937 = vmatmul.mubr.msk.bf16.vlgmr.msra.gmra.mrb[0].mxu0 %vm7636_vm13, %v9155_v29  ;;  %v9520_v29 = vld [vmem:[%s19878_s8] sm:$0x1] }
 0x7a5   :  { %11941 = vmatpush3.bf16.msra.mxu0 %v22748_v57  ;;  %11948 = vmatprep.mubr.msk.bf16.mxu0 %vm7636_vm13, %v9245_v52 }
 0x7a6   :  { %11942 = vmatprep.subr.bf16.mxu0 %v22749_v50 }
 0x7a9   :  { %11943 = vmatpush3.bf16.msra.mxu0 %v22749_v50 }
 0x7aa   :  { %11944 = vmatprep.subr.bf16.mxu0 %v22750_v31 }
 0x7ad   :  { %11945 = vmatpush3.bf16.msra.mxu0 %v22750_v31  ;;  %v11398_v31 = vld [vmem:[%s19879_s9] ss:$0 sm:$0xff] }
 0x7ae   :  { %11946 = vmatprep.subr.bf16.mxu0 %v22751_v63 }
 0x7b1   :  { %11947 = vmatpush3.bf16.msra.mxu0 %v22751_v63 }
 0x7b2   :  { %11952 = vmatprep.subr.bf16.mxu0 %v22752_v19 }
 0x7b4   :  { %11949 = vmatmul.mubr.msk.bf16.vlgmr.msra.gmra.mrb[0].mxu0 %vm7636_vm13, %v9246_v0 }
 0x7b5   :  { %11953 = vmatpush3.bf16.msra.mxu0 %v22752_v19  ;;  %11960 = vmatprep.mubr.msk.bf16.mxu0 %vm7636_vm13, %v9335_v4 }
 0x7b6   :  { %11954 = vmatprep.subr.bf16.mxu0 %v22753_v41 }
 0x7b9   :  { %11955 = vmatpush3.bf16.msra.mxu0 %v22753_v41 }
 0x7ba   :  { %11956 = vmatprep.subr.bf16.mxu0 %v22754_v5 }
 0x7bd   :  { %11957 = vmatpush3.bf16.msra.mxu0 %v22754_v5 }
 0x7be   :  { %11958 = vmatprep.subr.bf16.mxu0 %v22755_v49 }
 0x7c1   :  { %11959 = vmatpush3.bf16.msra.mxu0 %v22755_v49 }
 0x7c2   :  { %11964 = vmatprep.subr.bf16.mxu0 %v22756_v17 }
 0x7c4   :  { %11961 = vmatmul.mubr.msk.bf16.vlgmr.msra.gmra.mrb[0].mxu0 %vm7636_vm13, %v9336_v6 }
 0x7c5   :  { %11965 = vmatpush3.bf16.msra.mxu0 %v22756_v17  ;;  %11972 = vmatprep.mubr.msk.bf16.mxu0 %vm7636_vm13, %v9425_v60 }
 0x7c6   :  { %11966 = vmatprep.subr.bf16.mxu0 %v22757_v34 }
 0x7c9   :  { %11967 = vmatpush3.bf16.msra.mxu0 %v22757_v34 }
 0x7ca   :  { %11968 = vmatprep.subr.bf16.mxu0 %v22758_v22 }
 0x7cd   :  { %11969 = vmatpush3.bf16.msra.mxu0 %v22758_v22 }
 0x7ce   :  { %11970 = vmatprep.subr.bf16.mxu0 %v22759_v36 }
 0x7d1   :  { %11971 = vmatpush3.bf16.msra.mxu0 %v22759_v36 }
 0x7d4   :  { %11973 = vmatmul.mubr.msk.bf16.vlgmr.msra.gmra.mrb[0].mxu0 %vm7636_vm13, %v9426_v39 }
 0x8a7   :  { %v11974_v21 = vpop.f32.mrb[0].mxu0 }
 0x8a8   :  { %v9472_v13 = vpop.f32.mrb[1].mxu0 }
 0x8a9   :  { %v11975_v44 = vpop.f32.mrb[2].mxu0 }
 0x8aa   :  { %v9475_v55 = vpop.f32.mrb[3].mxu0 }
 0x8ab   :  { %v9491_v48 = vadd.f32 %v9475_v55, %v9472_v13 }
 0x8ad   :  { %v9492_v23 = vadd.f32 %v11974_v21, %v9491_v48 }
 0x8af   :  { %v9493_v15 = vadd.f32 %v11975_v44, %v9492_v23 }
 0x8b1   :  { %v9494_v45 = vrot.slane %v9493_v15, 4 }
 0x8b3   :  { %v9495_v10 = vadd.f32 %v9494_v45, %v9493_v15 }
 0x8b5   :  { %v9496_v61 = vrot.slane %v9495_v10, 2 }
 0x8b7   :  { %v9497_v20 = vadd.f32 %v9496_v61, %v9495_v10 }
 0x8b9   :  { %v9498_v46 = vrot.slane %v9497_v20, 1 }
 0x8bb   :  { %v9499_v18 = vadd.f32 %v9498_v46, %v9497_v20 }
 0x8bd   :  { %v9501_v38 = vmul.f32 0.03125, %v9499_v18 }
 0x8bf   :  { %v9502_v32 = vsub.f32 %v9472_v13, %v9501_v38  ;;  %v9503_v12 = vsub.f32 %v9475_v55, %v9501_v38  ;;  %v9504_v24 = vsub.f32 %v11974_v21, %v9501_v38  ;;  %v9505_v16 = vsub.f32 %v11975_v44, %v9501_v38 }
 0x8c1   :  { %v9506_v11 = vmul.f32 %v9502_v32, %v9502_v32  ;;  %v9507_v14 = vmul.f32 %v9503_v12, %v9503_v12  ;;  %v9508_v35 = vmul.f32 %v9504_v24, %v9504_v24  ;;  %v9509_v8 = vmul.f32 %v9505_v16, %v9505_v16 }
 0x8c3   :  { %v9510_v53 = vadd.f32 %v9507_v14, %v9506_v11 }
 0x8c5   :  { %v9511_v42 = vadd.f32 %v9510_v53, %v9508_v35 }
 0x8c7   :  { %v9512_v51 = vadd.f32 %v9511_v42, %v9509_v8 }
 0x8c9   :  { %v9513_v28 = vrot.slane %v9512_v51, 4 }
 0x8cb   :  { %v9514_v27 = vadd.f32 %v9513_v28, %v9512_v51 }
 0x8cd   :  { %v9515_v37 = vrot.slane %v9514_v27, 2 }
 0x8cf   :  { %v9516_v26 = vadd.f32 %v9515_v37, %v9514_v27 }
 0x8d1   :  { %v9517_v56 = vrot.slane %v9516_v26, 1 }
 0x8d3   :  { %v9518_v30 = vadd.f32 %v9517_v56, %v9516_v26 }
 0x8d5   :  { %v9519_v7 = vmul.f32 0.03125, %v9518_v30 }
 0x8d7   :  { %v9521_v59 = vadd.f32 1e-05, %v9519_v7 }
 0x8d9   :  { %12266 = vrsqrt.f32 %v9521_v59 }
 0x8e3   :  { %v12267_v52 = vpop.eup %12266 }
 0x8e4   :  { %v9523_v57 = vmul.f32 %v12267_v52, %v9520_v29 }
 0x8e6   :  { %v9528_v50 = vrot.slane %v9523_v57, %v22723_v54 }
 0x8e8   :  { %v9530_v3 = vmul.f32 %v9528_v50, %v9502_v32  ;;  %v9531_v47 = vmul.f32 %v9528_v50, %v9503_v12  ;;  %v9532_v25 = vmul.f32 %v9528_v50, %v9504_v24  ;;  %v9533_v2 = vmul.f32 %v9528_v50, %v9505_v16 }
 0x8ea   :  { %v9541_v63 = vadd.f32 %v11398_v31, %v9530_v3  ;;  %v9542_v0 = vadd.f32 %v11398_v31, %v9531_v47  ;;  %v9543_v4 = vadd.f32 %v11398_v31, %v9532_v25  ;;  %v9544_v19 = vadd.f32 %v11398_v31, %v9533_v2 }
 0x8ec   :  { %v9545_v41 = vmax.f32 %v9541_v63, 0.0  ;;  %v9546_v5 = vmax.f32 %v9542_v0, 0.0  ;;  %v9547_v43 = vmax.f32 %v9543_v4, 0.0  ;;  %v9548_v58 = vmax.f32 %v9544_v19, 0.0 }
 0x8ee   :  { %v9553_v40 = vcombine.high %v9545_v41, %v9545_v41  ;;  %v9560_v49 = vrot.slane %v9545_v41, %v22760_v9  ;;  %v9570_v6 = vcombine.high %v9546_v5, %v9546_v5  ;;  %v9577_v60 = vrot.slane %v9546_v5, %v22760_v9 }
 0x8ef   :  { %v9587_v17 = vcombine.high %v9547_v43, %v9547_v43  ;;  %v9594_v34 = vrot.slane %v9547_v43, %v22760_v9  ;;  %v9604_v22 = vcombine.high %v9548_v58, %v9548_v58  ;;  %v9611_v1 = vrot.slane %v9548_v58, %v22760_v9 }
 0x8f0   :  { %v9567_v62 = vrot.slane %v9553_v40, %v22760_v9  ;;  %v9568_v36 = vcombine.high %v9560_v49, %v9560_v49  ;;  %v9584_v39 = vrot.slane %v9570_v6, %v22760_v9  ;;  %v9585_v21 = vcombine.high %v9577_v60, %v9577_v60 }
 0x8f1   :  { %v9601_v13 = vrot.slane %v9587_v17, %v22760_v9  ;;  %v9602_v44 = vcombine.high %v9594_v34, %v9594_v34  ;;  %v9618_v55 = vrot.slane %v9604_v22, %v22760_v9  ;;  %v9619_v48 = vcombine.high %v9611_v1, %v9611_v1 }
 0x8f2   :  { %v9569_v23 = vcombine.high %v9567_v62, %v9567_v62  ;;  %v9586_v15 = vcombine.high %v9584_v39, %v9584_v39  ;;  %v11399_v45 = vrot.slane %v9560_v49, 9  ;;  %v11400_v10 = vrot.slane %v9568_v36, 9 }
 0x8f3   :  { %v9603_v61 = vcombine.high %v9601_v13, %v9601_v13  ;;  %v9620_v20 = vcombine.high %v9618_v55, %v9618_v55  ;;  %v11401_v46 = vrot.slane %v9567_v62, 9  ;;  %v11403_v18 = vrot.slane %v9577_v60, 9 }
 0x8f4   :  { %v11402_v38 = vrot.slane %v9569_v23, 9  ;;  %v11404_v32 = vrot.slane %v9585_v21, 9  ;;  %v11405_v12 = vrot.slane %v9584_v39, 9  ;;  %v11406_v24 = vrot.slane %v9586_v15, 9 }
 0x8f5   :  { %v11407_v16 = vrot.slane %v9594_v34, 9  ;;  %v11408_v11 = vrot.slane %v9602_v44, 9  ;;  %v11409_v14 = vrot.slane %v9601_v13, 9  ;;  %v11410_v35 = vrot.slane %v9603_v61, 9 }
 0x8f6   :  { %v11411_v53 = vrot.slane %v9611_v1, 9  ;;  %v11412_v8 = vrot.slane %v9619_v48, 9  ;;  %v11413_v42 = vrot.slane %v9618_v55, 9  ;;  %v11414_v51 = vrot.slane %v9620_v20, 9 }
 0x8f7   :  { %v9685_v28 = vmax.f32 %v9560_v49, %v11399_v45  ;;  %v9686_v27 = vmax.f32 %v9568_v36, %v11400_v10  ;;  %v9687_v37 = vmax.f32 %v9567_v62, %v11401_v46  ;;  %v9688_v26 = vmax.f32 %v9569_v23, %v11402_v38 }
 0x8f8   :  { %v9689_v56 = vmax.f32 %v9577_v60, %v11403_v18  ;;  %v9690_v30 = vmax.f32 %v9585_v21, %v11404_v32  ;;  %v9691_v7 = vmax.f32 %v9584_v39, %v11405_v12  ;;  %v9692_v59 = vmax.f32 %v9586_v15, %v11406_v24 }
 0x8f9   :  { %v9693_v29 = vmax.f32 %v9594_v34, %v11407_v16  ;;  %v9694_v52 = vmax.f32 %v9602_v44, %v11408_v11  ;;  %v9695_v57 = vmax.f32 %v9601_v13, %v11409_v14  ;;  %v9696_v50 = vmax.f32 %v9603_v61, %v11410_v35 }
 0x8fa   :  { %v9697_v31 = vmax.f32 %v9611_v1, %v11411_v53  ;;  %v9698_v3 = vmax.f32 %v9619_v48, %v11412_v8  ;;  %v9699_v47 = vmax.f32 %v9618_v55, %v11413_v42  ;;  %v9700_v25 = vmax.f32 %v9620_v20, %v11414_v51 }
 0x8fb   :  { %v9701_v2 = vmax.f32 %v9685_v28, %v9687_v37  ;;  %v9702_v63 = vmax.f32 %v9686_v27, %v9688_v26  ;;  %v9703_v0 = vmax.f32 %v9689_v56, %v9691_v7  ;;  %v9704_v4 = vmax.f32 %v9690_v30, %v9692_v59 }
 0x8fc   :  { %v9705_v19 = vmax.f32 %v9693_v29, %v9695_v57  ;;  %v9706_v41 = vmax.f32 %v9694_v52, %v9696_v50  ;;  %v9707_v5 = vmax.f32 %v9697_v31, %v9699_v47  ;;  %v9708_v43 = vmax.f32 %v9698_v3, %v9700_v25 }
 0x8fd   :  { %12332 = dma.done.wait [#allocation8 + $0x1], 18432 }
 0x8fe   :  { %12333 = vsyncadd [#allocation8 + $0x1], 4294948864  ;;  %v9745_v58 = vrot.slane %v9701_v2, %v22723_v54  ;;  %v9749_v40 = vrot.slane %v9702_v63, %v22723_v54  ;;  %v9761_v49 = vrot.slane %v9705_v19, %v22723_v54  ;;  %9713 = vst [vmem:[#allocation4] sm:$0xf] %v22724_v33  ;;  %v12341_v6 = vmov 0   ;;  %v9859_v13 = vld [vmem:[#allocation6 + $0x88] sm:$0xff] }
 0x8ff   :  { %9714 = vst [vmem:[#allocation4 + $0x10] sm:$0xf] %v22724_v33  ;;  %9716 = vst [vmem:[#allocation4 + $0xc] sm:$0xf] %v22724_v33  ;;  %9906 = vmatprep.mubr.bf16.mxu0 %v12341_v6  ;;  %v9765_v60 = vrot.slane %v9706_v41, %v22723_v54  ;;  %v9753_v17 = vrot.slane %v9703_v0, %v22723_v54  ;;  %v9757_v34 = vrot.slane %v9704_v4, %v22723_v54  ;;  %v9858_v44 = vld [vmem:[#allocation6 + $0x80] sm:$0xff]  ;;  %v9861_v55 = vld [vmem:[#allocation6 + $0x98] sm:$0xff] }
 0x900   :  { %9717 = vst [vmem:[#allocation4 + $0x1c] sm:$0xf] %v22724_v33  ;;  %9719 = vst [vmem:[#allocation4 + $0x4] sm:$0x1] %v22724_v33  ;;  %v9769_v22 = vrot.slane %v9707_v5, %v22723_v54  ;;  %v9774_v1 = vsel %vm5914_vm4, %v9749_v40, %v9745_v58  ;;  %v9773_v62 = vrot.slane %v9708_v43, %v22723_v54  ;;  %9874 = vmatprep.subr.bf16.mxu0 %v9859_v13  ;;  %v9863_v48 = vld [vmem:[#allocation6 + $0xa8] sm:$0xff]  ;;  %v9862_v23 = vld [vmem:[#allocation6 + $0xa0] sm:$0xff] }
 0x901   :  { %9720 = vst [vmem:[#allocation4 + $0x8] sm:$0x1] %v22724_v33  ;;  %9723 = vst [vmem:[#allocation4 + $0x14] sm:$0x1] %v22724_v33  ;;  %v9776_v36 = vsel %vm5914_vm4, %v9765_v60, %v9761_v49  ;;  %v9775_v39 = vsel %vm5914_vm4, %v9757_v34, %v9753_v17  ;;  %9875 = vmatpush1.bf16.msra.mxu0 %v9858_v44  ;;  %v9865_v15 = vld [vmem:[#allocation6 + $0xb8] sm:$0xff]  ;;  %v9864_v45 = vld [vmem:[#allocation6 + $0xb0] sm:$0xff] }
 0x902   :  { %9724 = vst [vmem:[#allocation4 + $0x18] sm:$0x1] %v22724_v33  ;;  %9727 = vst [vmem:[#allocation4 + $0x7] sm:$0x1] %v22724_v33  ;;  %v9777_v21 = vsel %vm5914_vm4, %v9773_v62, %v9769_v22  ;;  %9876 = vmatprep.subr.bf16.mxu0 %v9861_v55  ;;  %v9867_v10 = vld [vmem:[#allocation6 + $0xc8] sm:$0xff]  ;;  %v9866_v61 = vld [vmem:[#allocation6 + $0xc0] sm:$0xff] }
 0x903   :  { %9728 = vst [vmem:[#allocation4 + $0xb] sm:$0x1] %v22724_v33  ;;  %9731 = vst [vmem:[#allocation4 + $0x17] sm:$0x1] %v22724_v33  ;;  %v9869_v20 = vld [vmem:[#allocation6 + $0xd8] sm:$0xff]  ;;  %v9868_v38 = vld [vmem:[#allocation6 + $0xd0] sm:$0xff] }
 0x904   :  { %9732 = vst [vmem:[#allocation4 + $0x1b] sm:$0x1] %v22724_v33  ;;  %9718 = vst [vmem:[#allocation4] sm:$0x1] %v22724_v33  ;;  %v9871_v32 = vld [vmem:[#allocation6 + $0xe8] sm:$0xff]  ;;  %v9870_v12 = vld [vmem:[#allocation6 + $0xe0] sm:$0xff] }
 0x905   :  { %9721 = vst [vmem:[#allocation4 + $0xc] sm:$0x1] %v22724_v33  ;;  %9722 = vst [vmem:[#allocation4 + $0x10] sm:$0x1] %v22724_v33  ;;  %v9873_v24 = vld [vmem:[#allocation6 + $0xf8] sm:$0xff]  ;;  %v9872_v11 = vld [vmem:[#allocation6 + $0xf0] sm:$0xff] }
 0x906   :  { %9725 = vst [vmem:[#allocation4 + $0x1c] sm:$0x1] %v22724_v33  ;;  %9726 = vst [vmem:[#allocation4 + $0x3] sm:$0x1] %v22724_v33  ;;  %v9815_v14 = vld [vmem:[#allocation6 + $0x8] sm:$0xff]  ;;  %v9814_v53 = vld [vmem:[#allocation6] sm:$0xff] }
 0x907   :  { %9729 = vst [vmem:[#allocation4 + $0xf] sm:$0x1] %v22724_v33  ;;  %9730 = vst [vmem:[#allocation4 + $0x13] sm:$0x1] %v22724_v33  ;;  %v9817_v8 = vld [vmem:[#allocation6 + $0x18] sm:$0xff]  ;;  %v9816_v42 = vld [vmem:[#allocation6 + $0x10] sm:$0xff] }
 0x908   :  { %9733 = vst [vmem:[#allocation4 + $0x1f] sm:$0x1] %v22724_v33  ;;  %9783 = vst [vmem:[#allocation4 + $0x5] sm:$0x3] %v9774_v1  ;;  %v9860_v33 = vld [vmem:[#allocation6 + $0x90] sm:$0xff]  ;;  %v9819_v51 = vld [vmem:[#allocation6 + $0x28] sm:$0xff] }
 0x909   :  { %9785 = vst [vmem:[#allocation4 + $0x15] sm:$0x3] %v9776_v36  ;;  %9784 = vst [vmem:[#allocation4 + $0x9] sm:$0x3] %v9775_v39  ;;  %9877 = vmatpush1.bf16.msra.mxu0 %v9860_v33  ;;  %v9818_v28 = vld [vmem:[#allocation6 + $0x20] sm:$0xff]  ;;  %v9821_v27 = vld [vmem:[#allocation6 + $0x38] sm:$0xff] }
 0x90a   :  { %9786 = vst [vmem:[#allocation4 + $0x19] sm:$0x3] %v9777_v21  ;;  %9878 = vmatprep.subr.bf16.mxu0 %v9863_v48  ;;  %v9820_v37 = vld [vmem:[#allocation6 + $0x30] sm:$0xff]  ;;  %v9823_v26 = vld [vmem:[#allocation6 + $0x48] sm:$0xff]  ;;  %v9822_v56 = vld [vmem:[#allocation6 + $0x40] sm:$0xff] }
 0x90b   :  { %v9825_v30 = vld [vmem:[#allocation6 + $0x58] sm:$0xff]  ;;  %v9824_v29 = vld [vmem:[#allocation6 + $0x50] sm:$0xff]  ;;  %v9827_v52 = vld [vmem:[#allocation6 + $0x68] sm:$0xff] }
 0x90c   :  { %v9826_v57 = vld [vmem:[#allocation6 + $0x60] sm:$0xff]  ;;  %v9829_v50 = vld [vmem:[#allocation6 + $0x78] sm:$0xff]  ;;  %v9828_v3 = vld [vmem:[#allocation6 + $0x70] sm:$0xff] }
 0x90d   :  { %9879 = vmatpush1.bf16.msra.mxu0 %v9862_v23  ;;  %v9985_v47 = vld [vmem:[#allocation6 + $0x108] sm:$0xff]  ;;  %v9984_v2 = vld [vmem:[#allocation6 + $0x100] sm:$0xff]  ;;  %v9987_v63 = vld [vmem:[#allocation6 + $0x118] sm:$0xff] }
 0x90e   :  { %9880 = vmatprep.subr.bf16.mxu0 %v9865_v15  ;;  %v9986_v0 = vld [vmem:[#allocation6 + $0x110] sm:$0xff]  ;;  %v9989_v4 = vld [vmem:[#allocation6 + $0x128] sm:$0xff]  ;;  %v9988_v19 = vld [vmem:[#allocation6 + $0x120] sm:$0xff] }
 0x90f   :  { %v12290_v46 = vld.sshfl [vmem:[#allocation4 + $0x1] sm:$0xf pattern:$0x76325410]  ;;  %v9991_v41 = vld [vmem:[#allocation6 + $0x138] sm:$0xff]  ;;  %v9990_v5 = vld [vmem:[#allocation6 + $0x130] sm:$0xff] }
 0x910   :  { %v12291_v18 = vld.sshfl [vmem:[#allocation4 + $0x11] sm:$0xf pattern:$0x76325410]  ;;  %v9993_v43 = vld [vmem:[#allocation6 + $0x148] sm:$0xff]  ;;  %v9992_v58 = vld [vmem:[#allocation6 + $0x140] sm:$0xff] }
 0x911   :  { %9881 = vmatpush1.bf16.msra.mxu0 %v9864_v45  ;;  %v9854_v16 = vcombine.low %v12290_v46, %v12291_v18  ;;  %v12292_v7 = vld.sshfl [vmem:[#allocation4] sm:$0xf pattern:$0x76325410]  ;;  %v9995_v40 = vld [vmem:[#allocation6 + $0x158] sm:$0xff]  ;;  %v9994_v17 = vld [vmem:[#allocation6 + $0x150] sm:$0xff] }
 0x912   :  { %9882 = vmatprep.subr.bf16.mxu0 %v9867_v10  ;;  %v12293_v59 = vld.sshfl [vmem:[#allocation4 + $0x10] sm:$0xf pattern:$0x76325410]  ;;  %v9997_v34 = vld [vmem:[#allocation6 + $0x168] sm:$0xff]  ;;  %v9996_v22 = vld [vmem:[#allocation6 + $0x160] sm:$0xff] }
 0x913   :  { %v9856_v35 = vpack.c.bf16 %v9854_v16, %v9854_v16  ;;  %v9811_v31 = vcombine.low %v12292_v7, %v12293_v59  ;;  %v12294_v49 = vld.sshfl [vmem:[#allocation4 + $0x2] sm:$0xf pattern:$0x76325410]  ;;  %v9999_v1 = vld [vmem:[#allocation6 + $0x178] sm:$0xff]  ;;  %v9998_v36 = vld [vmem:[#allocation6 + $0x170] sm:$0xff] }
 0x914   :  { %v12295_v60 = vld.sshfl [vmem:[#allocation4 + $0x12] sm:$0xf pattern:$0x76325410]  ;;  %v10072_v39 = vld [vmem:[#allocation6 + $0x188] sm:$0xff]  ;;  %v10071_v13 = vld [vmem:[#allocation6 + $0x180] sm:$0xff] }
 0x915   :  { %9883 = vmatpush1.bf16.msra.mxu0 %v9866_v61  ;;  %v9813_v25 = vpack.c.bf16 %v9811_v31, %v9811_v31  ;;  %v9980_v62 = vcombine.low %v12294_v49, %v12295_v60  ;;  %v10074_v44 = vld [vmem:[#allocation6 + $0x198] sm:$0xff]  ;;  %v10073_v55 = vld [vmem:[#allocation6 + $0x190] sm:$0xff]  ;;  %v10076_v33 = vld [vmem:[#allocation6 + $0x1a8] sm:$0xff] }
 0x916   :  { %9884 = vmatprep.subr.bf16.mxu0 %v9869_v20  ;;  %v10075_v48 = vld [vmem:[#allocation6 + $0x1a0] sm:$0xff]  ;;  %v10078_v23 = vld [vmem:[#allocation6 + $0x1b8] sm:$0xff]  ;;  %v10077_v15 = vld [vmem:[#allocation6 + $0x1b0] sm:$0xff] }
 0x917   :  { %v9982_v21 = vpack.c.bf16 %v9980_v62, %v9980_v62  ;;  %v10080_v45 = vld [vmem:[#allocation6 + $0x1c8] sm:$0xff]  ;;  %v10079_v10 = vld [vmem:[#allocation6 + $0x1c0] sm:$0xff]  ;;  %v10082_v61 = vld [vmem:[#allocation6 + $0x1d8] sm:$0xff] }
 0x918   :  { %v12296_v20 = vld.sshfl [vmem:[#allocation4 + $0x4] sm:$0xf pattern:$0x76325410]  ;;  %v10081_v18 = vld [vmem:[#allocation6 + $0x1d0] sm:$0xff] }
 0x919   :  { %9885 = vmatpush1.bf16.msra.mxu0 %v9868_v38  ;;  %v12297_v46 = vld.sshfl [vmem:[#allocation4 + $0x14] sm:$0xf pattern:$0x76325410]  ;;  %v10084_v38 = vld [vmem:[#allocation6 + $0x1e8] sm:$0xff] }
 0x91a   :  { %9886 = vmatprep.subr.bf16.mxu0 %v9871_v32  ;;  %v10083_v32 = vld [vmem:[#allocation6 + $0x1e0] sm:$0xff]  ;;  %v10085_v16 = vld [vmem:[#allocation6 + $0x1f0] sm:$0xff] }
 0x91b   :  { %v12299_v7 = vld.sshfl [vmem:[#allocation4 + $0x15] sm:$0xf pattern:$0x76325410] }
 0x91c   :  { %v10168_v59 = vld [vmem:[#allocation6 + $0x250] sm:$0xff] }
 0x91d   :  { %9887 = vmatpush1.bf16.msra.mxu0 %v9870_v12  ;;  %v10086_v12 = vld [vmem:[#allocation6 + $0x1f8] sm:$0xff]  ;;  %v10172_v31 = vld [vmem:[#allocation6 + $0x270] sm:$0xff] }
 0x91e   :  { %9888 = vmatprep.subr.bf16.mxu0 %v9873_v24  ;;  %v10067_v24 = vcombine.low %v12296_v20, %v12297_v46  ;;  %v12301_v49 = vld.sshfl [vmem:[#allocation4 + $0x16] sm:$0xf pattern:$0x76325410] }
 0x91f   :  { %v10255_v60 = vld [vmem:[#allocation6 + $0x2d0] sm:$0xff]  ;;  %v12303_v20 = vld.sshfl [vmem:[#allocation4 + $0x18] sm:$0xf pattern:$0x76325410] }
 0x920   :  { %v10259_v62 = vld [vmem:[#allocation6 + $0x2f0] sm:$0xff] }
 0x921   :  { %9889 = vmatpush1.bf16.msra.mxu0 %v9872_v11  ;;  %v10159_v11 = vld [vmem:[#allocation6 + $0x208] sm:$0xff]  ;;  %v10343_v46 = vld [vmem:[#allocation6 + $0x350] sm:$0xff] }
 0x922   :  { %9915 = vmatprep.subr.bf16.mxu0 %v9815_v14  ;;  %v10069_v14 = vpack.c.bf16 %v10067_v24, %v10067_v24  ;;  %v10347_v24 = vld [vmem:[#allocation6 + $0x370] sm:$0xff] }
 0x924   :  { %9907 = vmatmul.mubr.bf16.vlgmr.msra.gmra.mrb[4].mxu0 %v9856_v35  ;;  %v10158_v35 = vld [vmem:[#allocation6 + $0x200] sm:$0xff] }
 0x925   :  { %9916 = vmatpush1.bf16.msra.mxu0 %v9814_v53  ;;  %9947 = vmatprep.mubr.bf16.mxu0 %v12341_v6  ;;  %v10161_v53 = vld [vmem:[#allocation6 + $0x218] sm:$0xff] }
 0x926   :  { %9917 = vmatprep.subr.bf16.mxu0 %v9817_v8  ;;  %v10160_v8 = vld [vmem:[#allocation6 + $0x210] sm:$0xff] }
 0x929   :  { %9918 = vmatpush1.bf16.msra.mxu0 %v9816_v42  ;;  %v10163_v42 = vld [vmem:[#allocation6 + $0x228] sm:$0xff] }
 0x92a   :  { %9919 = vmatprep.subr.bf16.mxu0 %v9819_v51  ;;  %v10162_v51 = vld [vmem:[#allocation6 + $0x220] sm:$0xff] }
 0x92d   :  { %9920 = vmatpush1.bf16.msra.mxu0 %v9818_v28  ;;  %v10165_v28 = vld [vmem:[#allocation6 + $0x238] sm:$0xff] }
 0x92e   :  { %9921 = vmatprep.subr.bf16.mxu0 %v9821_v27  ;;  %v10164_v27 = vld [vmem:[#allocation6 + $0x230] sm:$0xff] }
 0x931   :  { %9922 = vmatpush1.bf16.msra.mxu0 %v9820_v37  ;;  %v10167_v37 = vld [vmem:[#allocation6 + $0x248] sm:$0xff] }
 0x932   :  { %9923 = vmatprep.subr.bf16.mxu0 %v9823_v26  ;;  %v10166_v26 = vld [vmem:[#allocation6 + $0x240] sm:$0xff] }
 0x935   :  { %9924 = vmatpush1.bf16.msra.mxu0 %v9822_v56  ;;  %v10169_v56 = vld [vmem:[#allocation6 + $0x258] sm:$0xff] }
 0x936   :  { %9925 = vmatprep.subr.bf16.mxu0 %v9825_v30  ;;  %v12298_v30 = vld.sshfl [vmem:[#allocation4 + $0x5] sm:$0xf pattern:$0x76325410] }
 0x939   :  { %9926 = vmatpush1.bf16.msra.mxu0 %v9824_v29  ;;  %v10171_v29 = vld [vmem:[#allocation6 + $0x268] sm:$0xff] }
 0x93a   :  { %9927 = vmatprep.subr.bf16.mxu0 %v9827_v52  ;;  %v10170_v52 = vld [vmem:[#allocation6 + $0x260] sm:$0xff] }
 0x93d   :  { %9928 = vmatpush1.bf16.msra.mxu0 %v9826_v57  ;;  %v10173_v57 = vld [vmem:[#allocation6 + $0x278] sm:$0xff] }
 0x93e   :  { %9929 = vmatprep.subr.bf16.mxu0 %v9829_v50  ;;  %v10154_v50 = vcombine.low %v12298_v30, %v12299_v7  ;;  %v12305_v30 = vld.sshfl [vmem:[#allocation4 + $0x19] sm:$0xf pattern:$0x76325410]  ;;  %v10430_v7 = vld [vmem:[#allocation6 + $0x3d0] sm:$0xff] }
 0x941   :  { %9930 = vmatpush1.bf16.msra.mxu0 %v9828_v3  ;;  %v10246_v3 = vld [vmem:[#allocation6 + $0x288] sm:$0xff] }
 0x942   :  { %10000 = vmatprep.subr.bf16.mxu0 %v9985_v47  ;;  %v10156_v47 = vpack.c.bf16 %v10154_v50, %v10154_v50  ;;  %v10434_v50 = vld [vmem:[#allocation6 + $0x3f0] sm:$0xff] }
 0x944   :  { %9948 = vmatmul.mubr.bf16.vlgmr.msra.gmra.mrb[4].mxu0 %v9813_v25  ;;  %v10245_v25 = vld [vmem:[#allocation6 + $0x280] sm:$0xff] }
 0x945   :  { %10001 = vmatpush1.bf16.msra.mxu0 %v9984_v2  ;;  %10032 = vmatprep.mubr.bf16.mxu0 %v12341_v6  ;;  %v10248_v2 = vld [vmem:[#allocation6 + $0x298] sm:$0xff] }
 0x946   :  { %10002 = vmatprep.subr.bf16.mxu0 %v9987_v63  ;;  %v10247_v63 = vld [vmem:[#allocation6 + $0x290] sm:$0xff] }
 0x949   :  { %10003 = vmatpush1.bf16.msra.mxu0 %v9986_v0  ;;  %v10250_v0 = vld [vmem:[#allocation6 + $0x2a8] sm:$0xff] }
 0x94a   :  { %10004 = vmatprep.subr.bf16.mxu0 %v9989_v4  ;;  %v10249_v4 = vld [vmem:[#allocation6 + $0x2a0] sm:$0xff] }
 0x94d   :  { %10005 = vmatpush1.bf16.msra.mxu0 %v9988_v19  ;;  %v10252_v19 = vld [vmem:[#allocation6 + $0x2b8] sm:$0xff] }
 0x94e   :  { %10006 = vmatprep.subr.bf16.mxu0 %v9991_v41  ;;  %v10251_v41 = vld [vmem:[#allocation6 + $0x2b0] sm:$0xff] }
 0x951   :  { %10007 = vmatpush1.bf16.msra.mxu0 %v9990_v5  ;;  %v10254_v5 = vld [vmem:[#allocation6 + $0x2c8] sm:$0xff] }
 0x952   :  { %10008 = vmatprep.subr.bf16.mxu0 %v9993_v43  ;;  %v10253_v43 = vld [vmem:[#allocation6 + $0x2c0] sm:$0xff] }
 0x955   :  { %10009 = vmatpush1.bf16.msra.mxu0 %v9992_v58  ;;  %v10256_v58 = vld [vmem:[#allocation6 + $0x2d8] sm:$0xff] }
 0x956   :  { %10010 = vmatprep.subr.bf16.mxu0 %v9995_v40  ;;  %v12300_v40 = vld.sshfl [vmem:[#allocation4 + $0x6] sm:$0xf pattern:$0x76325410] }
 0x959   :  { %10011 = vmatpush1.bf16.msra.mxu0 %v9994_v17  ;;  %v10258_v17 = vld [vmem:[#allocation6 + $0x2e8] sm:$0xff] }
 0x95a   :  { %10012 = vmatprep.subr.bf16.mxu0 %v9997_v34  ;;  %v10257_v34 = vld [vmem:[#allocation6 + $0x2e0] sm:$0xff] }
 0x95d   :  { %10013 = vmatpush1.bf16.msra.mxu0 %v9996_v22  ;;  %v10260_v22 = vld [vmem:[#allocation6 + $0x2f8] sm:$0xff] }
 0x95e   :  { %10014 = vmatprep.subr.bf16.mxu0 %v9999_v1  ;;  %v10241_v1 = vcombine.low %v12300_v40, %v12301_v49  ;;  %v12307_v40 = vld.sshfl [vmem:[#allocation4 + $0x1a] sm:$0xf pattern:$0x76325410]  ;;  %v10520_v49 = vld [vmem:[#allocation6 + $0x468] sm:$0xff] }
 0x961   :  { %10015 = vmatpush1.bf16.msra.mxu0 %v9998_v36  ;;  %v10334_v36 = vld [vmem:[#allocation6 + $0x308] sm:$0xff] }
 0x962   :  { %10087 = vmatprep.subr.bf16.mxu0 %v10072_v39  ;;  %v10243_v39 = vpack.c.bf16 %v10241_v1, %v10241_v1 }
 0x964   :  { %10033 = vmatmul.mubr.bf16.vlgmr.msra.gmra.mrb[4].mxu0 %v9982_v21  ;;  %v10333_v21 = vld [vmem:[#allocation6 + $0x300] sm:$0xff] }
 0x965   :  { %10088 = vmatpush1.bf16.msra.mxu0 %v10071_v13  ;;  %10119 = vmatprep.mubr.bf16.mxu0 %v12341_v6  ;;  %v10336_v13 = vld [vmem:[#allocation6 + $0x318] sm:$0xff] }
 0x966   :  { %10089 = vmatprep.subr.bf16.mxu0 %v10074_v44  ;;  %v10335_v44 = vld [vmem:[#allocation6 + $0x310] sm:$0xff] }
 0x969   :  { %10090 = vmatpush1.bf16.msra.mxu0 %v10073_v55  ;;  %v10338_v55 = vld [vmem:[#allocation6 + $0x328] sm:$0xff] }
 0x96a   :  { %10091 = vmatprep.subr.bf16.mxu0 %v10076_v33  ;;  %v10337_v33 = vld [vmem:[#allocation6 + $0x320] sm:$0xff] }
 0x96d   :  { %10092 = vmatpush1.bf16.msra.mxu0 %v10075_v48  ;;  %v10340_v48 = vld [vmem:[#allocation6 + $0x338] sm:$0xff] }
 0x96e   :  { %10093 = vmatprep.subr.bf16.mxu0 %v10078_v23  ;;  %v10339_v23 = vld [vmem:[#allocation6 + $0x330] sm:$0xff] }
 0x971   :  { %10094 = vmatpush1.bf16.msra.mxu0 %v10077_v15  ;;  %v10342_v15 = vld [vmem:[#allocation6 + $0x348] sm:$0xff] }
 0x972   :  { %10095 = vmatprep.subr.bf16.mxu0 %v10080_v45  ;;  %v10341_v45 = vld [vmem:[#allocation6 + $0x340] sm:$0xff] }
 0x975   :  { %10096 = vmatpush1.bf16.msra.mxu0 %v10079_v10  ;;  %v10344_v10 = vld [vmem:[#allocation6 + $0x358] sm:$0xff] }
 0x976   :  { %10097 = vmatprep.subr.bf16.mxu0 %v10082_v61  ;;  %v12302_v61 = vld.sshfl [vmem:[#allocation4 + $0x8] sm:$0xf pattern:$0x76325410] }
 0x979   :  { %10098 = vmatpush1.bf16.msra.mxu0 %v10081_v18  ;;  %v10346_v18 = vld [vmem:[#allocation6 + $0x368] sm:$0xff] }
 0x97a   :  { %10099 = vmatprep.subr.bf16.mxu0 %v10084_v38  ;;  %v10345_v38 = vld [vmem:[#allocation6 + $0x360] sm:$0xff] }
 0x97d   :  { %10100 = vmatpush1.bf16.msra.mxu0 %v10083_v32  ;;  %v10348_v32 = vld [vmem:[#allocation6 + $0x378] sm:$0xff] }
 0x97e   :  { %10101 = vmatprep.subr.bf16.mxu0 %v10086_v12  ;;  %v10329_v12 = vcombine.low %v12302_v61, %v12303_v20 }
 0x981   :  { %10102 = vmatpush1.bf16.msra.mxu0 %v10085_v16  ;;  %v10421_v16 = vld [vmem:[#allocation6 + $0x388] sm:$0xff] }
 0x982   :  { %10174 = vmatprep.subr.bf16.mxu0 %v10159_v11  ;;  %v10331_v11 = vpack.c.bf16 %v10329_v12, %v10329_v12 }
 0x984   :  { %10120 = vmatmul.mubr.bf16.vlgmr.msra.gmra.mrb[4].mxu0 %v10069_v14  ;;  %v10420_v14 = vld [vmem:[#allocation6 + $0x380] sm:$0xff] }
 0x985   :  { %10175 = vmatpush1.bf16.msra.mxu0 %v10158_v35  ;;  %10206 = vmatprep.mubr.bf16.mxu0 %v12341_v6  ;;  %v10423_v35 = vld [vmem:[#allocation6 + $0x398] sm:$0xff] }
 0x986   :  { %10176 = vmatprep.subr.bf16.mxu0 %v10161_v53  ;;  %v10422_v53 = vld [vmem:[#allocation6 + $0x390] sm:$0xff] }
 0x989   :  { %10177 = vmatpush1.bf16.msra.mxu0 %v10160_v8  ;;  %v10425_v8 = vld [vmem:[#allocation6 + $0x3a8] sm:$0xff] }
 0x98a   :  { %10178 = vmatprep.subr.bf16.mxu0 %v10163_v42  ;;  %v10424_v42 = vld [vmem:[#allocation6 + $0x3a0] sm:$0xff] }
 0x98d   :  { %10179 = vmatpush1.bf16.msra.mxu0 %v10162_v51  ;;  %v10427_v51 = vld [vmem:[#allocation6 + $0x3b8] sm:$0xff] }
 0x98e   :  { %10180 = vmatprep.subr.bf16.mxu0 %v10165_v28  ;;  %v10426_v28 = vld [vmem:[#allocation6 + $0x3b0] sm:$0xff] }
 0x991   :  { %10181 = vmatpush1.bf16.msra.mxu0 %v10164_v27  ;;  %v10429_v27 = vld [vmem:[#allocation6 + $0x3c8] sm:$0xff] }
 0x992   :  { %10182 = vmatprep.subr.bf16.mxu0 %v10167_v37  ;;  %v10428_v37 = vld [vmem:[#allocation6 + $0x3c0] sm:$0xff] }
 0x995   :  { %10183 = vmatpush1.bf16.msra.mxu0 %v10166_v26  ;;  %v10431_v26 = vld [vmem:[#allocation6 + $0x3d8] sm:$0xff] }
 0x996   :  { %10184 = vmatprep.subr.bf16.mxu0 %v10169_v56  ;;  %v12304_v56 = vld.sshfl [vmem:[#allocation4 + $0x9] sm:$0xf pattern:$0x76325410] }
 0x999   :  { %10185 = vmatpush1.bf16.msra.mxu0 %v10168_v59  ;;  %v10433_v59 = vld [vmem:[#allocation6 + $0x3e8] sm:$0xff] }
 0x99a   :  { %10186 = vmatprep.subr.bf16.mxu0 %v10171_v29  ;;  %v10432_v29 = vld [vmem:[#allocation6 + $0x3e0] sm:$0xff] }
 0x99d   :  { %10187 = vmatpush1.bf16.msra.mxu0 %v10170_v52  ;;  %v10435_v52 = vld [vmem:[#allocation6 + $0x3f8] sm:$0xff] }
 0x99e   :  { %10188 = vmatprep.subr.bf16.mxu0 %v10173_v57  ;;  %v10416_v57 = vcombine.low %v12304_v56, %v12305_v30 }
 0x9a1   :  { %10189 = vmatpush1.bf16.msra.mxu0 %v10172_v31  ;;  %v10508_v31 = vld [vmem:[#allocation6 + $0x408] sm:$0xff] }
 0x9a2   :  { %10261 = vmatprep.subr.bf16.mxu0 %v10246_v3  ;;  %v10418_v3 = vpack.c.bf16 %v10416_v57, %v10416_v57 }
 0x9a4   :  { %10207 = vmatmul.mubr.bf16.vlgmr.msra.gmra.mrb[4].mxu0 %v10156_v47  ;;  %v10507_v47 = vld [vmem:[#allocation6 + $0x400] sm:$0xff] }
 0x9a5   :  { %10262 = vmatpush1.bf16.msra.mxu0 %v10245_v25  ;;  %10293 = vmatprep.mubr.bf16.mxu0 %v12341_v6  ;;  %v10510_v25 = vld [vmem:[#allocation6 + $0x418] sm:$0xff] }
 0x9a6   :  { %10263 = vmatprep.subr.bf16.mxu0 %v10248_v2  ;;  %v10509_v2 = vld [vmem:[#allocation6 + $0x410] sm:$0xff] }
 0x9a9   :  { %10264 = vmatpush1.bf16.msra.mxu0 %v10247_v63  ;;  %v10512_v63 = vld [vmem:[#allocation6 + $0x428] sm:$0xff] }
 0x9aa   :  { %10265 = vmatprep.subr.bf16.mxu0 %v10250_v0  ;;  %v10511_v0 = vld [vmem:[#allocation6 + $0x420] sm:$0xff] }
 0x9ad   :  { %10266 = vmatpush1.bf16.msra.mxu0 %v10249_v4  ;;  %v10514_v4 = vld [vmem:[#allocation6 + $0x438] sm:$0xff] }
 0x9ae   :  { %10267 = vmatprep.subr.bf16.mxu0 %v10252_v19  ;;  %v10513_v19 = vld [vmem:[#allocation6 + $0x430] sm:$0xff] }
 0x9b1   :  { %10268 = vmatpush1.bf16.msra.mxu0 %v10251_v41  ;;  %v10516_v41 = vld [vmem:[#allocation6 + $0x448] sm:$0xff] }
 0x9b2   :  { %10269 = vmatprep.subr.bf16.mxu0 %v10254_v5  ;;  %v10515_v5 = vld [vmem:[#allocation6 + $0x440] sm:$0xff] }
 0x9b5   :  { %10270 = vmatpush1.bf16.msra.mxu0 %v10253_v43  ;;  %v10518_v43 = vld [vmem:[#allocation6 + $0x458] sm:$0xff] }
 0x9b6   :  { %10271 = vmatprep.subr.bf16.mxu0 %v10256_v58  ;;  %v12306_v58 = vld.sshfl [vmem:[#allocation4 + $0xa] sm:$0xf pattern:$0x76325410] }
 0x9b9   :  { %10272 = vmatpush1.bf16.msra.mxu0 %v10255_v60  ;;  %v10519_v60 = vld [vmem:[#allocation6 + $0x460] sm:$0xff] }
 0x9ba   :  { %10273 = vmatprep.subr.bf16.mxu0 %v10258_v17  ;;  %v10522_v17 = vld [vmem:[#allocation6 + $0x478] sm:$0xff] }
 0x9bd   :  { %10274 = vmatpush1.bf16.msra.mxu0 %v10257_v34  ;;  %v10503_v34 = vcombine.low %v12306_v58, %v12307_v40 }
 0x9be   :  { %10275 = vmatprep.subr.bf16.mxu0 %v10260_v22  ;;  %v10521_v22 = vld [vmem:[#allocation6 + $0x470] sm:$0xff] }
 0x9bf   :  { %v10505_v1 = vpack.c.bf16 %v10503_v34, %v10503_v34 }
 0x9c1   :  { %10276 = vmatpush1.bf16.msra.mxu0 %v10259_v62 }
 0x9c2   :  { %10349 = vmatprep.subr.bf16.mxu0 %v10334_v36 }
 0x9c4   :  { %10294 = vmatmul.mubr.bf16.vlgmr.msra.gmra.mrb[4].mxu0 %v10243_v39 }
 0x9c5   :  { %10350 = vmatpush1.bf16.msra.mxu0 %v10333_v21  ;;  %10381 = vmatprep.mubr.bf16.mxu0 %v12341_v6 }
 0x9c6   :  { %10351 = vmatprep.subr.bf16.mxu0 %v10336_v13 }
 0x9c9   :  { %10352 = vmatpush1.bf16.msra.mxu0 %v10335_v44 }
 0x9ca   :  { %10353 = vmatprep.subr.bf16.mxu0 %v10338_v55 }
 0x9cd   :  { %10354 = vmatpush1.bf16.msra.mxu0 %v10337_v33 }
 0x9ce   :  { %10355 = vmatprep.subr.bf16.mxu0 %v10340_v48 }
 0x9d1   :  { %10356 = vmatpush1.bf16.msra.mxu0 %v10339_v23 }
 0x9d2   :  { %10357 = vmatprep.subr.bf16.mxu0 %v10342_v15 }
 0x9d5   :  { %10358 = vmatpush1.bf16.msra.mxu0 %v10341_v45 }
 0x9d6   :  { %10359 = vmatprep.subr.bf16.mxu0 %v10344_v10 }
 0x9d9   :  { %10360 = vmatpush1.bf16.msra.mxu0 %v10343_v46 }
 0x9da   :  { %10361 = vmatprep.subr.bf16.mxu0 %v10346_v18 }
 0x9dd   :  { %10362 = vmatpush1.bf16.msra.mxu0 %v10345_v38 }
 0x9de   :  { %10363 = vmatprep.subr.bf16.mxu0 %v10348_v32 }
 0x9e1   :  { %10364 = vmatpush1.bf16.msra.mxu0 %v10347_v24 }
 0x9e2   :  { %10436 = vmatprep.subr.bf16.mxu0 %v10421_v16 }
 0x9e4   :  { %10382 = vmatmul.mubr.bf16.vlgmr.msra.gmra.mrb[4].mxu0 %v10331_v11 }
 0x9e5   :  { %10437 = vmatpush1.bf16.msra.mxu0 %v10420_v14  ;;  %10468 = vmatprep.mubr.bf16.mxu0 %v12341_v6 }
 0x9e6   :  { %10438 = vmatprep.subr.bf16.mxu0 %v10423_v35 }
 0x9e9   :  { %10439 = vmatpush1.bf16.msra.mxu0 %v10422_v53 }
 0x9ea   :  { %10440 = vmatprep.subr.bf16.mxu0 %v10425_v8 }
 0x9ed   :  { %10441 = vmatpush1.bf16.msra.mxu0 %v10424_v42 }
 0x9ee   :  { %10442 = vmatprep.subr.bf16.mxu0 %v10427_v51 }
 0x9f1   :  { %10443 = vmatpush1.bf16.msra.mxu0 %v10426_v28 }
 0x9f2   :  { %10444 = vmatprep.subr.bf16.mxu0 %v10429_v27 }
 0x9f5   :  { %10445 = vmatpush1.bf16.msra.mxu0 %v10428_v37 }
 0x9f6   :  { %10446 = vmatprep.subr.bf16.mxu0 %v10431_v26 }
 0x9f9   :  { %10447 = vmatpush1.bf16.msra.mxu0 %v10430_v7 }
 0x9fa   :  { %10448 = vmatprep.subr.bf16.mxu0 %v10433_v59 }
 0x9fd   :  { %10449 = vmatpush1.bf16.msra.mxu0 %v10432_v29 }
 0x9fe   :  { %10450 = vmatprep.subr.bf16.mxu0 %v10435_v52  ;;  %v12342_v52 = vmov 1966171168  }
 0x9ff   :  { %v10608_v57 = vunpack.c.l.s4 %v12342_v52 }
 0xa01   :  { %10451 = vmatpush1.bf16.msra.mxu0 %v10434_v50  ;;  %v10609_v50 = vunpack.c.0.s8 %v10608_v57 }
 0xa02   :  { %10523 = vmatprep.subr.bf16.mxu0 %v10508_v31 }
 0xa04   :  { %10469 = vmatmul.mubr.bf16.vlgmr.msra.gmra.mrb[4].mxu0 %v10418_v3  ;;  %v22761_v3 = vld [vmem:[#allocation83_spill] sm:$0xff] }
 0xa05   :  { %10524 = vmatpush1.bf16.msra.mxu0 %v10507_v47  ;;  %10555 = vmatprep.mubr.bf16.mxu0 %v12341_v6  ;;  %v10517_v6 = vld [vmem:[#allocation6 + $0x450] sm:$0xff]  ;;  %v10612_v47 = vsub.s32 %v10609_v50, %v22761_v3 }
 0xa06   :  { %10525 = vmatprep.subr.bf16.mxu0 %v10510_v25 }
 0xa09   :  { %10526 = vmatpush1.bf16.msra.mxu0 %v10509_v2 }
 0xa0a   :  { %10527 = vmatprep.subr.bf16.mxu0 %v10512_v63 }
 0xa0d   :  { %10528 = vmatpush1.bf16.msra.mxu0 %v10511_v0  ;;  %v10599_v0 = vld [vmem:[%s19881_s11] sm:$0x3] }
 0xa0e   :  { %10529 = vmatprep.subr.bf16.mxu0 %v10514_v4 }
 0xa11   :  { %10530 = vmatpush1.bf16.msra.mxu0 %v10513_v19  ;;  %v10630_v19 = vsub.s32 1, %v22761_v3 }
 0xa12   :  { %10531 = vmatprep.subr.bf16.mxu0 %v10516_v41  ;;  %v10636_v41 = vld [vmem:[%s19882_s12] sm:$0x3] }
 0xa13   :  { %v10641_v40 = vrot.slane %v10636_v41, %v22723_v54 }
 0xa15   :  { %10532 = vmatpush1.bf16.msra.mxu0 %v10515_v5 }
 0xa16   :  { %10533 = vmatprep.subr.bf16.mxu0 %v10518_v43 }
 0xa19   :  { %10534 = vmatpush1.bf16.msra.mxu0 %v10517_v6  ;;  %v10645_v6 = vrot.slane %v10636_v41, %v10630_v19 }
 0xa1a   :  { %10535 = vmatprep.subr.bf16.mxu0 %v10520_v49 }
 0xa1d   :  { %10536 = vmatpush1.bf16.msra.mxu0 %v10519_v60 }
 0xa1e   :  { %10537 = vmatprep.subr.bf16.mxu0 %v10522_v17 }
 0xa21   :  { %10538 = vmatpush1.bf16.msra.mxu0 %v10521_v22 }
 0xa24   :  { %10556 = vmatmul.mubr.bf16.vlgmr.msra.gmra.mrb[4].mxu0 %v10505_v1 }
 0xaf7   :  { %v10557_v62 = vpop.f32.mrb[4].mxu0 }
 0xaf8   :  { %v10566_v36 = vrot.slane %v10557_v62, 4  ;;  %v10559_v39 = vpop.f32.mrb[5].mxu0 }
 0xaf9   :  { %v10572_v21 = vrot.slane %v10559_v39, 4  ;;  %v10561_v13 = vpop.f32.mrb[6].mxu0 }
 0xafa   :  { %v10567_v44 = vadd.f32 %v10566_v36, %v10557_v62  ;;  %v10562_v55 = vpop.f32.mrb[7].mxu0 }
 0xafb   :  { %v10573_v33 = vadd.f32 %v10572_v21, %v10559_v39 }
 0xafc   :  { %v10568_v48 = vrot.slane %v10567_v44, 2 }
 0xafd   :  { %v10574_v23 = vrot.slane %v10573_v33, 2 }
 0xafe   :  { %v10569_v15 = vadd.f32 %v10568_v48, %v10567_v44 }
 0xaff   :  { %v10575_v45 = vadd.f32 %v10574_v23, %v10573_v33 }
 0xb00   :  { %v10570_v10 = vrot.slane %v10569_v15, 1 }
 0xb01   :  { %v10576_v61 = vrot.slane %v10575_v45, 1 }
 0xb02   :  { %v10571_v20 = vadd.f32 %v10570_v10, %v10569_v15 }
 0xb03   :  { %v10577_v46 = vadd.f32 %v10576_v61, %v10575_v45 }
 0xb04   :  { %v10579_v18 = vmul.f32 0.125, %v10571_v20 }
 0xb05   :  { %v10580_v38 = vmul.f32 0.125, %v10577_v46 }
 0xb06   :  { %v10581_v32 = vsub.f32 %v10557_v62, %v10579_v18  ;;  %v22762_v18 = vld [vmem:[#allocation62_spill] sm:$0xff] }
 0xb07   :  { %v10582_v12 = vsub.f32 %v10559_v39, %v10580_v38  ;;  %11600 = vmatprep.subr.bf16.mxu1 %v22762_v18  ;;  %v10708_v38 = vsub.s32 2, %v22761_v3 }
 0xb08   :  { %v10583_v24 = vmul.f32 %v10581_v32, %v10581_v32 }
 0xb09   :  { %v10584_v16 = vmul.f32 %v10582_v12, %v10582_v12 }
 0xb0a   :  { %v10585_v11 = vrot.slane %v10583_v24, 4 }
 0xb0b   :  { %v10591_v14 = vrot.slane %v10584_v16, 4 }
 0xb0c   :  { %v10586_v35 = vadd.f32 %v10585_v11, %v10583_v24 }
 0xb0d   :  { %v10592_v53 = vadd.f32 %v10591_v14, %v10584_v16 }
 0xb0e   :  { %v10587_v8 = vrot.slane %v10586_v35, 2 }
 0xb0f   :  { %v10593_v42 = vrot.slane %v10592_v53, 2 }
 0xb10   :  { %v10588_v51 = vadd.f32 %v10587_v8, %v10586_v35 }
 0xb11   :  { %v10594_v28 = vadd.f32 %v10593_v42, %v10592_v53 }
 0xb12   :  { %v10589_v27 = vrot.slane %v10588_v51, 1 }
 0xb13   :  { %v10595_v37 = vrot.slane %v10594_v28, 1 }
 0xb14   :  { %v10590_v26 = vadd.f32 %v10589_v27, %v10588_v51 }
 0xb15   :  { %v10596_v56 = vadd.f32 %v10595_v37, %v10594_v28 }
 0xb16   :  { %v10597_v30 = vmul.f32 0.125, %v10590_v26 }
 0xb17   :  { %v10598_v7 = vmul.f32 0.125, %v10596_v56 }
 0xb18   :  { %v10600_v59 = vadd.f32 1e-05, %v10597_v30 }
 0xb19   :  { %v10601_v29 = vadd.f32 1e-05, %v10598_v7 }
 0xb1a   :  { %12286 = vrsqrt.f32 %v10600_v59 }
 0xb1b   :  { %12288 = vrsqrt.f32 %v10601_v29 }
 0xb24   :  { %v12287_v31 = vpop.eup %12286 }
 0xb25   :  { %v12289_v25 = vpop.eup %12288 }
 0xb26   :  { %v10606_v2 = vcombine.low %v12287_v31, %v12289_v25 }
 0xb28   :  { %v10613_v63 = vrot.slane %v10606_v2, %v10612_v47 }
 0xb2a   :  { %v10620_v4 = vrot.slane %v10613_v63, %v10612_v47 }
 0xb2c   :  { %v10622_v5 = vmul.f32 %v10620_v4, %v10599_v0 }
 0xb2e   :  { %v10627_v43 = vrot.slane %v10622_v5, %v22723_v54  ;;  %v10631_v58 = vrot.slane %v10622_v5, %v10630_v19 }
 0xb30   :  { %v10634_v49 = vmul.f32 %v10627_v43, %v10581_v32  ;;  %v10635_v60 = vmul.f32 %v10631_v58, %v10582_v12 }
 0xb32   :  { %v10648_v17 = vadd.f32 %v10641_v40, %v10634_v49  ;;  %v10649_v34 = vadd.f32 %v10645_v6, %v10635_v60 }
 0xb34   :  { %v10650_v22 = vmax.f32 %v10648_v17, 0.0  ;;  %v10651_v1 = vmax.f32 %v10649_v34, 0.0 }
 0xb36   :  { %v10654_v62 = vcombine.low %v10650_v22, %v10651_v1  ;;  %v10655_v36 = vcombine.high %v10650_v22, %v10651_v1 }
 0xb38   :  { %v10662_v39 = vrot.slane %v10654_v62, %v22760_v9  ;;  %v10669_v21 = vrot.slane %v10655_v36, %v22760_v9 }
 0xb3a   :  { %v10670_v13 = vcombine.high %v10662_v39, %v10662_v39  ;;  %v10671_v44 = vcombine.high %v10669_v21, %v10669_v21  ;;  %v11415_v55 = vrot.slane %v10662_v39, 9  ;;  %v11417_v33 = vrot.slane %v10669_v21, 9 }
 0xb3c   :  { %v11416_v48 = vrot.slane %v10670_v13, 9  ;;  %v11418_v23 = vrot.slane %v10671_v44, 9  ;;  %v10688_v15 = vmax.f32 %v10662_v39, %v11415_v55  ;;  %v10690_v10 = vmax.f32 %v10669_v21, %v11417_v33 }
 0xb3e   :  { %v10689_v45 = vmax.f32 %v10670_v13, %v11416_v48  ;;  %v10691_v61 = vmax.f32 %v10671_v44, %v11418_v23 }
 0xb40   :  { %v10692_v20 = vmax.f32 %v10688_v15, %v10689_v45  ;;  %v10693_v46 = vmax.f32 %v10690_v10, %v10691_v61 }
 0xb41   :  { %12334 = dma.done.wait [#allocation8 + $0x2], 2048 }
 0xb42   :  { %12335 = vsyncadd [#allocation8 + $0x2], 4294965248  ;;  %v22763_v32 = vld [vmem:[#allocation54_spill] sm:$0xff]  ;;  %v22764_v9 = vld [vmem:[#allocation63_spill] sm:$0xff]  ;;  %v10709_v12 = vrot.slane %v10692_v20, %v10708_v38  ;;  %v10717_v24 = vrot.slane %v10693_v46, %v10708_v38  ;;  %v10713_v28 = vrot.slane %v10693_v46, %v22723_v54  ;;  %v10705_v30 = vrot.slane %v10692_v20, %v22723_v54  ;;  %s12343_s3 = smov [#allocation9]  }
 0xb43   :  { %11601 = vmatpush3.bf16.msra.mxu1 %v22763_v32  ;;  %v22765_v14 = vld [vmem:[#allocation55_spill] sm:$0xff]  ;;  %v22766_v35 = vld [vmem:[#allocation64_spill] sm:$0xff]  ;;  %v22768_v27 = vld [vmem:[#allocation65_spill] sm:$0xff]  ;;  %s10813_s23 = sshll.u32 %s12343_s3, 4  ;;  %vm10805_vm1 = vcmask 58368   ;;  %s10814_s23 = int_to_ptr.vmem [resolvable:$true] %s10813_s23 }
 0xb44   :  { %11602 = vmatprep.subr.bf16.mxu1 %v22764_v9  ;;  %v10723_v16 = vpack.c.bf16 %v10709_v12, %v10709_v12  ;;  %v10725_v11 = vpack.c.bf16 %v10717_v24, %v10717_v24  ;;  %v22767_v51 = vld [vmem:[#allocation56_spill] sm:$0xff]  ;;  %v22769_v56 = vld [vmem:[#allocation57_spill] sm:$0xff]  ;;  %v10724_v7 = vpack.c.bf16 %v10713_v28, %v10713_v28  ;;  %v22770_v59 = vld [vmem:[#allocation66_spill] sm:$0xff]  ;;  %v10722_v52 = vpack.c.bf16 %v10705_v30, %v10705_v30  ;;  %s12308_s24 = scalar_lea.vmem %s10814_s23, 32  ;;  %p12313_p1 = scmp.lt.s32.totalorder %s10814_s23, %s10814_s23 }
 0xb45   :  { %v22771_v29 = vld [vmem:[#allocation58_spill] sm:$0xff]  ;;  %v22772_v50 = vld [vmem:[#allocation67_spill] sm:$0xff]  ;;  %v22774_v25 = vld [vmem:[#allocation68_spill] sm:$0xff]  ;;  %p12309_p0 = scmp.ne.s32.totalorder %s10814_s23, %s12308_s24  ;;  %p12314_p2 = scmp.lt.s32.totalorder %s12308_s24, %s12308_s24 }
 0xb46   :  { %v10754_v53 = vunpack.c.l.b16 %v10723_v16  ;;  %v10756_v8 = vunpack.c.l.b16 %v10725_v11  ;;  %v10755_v57 = vunpack.c.l.b16 %v10724_v7  ;;  %v22773_v31 = vld [vmem:[#allocation59_spill] sm:$0xff]  ;;  %v10753_v3 = vunpack.c.l.b16 %v10722_v52  ;;  %v22775_v2 = vld [vmem:[#allocation60_spill] sm:$0xff]  ;;  %v22776_v54 = vld [vmem:[#allocation69_spill] sm:$0xff] }
 0xb47   :  { %11603 = vmatpush3.bf16.msra.mxu1 %v22765_v14  ;;  %v22777_v4 = vld [vmem:[#allocation61_spill] sm:$0xff]  ;;  %p12315_p3 = por %p12314_p2, %p12313_p1 }
 0xb48   :  { %11604 = vmatprep.subr.bf16.mxu1 %v22766_v35  ;;  %v10759_v42 = vrot.slane %v10756_v8, 7  ;;  %v10757_v47 = vrot.slane %v10755_v57, 7  ;;  %v11419_v41 = vld [vmem:[%s19884_s14] ss:$0 sm:$0xff] }
 0xb49   :  { %p12316_p4 = pnand %p12315_p3, %p12309_p0 }
 0xb4a   :  { %v10760_v37 = vsel %vm5914_vm4, %v10759_v42, %v10754_v53  ;;  %v10758_v63 = vsel %vm5914_vm4, %v10757_v47, %v10753_v3 }
 0xb4b   :  { %11605 = vmatpush3.bf16.msra.mxu1 %v22767_v51  ;;  %v10762_v26 = vpack.c.b16 %v10760_v37, %v10760_v37  ;;  %v10761_v0 = vpack.c.b16 %v10758_v63, %v10758_v63 }
 0xb4c   :  { %11606 = vmatprep.subr.bf16.mxu1 %v22768_v27 }
 0xb4d   :  { %10797 = vmatprep.mubr.bf16.mxu1 %v10762_v26 }
 0xb4f   :  { %11607 = vmatpush3.bf16.msra.mxu1 %v22769_v56 }
 0xb50   :  { %11608 = vmatprep.subr.bf16.mxu1 %v22770_v59 }
 0xb53   :  { %11609 = vmatpush3.bf16.msra.mxu1 %v22771_v29 }
 0xb54   :  { %11610 = vmatprep.subr.bf16.mxu1 %v22772_v50 }
 0xb57   :  { %11611 = vmatpush3.bf16.msra.mxu1 %v22773_v31 }
 0xb58   :  { %11612 = vmatprep.subr.bf16.mxu1 %v22774_v25 }
 0xb5b   :  { %11613 = vmatpush3.bf16.msra.mxu1 %v22775_v2 }
 0xb5c   :  { %11614 = vmatprep.subr.bf16.mxu1 %v22776_v54 }
 0xb5f   :  { %11615 = vmatpush3.bf16.msra.mxu1 %v22777_v4 }
 0xb62   :  { %10798 = vmatmul.mubr.bf16.vlgmr.msra.gmra.mrb[80].mxu1 %v10761_v0 }
 0xc35   :  { %v11616_v19 = vpop.f32.mrb[80].mxu1 }
 0xc36   :  { %v11617_v5 = vpop.f32.mrb[81].mxu1 }
 0xc37   :  { %v11618_v43 = vadd.f32 %v11617_v5, %v11616_v19  ;;  %v11619_v58 = vpop.f32.mrb[82].mxu1 }
 0xc38   :  { %v11620_v40 = vpop.f32.mrb[83].mxu1 }
 0xc39   :  { %v10800_v6 = vadd.f32 %v11618_v43, %v11419_v41 }
 0xc3b   :  { %10806 = vst.msk [vmem:[#allocation9] sm:$0x3] %vm10805_vm1, %v10800_v6 }
 0xc3c   :  { %12319 = shalt.err (!%p12316_p4)
}
 0xc3d   :  { %s12320_s14 = scalar_lea.hbm %s19885_s15, 32 }
 0xc3e   :  { %p12321_p5 = scmp.ne.s32.totalorder %s19885_s15, %s12320_s14  ;;  %p12324_p6 = scmp.lt.u32.totalorder %s12320_s14, %s19885_s15 }
 0xc40   :  { %p12326_p7 = pnand %p12324_p6, %p12321_p5 }
 0xc42   :  { %12329 = shalt.err (!%p12326_p7)
}
 0xc43   :  { %10816 = dma.vmem_to_hbm [thread:$0]  %s10814_s23, 32, %s19885_s15, [#allocation10]  }
 0xc44   :  { %12336 = dma.done.wait [#allocation10], 32  }
 0xc45   :  { %12337 = vsyncadd [#allocation10], 4294967264 }
 0xc46   :  { %10820 = vsyncpa [#allocation10], 1 }
 0xc47   :  { %10821 = vsyncmov [#allocation8] }
 0xc4a   :  { %s10822_s18 = vpop.sfrf %10821 }
 0xc4b   :  { %p11420_p8 = scmp.ne.s32.totalorder %s10822_s18, 0 }
 0xc4d   :  { %10826 = shalt.err (%p11420_p8)  }
 0xc4e   :  { %10828 = vsyncmov [#allocation8 + $0x1] }
 0xc51   :  { %s10829_s13 = vpop.sfrf %10828 }
 0xc52   :  { %p11421_p9 = scmp.ne.s32.totalorder %s10829_s13, 0 }
 0xc54   :  { %10833 = shalt.err (%p11421_p9)  }
 0xc55   :  { %10835 = vsyncmov [#allocation8 + $0x2] }
 0xc58   :  { %s10836_s19 = vpop.sfrf %10835 }
 0xc59   :  { %p11422_p10 = scmp.ne.s32.totalorder %s10836_s19, 0 }
 0xc5b   :  { %10840 = shalt.err (%p11422_p10)  }

</bundles_post_ra>
